<compile_context>
chip_gen: v6e
topology: v6e:2x2x1
jax: 0.10.0
libtpu: 0.0.40
codegen_flags: <defaults>
</compile_context>

<pallas_src>
import functools

import numpy as np
import jax
import jax.numpy as jnp
from jax.experimental import pallas as pl
from jax.experimental.pallas import tpu as pltpu


def _round_up(x: int, m: int) -> int:
    return (x + m - 1) // m * m


def _ac_predict_kernel(
    x_ref, w_cat_ref, t_all_ref, s_big_ref, w2_ref, b_out_ref,
    out_ref,
    *, lod: int, kp: int, hp: int,
):
    f32 = jnp.float32
    p2 = lod * lod
    x = x_ref[...]                                               # [TB, IN_W]

    # ---- ONE wide matmul on the shared LHS x -------------------------------
    #   cols: [ coeff-net logits (padded) | control hidden pre-act (padded) |
    #           row-replicated mu|ml|cu|cl|cs slabs ]
    # bc / b1 / -1e30 pad bias are folded into the ones-lane of x.
    zt = jnp.dot(x, w_cat_ref[...], preferred_element_type=f32)  # [TB, kp+hp+5*p2]

    logits = zt[:, :kp]                # padded cols carry -1e30 -> softmax weight 0
    logits = logits - jnp.max(logits, axis=-1, keepdims=True)
    e = jnp.exp(logits)
    coeff = e / jnp.sum(e, axis=-1, keepdims=True)               # [TB, kp]
    h = jnp.maximum(zt[:, kp:kp + hp], 0.0)                      # [TB, hp]

    base = kp + hp
    mu_t = zt[:, base + 0 * p2: base + 1 * p2]
    ml_t = zt[:, base + 1 * p2: base + 2 * p2]
    cu_t = zt[:, base + 2 * p2: base + 3 * p2]
    cl_t = zt[:, base + 3 * p2: base + 4 * p2]
    cs_t = zt[:, base + 4 * p2: base + 5 * p2]

    # ---- locally-linear transition model (+eye folded into t_all rows) -----
    tm = jnp.dot(coeff, t_all_ref[...], preferred_element_type=f32)   # [TB, 4*p2]
    tm11 = tm[:, 0 * p2:1 * p2]
    tm12 = tm[:, 1 * p2:2 * p2]
    tm21 = tm[:, 2 * p2:3 * p2]
    tm22 = tm[:, 3 * p2:4 * p2]

    # ---- accumulating segmented-sum dots straight into the packed output ----
    # No concatenate temp: each integrand feeds the MXU as soon as the VPU
    # produces it.  Output layout: [nmu|nml|ncu|ncl|ncs|pad] (lane-dense).
    acc = b_out_ref[...] + jnp.dot(h, w2_ref[...], preferred_element_type=f32)
    acc = acc + jnp.dot(tm11 * mu_t + tm12 * ml_t,
                        s_big_ref[0 * p2:1 * p2, :], preferred_element_type=f32)
    acc = acc + jnp.dot(tm21 * mu_t + tm22 * ml_t,
                        s_big_ref[1 * p2:2 * p2, :], preferred_element_type=f32)
    acc = acc + jnp.dot(tm11 * tm11 * cu_t + 2.0 * tm11 * tm12 * cs_t + tm12 * tm12 * cl_t,
                        s_big_ref[2 * p2:3 * p2, :], preferred_element_type=f32)
    acc = acc + jnp.dot(tm21 * tm21 * cu_t + 2.0 * tm21 * tm22 * cs_t + tm22 * tm22 * cl_t,
                        s_big_ref[3 * p2:4 * p2, :], preferred_element_type=f32)
    acc = acc + jnp.dot((tm21 * cu_t + tm22 * cs_t) * tm11 + (tm21 * cs_t + tm22 * cl_t) * tm12,
                        s_big_ref[4 * p2:5 * p2, :], preferred_element_type=f32)
    out_ref[...] = acc


def ac_predict_pallas(post_mean, cu, cl, cs, action, params, *, lod, block_b=128):
    B, lsd = post_mean.shape
    assert lsd == 2 * lod
    lad = action.shape[1]
    K = params["t11f"].shape[0]
    H = params["w1"].shape[1]
    p2 = lod * lod
    f32 = jnp.float32

    block_b = min(block_b, B)
    assert B % block_b == 0
    # block_b=128 is MXU-native on v5e and keeps grid >= 2 for B >= 256 so both
    # v7x TensorCores get work; on single-core v6e, block_b=256 fills the
    # 256x256 MXU better when B allows it.

    IN_W = _round_up(5 * lod + lad + 1, 128)   # packed input lanes (+1 ones-lane for biases)
    KP = _round_up(K, 128)                     # padded num_basis
    HP = _round_up(H, 128)                     # padded control hidden
    OUT_W = _round_up(5 * lod, 128)            # packed output lanes
    W_COLS = KP + HP + 5 * p2
    ones_lane = 5 * lod + lad

    # ---- static 0/1 selector constants --------------------------------------
    cols = np.arange(5 * p2)
    q, rem = cols // p2, cols % p2
    R_big = np.zeros((IN_W, 5 * p2), np.float32)
    R_big[q * lod + (rem % lod), cols] = 1.0          # replicate [mu|ml|cu|cl|cs] over row index i

    rows = np.arange(5 * p2)
    q, rem = rows // p2, rows % p2
    S_big = np.zeros((5 * p2, OUT_W), np.float32)
    S_big[rows, q * lod + (rem // lod)] = 1.0         # segmented sum over j -> packed output cols

    i_idx = np.arange(p2) // lod
    j_idx = np.arange(p2) % lod
    eye_flat = (i_idx == j_idx).astype(np.float32)

    # ---- fused first-layer + replication weight slab (biases in ones-lane) ---
    w_cat = jnp.zeros((IN_W, W_COLS), f32)
    w_cat = w_cat.at[0:lsd, 0:K].set(params["wc"])
    w_cat = w_cat.at[ones_lane, 0:K].set(params["bc"][0])
    w_cat = w_cat.at[ones_lane, K:KP].set(-1e30)      # kill padded softmax logits exactly (f32 path)
    w_cat = w_cat.at[5 * lod:5 * lod + lad, KP:KP + H].set(params["w1"])
    w_cat = w_cat.at[ones_lane, KP:KP + H].set(params["b1"][0])
    w_cat = w_cat.at[:, KP + HP:].set(jnp.asarray(R_big))

    # transition bases with "+ eye" folded in (softmax coefficients sum to 1)
    t_cat = jnp.concatenate(
        [params["t11f"] + eye_flat[None], params["t12f"],
         params["t21f"], params["t22f"] + eye_flat[None]], axis=1)
    t_all = jnp.zeros((KP, 4 * p2), f32).at[0:K, :].set(t_cat)

    w2_pad = jnp.zeros((HP, OUT_W), f32).at[0:H, 0:lsd].set(params["w2"])

    ln = params["ln"]
    tc = jnp.where(ln < 0.0, jnp.exp(ln), ln + 1.0)   # elup1, hoisted out of the grid
    b_out = jnp.zeros((1, OUT_W), f32)
    b_out = b_out.at[0, 0:lsd].set(params["b2"][0])
    b_out = b_out.at[0, lsd:lsd + lod].set(tc[0, :lod])
    b_out = b_out.at[0, lsd + lod:lsd + 2 * lod].set(tc[0, lod:])

    # ---- pack per-batch data into one lane-dense slab (+ ones-lane) ----------
    ones_col = jnp.ones((B, 1), f32)
    pad = jnp.zeros((B, IN_W - (5 * lod + lad + 1)), f32)
    x = jnp.concatenate([post_mean, cu, cl, cs, action, ones_col, pad], axis=-1)  # [B, IN_W]

    data_spec = pl.BlockSpec((block_b, IN_W), lambda i: (i, 0))
    full = lambda shape: pl.BlockSpec(shape, lambda i: (0, 0))

    kernel = functools.partial(_ac_predict_kernel, lod=lod, kp=KP, hp=HP)
    out = pl.pallas_call(
        kernel,
        grid=(B // block_b,),
        in_specs=[
            data_spec,
            full((IN_W, W_COLS)),
            full((KP, 4 * p2)),
            full((5 * p2, OUT_W)),
            full((HP, OUT_W)),
            full((1, OUT_W)),
        ],
        out_specs=pl.BlockSpec((block_b, OUT_W), lambda i: (i, 0)),
        out_shape=jax.ShapeDtypeStruct((B, OUT_W), f32),
        compiler_params=pltpu.CompilerParams(
            dimension_semantics=("parallel",),
            vmem_limit_bytes=32 * 1024 * 1024,
        ),
    )(x, w_cat, t_all, jnp.asarray(S_big), w2_pad, b_out)

    mean = out[:, 0:lsd]
    ncu_o = out[:, lsd:lsd + lod]
    ncl_o = out[:, lsd + lod:lsd + 2 * lod]
    ncs_o = out[:, lsd + 2 * lod:lsd + 3 * lod]
    return mean, (ncu_o, ncl_o, ncs_o)


def ac_predict_ref(post_mean, cu, cl, cs, action, raw, band_mask, *, lod):
    """Pure-JAX reference mirroring the PyTorch forward."""
    coeff = jax.nn.softmax(post_mean @ raw["wc"] + raw["bc"], axis=-1)
    c = coeff[:, :, None, None]
    eye = jnp.eye(lod, dtype=post_mean.dtype)
    tm11 = (c * raw["t11"][None]).sum(1) * band_mask + eye
    tm12 = (c * raw["t12"][None]).sum(1) * band_mask
    tm21 = (c * raw["t21"][None]).sum(1) * band_mask
    tm22 = (c * raw["t22"][None]).sum(1) * band_mask + eye
    ln = raw["ln"]
    tc = jnp.where(ln < 0.0, jnp.exp(ln), ln + 1.0)
    tcu, tcl = tc[:, :lod], tc[:, lod:]
    mu, ml = post_mean[:, :lod], post_mean[:, lod:]
    bmv = lambda m, v: jnp.sum(m * v[:, None, :], axis=-1)
    dadat = lambda a, d: bmv(a * a, d)
    dadbt = lambda a, d, b: bmv(a * b, d)
    nmu = bmv(tm11, mu) + bmv(tm12, ml)
    nml = bmv(tm21, mu) + bmv(tm22, ml)
    ncu = dadat(tm11, cu) + 2.0 * dadbt(tm11, cs, tm12) + dadat(tm12, cl) + tcu
    ncl = dadat(tm21, cu) + 2.0 * dadbt(tm21, cs, tm22) + dadat(tm22, cl) + tcl
    ncs = (dadbt(tm21, cu, tm11) + dadbt(tm22, cs, tm11)
           + dadbt(tm21, cs, tm12) + dadbt(tm22, cl, tm12))
    h = jax.nn.relu(action @ raw["w1"] + raw["b1"])
    cf = h @ raw["w2"] + raw["b2"]
    return jnp.concatenate([nmu, nml], axis=-1) + cf, (ncu, ncl, ncs)


if __name__ == "__main__":
    LOD, LAD, K, H, BW = 16, 4, 15, 60, 3   # latent obs dim, act dim, num_basis, control hidden, bandwidth
    LSD = 2 * LOD
    B, TB = 256, 128                        # grid of 2 parallel steps -> both v7x TensorCores busy

    key = jax.random.PRNGKey(0)
    ks = jax.random.split(key, 16)
    normal = lambda k, shape, s=1.0: s * jax.random.normal(k, shape, dtype=jnp.float32)

    eye = jnp.eye(LOD, dtype=jnp.float32)
    raw = {
        "wc": normal(ks[0], (LSD, K), 1.0 / np.sqrt(LSD)),
        "bc": normal(ks[1], (1, K), 0.1),
        "w1": normal(ks[2], (LAD, H), 1.0 / np.sqrt(LAD)),
        "b1": normal(ks[3], (1, H), 0.1),
        "w2": normal(ks[4], (H, LSD), 1.0 / np.sqrt(H)),
        "b2": normal(ks[5], (1, LSD), 0.1),
        "t11": normal(ks[6], (K, LOD, LOD), 0.05),
        "t12": 0.2 * eye[None] + normal(ks[7], (K, LOD, LOD), 0.05),
        "t21": -0.2 * eye[None] + normal(ks[8], (K, LOD, LOD), 0.05),
        "t22": normal(ks[9], (K, LOD, LOD), 0.05),
        "ln": normal(ks[10], (1, LSD), 0.3),   # log transition noise (exercises both elup1 branches)
    }

    band = (np.triu(np.ones((LOD, LOD), np.float32), -BW)
            * np.tril(np.ones((LOD, LOD), np.float32), BW))
    band_mask = jnp.asarray(band)

    params = dict(
        wc=raw["wc"], bc=raw["bc"], w1=raw["w1"], b1=raw["b1"], w2=raw["w2"], b2=raw["b2"],
        ln=raw["ln"],
        t11f=(raw["t11"] * band_mask[None]).reshape(K, LOD * LOD),
        t12f=(raw["t12"] * band_mask[None]).reshape(K, LOD * LOD),
        t21f=(raw["t21"] * band_mask[None]).reshape(K, LOD * LOD),
        t22f=(raw["t22"] * band_mask[None]).reshape(K, LOD * LOD),
    )

    post_mean = normal(ks[11], (B, LSD))
    cu = jnp.abs(normal(ks[12], (B, LOD))) + 0.1
    cl = jnp.abs(normal(ks[13], (B, LOD))) + 0.1
    cs = normal(ks[14], (B, LOD), 0.1)
    action = normal(ks[15], (B, LAD))

    mean, (ncu, ncl, ncs) = ac_predict_pallas(post_mean, cu, cl, cs, action, params,
                                              lod=LOD, block_b=TB)
    jax.block_until_ready((mean, ncu, ncl, ncs))

    with jax.default_matmul_precision("highest"):
        mean_r, (ncu_r, ncl_r, ncs_r) = ac_predict_ref(post_mean, cu, cl, cs, action,
                                                       raw, band_mask, lod=LOD)
    np.testing.assert_allclose(np.asarray(mean), np.asarray(mean_r), rtol=1e-3, atol=1e-3)
    np.testing.assert_allclose(np.asarray(ncu), np.asarray(ncu_r), rtol=1e-3, atol=1e-3)
    np.testing.assert_allclose(np.asarray(ncl), np.asarray(ncl_r), rtol=1e-3, atol=1e-3)
    np.testing.assert_allclose(np.asarray(ncs), np.asarray(ncs_r), rtol=1e-3, atol=1e-3)

    print("KERNEL_OK")
</pallas_src>

<mosaic_0001>
module attributes {stable_mosaic.version = 11 : i64} {
  func.func @_ac_predict_kernel(%arg0: i32, %arg1: memref<128x128xf32, #tpu.memory_space<vmem>>, %arg2: memref<128x1536xf32, #tpu.memory_space<vmem>>, %arg3: memref<128x1024xf32, #tpu.memory_space<vmem>>, %arg4: memref<1280x128xf32, #tpu.memory_space<vmem>>, %arg5: memref<128x128xf32, #tpu.memory_space<vmem>>, %arg6: memref<1x128xf32, #tpu.memory_space<vmem>>, %arg7: memref<128x128xf32, #tpu.memory_space<vmem>>) attributes {dimension_semantics = [#tpu.dimension_semantics<parallel>], iteration_bounds = array<i64: 2>, scalar_prefetch = 0 : i64, scratch_operands = 0 : i64, tpu.core_type = #tpu.core_type<tc>, window_params = [{transform_indices = @transform_0, window_bounds = array<i64: 128, 128>}, {pipeline_mode = #tpu.pipeline_mode<synchronous>, transform_indices = @transform_1, window_bounds = array<i64: 128, 1536>}, {pipeline_mode = #tpu.pipeline_mode<synchronous>, transform_indices = @transform_2, window_bounds = array<i64: 128, 1024>}, {pipeline_mode = #tpu.pipeline_mode<synchronous>, transform_indices = @transform_3, window_bounds = array<i64: 1280, 128>}, {pipeline_mode = #tpu.pipeline_mode<synchronous>, transform_indices = @transform_4, window_bounds = array<i64: 128, 128>}, {pipeline_mode = #tpu.pipeline_mode<synchronous>, transform_indices = @transform_5, window_bounds = array<i64: 1, 128>}, {transform_indices = @transform_6, window_bounds = array<i64: 128, 128>}]} {
    %c0 = arith.constant 0 : index
    %c0_0 = arith.constant 0 : index
    %0 = vector.load %arg1[%c0, %c0_0] : memref<128x128xf32, #tpu.memory_space<vmem>>, vector<128x128xf32>
    %c0_1 = arith.constant 0 : index
    %c0_2 = arith.constant 0 : index
    %1 = vector.load %arg2[%c0_1, %c0_2] : memref<128x1536xf32, #tpu.memory_space<vmem>>, vector<128x1536xf32>
    %cst = arith.constant dense<0.000000e+00> : vector<128x1536xf32>
    %2 = tpu.matmul %0, %1, %cst {dimension_numbers = #tpu.dot_dimension_numbers<[1], [0], [0], [1], [0, 0, 1, 1], [], []>} : vector<128x128xf32>, vector<128x1536xf32>, vector<128x1536xf32> -> vector<128x1536xf32>
    %3 = vector.extract_strided_slice %2 {offsets = [0, 0], sizes = [128, 128], strides = [1, 1]} : vector<128x1536xf32> to vector<128x128xf32>
    %cst_3 = arith.constant dense<0xFF800000> : vector<128xf32>
    %4 = vector.multi_reduction <maximumf>, %3, %cst_3 [1] : vector<128x128xf32> to vector<128xf32>
    %5 = vector.shape_cast %4 : vector<128xf32> to vector<128x1xf32>
    %6 = vector.broadcast %5 : vector<128x1xf32> to vector<128x128xf32>
    %7 = arith.subf %3, %6 : vector<128x128xf32>
    %8 = math.exp %7 : vector<128x128xf32>
    %cst_4 = arith.constant dense<0.000000e+00> : vector<128xf32>
    %9 = vector.multi_reduction <add>, %8, %cst_4 [1] : vector<128x128xf32> to vector<128xf32>
    %10 = vector.shape_cast %9 : vector<128xf32> to vector<128x1xf32>
    %11 = vector.broadcast %10 : vector<128x1xf32> to vector<128x128xf32>
    %12 = arith.divf %8, %11 : vector<128x128xf32>
    %13 = vector.extract_strided_slice %2 {offsets = [0, 128], sizes = [128, 128], strides = [1, 1]} : vector<128x1536xf32> to vector<128x128xf32>
    %cst_5 = arith.constant 0.000000e+00 : f32
    %14 = vector.broadcast %cst_5 : f32 to vector<128x128xf32>
    %15 = arith.maximumf %13, %14 : vector<128x128xf32>
    %16 = vector.extract_strided_slice %2 {offsets = [0, 256], sizes = [128, 256], strides = [1, 1]} : vector<128x1536xf32> to vector<128x256xf32>
    %17 = vector.extract_strided_slice %2 {offsets = [0, 512], sizes = [128, 256], strides = [1, 1]} : vector<128x1536xf32> to vector<128x256xf32>
    %18 = vector.extract_strided_slice %2 {offsets = [0, 768], sizes = [128, 256], strides = [1, 1]} : vector<128x1536xf32> to vector<128x256xf32>
    %19 = vector.extract_strided_slice %2 {offsets = [0, 1024], sizes = [128, 256], strides = [1, 1]} : vector<128x1536xf32> to vector<128x256xf32>
    %20 = vector.extract_strided_slice %2 {offsets = [0, 1280], sizes = [128, 256], strides = [1, 1]} : vector<128x1536xf32> to vector<128x256xf32>
    %c0_6 = arith.constant 0 : index
    %c0_7 = arith.constant 0 : index
    %21 = vector.load %arg3[%c0_6, %c0_7] : memref<128x1024xf32, #tpu.memory_space<vmem>>, vector<128x1024xf32>
    %cst_8 = arith.constant dense<0.000000e+00> : vector<128x1024xf32>
    %22 = tpu.matmul %12, %21, %cst_8 {dimension_numbers = #tpu.dot_dimension_numbers<[1], [0], [0], [1], [0, 0, 1, 1], [], []>} : vector<128x128xf32>, vector<128x1024xf32>, vector<128x1024xf32> -> vector<128x1024xf32>
    %23 = vector.extract_strided_slice %22 {offsets = [0, 0], sizes = [128, 256], strides = [1, 1]} : vector<128x1024xf32> to vector<128x256xf32>
    %24 = vector.extract_strided_slice %22 {offsets = [0, 256], sizes = [128, 256], strides = [1, 1]} : vector<128x1024xf32> to vector<128x256xf32>
    %25 = vector.extract_strided_slice %22 {offsets = [0, 512], sizes = [128, 256], strides = [1, 1]} : vector<128x1024xf32> to vector<128x256xf32>
    %26 = vector.extract_strided_slice %22 {offsets = [0, 768], sizes = [128, 256], strides = [1, 1]} : vector<128x1024xf32> to vector<128x256xf32>
    %c0_9 = arith.constant 0 : index
    %c0_10 = arith.constant 0 : index
    %27 = vector.load %arg6[%c0_9, %c0_10] : memref<1x128xf32, #tpu.memory_space<vmem>>, vector<1x128xf32>
    %c0_11 = arith.constant 0 : index
    %c0_12 = arith.constant 0 : index
    %28 = vector.load %arg5[%c0_11, %c0_12] : memref<128x128xf32, #tpu.memory_space<vmem>>, vector<128x128xf32>
    %cst_13 = arith.constant dense<0.000000e+00> : vector<128x128xf32>
    %29 = tpu.matmul %15, %28, %cst_13 {dimension_numbers = #tpu.dot_dimension_numbers<[1], [0], [0], [1], [0, 0, 1, 1], [], []>} : vector<128x128xf32>, vector<128x128xf32>, vector<128x128xf32> -> vector<128x128xf32>
    %30 = vector.broadcast %27 : vector<1x128xf32> to vector<128x128xf32>
    %31 = arith.addf %30, %29 : vector<128x128xf32>
    %32 = arith.mulf %23, %16 : vector<128x256xf32>
    %33 = arith.mulf %24, %17 : vector<128x256xf32>
    %34 = arith.addf %32, %33 : vector<128x256xf32>
    %c0_14 = arith.constant 0 : index
    %c0_15 = arith.constant 0 : index
    %35 = vector.load %arg4[%c0_14, %c0_15] : memref<1280x128xf32, #tpu.memory_space<vmem>>, vector<256x128xf32>
    %cst_16 = arith.constant dense<0.000000e+00> : vector<128x128xf32>
    %36 = tpu.matmul %34, %35, %cst_16 {dimension_numbers = #tpu.dot_dimension_numbers<[1], [0], [0], [1], [0, 0, 1, 1], [], []>} : vector<128x256xf32>, vector<256x128xf32>, vector<128x128xf32> -> vector<128x128xf32>
    %37 = arith.addf %31, %36 : vector<128x128xf32>
    %38 = arith.mulf %25, %16 : vector<128x256xf32>
    %39 = arith.mulf %26, %17 : vector<128x256xf32>
    %40 = arith.addf %38, %39 : vector<128x256xf32>
    %c256 = arith.constant 256 : index
    %c0_17 = arith.constant 0 : index
    %41 = vector.load %arg4[%c256, %c0_17] : memref<1280x128xf32, #tpu.memory_space<vmem>>, vector<256x128xf32>
    %cst_18 = arith.constant dense<0.000000e+00> : vector<128x128xf32>
    %42 = tpu.matmul %40, %41, %cst_18 {dimension_numbers = #tpu.dot_dimension_numbers<[1], [0], [0], [1], [0, 0, 1, 1], [], []>} : vector<128x256xf32>, vector<256x128xf32>, vector<128x128xf32> -> vector<128x128xf32>
    %43 = arith.addf %37, %42 : vector<128x128xf32>
    %44 = arith.mulf %23, %23 : vector<128x256xf32>
    %45 = arith.mulf %44, %18 : vector<128x256xf32>
    %cst_19 = arith.constant 2.000000e+00 : f32
    %46 = vector.broadcast %cst_19 : f32 to vector<128x256xf32>
    %47 = arith.mulf %46, %23 : vector<128x256xf32>
    %48 = arith.mulf %47, %24 : vector<128x256xf32>
    %49 = arith.mulf %48, %20 : vector<128x256xf32>
    %50 = arith.addf %45, %49 : vector<128x256xf32>
    %51 = arith.mulf %24, %24 : vector<128x256xf32>
    %52 = arith.mulf %51, %19 : vector<128x256xf32>
    %53 = arith.addf %50, %52 : vector<128x256xf32>
    %c512 = arith.constant 512 : index
    %c0_20 = arith.constant 0 : index
    %54 = vector.load %arg4[%c512, %c0_20] : memref<1280x128xf32, #tpu.memory_space<vmem>>, vector<256x128xf32>
    %cst_21 = arith.constant dense<0.000000e+00> : vector<128x128xf32>
    %55 = tpu.matmul %53, %54, %cst_21 {dimension_numbers = #tpu.dot_dimension_numbers<[1], [0], [0], [1], [0, 0, 1, 1], [], []>} : vector<128x256xf32>, vector<256x128xf32>, vector<128x128xf32> -> vector<128x128xf32>
    %56 = arith.addf %43, %55 : vector<128x128xf32>
    %57 = arith.mulf %25, %25 : vector<128x256xf32>
    %58 = arith.mulf %57, %18 : vector<128x256xf32>
    %cst_22 = arith.constant 2.000000e+00 : f32
    %59 = vector.broadcast %cst_22 : f32 to vector<128x256xf32>
    %60 = arith.mulf %59, %25 : vector<128x256xf32>
    %61 = arith.mulf %60, %26 : vector<128x256xf32>
    %62 = arith.mulf %61, %20 : vector<128x256xf32>
    %63 = arith.addf %58, %62 : vector<128x256xf32>
    %64 = arith.mulf %26, %26 : vector<128x256xf32>
    %65 = arith.mulf %64, %19 : vector<128x256xf32>
    %66 = arith.addf %63, %65 : vector<128x256xf32>
    %c768 = arith.constant 768 : index
    %c0_23 = arith.constant 0 : index
    %67 = vector.load %arg4[%c768, %c0_23] : memref<1280x128xf32, #tpu.memory_space<vmem>>, vector<256x128xf32>
    %cst_24 = arith.constant dense<0.000000e+00> : vector<128x128xf32>
    %68 = tpu.matmul %66, %67, %cst_24 {dimension_numbers = #tpu.dot_dimension_numbers<[1], [0], [0], [1], [0, 0, 1, 1], [], []>} : vector<128x256xf32>, vector<256x128xf32>, vector<128x128xf32> -> vector<128x128xf32>
    %69 = arith.addf %56, %68 : vector<128x128xf32>
    %70 = arith.mulf %25, %18 : vector<128x256xf32>
    %71 = arith.mulf %26, %20 : vector<128x256xf32>
    %72 = arith.addf %70, %71 : vector<128x256xf32>
    %73 = arith.mulf %72, %23 : vector<128x256xf32>
    %74 = arith.mulf %25, %20 : vector<128x256xf32>
    %75 = arith.mulf %26, %19 : vector<128x256xf32>
    %76 = arith.addf %74, %75 : vector<128x256xf32>
    %77 = arith.mulf %76, %24 : vector<128x256xf32>
    %78 = arith.addf %73, %77 : vector<128x256xf32>
    %c1024 = arith.constant 1024 : index
    %c0_25 = arith.constant 0 : index
    %79 = vector.load %arg4[%c1024, %c0_25] : memref<1280x128xf32, #tpu.memory_space<vmem>>, vector<256x128xf32>
    %cst_26 = arith.constant dense<0.000000e+00> : vector<128x128xf32>
    %80 = tpu.matmul %78, %79, %cst_26 {dimension_numbers = #tpu.dot_dimension_numbers<[1], [0], [0], [1], [0, 0, 1, 1], [], []>} : vector<128x256xf32>, vector<256x128xf32>, vector<128x128xf32> -> vector<128x128xf32>
    %81 = arith.addf %69, %80 : vector<128x128xf32>
    %c0_27 = arith.constant 0 : index
    %c0_28 = arith.constant 0 : index
    %82 = vector.load %arg7[%c0_27, %c0_28] : memref<128x128xf32, #tpu.memory_space<vmem>>, vector<128x128xf32>
    tpu.vector_store %arg7[%c0_27, %c0_28], %81 {strides = array<i32>} : memref<128x128xf32, #tpu.memory_space<vmem>>, vector<128x128xf32>,
    return
  }
  func.func @transform_0(%arg0: i32) -> (i32, i32) {
    %c0_i32 = arith.constant 0 : i32
    %c0_i32_0 = arith.constant 0 : i32
    return %arg0, %c0_i32 : i32, i32
  }
  func.func @transform_1(%arg0: i32) -> (i32, i32) {
    %c0_i32 = arith.constant 0 : i32
    %c0_i32_0 = arith.constant 0 : i32
    %c0_i32_1 = arith.constant 0 : i32
    return %c0_i32, %c0_i32_0 : i32, i32
  }
  func.func @transform_2(%arg0: i32) -> (i32, i32) {
    %c0_i32 = arith.constant 0 : i32
    %c0_i32_0 = arith.constant 0 : i32
    %c0_i32_1 = arith.constant 0 : i32
    return %c0_i32, %c0_i32_0 : i32, i32
  }
  func.func @transform_3(%arg0: i32) -> (i32, i32) {
    %c0_i32 = arith.constant 0 : i32
    %c0_i32_0 = arith.constant 0 : i32
    %c0_i32_1 = arith.constant 0 : i32
    return %c0_i32, %c0_i32_0 : i32, i32
  }
  func.func @transform_4(%arg0: i32) -> (i32, i32) {
    %c0_i32 = arith.constant 0 : i32
    %c0_i32_0 = arith.constant 0 : i32
    %c0_i32_1 = arith.constant 0 : i32
    return %c0_i32, %c0_i32_0 : i32, i32
  }
  func.func @transform_5(%arg0: i32) -> (i32, i32) {
    %c0_i32 = arith.constant 0 : i32
    %c0_i32_0 = arith.constant 0 : i32
    %c0_i32_1 = arith.constant 0 : i32
    return %c0_i32, %c0_i32_0 : i32, i32
  }
  func.func @transform_6(%arg0: i32) -> (i32, i32) {
    %c0_i32 = arith.constant 0 : i32
    %c0_i32_0 = arith.constant 0 : i32
    return %arg0, %c0_i32 : i32, i32
  }
}

</mosaic_0001>

<bundles_post_ra>
// kernel: tpu_custom_call.1
= control target key start
LH: loop header
LB: loop body
LE: loop exit
PB: predicated region body
PF: predicated region fallthrough
CT: control target
= control target key end

     0   :  { %11 = vsyncpa [#allocation3], 0  ;;  %s9169_s0 = inlined_call_operand.hbm [shape: f32[256,128], index: 0, kind: input, shape index: {}]   ;;  %s9170_s1 = inlined_call_operand.hbm [shape: f32[128,1536], index: 1, kind: input, shape index: {}]   ;;  %s9171_s2 = inlined_call_operand.hbm [shape: f32[128,1024], index: 2, kind: input, shape index: {}]   ;;  %s9172_s3 = inlined_call_operand.hbm [shape: f32[1280,128], index: 3, kind: input, shape index: {}]   ;;  %s9173_s4 = inlined_call_operand.hbm [shape: f32[128,128], index: 4, kind: input, shape index: {}]   ;;  %s9174_s5 = inlined_call_operand.vmem [shape: f32[1,128], index: 5, kind: input, shape index: {}]   ;;  %s9175_s6 = inlined_call_operand.hbm [shape: f32[256,128], index: 6, kind: output, shape index: {}]  }
   0x1   :  { %13 = vsyncpa [#allocation3 + $0x1], 0 }
   0x2   :  { %14 = vsyncpa [#allocation6], 0 }
   0x3   :  { %15 = vsyncpa [#allocation9], 0 }
   0x4   :  { %16 = vsyncpa [#allocation4], 0 }
   0x5   :  { %18 = vsyncpa [#allocation4 + $0x1], 0  ;;  %s5792_s21 = smov 0   ;;  %s5794_s22 = smov 0  }
   0x6   :  { %s5796_s23 = smov 0   ;;  %s5798_s24 = smov 0  }
   0x7 LB: > { %s5813_s25 = sadd.s32 4294967295, %s5740_s24   ;;  %s4782_s26 = sadd.s32 4294967294, %s5740_s24   ;;  %s5740_s24 = sphi %s5798_s24, %s10519_s24   ;;  %s5736_s23 = sphi %s5796_s23, %s10518_s23   ;;  %s5732_s22 = sphi %s5794_s22, %s10517_s22   ;;  %s5728_s21 = sphi %s5792_s21, %s10516_s21  }
   0x8   : > { %p44_p0 = scmp.ne.s32.totalorder %s5732_s22, %s5728_s21  ;;  %p9176_p1 = scmp.eq.s32.totalorder %s5813_s25, 0 }
   0x9   : > { %p179_p3 = scmp.eq.s32.totalorder %s4782_s26, 1  ;;  %p4783_p5 = scmp.ge.s32.totalorder %s5740_s24, 1 }
   0xa   : > { %p5822_p4 = por %p9176_p1, %p44_p0  ;;  %p186_p7 = scmp.lt.s32.totalorder %s5740_s24, 3 }
   0xb   : > { %p5827_p6 = por %p179_p3, %p44_p0  ;;  %s5742_s30 = smov [#allocation5]  }
   0xc   : > { %s9467_s27 = scalar_select %p5822_p4, 1, 0 }
   0xd   : > { %s9468_s28 = scalar_select %p5827_p6, 1, 0 }
   0xe   : > { %p5832_p8 = pnand %p4783_p5, %p186_p7  ;;  %s198_s7 = sshll.u32 %s5742_s30, 4  ;;  %s199_s7 = int_to_ptr.vmem [resolvable:$true] %s198_s7 }
   0xf   : > { %s5743_s9 = smov [#allocation8]   ;;  %s5547_s11 = scalar_lea.vmem %s199_s7, 24576 }
  0x10   : > { %s9469_s29 = scalar_select %p5832_p8, 1, 0 }
  0x11   : > { %p5347_p9 = pneg %p5832_p8  ;;  %s224_s10 = sshll.u32 %s5743_s9, 4  ;;  %s225_s10 = int_to_ptr.vmem [resolvable:$true] %s224_s10 }
  0x12   : > { %p5548_p13 = scmp.ne.s32.totalorder %s199_s7, %s5547_s11  ;;  %p5555_p5 = scmp.lt.s32.totalorder %s199_s7, %s199_s7 }
  0x13   : > { %p5841_p11 = pnand %p5347_p9, %p9176_p1  ;;  %p5556_p7 = scmp.lt.s32.totalorder %s5547_s11, %s5547_s11 }
  0x15   : > { %p5538_p12 = pneg %p5841_p11  ;;  %p5557_p10 = por %p5556_p7, %p5555_p5 }
  0x17   : > { %p5550_p0 = pnand %p5548_p13, %p5538_p12 }
  0x19   : > { %p5551_p3 = pneg %p5550_p0 }
  0x1b   : > { %p5558_p9 = pnand %p5557_p10, %p5551_p3 }
  0x1d   : > { %5561 = shalt.err (!%p5558_p9)
}
  0x1e   : > { %s5744_s12 = smov 1536   ;;  %s5745_s13 = smov 96  }
  0x1f   : > { %5350 = dma.hbm_to_vmem [thread:$0]  (!%p5841_p11), %s9170_s1, 24576, %s199_s7, [#allocation6], %s5744_s12, %s5744_s12, %s5745_s13  }
  0x20   : > { %s5573_s16 = scalar_lea.vmem %s225_s10, 20480  ;;  %p5581_p2 = scmp.lt.s32.totalorder %s225_s10, %s225_s10 }
  0x21   : > { %p5574_p1 = scmp.ne.s32.totalorder %s225_s10, %s5573_s16  ;;  %p5582_p6 = scmp.lt.s32.totalorder %s5573_s16, %s5573_s16 }
  0x23   : > { %p5576_p13 = pnand %p5574_p1, %p5538_p12  ;;  %p5583_p5 = por %p5582_p6, %p5581_p2 }
  0x25   : > { %p5577_p0 = pneg %p5576_p13 }
  0x27   : > { %p5584_p10 = pnand %p5583_p5, %p5577_p0 }
  0x29   : > { %5587 = shalt.err (!%p5584_p10)
}
  0x2a   : > { %s9177_s17 = smov 128   ;;  %s9178_s18 = smov 8  }
  0x2b   : > { %5356 = dma.hbm_to_vmem [thread:$0]  (!%p5841_p11), %s9172_s3, 20480, %s225_s10, [#allocation9], %s9177_s17, %s9177_s17, %s9178_s18  }
  0x2c   : > { %s5748_s26 = smov [#allocation7]  }
  0x2d   : > { %s211_s30 = sshll.u32 %s5748_s26, 4  ;;  %s212_s30 = int_to_ptr.vmem [resolvable:$true] %s211_s30 }
  0x2e   : > { %s5599_s7 = scalar_lea.vmem %s212_s30, 16384  ;;  %p5607_p3 = scmp.lt.s32.totalorder %s212_s30, %s212_s30 }
  0x2f   : > { %p5600_p1 = scmp.ne.s32.totalorder %s212_s30, %s5599_s7  ;;  %p5608_p7 = scmp.lt.s32.totalorder %s5599_s7, %s5599_s7 }
  0x31   : > { %p5602_p2 = pnand %p5600_p1, %p5538_p12  ;;  %p5609_p9 = por %p5608_p7, %p5607_p3 }
  0x33   : > { %p5603_p6 = pneg %p5602_p2 }
  0x35   : > { %p5610_p13 = pnand %p5609_p9, %p5603_p6 }
  0x37   : > { %5613 = shalt.err (!%p5610_p13)
}
  0x38   : > { %s5749_s9 = smov 1024   ;;  %s5750_s11 = smov 64  }
  0x39   : > { %5353 = dma.hbm_to_vmem [thread:$0]  (!%p5841_p11), %s9171_s2, 16384, %s212_s30, [#allocation6], %s5749_s9, %s5749_s9, %s5750_s11  }
  0x3a   : > { %s5751_s13 = smov [#allocation10]  }
  0x3b   : > { %s237_s14 = sshll.u32 %s5751_s13, 4  ;;  %s238_s14 = int_to_ptr.vmem [resolvable:$true] %s237_s14 }
  0x3c   : > { %s5625_s15 = scalar_lea.vmem %s238_s14, 2048  ;;  %p5633_p1 = scmp.lt.s32.totalorder %s238_s14, %s238_s14 }
  0x3d   : > { %p5626_p0 = scmp.ne.s32.totalorder %s238_s14, %s5625_s15  ;;  %p5634_p2 = scmp.lt.s32.totalorder %s5625_s15, %s5625_s15 }
  0x3f   : > { %p5628_p5 = pnand %p5626_p0, %p5538_p12  ;;  %p5635_p6 = por %p5634_p2, %p5633_p1 }
  0x41   : > { %p5629_p10 = pneg %p5628_p5 }
  0x43   : > { %p5636_p3 = pnand %p5635_p6, %p5629_p10 }
  0x45   : > { %5639 = shalt.err (!%p5636_p3)
}
  0x46   : > { %5359 = dma.hbm_to_vmem [thread:$0]  (!%p5841_p11), %s9173_s4, 2048, %s238_s14, [#allocation9], %s9177_s17, %s9177_s17, %s9178_s18  }
  0x47   : > { %s5886_s20 = sadd.s32 1, %s5740_s24   ;;  %s31_s8 = sadd.s32 1, %s5736_s23 }
  0x48   : > { %s28_s26 = ssub.s32 %s5740_s24, %s5886_s20  ;;  %p38_p12 = scmp.ne.s32.totalorder %s5736_s23, %s5732_s22 }
  0x49   : > { %p29_p7 = scmp.eq.s32.totalorder %s28_s26, 0  ;;  %p39_p9 = scmp.eq.s32.totalorder %s5740_s24, 0 }
  0x4a   : > { %p9471_p13 = scmp.eq.s32.totalorder %s5813_s25, 1  ;;  %p5372_p5 = scmp.lt.s32.totalorder %s5740_s24, 2 }
  0x4b   : > { %s5902_s7 = scalar_select %p29_p7, %s5736_s23, %s31_s8  }
  0x4c   : > { %p5896_p0 = por %p9471_p13, %p38_p12  ;;  %p40_p10 = por %p39_p9, %p38_p12 }
  0x4d   : > { %s254_s9 = sand.u32 1, %s5736_s23   ;;  %s4805_s10 = sshll.u32 %s5740_s24, 11 }
  0x4e   : > { %s9472_s30 = scalar_select %p5896_p0, 1, 0 }
  0x4f   : > { %s4789_s11 = sshll.u32 %s254_s9, 7  ;;  %s5909_s14 = scalar_lea.hbm %s9169_s0, %s4805_s10 }
  0x50   : > { %s258_s15 = scalar_lea.vmem [#allocation2], %s4789_s11  ;;  %p5913_p11 = pnand %p5372_p5, %p40_p10 }
  0x51   : > { %s265_s16 = sshll.u32 %s258_s15, 4  ;;  %s5917_s8 = scalar_lea.sflag [#allocation3], %s254_s9  ;;  %s5911_s16 = int_to_ptr.vmem [resolvable:$true] %s265_s16 }
  0x52   : > { %s5640_s26 = scalar_lea.hbm %s5909_s14, 2048  ;;  %p5642_p2 = pneg %p5913_p11 }
  0x53   : > { %p5641_p1 = scmp.ne.s32.totalorder %s5909_s14, %s5640_s26  ;;  %s5645_s11 = scalar_lea.hbm %s9169_s0, 4096 }
  0x54   : > { %p5646_p12 = scmp.lt.s32.totalorder %s5909_s14, %s9169_s0  ;;  %p5647_p7 = scmp.lt.s32.totalorder %s5645_s11, %s5640_s26 }
  0x55   : > { %p5643_p6 = pnand %p5642_p2, %p5641_p1 }
  0x56   : > { %p5648_p9 = por %p5647_p7, %p5646_p12 }
  0x57   : > { %p5644_p3 = pneg %p5643_p6 }
  0x59   : > { %p5649_p13 = pnand %p5648_p9, %p5644_p3 }
  0x5b   : > { %5652 = shalt.err (!%p5649_p13)
}
  0x5c   : > { %s5653_s9 = scalar_lea.vmem %s5911_s16, 2048  ;;  %s5752_s17 = smov [#allocation2]  }
  0x5d   : > { %p5654_p5 = scmp.ne.s32.totalorder %s5911_s16, %s5653_s9  ;;  %s5658_s18 = sshll.u32 %s5752_s17, 4  ;;  %s5659_s18 = int_to_ptr.vmem [resolvable:$false] %s5658_s18 }
  0x5e   : > { %s5660_s10 = scalar_lea.vmem %s5659_s18, 4096  ;;  %p5661_p6 = scmp.lt.s32.totalorder %s5911_s16, %s5659_s18 }
  0x5f   : > { %p5656_p10 = pnand %p5654_p5, %p5642_p2  ;;  %p5662_p0 = scmp.lt.s32.totalorder %s5660_s10, %s5653_s9 }
  0x61   : > { %p5657_p1 = pneg %p5656_p10  ;;  %p5663_p4 = por %p5662_p0, %p5661_p6 }
  0x63   : > { %p5664_p8 = pnand %p5663_p4, %p5657_p1 }
  0x65   : > { %5667 = shalt.err (!%p5664_p8)
}
  0x66   : > { %s9474_s26 = smov 8   ;;  %s9475_s12 = smov 128  }
  0x67   : > { %5363 = dma.hbm_to_vmem [thread:$0]  (!%p5913_p11), %s5909_s14, 2048, %s5911_s16, %s5917_s8, %s9475_s12, %s9475_s12, %s9474_s26  }
  0x68   : > { %p9476_p2 = scmp.ne.s32.totalorder %s9469_s29, 0 }
  0x6a   : > { %277 = sbr.rel (%p9476_p2) target bundleno = 1408 (0x580), region = 44 }
  0x6f   : > { %s5944_s17 = sand.u32 1, %s5732_s22   ;;  %p9477_p4 = scmp.ne.s32.totalorder %s9467_s27, 0 }
  0x70   : > { %s4793_s18 = sshll.u32 %s5944_s17, 7  ;;  %s280_s11 = scalar_lea.sflag [#allocation3], %s5944_s17 }
  0x71   : > { %s5950_s19 = scalar_lea.vmem [#allocation2], %s4793_s18 }
  0x72   : > { %5711 = dma.done.wait (%p9477_p4), %s280_s11, 2048  }
  0x73   : > { %5713 = vsyncadd (%p9477_p4), %s280_s11, 4294965248  ;;  %p9478_p8 = scmp.eq.s32.totalorder %s5813_s25, 0 }
  0x75   : > { %5715 = dma.done.wait (%p9478_p8), [#allocation6], 40960   ;;  %p9479_p0 = pmov %p9478_p8 }
  0x77   : > { %5717 = vsyncadd (%p9479_p0), [#allocation6], 4294926336  ;;  %p9480_p11 = pmov %p9479_p0 }
  0x78   : > { %p9481_p3 = pmov %p9479_p0 }
  0x79   : > { %5719 = dma.done.wait (%p9480_p11), [#allocation9], 22528  }
  0x7a   : > { %5721 = vsyncadd (%p9481_p3), [#allocation9], 4294944768  ;;  %v9182_v0 = vmov 0.0   ;;  %v527_v1 = vld [vmem:[#allocation5 + $0x5a8] sm:$0xff]  ;;  %v526_v2 = vld [vmem:[#allocation5 + $0x5a0] sm:$0xff]  ;;  %s9068_s8 = scalar_lea.vmem [#allocation11], %s4793_s18 }
  0x7b   : > { %602 = vmatprep.mubr.f32.mxu0 %v9182_v0  ;;  %763 = vmatprep.mubr.f32.mxu1 %v9182_v0  ;;  %v515_v3 = vld [vmem:[#allocation5 + $0x548] sm:$0xff]  ;;  %v514_v4 = vld [vmem:[#allocation5 + $0x540] sm:$0xff]  ;;  %v5977_v35 = vld [vmem:[%s5950_s19 + $0x10] sm:$0xff]  ;;  %s4806_s13 = sshll.u32 %s5813_s25, 11  ;;  %s4671_s15 = sshll.u32 %s9068_s8, 4  ;;  %s9124_s15 = int_to_ptr.vmem [resolvable:$true] %s4671_s15 }
  0x7c   : > { %538 = vmatprep.subr.mxu0 %v527_v1  ;;  %v503_v5 = vld [vmem:[#allocation5 + $0x4e8] sm:$0xff]  ;;  %v502_v6 = vld [vmem:[#allocation5 + $0x4e0] sm:$0xff]  ;;  %v5982_v36 = vld [vmem:[%s5950_s19 + $0x18] sm:$0xff]  ;;  %s9122_s26 = scalar_lea.hbm %s9175_s6, %s4806_s13  ;;  %s4658_s12 = scalar_lea.sflag [#allocation4], %s5944_s17 }
  0x7d   : > { %539 = vmatpush1.msra.mxu0 %v526_v2  ;;  %v491_v7 = vld [vmem:[#allocation5 + $0x488] sm:$0xff]  ;;  %v490_v8 = vld [vmem:[#allocation5 + $0x480] sm:$0xff]  ;;  %v5997_v39 = vld [vmem:[%s5950_s19 + $0x30] sm:$0xff]  ;;  %s5668_s18 = scalar_lea.vmem %s9124_s15, 2048  ;;  %p10513_p7 = scmp.ne.s32.totalorder %s9472_s30, 0 }
  0x7e   : > { %540 = vmatprep.subr.mxu0 %v515_v3  ;;  %v479_v9 = vld [vmem:[#allocation5 + $0x428] sm:$0xff]  ;;  %v478_v10 = vld [vmem:[#allocation5 + $0x420] sm:$0xff]  ;;  %v6002_v40 = vld [vmem:[%s5950_s19 + $0x38] sm:$0xff]  ;;  %p5669_p12 = scmp.ne.s32.totalorder %s9124_s15, %s5668_s18  ;;  %s5754_s25 = smov [#allocation11]  }
  0x7f   : > { %541 = vmatpush1.msra.mxu0 %v514_v4  ;;  %v467_v11 = vld [vmem:[#allocation5 + $0x3c8] sm:$0xff]  ;;  %v466_v12 = vld [vmem:[#allocation5 + $0x3c0] sm:$0xff]  ;;  %v6017_v43 = vld [vmem:[%s5950_s19 + $0x50] sm:$0xff]  ;;  %s5672_s11 = sshll.u32 %s5754_s25, 4  ;;  %s5673_s11 = int_to_ptr.vmem [resolvable:$false] %s5672_s11 }
  0x80   : > { %542 = vmatprep.subr.mxu0 %v503_v5  ;;  %v455_v13 = vld [vmem:[#allocation5 + $0x368] sm:$0xff]  ;;  %v454_v14 = vld [vmem:[#allocation5 + $0x360] sm:$0xff]  ;;  %v6022_v44 = vld [vmem:[%s5950_s19 + $0x58] sm:$0xff]  ;;  %p5670_p9 = pnand %p5669_p12, %p10513_p7  ;;  %p5675_p5 = scmp.lt.s32.totalorder %s9124_s15, %s5673_s11 }
  0x81   : > { %543 = vmatpush1.msra.mxu0 %v502_v6  ;;  %v443_v15 = vld [vmem:[#allocation5 + $0x308] sm:$0xff]  ;;  %v442_v16 = vld [vmem:[#allocation5 + $0x300] sm:$0xff]  ;;  %v6037_v47 = vld [vmem:[%s5950_s19 + $0x70] sm:$0xff] }
  0x82   : > { %544 = vmatprep.subr.mxu0 %v491_v7  ;;  %v431_v17 = vld [vmem:[#allocation5 + $0x2a8] sm:$0xff]  ;;  %v430_v18 = vld [vmem:[#allocation5 + $0x2a0] sm:$0xff]  ;;  %v6042_v48 = vld [vmem:[%s5950_s19 + $0x78] sm:$0xff]  ;;  %p5671_p13 = pneg %p5670_p9 }
  0x83   : > { %545 = vmatpush1.msra.mxu0 %v490_v8  ;;  %v419_v19 = vld [vmem:[#allocation5 + $0x248] sm:$0xff]  ;;  %v418_v20 = vld [vmem:[#allocation5 + $0x240] sm:$0xff]  ;;  %v529_v49 = vld [vmem:[#allocation5 + $0x5b8] sm:$0xff] }
  0x84   : > { %546 = vmatprep.subr.mxu0 %v479_v9  ;;  %v407_v21 = vld [vmem:[#allocation5 + $0x1e8] sm:$0xff]  ;;  %v406_v22 = vld [vmem:[#allocation5 + $0x1e0] sm:$0xff]  ;;  %v528_v50 = vld [vmem:[#allocation5 + $0x5b0] sm:$0xff]  ;;  %699 = vmatprep.subr.mxu1 %v529_v49 }
  0x85   : > { %547 = vmatpush1.msra.mxu0 %v478_v10  ;;  %v395_v23 = vld [vmem:[#allocation5 + $0x188] sm:$0xff]  ;;  %v394_v24 = vld [vmem:[#allocation5 + $0x180] sm:$0xff]  ;;  %v517_v51 = vld [vmem:[#allocation5 + $0x558] sm:$0xff]  ;;  %700 = vmatpush1.msra.mxu1 %v528_v50 }
  0x86   : > { %548 = vmatprep.subr.mxu0 %v467_v11  ;;  %v383_v25 = vld [vmem:[#allocation5 + $0x128] sm:$0xff]  ;;  %v382_v26 = vld [vmem:[#allocation5 + $0x120] sm:$0xff]  ;;  %v516_v52 = vld [vmem:[#allocation5 + $0x550] sm:$0xff]  ;;  %701 = vmatprep.subr.mxu1 %v517_v51 }
  0x87   : > { %549 = vmatpush1.msra.mxu0 %v466_v12  ;;  %v371_v27 = vld [vmem:[#allocation5 + $0xc8] sm:$0xff]  ;;  %v370_v28 = vld [vmem:[#allocation5 + $0xc0] sm:$0xff]  ;;  %v505_v53 = vld [vmem:[#allocation5 + $0x4f8] sm:$0xff]  ;;  %702 = vmatpush1.msra.mxu1 %v516_v52 }
  0x88   : > { %550 = vmatprep.subr.mxu0 %v455_v13  ;;  %v359_v29 = vld [vmem:[#allocation5 + $0x68] sm:$0xff]  ;;  %v358_v30 = vld [vmem:[#allocation5 + $0x60] sm:$0xff]  ;;  %v504_v54 = vld [vmem:[#allocation5 + $0x4f0] sm:$0xff]  ;;  %703 = vmatprep.subr.mxu1 %v505_v53 }
  0x89   : > { %551 = vmatpush1.msra.mxu0 %v454_v14  ;;  %v347_v31 = vld [vmem:[#allocation5 + $0x8] sm:$0xff]  ;;  %v346_v32 = vld [vmem:[#allocation5] sm:$0xff]  ;;  %v493_v55 = vld [vmem:[#allocation5 + $0x498] sm:$0xff]  ;;  %704 = vmatpush1.msra.mxu1 %v504_v54 }
  0x8a   : > { %552 = vmatprep.subr.mxu0 %v443_v15  ;;  %v5967_v33 = vld [vmem:[%s5950_s19] sm:$0xff]  ;;  %v5972_v34 = vld [vmem:[%s5950_s19 + $0x8] sm:$0xff]  ;;  %v492_v56 = vld [vmem:[#allocation5 + $0x490] sm:$0xff]  ;;  %705 = vmatprep.subr.mxu1 %v493_v55 }
  0x8b   : > { %553 = vmatpush1.msra.mxu0 %v442_v16  ;;  %v5987_v37 = vld [vmem:[%s5950_s19 + $0x20] sm:$0xff]  ;;  %v5992_v38 = vld [vmem:[%s5950_s19 + $0x28] sm:$0xff]  ;;  %v481_v57 = vld [vmem:[#allocation5 + $0x438] sm:$0xff]  ;;  %706 = vmatpush1.msra.mxu1 %v492_v56 }
  0x8c   : > { %554 = vmatprep.subr.mxu0 %v431_v17  ;;  %v6007_v41 = vld [vmem:[%s5950_s19 + $0x40] sm:$0xff]  ;;  %v6012_v42 = vld [vmem:[%s5950_s19 + $0x48] sm:$0xff]  ;;  %v480_v58 = vld [vmem:[#allocation5 + $0x430] sm:$0xff]  ;;  %707 = vmatprep.subr.mxu1 %v481_v57 }
  0x8d   : > { %555 = vmatpush1.msra.mxu0 %v430_v18  ;;  %v6027_v45 = vld [vmem:[%s5950_s19 + $0x60] sm:$0xff]  ;;  %v6032_v46 = vld [vmem:[%s5950_s19 + $0x68] sm:$0xff]  ;;  %v469_v59 = vld [vmem:[#allocation5 + $0x3d8] sm:$0xff]  ;;  %708 = vmatpush1.msra.mxu1 %v480_v58 }
  0x8e   : > { %556 = vmatprep.subr.mxu0 %v419_v19  ;;  %v468_v60 = vld [vmem:[#allocation5 + $0x3d0] sm:$0xff]  ;;  %v457_v61 = vld [vmem:[#allocation5 + $0x378] sm:$0xff]  ;;  %v531_v62 = vld [vmem:[#allocation5 + $0x5c8] sm:$0xff]  ;;  %709 = vmatprep.subr.mxu1 %v469_v59 }
  0x8f   : > { %557 = vmatpush1.msra.mxu0 %v418_v20  ;;  %v456_v63 = vld [vmem:[#allocation5 + $0x370] sm:$0xff]  ;;  %v530_v1 = vld [vmem:[#allocation5 + $0x5c0] sm:$0xff]  ;;  %710 = vmatpush1.msra.mxu1 %v468_v60  ;;  %v445_v2 = vld [vmem:[#allocation5 + $0x318] sm:$0xff] }
  0x90   : > { %558 = vmatprep.subr.mxu0 %v407_v21  ;;  %v519_v3 = vld [vmem:[#allocation5 + $0x568] sm:$0xff]  ;;  %v518_v4 = vld [vmem:[#allocation5 + $0x560] sm:$0xff]  ;;  %711 = vmatprep.subr.mxu1 %v457_v61  ;;  %v444_v5 = vld [vmem:[#allocation5 + $0x310] sm:$0xff] }
  0x91   : > { %559 = vmatpush1.msra.mxu0 %v406_v22  ;;  %v507_v6 = vld [vmem:[#allocation5 + $0x508] sm:$0xff]  ;;  %712 = vmatpush1.msra.mxu1 %v456_v63  ;;  %v433_v7 = vld [vmem:[#allocation5 + $0x2b8] sm:$0xff]  ;;  %v506_v8 = vld [vmem:[#allocation5 + $0x500] sm:$0xff] }
  0x92   : > { %560 = vmatprep.subr.mxu0 %v395_v23  ;;  %v495_v9 = vld [vmem:[#allocation5 + $0x4a8] sm:$0xff]  ;;  %713 = vmatprep.subr.mxu1 %v445_v2  ;;  %v432_v10 = vld [vmem:[#allocation5 + $0x2b0] sm:$0xff]  ;;  %v494_v11 = vld [vmem:[#allocation5 + $0x4a0] sm:$0xff] }
  0x93   : > { %561 = vmatpush1.msra.mxu0 %v394_v24  ;;  %714 = vmatpush1.msra.mxu1 %v444_v5  ;;  %v421_v12 = vld [vmem:[#allocation5 + $0x258] sm:$0xff]  ;;  %v483_v13 = vld [vmem:[#allocation5 + $0x448] sm:$0xff]  ;;  %v420_v14 = vld [vmem:[#allocation5 + $0x250] sm:$0xff] }
  0x94   : > { %562 = vmatprep.subr.mxu0 %v383_v25  ;;  %715 = vmatprep.subr.mxu1 %v433_v7  ;;  %v482_v15 = vld [vmem:[#allocation5 + $0x440] sm:$0xff]  ;;  %v409_v16 = vld [vmem:[#allocation5 + $0x1f8] sm:$0xff]  ;;  %v471_v17 = vld [vmem:[#allocation5 + $0x3e8] sm:$0xff] }
  0x95   : > { %563 = vmatpush1.msra.mxu0 %v382_v26  ;;  %716 = vmatpush1.msra.mxu1 %v432_v10  ;;  %v408_v18 = vld [vmem:[#allocation5 + $0x1f0] sm:$0xff]  ;;  %v397_v19 = vld [vmem:[#allocation5 + $0x198] sm:$0xff]  ;;  %v458_v7 = vld [vmem:[#allocation5 + $0x380] sm:$0xff] }
  0x96   : > { %564 = vmatprep.subr.mxu0 %v371_v27  ;;  %717 = vmatprep.subr.mxu1 %v421_v12  ;;  %v396_v20 = vld [vmem:[#allocation5 + $0x190] sm:$0xff]  ;;  %v385_v21 = vld [vmem:[#allocation5 + $0x138] sm:$0xff] }
  0x97   : > { %565 = vmatpush1.msra.mxu0 %v370_v28  ;;  %718 = vmatpush1.msra.mxu1 %v420_v14  ;;  %v384_v22 = vld [vmem:[#allocation5 + $0x130] sm:$0xff]  ;;  %v373_v23 = vld [vmem:[#allocation5 + $0xd8] sm:$0xff] }
  0x98   : > { %566 = vmatprep.subr.mxu0 %v359_v29  ;;  %719 = vmatprep.subr.mxu1 %v409_v16  ;;  %v372_v24 = vld [vmem:[#allocation5 + $0xd0] sm:$0xff]  ;;  %v361_v25 = vld [vmem:[#allocation5 + $0x78] sm:$0xff] }
  0x99   : > { %567 = vmatpush1.msra.mxu0 %v358_v30  ;;  %720 = vmatpush1.msra.mxu1 %v408_v18  ;;  %v360_v26 = vld [vmem:[#allocation5 + $0x70] sm:$0xff]  ;;  %v349_v27 = vld [vmem:[#allocation5 + $0x18] sm:$0xff] }
  0x9a   : > { %568 = vmatprep.subr.mxu0 %v347_v31  ;;  %721 = vmatprep.subr.mxu1 %v397_v19  ;;  %v348_v28 = vld [vmem:[#allocation5 + $0x10] sm:$0xff]  ;;  %v533_v29 = vld [vmem:[#allocation5 + $0x5d8] sm:$0xff]  ;;  %v434_v19 = vld [vmem:[#allocation5 + $0x2c0] sm:$0xff] }
  0x9b   : > { %569 = vmatpush1.msra.mxu0 %v346_v32  ;;  %722 = vmatpush1.msra.mxu1 %v396_v20  ;;  %v532_v30 = vld [vmem:[#allocation5 + $0x5d0] sm:$0xff]  ;;  %v521_v31 = vld [vmem:[#allocation5 + $0x578] sm:$0xff] }
  0x9c   : > { %603 = vmatmul.mubr.f32.vlgmr.msra.gmra.mxu0 %v5967_v33  ;;  %860 = vmatprep.subr.mxu0 %v531_v62  ;;  %v520_v32 = vld [vmem:[#allocation5 + $0x570] sm:$0xff]  ;;  %v509_v49 = vld [vmem:[#allocation5 + $0x518] sm:$0xff] }
  0x9d   : > { %608 = vmatprep.mubr.f32.mxu0 %v9182_v0  ;;  %861 = vmatpush1.msra.mxu0 %v530_v1  ;;  %v508_v50 = vld [vmem:[#allocation5 + $0x510] sm:$0xff]  ;;  %v497_v51 = vld [vmem:[#allocation5 + $0x4b8] sm:$0xff]  ;;  %v470_v1 = vld [vmem:[#allocation5 + $0x3e0] sm:$0xff] }
  0x9e   : > { %862 = vmatprep.subr.mxu0 %v519_v3  ;;  %723 = vmatprep.subr.mxu1 %v385_v21  ;;  %v496_v52 = vld [vmem:[#allocation5 + $0x4b0] sm:$0xff]  ;;  %v485_v53 = vld [vmem:[#allocation5 + $0x458] sm:$0xff]  ;;  %v459_v3 = vld [vmem:[#allocation5 + $0x388] sm:$0xff] }
  0x9f   : > { %863 = vmatpush1.msra.mxu0 %v518_v4  ;;  %724 = vmatpush1.msra.mxu1 %v384_v22  ;;  %v484_v54 = vld [vmem:[#allocation5 + $0x450] sm:$0xff]  ;;  %v473_v55 = vld [vmem:[#allocation5 + $0x3f8] sm:$0xff]  ;;  %v423_v21 = vld [vmem:[#allocation5 + $0x268] sm:$0xff] }
  0xa0   : > { %609 = vmatmul.mubr.f32.gmra.mxu0 %v5972_v34  ;;  %864 = vmatprep.subr.mxu0 %v507_v6  ;;  %v472_v2 = vld [vmem:[#allocation5 + $0x3f0] sm:$0xff]  ;;  %v461_v5 = vld [vmem:[#allocation5 + $0x398] sm:$0xff] }
  0xa1   : > { %614 = vmatprep.mubr.f32.mxu0 %v9182_v0  ;;  %865 = vmatpush1.msra.mxu0 %v506_v8  ;;  %v460_v8 = vld [vmem:[#allocation5 + $0x390] sm:$0xff] }
  0xa2   : > { %866 = vmatprep.subr.mxu0 %v495_v9  ;;  %725 = vmatprep.subr.mxu1 %v373_v23  ;;  %v447_v9 = vld [vmem:[#allocation5 + $0x328] sm:$0xff]  ;;  %v448_v14 = vld [vmem:[#allocation5 + $0x330] sm:$0xff]  ;;  %v425_v23 = vld [vmem:[#allocation5 + $0x278] sm:$0xff] }
  0xa3   : > { %867 = vmatpush1.msra.mxu0 %v494_v11  ;;  %726 = vmatpush1.msra.mxu1 %v372_v24  ;;  %v449_v11 = vld [vmem:[#allocation5 + $0x338] sm:$0xff]  ;;  %v436_v20 = vld [vmem:[#allocation5 + $0x2d0] sm:$0xff] }
  0xa4   : > { %615 = vmatmul.mubr.f32.gmra.mxu0 %v5977_v35  ;;  %868 = vmatprep.subr.mxu0 %v483_v13  ;;  %v446_v13 = vld [vmem:[#allocation5 + $0x320] sm:$0xff] }
  0xa5   : > { %620 = vmatprep.mubr.f32.mxu0 %v9182_v0  ;;  %869 = vmatpush1.msra.mxu0 %v482_v15  ;;  %v435_v15 = vld [vmem:[#allocation5 + $0x2c8] sm:$0xff] }
  0xa6   : > { %870 = vmatprep.subr.mxu0 %v471_v17  ;;  %727 = vmatprep.subr.mxu1 %v361_v25  ;;  %v437_v17 = vld [vmem:[#allocation5 + $0x2d8] sm:$0xff]  ;;  %v422_v25 = vld [vmem:[#allocation5 + $0x260] sm:$0xff] }
  0xa7   : > { %728 = vmatpush1.msra.mxu1 %v360_v26  ;;  %871 = vmatpush1.msra.mxu0 %v470_v1  ;;  %v424_v26 = vld [vmem:[#allocation5 + $0x270] sm:$0xff] }
  0xa8   : > { %621 = vmatmul.mubr.f32.gmra.mxu0 %v5982_v36  ;;  %729 = vmatprep.subr.mxu1 %v349_v27  ;;  %v411_v27 = vld [vmem:[#allocation5 + $0x208] sm:$0xff] }
  0xa9   : > { %626 = vmatprep.mubr.f32.mxu0 %v9182_v0  ;;  %730 = vmatpush1.msra.mxu1 %v348_v28 }
  0xaa   : > { %764 = vmatmul.mubr.f32.vlgmr.msra.gmra.mxu1 %v5967_v33  ;;  %1021 = vmatprep.subr.mxu1 %v533_v29  ;;  %v413_v29 = vld [vmem:[#allocation5 + $0x218] sm:$0xff] }
  0xab   : > { %1022 = vmatpush1.msra.mxu1 %v532_v30  ;;  %769 = vmatprep.mubr.f32.mxu1 %v9182_v0 }
  0xac   : > { %627 = vmatmul.mubr.f32.gmra.mxu0 %v5987_v37  ;;  %1023 = vmatprep.subr.mxu1 %v521_v31  ;;  %v410_v31 = vld [vmem:[#allocation5 + $0x200] sm:$0xff] }
  0xad   : > { %632 = vmatprep.mubr.f32.mxu0 %v9182_v0  ;;  %1024 = vmatpush1.msra.mxu1 %v520_v32  ;;  %v412_v32 = vld [vmem:[#allocation5 + $0x210] sm:$0xff] }
  0xae   : > { %770 = vmatmul.mubr.f32.gmra.mxu1 %v5972_v34  ;;  %1025 = vmatprep.subr.mxu1 %v509_v49  ;;  %v399_v49 = vld [vmem:[#allocation5 + $0x1a8] sm:$0xff] }
  0xaf   : > { %775 = vmatprep.mubr.f32.mxu1 %v9182_v0  ;;  %1026 = vmatpush1.msra.mxu1 %v508_v50 }
  0xb0   : > { %633 = vmatmul.mubr.f32.gmra.mxu0 %v5992_v38  ;;  %1027 = vmatprep.subr.mxu1 %v497_v51  ;;  %v401_v51 = vld [vmem:[#allocation5 + $0x1b8] sm:$0xff] }
  0xb1   : > { %638 = vmatprep.mubr.f32.mxu0 %v9182_v0  ;;  %1028 = vmatpush1.msra.mxu1 %v496_v52 }
  0xb2   : > { %776 = vmatmul.mubr.f32.gmra.mxu1 %v5977_v35  ;;  %1029 = vmatprep.subr.mxu1 %v485_v53  ;;  %v398_v53 = vld [vmem:[#allocation5 + $0x1a0] sm:$0xff] }
  0xb3   : > { %781 = vmatprep.mubr.f32.mxu1 %v9182_v0  ;;  %1030 = vmatpush1.msra.mxu1 %v484_v54  ;;  %v400_v54 = vld [vmem:[#allocation5 + $0x1b0] sm:$0xff] }
  0xb4   : > { %639 = vmatmul.mubr.f32.gmra.mxu0 %v5997_v39  ;;  %1031 = vmatprep.subr.mxu1 %v473_v55  ;;  %v387_v55 = vld [vmem:[#allocation5 + $0x148] sm:$0xff] }
  0xb5   : > { %644 = vmatprep.mubr.f32.mxu0 %v9182_v0  ;;  %1032 = vmatpush1.msra.mxu1 %v472_v2  ;;  %v389_v2 = vld [vmem:[#allocation5 + $0x158] sm:$0xff] }
  0xb6   : > { %782 = vmatmul.mubr.f32.gmra.mxu1 %v5982_v36  ;;  %872 = vmatprep.subr.mxu0 %v459_v3 }
  0xb7   : > { %787 = vmatprep.mubr.f32.mxu1 %v9182_v0  ;;  %1033 = vmatprep.subr.mxu1 %v461_v5  ;;  %v386_v5 = vld [vmem:[#allocation5 + $0x140] sm:$0xff] }
  0xb8   : > { %645 = vmatmul.mubr.f32.gmra.mxu0 %v6002_v40  ;;  %1034 = vmatpush1.msra.mxu1 %v460_v8  ;;  %v375_v8 = vld [vmem:[#allocation5 + $0xe8] sm:$0xff] }
  0xb9   : > { %650 = vmatprep.mubr.f32.mxu0 %v9182_v0  ;;  %873 = vmatpush1.msra.mxu0 %v458_v7  ;;  %v388_v7 = vld [vmem:[#allocation5 + $0x150] sm:$0xff] }
  0xba   : > { %788 = vmatmul.mubr.f32.gmra.mxu1 %v5987_v37  ;;  %874 = vmatprep.subr.mxu0 %v447_v9 }
  0xbb   : > { %793 = vmatprep.mubr.f32.mxu1 %v9182_v0  ;;  %1035 = vmatprep.subr.mxu1 %v449_v11  ;;  %v377_v11 = vld [vmem:[#allocation5 + $0xf8] sm:$0xff] }
  0xbc   : > { %651 = vmatmul.mubr.f32.gmra.mxu0 %v6007_v41  ;;  %1036 = vmatpush1.msra.mxu1 %v448_v14  ;;  %v374_v14 = vld [vmem:[#allocation5 + $0xe0] sm:$0xff] }
  0xbd   : > { %656 = vmatprep.mubr.f32.mxu0 %v9182_v0  ;;  %875 = vmatpush1.msra.mxu0 %v446_v13 }
  0xbe   : > { %794 = vmatmul.mubr.f32.gmra.mxu1 %v5992_v38  ;;  %876 = vmatprep.subr.mxu0 %v435_v15  ;;  %v376_v15 = vld [vmem:[#allocation5 + $0xf0] sm:$0xff] }
  0xbf   : > { %799 = vmatprep.mubr.f32.mxu1 %v9182_v0  ;;  %1037 = vmatprep.subr.mxu1 %v437_v17  ;;  %v363_v17 = vld [vmem:[#allocation5 + $0x88] sm:$0xff] }
  0xc0   : > { %657 = vmatmul.mubr.f32.gmra.mxu0 %v6012_v42  ;;  %1038 = vmatpush1.msra.mxu1 %v436_v20  ;;  %v365_v20 = vld [vmem:[#allocation5 + $0x98] sm:$0xff] }
  0xc1   : > { %662 = vmatprep.mubr.f32.mxu0 %v9182_v0  ;;  %877 = vmatpush1.msra.mxu0 %v434_v19 }
  0xc2   : > { %800 = vmatmul.mubr.f32.gmra.mxu1 %v5997_v39  ;;  %878 = vmatprep.subr.mxu0 %v423_v21  ;;  %v362_v21 = vld [vmem:[#allocation5 + $0x80] sm:$0xff] }
  0xc3   : > { %805 = vmatprep.mubr.f32.mxu1 %v9182_v0  ;;  %1039 = vmatprep.subr.mxu1 %v425_v23  ;;  %v364_v23 = vld [vmem:[#allocation5 + $0x90] sm:$0xff] }
  0xc4   : > { %663 = vmatmul.mubr.f32.gmra.mxu0 %v6017_v43  ;;  %1040 = vmatpush1.msra.mxu1 %v424_v26  ;;  %v351_v26 = vld [vmem:[#allocation5 + $0x28] sm:$0xff] }
  0xc5   : > { %668 = vmatprep.mubr.f32.mxu0 %v9182_v0  ;;  %879 = vmatpush1.msra.mxu0 %v422_v25 }
  0xc6   : > { %806 = vmatmul.mubr.f32.gmra.mxu1 %v6002_v40  ;;  %880 = vmatprep.subr.mxu0 %v411_v27  ;;  %v353_v27 = vld [vmem:[#allocation5 + $0x38] sm:$0xff] }
  0xc7   : > { %811 = vmatprep.mubr.f32.mxu1 %v9182_v0  ;;  %1041 = vmatprep.subr.mxu1 %v413_v29  ;;  %v350_v29 = vld [vmem:[#allocation5 + $0x20] sm:$0xff] }
  0xc8   : > { %669 = vmatmul.mubr.f32.gmra.mxu0 %v6022_v44  ;;  %1042 = vmatpush1.msra.mxu1 %v412_v32 }
  0xc9   : > { %674 = vmatprep.mubr.f32.mxu0 %v9182_v0  ;;  %881 = vmatpush1.msra.mxu0 %v410_v31  ;;  %v352_v31 = vld [vmem:[#allocation5 + $0x30] sm:$0xff] }
  0xca   : > { %812 = vmatmul.mubr.f32.gmra.mxu1 %v6007_v41  ;;  %882 = vmatprep.subr.mxu0 %v399_v49 }
  0xcb   : > { %817 = vmatprep.mubr.f32.mxu1 %v9182_v0  ;;  %1043 = vmatprep.subr.mxu1 %v401_v51  ;;  %v535_v51 = vld [vmem:[#allocation5 + $0x5e8] sm:$0xff] }
  0xcc   : > { %675 = vmatmul.mubr.f32.gmra.mxu0 %v6027_v45  ;;  %1044 = vmatpush1.msra.mxu1 %v400_v54 }
  0xcd   : > { %680 = vmatprep.mubr.f32.mxu0 %v9182_v0  ;;  %883 = vmatpush1.msra.mxu0 %v398_v53  ;;  %v537_v53 = vld [vmem:[#allocation5 + $0x5f8] sm:$0xff] }
  0xce   : > { %818 = vmatmul.mubr.f32.gmra.mxu1 %v6012_v42  ;;  %884 = vmatprep.subr.mxu0 %v387_v55 }
  0xcf   : > { %823 = vmatprep.mubr.f32.mxu1 %v9182_v0  ;;  %1045 = vmatprep.subr.mxu1 %v389_v2  ;;  %v534_v2 = vld [vmem:[#allocation5 + $0x5e0] sm:$0xff] }
  0xd0   : > { %681 = vmatmul.mubr.f32.gmra.mxu0 %v6032_v46  ;;  %1046 = vmatpush1.msra.mxu1 %v388_v7 }
  0xd1   : > { %686 = vmatprep.mubr.f32.mxu0 %v9182_v0  ;;  %885 = vmatpush1.msra.mxu0 %v386_v5  ;;  %v523_v5 = vld [vmem:[#allocation5 + $0x588] sm:$0xff] }
  0xd2   : > { %824 = vmatmul.mubr.f32.gmra.mxu1 %v6017_v43  ;;  %886 = vmatprep.subr.mxu0 %v375_v8  ;;  %v525_v8 = vld [vmem:[#allocation5 + $0x598] sm:$0xff] }
  0xd3   : > { %829 = vmatprep.mubr.f32.mxu1 %v9182_v0  ;;  %1047 = vmatprep.subr.mxu1 %v377_v11  ;;  %v522_v11 = vld [vmem:[#allocation5 + $0x580] sm:$0xff] }
  0xd4   : > { %687 = vmatmul.mubr.f32.gmra.mxu0 %v6037_v47  ;;  %1048 = vmatpush1.msra.mxu1 %v376_v15  ;;  %v513_v15 = vld [vmem:[#allocation5 + $0x538] sm:$0xff] }
  0xd5   : > { %692 = vmatprep.mubr.f32.mxu0 %v9182_v0  ;;  %887 = vmatpush1.msra.mxu0 %v374_v14  ;;  %v511_v14 = vld [vmem:[#allocation5 + $0x528] sm:$0xff] }
  0xd6   : > { %830 = vmatmul.mubr.f32.gmra.mxu1 %v6022_v44  ;;  %888 = vmatprep.subr.mxu0 %v363_v17  ;;  %v510_v17 = vld [vmem:[#allocation5 + $0x520] sm:$0xff] }
  0xd7   : > { %835 = vmatprep.mubr.f32.mxu1 %v9182_v0  ;;  %1049 = vmatprep.subr.mxu1 %v365_v20  ;;  %v512_v20 = vld [vmem:[#allocation5 + $0x530] sm:$0xff] }
  0xd8   : > { %693 = vmatmul.mubr.f32.gmra.mxu0 %v6042_v48  ;;  %1050 = vmatpush1.msra.mxu1 %v364_v23  ;;  %v498_v23 = vld [vmem:[#allocation5 + $0x4c0] sm:$0xff] }
  0xd9   : > { %924 = vmatprep.mubr.f32.mxu0 %v9182_v0  ;;  %889 = vmatpush1.msra.mxu0 %v362_v21  ;;  %v499_v21 = vld [vmem:[#allocation5 + $0x4c8] sm:$0xff] }
  0xda   : > { %836 = vmatmul.mubr.f32.gmra.mxu1 %v6027_v45  ;;  %890 = vmatprep.subr.mxu0 %v351_v26  ;;  %v500_v26 = vld [vmem:[#allocation5 + $0x4d0] sm:$0xff] }
  0xdb   : > { %841 = vmatprep.mubr.f32.mxu1 %v9182_v0  ;;  %1051 = vmatprep.subr.mxu1 %v353_v27  ;;  %v487_v27 = vld [vmem:[#allocation5 + $0x468] sm:$0xff] }
  0xdc   : > { %891 = vmatpush1.msra.mxu0 %v350_v29  ;;  %1052 = vmatpush1.msra.mxu1 %v352_v31  ;;  %v486_v29 = vld [vmem:[#allocation5 + $0x460] sm:$0xff]  ;;  %v488_v31 = vld [vmem:[#allocation5 + $0x470] sm:$0xff] }
  0xdd   : > { %925 = vmatmul.mubr.f32.vlgmr.msra.gmra.mxu0 %v5967_v33  ;;  %1182 = vmatprep.subr.mxu0 %v535_v51  ;;  %v475_v51 = vld [vmem:[#allocation5 + $0x408] sm:$0xff] }
  0xde   : > { %842 = vmatmul.mubr.f32.gmra.mxu1 %v6032_v46  ;;  %930 = vmatprep.mubr.f32.mxu0 %v9182_v0 }
  0xdf   : > { %847 = vmatprep.mubr.f32.mxu1 %v9182_v0  ;;  %1343 = vmatprep.subr.mxu1 %v537_v53  ;;  %v474_v53 = vld [vmem:[#allocation5 + $0x400] sm:$0xff] }
  0xe0   : > { %1183 = vmatpush1.msra.mxu0 %v534_v2  ;;  %v476_v2 = vld [vmem:[#allocation5 + $0x410] sm:$0xff] }
  0xe1   : > { %931 = vmatmul.mubr.f32.gmra.mxu0 %v5972_v34  ;;  %1184 = vmatprep.subr.mxu0 %v523_v5  ;;  %v465_v5 = vld [vmem:[#allocation5 + $0x3b8] sm:$0xff] }
  0xe2   : > { %848 = vmatmul.mubr.f32.gmra.mxu1 %v6037_v47  ;;  %936 = vmatprep.mubr.f32.mxu0 %v9182_v0 }
  0xe3   : > { %853 = vmatprep.mubr.f32.mxu1 %v9182_v0  ;;  %1185 = vmatpush1.msra.mxu0 %v522_v11  ;;  %v451_v11 = vld [vmem:[#allocation5 + $0x348] sm:$0xff] }
  0xe4   : > { %1186 = vmatprep.subr.mxu0 %v511_v14  ;;  %v450_v14 = vld [vmem:[#allocation5 + $0x340] sm:$0xff] }
  0xe5   : > { %937 = vmatmul.mubr.f32.gmra.mxu0 %v5977_v35 }
  0xe6   : > { %854 = vmatmul.mubr.f32.gmra.mxu1 %v6042_v48  ;;  %942 = vmatprep.mubr.f32.mxu0 %v9182_v0 }
  0xe7   : > { %1085 = vmatprep.mubr.f32.mxu1 %v9182_v0  ;;  %1187 = vmatpush1.msra.mxu0 %v510_v17  ;;  %v441_v17 = vld [vmem:[#allocation5 + $0x2f8] sm:$0xff] }
  0xe8   : > { %1188 = vmatprep.subr.mxu0 %v499_v21  ;;  %v440_v21 = vld [vmem:[#allocation5 + $0x2f0] sm:$0xff] }
  0xe9   : > { %943 = vmatmul.mubr.f32.gmra.mxu0 %v5982_v36 }
  0xea   : > { %1086 = vmatmul.mubr.f32.vlgmr.msra.gmra.mxu1 %v5967_v33  ;;  %v536_v33 = vld [vmem:[#allocation5 + $0x5f0] sm:$0xff]  ;;  %948 = vmatprep.mubr.f32.mxu0 %v9182_v0 }
  0xeb   : > { %1091 = vmatprep.mubr.f32.mxu1 %v9182_v0  ;;  %1344 = vmatpush1.msra.mxu1 %v536_v33  ;;  %v463_v33 = vld [vmem:[#allocation5 + $0x3a8] sm:$0xff] }
  0xec   : > { %1345 = vmatprep.subr.mxu1 %v525_v8  ;;  %1189 = vmatpush1.msra.mxu0 %v498_v23  ;;  %v462_v8 = vld [vmem:[#allocation5 + $0x3a0] sm:$0xff] }
  0xed   : > { %949 = vmatmul.mubr.f32.gmra.mxu0 %v5987_v37  ;;  %1190 = vmatprep.subr.mxu0 %v487_v27  ;;  %v426_v23 = vld [vmem:[#allocation5 + $0x280] sm:$0xff]  ;;  %v417_v27 = vld [vmem:[#allocation5 + $0x238] sm:$0xff] }
  0xee   : > { %1092 = vmatmul.mubr.f32.gmra.mxu1 %v5972_v34  ;;  %v524_v34 = vld [vmem:[#allocation5 + $0x590] sm:$0xff]  ;;  %954 = vmatprep.mubr.f32.mxu0 %v9182_v0 }
  0xef   : > { %1097 = vmatprep.mubr.f32.mxu1 %v9182_v0  ;;  %1346 = vmatpush1.msra.mxu1 %v524_v34  ;;  %v453_v34 = vld [vmem:[#allocation5 + $0x358] sm:$0xff] }
  0xf0   : > { %1347 = vmatprep.subr.mxu1 %v513_v15  ;;  %1191 = vmatpush1.msra.mxu0 %v486_v29  ;;  %v452_v15 = vld [vmem:[#allocation5 + $0x350] sm:$0xff] }
  0xf1   : > { %1348 = vmatpush1.msra.mxu1 %v512_v20  ;;  %955 = vmatmul.mubr.f32.gmra.mxu0 %v5992_v38  ;;  %v438_v20 = vld [vmem:[#allocation5 + $0x2e0] sm:$0xff]  ;;  %v416_v29 = vld [vmem:[#allocation5 + $0x230] sm:$0xff] }
  0xf2   : > { %1098 = vmatmul.mubr.f32.gmra.mxu1 %v5977_v35  ;;  %v501_v35 = vld [vmem:[#allocation5 + $0x4d8] sm:$0xff]  ;;  %960 = vmatprep.mubr.f32.mxu0 %v9182_v0 }
  0xf3   : > { %1103 = vmatprep.mubr.f32.mxu1 %v9182_v0  ;;  %1349 = vmatprep.subr.mxu1 %v501_v35  ;;  %v429_v35 = vld [vmem:[#allocation5 + $0x298] sm:$0xff] }
  0xf4   : > { %1350 = vmatpush1.msra.mxu1 %v500_v26  ;;  %1192 = vmatprep.subr.mxu0 %v475_v51  ;;  %v428_v26 = vld [vmem:[#allocation5 + $0x290] sm:$0xff]  ;;  %v402_v51 = vld [vmem:[#allocation5 + $0x1c0] sm:$0xff] }
  0xf5   : > { %1193 = vmatpush1.msra.mxu0 %v474_v53  ;;  %v393_v53 = vld [vmem:[#allocation5 + $0x178] sm:$0xff] }
  0xf6   : > { %1104 = vmatmul.mubr.f32.gmra.mxu1 %v5982_v36  ;;  %v489_v36 = vld [vmem:[#allocation5 + $0x478] sm:$0xff]  ;;  %961 = vmatmul.mubr.f32.gmra.mxu0 %v5997_v39 }
  0xf7   : > { %1109 = vmatprep.mubr.f32.mxu1 %v9182_v0  ;;  %1351 = vmatprep.subr.mxu1 %v489_v36  ;;  %v414_v36 = vld [vmem:[#allocation5 + $0x220] sm:$0xff] }
  0xf8   : > { %1352 = vmatpush1.msra.mxu1 %v488_v31  ;;  %1194 = vmatprep.subr.mxu0 %v463_v33  ;;  %v405_v31 = vld [vmem:[#allocation5 + $0x1d8] sm:$0xff]  ;;  %v392_v33 = vld [vmem:[#allocation5 + $0x170] sm:$0xff] }
  0xf9   : > { %1195 = vmatpush1.msra.mxu0 %v462_v8  ;;  %966 = vmatprep.mubr.f32.mxu0 %v9182_v0  ;;  %v378_v8 = vld [vmem:[#allocation5 + $0x100] sm:$0xff] }
  0xfa   : > { %1110 = vmatmul.mubr.f32.gmra.mxu1 %v5987_v37  ;;  %v477_v37 = vld [vmem:[#allocation5 + $0x418] sm:$0xff]  ;;  %967 = vmatmul.mubr.f32.gmra.mxu0 %v6002_v40 }
  0xfb   : > { %1115 = vmatprep.mubr.f32.mxu1 %v9182_v0  ;;  %1353 = vmatprep.subr.mxu1 %v477_v37  ;;  %v404_v37 = vld [vmem:[#allocation5 + $0x1d0] sm:$0xff] }
  0xfc   : > { %1354 = vmatpush1.msra.mxu1 %v476_v2  ;;  %1196 = vmatprep.subr.mxu0 %v451_v11  ;;  %v390_v2 = vld [vmem:[#allocation5 + $0x160] sm:$0xff]  ;;  %v369_v11 = vld [vmem:[#allocation5 + $0xb8] sm:$0xff] }
  0xfd   : > { %1355 = vmatprep.subr.mxu1 %v465_v5  ;;  %1197 = vmatpush1.msra.mxu0 %v450_v14  ;;  %v381_v5 = vld [vmem:[#allocation5 + $0x118] sm:$0xff]  ;;  %v368_v14 = vld [vmem:[#allocation5 + $0xb0] sm:$0xff] }
  0xfe   : > { %1116 = vmatmul.mubr.f32.gmra.mxu1 %v5992_v38  ;;  %v464_v38 = vld [vmem:[#allocation5 + $0x3b0] sm:$0xff]  ;;  %972 = vmatprep.mubr.f32.mxu0 %v9182_v0 }
  0xff   : > { %1121 = vmatprep.mubr.f32.mxu1 %v9182_v0  ;;  %1356 = vmatpush1.msra.mxu1 %v464_v38  ;;  %v380_v38 = vld [vmem:[#allocation5 + $0x110] sm:$0xff] }
 0x100   : > { %1357 = vmatprep.subr.mxu1 %v453_v34  ;;  %973 = vmatmul.mubr.f32.gmra.mxu0 %v6007_v41  ;;  %v366_v34 = vld [vmem:[#allocation5 + $0xa0] sm:$0xff] }
 0x101   : > { %1358 = vmatpush1.msra.mxu1 %v452_v15  ;;  %978 = vmatprep.mubr.f32.mxu0 %v9182_v0  ;;  %v357_v15 = vld [vmem:[#allocation5 + $0x58] sm:$0xff] }
 0x102   : > { %1122 = vmatmul.mubr.f32.gmra.mxu1 %v5997_v39  ;;  %v439_v39 = vld [vmem:[#allocation5 + $0x2e8] sm:$0xff]  ;;  %1359 = vmatprep.subr.mxu1 %v441_v17  ;;  %v356_v17 = vld [vmem:[#allocation5 + $0x50] sm:$0xff] }
 0x103   : > { %1127 = vmatprep.mubr.f32.mxu1 %v9182_v0  ;;  %1198 = vmatprep.subr.mxu0 %v439_v39  ;;  %v354_v39 = vld [vmem:[#allocation5 + $0x40] sm:$0xff] }
 0x104   : > { %1199 = vmatpush1.msra.mxu0 %v438_v20  ;;  %1360 = vmatpush1.msra.mxu1 %v440_v21  ;;  %v1787_v20 = vld [vmem:[#allocation7 + $0x3d8] sm:$0xff]  ;;  %v1784_v21 = vld [vmem:[#allocation7 + $0x3c0] sm:$0xff] }
 0x105   : > { %979 = vmatmul.mubr.f32.gmra.mxu0 %v6012_v42  ;;  %1361 = vmatprep.subr.mxu1 %v429_v35  ;;  %v1786_v35 = vld [vmem:[#allocation7 + $0x3d0] sm:$0xff] }
 0x106   : > { %1128 = vmatmul.mubr.f32.gmra.mxu1 %v6002_v40  ;;  %v427_v40 = vld [vmem:[#allocation5 + $0x288] sm:$0xff]  ;;  %984 = vmatprep.mubr.f32.mxu0 %v9182_v0 }
 0x107   : > { %1133 = vmatprep.mubr.f32.mxu1 %v9182_v0  ;;  %1200 = vmatprep.subr.mxu0 %v427_v40  ;;  %v5487_v40 = vld [vmem:[%s5950_s19] sm:$0xff] }
 0x108   : > { %1201 = vmatpush1.msra.mxu0 %v426_v23  ;;  %1362 = vmatpush1.msra.mxu1 %v428_v26  ;;  %v1779_v23 = vld [vmem:[#allocation7 + $0x398] sm:$0xff]  ;;  %v1776_v26 = vld [vmem:[#allocation7 + $0x380] sm:$0xff] }
 0x109   : > { %985 = vmatmul.mubr.f32.gmra.mxu0 %v6017_v43  ;;  %1363 = vmatprep.subr.mxu1 %v417_v27  ;;  %v1778_v27 = vld [vmem:[#allocation7 + $0x390] sm:$0xff] }
 0x10a   : > { %1134 = vmatmul.mubr.f32.gmra.mxu1 %v6007_v41  ;;  %v415_v41 = vld [vmem:[#allocation5 + $0x228] sm:$0xff]  ;;  %990 = vmatprep.mubr.f32.mxu0 %v9182_v0 }
 0x10b   : > { %1139 = vmatprep.mubr.f32.mxu1 %v9182_v0  ;;  %1202 = vmatprep.subr.mxu0 %v415_v41  ;;  %v5488_v41 = vld [vmem:[%s5950_s19 + $0x8] sm:$0xff] }
 0x10c   : > { %1203 = vmatpush1.msra.mxu0 %v414_v36  ;;  %1364 = vmatpush1.msra.mxu1 %v416_v29  ;;  %v1769_v36 = vld [vmem:[#allocation7 + $0x348] sm:$0xff]  ;;  %v1771_v29 = vld [vmem:[#allocation7 + $0x358] sm:$0xff] }
 0x10d   : > { %991 = vmatmul.mubr.f32.gmra.mxu0 %v6022_v44  ;;  %1365 = vmatprep.subr.mxu1 %v405_v31  ;;  %v5489_v31 = vld [vmem:[%s5950_s19 + $0x10] sm:$0xff] }
 0x10e   : > { %1140 = vmatmul.mubr.f32.gmra.mxu1 %v6012_v42  ;;  %v403_v42 = vld [vmem:[#allocation5 + $0x1c8] sm:$0xff]  ;;  %996 = vmatprep.mubr.f32.mxu0 %v9182_v0 }
 0x10f   : > { %1145 = vmatprep.mubr.f32.mxu1 %v9182_v0  ;;  %1204 = vmatprep.subr.mxu0 %v403_v42  ;;  %v1768_v42 = vld [vmem:[#allocation7 + $0x340] sm:$0xff] }
 0x110   : > { %1205 = vmatpush1.msra.mxu0 %v402_v51  ;;  %1366 = vmatpush1.msra.mxu1 %v404_v37  ;;  %v1770_v51 = vld [vmem:[#allocation7 + $0x350] sm:$0xff]  ;;  %v1761_v37 = vld [vmem:[#allocation7 + $0x308] sm:$0xff] }
 0x111   : > { %997 = vmatmul.mubr.f32.gmra.mxu0 %v6027_v45  ;;  %1367 = vmatprep.subr.mxu1 %v393_v53  ;;  %v1760_v53 = vld [vmem:[#allocation7 + $0x300] sm:$0xff] }
 0x112   : > { %1146 = vmatmul.mubr.f32.gmra.mxu1 %v6017_v43  ;;  %v391_v43 = vld [vmem:[#allocation5 + $0x168] sm:$0xff]  ;;  %1002 = vmatprep.mubr.f32.mxu0 %v9182_v0 }
 0x113   : > { %1151 = vmatprep.mubr.f32.mxu1 %v9182_v0  ;;  %1206 = vmatprep.subr.mxu0 %v391_v43  ;;  %v1763_v43 = vld [vmem:[#allocation7 + $0x318] sm:$0xff] }
 0x114   : > { %1207 = vmatpush1.msra.mxu0 %v390_v2  ;;  %1368 = vmatpush1.msra.mxu1 %v392_v33  ;;  %v5490_v2 = vld [vmem:[%s5950_s19 + $0x18] sm:$0xff]  ;;  %v1762_v33 = vld [vmem:[#allocation7 + $0x310] sm:$0xff] }
 0x115   : > { %1003 = vmatmul.mubr.f32.gmra.mxu0 %v6032_v46  ;;  %1369 = vmatprep.subr.mxu1 %v381_v5  ;;  %v1755_v5 = vld [vmem:[#allocation7 + $0x2d8] sm:$0xff] }
 0x116   : > { %1152 = vmatmul.mubr.f32.gmra.mxu1 %v6022_v44  ;;  %v379_v44 = vld [vmem:[#allocation5 + $0x108] sm:$0xff]  ;;  %1008 = vmatprep.mubr.f32.mxu0 %v9182_v0 }
 0x117   : > { %1157 = vmatprep.mubr.f32.mxu1 %v9182_v0  ;;  %1208 = vmatprep.subr.mxu0 %v379_v44  ;;  %v1753_v44 = vld [vmem:[#allocation7 + $0x2c8] sm:$0xff] }
 0x118   : > { %1209 = vmatpush1.msra.mxu0 %v378_v8  ;;  %1370 = vmatpush1.msra.mxu1 %v380_v38  ;;  %v1752_v8 = vld [vmem:[#allocation7 + $0x2c0] sm:$0xff] }
 0x119   : > { %1009 = vmatmul.mubr.f32.gmra.mxu0 %v6037_v47  ;;  %1371 = vmatprep.subr.mxu1 %v369_v11  ;;  %v5491_v38 = vld [vmem:[%s5950_s19 + $0x20] sm:$0xff]  ;;  %v1745_v11 = vld [vmem:[#allocation7 + $0x288] sm:$0xff] }
 0x11a   : > { %1158 = vmatmul.mubr.f32.gmra.mxu1 %v6027_v45  ;;  %v367_v45 = vld [vmem:[#allocation5 + $0xa8] sm:$0xff]  ;;  %1014 = vmatprep.mubr.f32.mxu0 %v9182_v0 }
 0x11b   : > { %1163 = vmatprep.mubr.f32.mxu1 %v9182_v0  ;;  %1210 = vmatprep.subr.mxu0 %v367_v45  ;;  %v1754_v45 = vld [vmem:[#allocation7 + $0x2d0] sm:$0xff] }
 0x11c   : > { %1211 = vmatpush1.msra.mxu0 %v366_v34  ;;  %1372 = vmatpush1.msra.mxu1 %v368_v14  ;;  %v1747_v14 = vld [vmem:[#allocation7 + $0x298] sm:$0xff] }
 0x11d   : > { %1015 = vmatmul.mubr.f32.gmra.mxu0 %v6042_v48  ;;  %1373 = vmatprep.subr.mxu1 %v357_v15 }
 0x11e   : > { %1164 = vmatmul.mubr.f32.gmra.mxu1 %v6032_v46  ;;  %v355_v46 = vld [vmem:[#allocation5 + $0x48] sm:$0xff]  ;;  %1246 = vmatprep.mubr.f32.mxu0 %v9182_v0 }
 0x11f   : > { %1169 = vmatprep.mubr.f32.mxu1 %v9182_v0  ;;  %1212 = vmatprep.subr.mxu0 %v355_v46  ;;  %v1744_v46 = vld [vmem:[#allocation7 + $0x280] sm:$0xff] }
 0x120   : > { %1213 = vmatpush1.msra.mxu0 %v354_v39  ;;  %1374 = vmatpush1.msra.mxu1 %v356_v17  ;;  %v5492_v39 = vld [vmem:[%s5950_s19 + $0x28] sm:$0xff]  ;;  %v1746_v17 = vld [vmem:[#allocation7 + $0x290] sm:$0xff] }
 0x121   : > { %1247 = vmatmul.mubr.f32.vlgmr.msra.gmra.mxu0 %v5487_v40  ;;  %1953 = vmatprep.subr.mxu1 %v1787_v20  ;;  %v1737_v20 = vld [vmem:[#allocation7 + $0x248] sm:$0xff] }
 0x122   : > { %1170 = vmatmul.mubr.f32.gmra.mxu1 %v6037_v47  ;;  %v1785_v47 = vld [vmem:[#allocation7 + $0x3c8] sm:$0xff]  ;;  %1252 = vmatprep.mubr.f32.mxu0 %v9182_v0 }
 0x123   : > { %1175 = vmatprep.mubr.f32.mxu1 %v9182_v0  ;;  %1792 = vmatprep.subr.mxu0 %v1785_v47 }
 0x124   : > { %1793 = vmatpush1.msra.mxu0 %v1784_v21 }
 0x125   : > { %1253 = vmatmul.mubr.f32.gmra.mxu0 %v5488_v41 }
 0x126   : > { %1176 = vmatmul.mubr.f32.gmra.mxu1 %v6042_v48  ;;  %v1777_v48 = vld [vmem:[#allocation7 + $0x388] sm:$0xff]  ;;  %1258 = vmatprep.mubr.f32.mxu0 %v9182_v0 }
 0x127   : > { %1407 = vmatprep.mubr.f32.mxu1 %v9182_v0  ;;  %1794 = vmatprep.subr.mxu0 %v1777_v48  ;;  %v5493_v48 = vld [vmem:[%s5950_s19 + $0x30] sm:$0xff] }
 0x128   : > { %1795 = vmatpush1.msra.mxu0 %v1776_v26 }
 0x129   : > { %1259 = vmatmul.mubr.f32.gmra.mxu0 %v5489_v31  ;;  %1796 = vmatprep.subr.mxu0 %v1769_v36  ;;  %v1731_v36 = vld [vmem:[#allocation7 + $0x218] sm:$0xff] }
 0x12a   : > { %1408 = vmatmul.mubr.f32.vlgmr.msra.gmra.mxu1 %v5487_v40  ;;  %1797 = vmatpush1.msra.mxu0 %v1768_v42  ;;  %v1739_v40 = vld [vmem:[#allocation7 + $0x258] sm:$0xff] }
 0x12b   : > { %1954 = vmatpush1.msra.mxu1 %v1786_v35  ;;  %1413 = vmatprep.mubr.f32.mxu1 %v9182_v0  ;;  %v1736_v35 = vld [vmem:[#allocation7 + $0x240] sm:$0xff]  ;;  %v5494_v42 = vld [vmem:[%s5950_s19 + $0x38] sm:$0xff] }
 0x12c   : > { %1955 = vmatprep.subr.mxu1 %v1779_v23  ;;  %1264 = vmatprep.mubr.f32.mxu0 %v9182_v0  ;;  %v1738_v23 = vld [vmem:[#allocation7 + $0x250] sm:$0xff] }
 0x12d   : > { %1956 = vmatpush1.msra.mxu1 %v1778_v27  ;;  %1265 = vmatmul.mubr.f32.gmra.mxu0 %v5490_v2 }
 0x12e   : > { %1414 = vmatmul.mubr.f32.gmra.mxu1 %v5488_v41  ;;  %1957 = vmatprep.subr.mxu1 %v1771_v29  ;;  %v1729_v41 = vld [vmem:[#allocation7 + $0x208] sm:$0xff]  ;;  %v1728_v29 = vld [vmem:[#allocation7 + $0x200] sm:$0xff] }
 0x12f   : > { %1419 = vmatprep.mubr.f32.mxu1 %v9182_v0  ;;  %1958 = vmatpush1.msra.mxu1 %v1770_v51 }
 0x130   : > { %1798 = vmatprep.subr.mxu0 %v1761_v37  ;;  %1959 = vmatprep.subr.mxu1 %v1763_v43  ;;  %v1721_v37 = vld [vmem:[#allocation7 + $0x1c8] sm:$0xff] }
 0x131   : > { %1799 = vmatpush1.msra.mxu0 %v1760_v53  ;;  %1960 = vmatpush1.msra.mxu1 %v1762_v33  ;;  %v1723_v53 = vld [vmem:[#allocation7 + $0x1d8] sm:$0xff]  ;;  %v5495_v33 = vld [vmem:[%s5950_s19 + $0x40] sm:$0xff] }
 0x132   : > { %1420 = vmatmul.mubr.f32.gmra.mxu1 %v5489_v31  ;;  %1270 = vmatprep.mubr.f32.mxu0 %v9182_v0  ;;  %v1730_v31 = vld [vmem:[#allocation7 + $0x210] sm:$0xff] }
 0x133   : > { %1425 = vmatprep.mubr.f32.mxu1 %v9182_v0  ;;  %1271 = vmatmul.mubr.f32.gmra.mxu0 %v5491_v38 }
 0x134   : > { %1800 = vmatprep.subr.mxu0 %v1753_v44  ;;  %1961 = vmatprep.subr.mxu1 %v1755_v5  ;;  %v1722_v44 = vld [vmem:[#allocation7 + $0x1d0] sm:$0xff] }
 0x135   : > { %1801 = vmatpush1.msra.mxu0 %v1752_v8  ;;  %1962 = vmatpush1.msra.mxu1 %v1754_v45  ;;  %v1713_v8 = vld [vmem:[#allocation7 + $0x188] sm:$0xff]  ;;  %v1715_v45 = vld [vmem:[#allocation7 + $0x198] sm:$0xff] }
 0x136   : > { %1426 = vmatmul.mubr.f32.gmra.mxu1 %v5490_v2  ;;  %1276 = vmatprep.mubr.f32.mxu0 %v9182_v0  ;;  %v1720_v2 = vld [vmem:[#allocation7 + $0x1c0] sm:$0xff] }
 0x137   : > { %1431 = vmatprep.mubr.f32.mxu1 %v9182_v0  ;;  %1277 = vmatmul.mubr.f32.gmra.mxu0 %v5492_v39 }
 0x138   : > { %1802 = vmatprep.subr.mxu0 %v1745_v11  ;;  %1963 = vmatprep.subr.mxu1 %v1747_v14  ;;  %v5496_v11 = vld [vmem:[%s5950_s19 + $0x48] sm:$0xff]  ;;  %v1714_v14 = vld [vmem:[#allocation7 + $0x190] sm:$0xff] }
 0x139   : > { %1803 = vmatpush1.msra.mxu0 %v1744_v46  ;;  %1964 = vmatpush1.msra.mxu1 %v1746_v17  ;;  %v1705_v17 = vld [vmem:[#allocation7 + $0x148] sm:$0xff] }
 0x13a   : > { %1432 = vmatmul.mubr.f32.gmra.mxu1 %v5491_v38  ;;  %1282 = vmatprep.mubr.f32.mxu0 %v9182_v0 }
 0x13b   : > { %1437 = vmatprep.mubr.f32.mxu1 %v9182_v0  ;;  %1283 = vmatmul.mubr.f32.gmra.mxu0 %v5493_v48 }
 0x13c   : > { %1804 = vmatprep.subr.mxu0 %v1737_v20  ;;  %1965 = vmatprep.subr.mxu1 %v1739_v40  ;;  %v1704_v20 = vld [vmem:[#allocation7 + $0x140] sm:$0xff]  ;;  %v5497_v40 = vld [vmem:[%s5950_s19 + $0x50] sm:$0xff] }
 0x13d   : > { %1805 = vmatpush1.msra.mxu0 %v1736_v35  ;;  %1966 = vmatpush1.msra.mxu1 %v1738_v23  ;;  %v1706_v35 = vld [vmem:[#allocation7 + $0x150] sm:$0xff]  ;;  %v1697_v23 = vld [vmem:[#allocation7 + $0x108] sm:$0xff] }
 0x13e   : > { %1438 = vmatmul.mubr.f32.gmra.mxu1 %v5492_v39  ;;  %1288 = vmatprep.mubr.f32.mxu0 %v9182_v0 }
 0x13f   : > { %1443 = vmatprep.mubr.f32.mxu1 %v9182_v0  ;;  %1289 = vmatmul.mubr.f32.gmra.mxu0 %v5494_v42 }
 0x140   : > { %1806 = vmatprep.subr.mxu0 %v1729_v41  ;;  %1967 = vmatprep.subr.mxu1 %v1731_v36  ;;  %v1696_v36 = vld [vmem:[#allocation7 + $0x100] sm:$0xff] }
 0x141   : > { %1807 = vmatpush1.msra.mxu0 %v1728_v29  ;;  %1968 = vmatpush1.msra.mxu1 %v1730_v31  ;;  %v1698_v29 = vld [vmem:[#allocation7 + $0x110] sm:$0xff]  ;;  %v1689_v31 = vld [vmem:[#allocation7 + $0xc8] sm:$0xff] }
 0x142   : > { %1444 = vmatmul.mubr.f32.gmra.mxu1 %v5493_v48  ;;  %1294 = vmatprep.mubr.f32.mxu0 %v9182_v0 }
 0x143   : > { %1449 = vmatprep.mubr.f32.mxu1 %v9182_v0  ;;  %1295 = vmatmul.mubr.f32.gmra.mxu0 %v5495_v33 }
 0x144   : > { %1808 = vmatprep.subr.mxu0 %v1721_v37  ;;  %1969 = vmatprep.subr.mxu1 %v1723_v53  ;;  %v1691_v37 = vld [vmem:[#allocation7 + $0xd8] sm:$0xff] }
 0x145   : > { %1809 = vmatpush1.msra.mxu0 %v1720_v2  ;;  %1970 = vmatpush1.msra.mxu1 %v1722_v44  ;;  %v5499_v2 = vld [vmem:[%s5950_s19 + $0x60] sm:$0xff] }
 0x146   : > { %1450 = vmatmul.mubr.f32.gmra.mxu1 %v5494_v42  ;;  %1300 = vmatprep.mubr.f32.mxu0 %v9182_v0 }
 0x147   : > { %1455 = vmatprep.mubr.f32.mxu1 %v9182_v0  ;;  %1301 = vmatmul.mubr.f32.gmra.mxu0 %v5496_v11 }
 0x148   : > { %1810 = vmatprep.subr.mxu0 %v1713_v8  ;;  %1971 = vmatprep.subr.mxu1 %v1715_v45  ;;  %v1683_v8 = vld [vmem:[#allocation7 + $0x98] sm:$0xff]  ;;  %v1680_v45 = vld [vmem:[#allocation7 + $0x80] sm:$0xff] }
 0x149   : > { %1972 = vmatpush1.msra.mxu1 %v1714_v14  ;;  %1306 = vmatprep.mubr.f32.mxu0 %v9182_v0 }
 0x14a   : > { %1456 = vmatmul.mubr.f32.gmra.mxu1 %v5495_v33 }
 0x14b   : > { %1461 = vmatprep.mubr.f32.mxu1 %v9182_v0  ;;  %1307 = vmatmul.mubr.f32.gmra.mxu0 %v5497_v40 }
 0x14c   : > { %1312 = vmatprep.mubr.f32.mxu0 %v9182_v0 }
 0x14e   : > { %1462 = vmatmul.mubr.f32.gmra.mxu1 %v5496_v11 }
 0x14f   : > { %1467 = vmatprep.mubr.f32.mxu1 %v9182_v0 }
 0x152   : > { %1468 = vmatmul.mubr.f32.gmra.mxu1 %v5497_v40 }
 0x153   : > { %1473 = vmatprep.mubr.f32.mxu1 %v9182_v0 }
 0x15c   : > { %v6062_v56 = vpop.f32.mrf.mxu0 }
 0x15d   : > { %1504 = vmax.xlane.f32.xlu0 %v6062_v56 }
 0x15e   : > { %v6067_v57 = vpop.f32.mrf.mxu0 }
 0x160   : > { %v6069_v58 = vpop.f32.mrf.mxu0 }
 0x161   : > { %1506 = vmax.xlane.f32.xlu0 %v6069_v58 }
 0x162   : > { %v6074_v59 = vpop.f32.mrf.mxu0 }
 0x164   : > { %v6076_v60 = vpop.f32.mrf.mxu0 }
 0x165   : > { %1508 = vmax.xlane.f32.xlu1 %v6076_v60 }
 0x166   : > { %v6081_v61 = vpop.f32.mrf.mxu0 }
 0x168   : > { %v6083_v62 = vpop.f32.mrf.mxu0 }
 0x169   : > { %1510 = vmax.xlane.f32.xlu1 %v6083_v62 }
 0x16a   : > { %v6088_v63 = vpop.f32.mrf.mxu0 }
 0x16c   : > { %v6090_v4 = vpop.f32.mrf.mxu0 }
 0x16d   : > { %1512 = vmax.xlane.f32.xlu0 %v6090_v4 }
 0x16e   : > { %v6093_v6 = vpop.f32.mrf.mxu0 }
 0x170   : > { %v6097_v10 = vpop.f32.mrf.mxu0 }
 0x171   : > { %1514 = vmax.xlane.f32.xlu1 %v6097_v10 }
 0x172   : > { %v6100_v12 = vpop.f32.mrf.mxu0 }
 0x174   : > { %v6104_v16 = vpop.f32.mrf.mxu0 }
 0x175   : > { %1516 = vmax.xlane.f32.xlu0 %v6104_v16 }
 0x176   : > { %v6107_v18 = vpop.f32.mrf.mxu0 }
 0x178   : > { %v6111_v22 = vpop.f32.mrf.mxu0 }
 0x179   : > { %1518 = vmax.xlane.f32.xlu1 %v6111_v22 }
 0x17a   : > { %v6114_v24 = vpop.f32.mrf.mxu0 }
 0x17c   : > { %v6118_v28 = vpop.f32.mrf.mxu0 }
 0x17d   : > { %1520 = vmax.xlane.f32.xlu0 %v6118_v28 }
 0x17e   : > { %v6121_v30 = vpop.f32.mrf.mxu0 }
 0x180   : > { %v6123_v50 = vpop.f32.mrf.mxu0 }
 0x181   : > { %1522 = vmax.xlane.f32.xlu1 %v6123_v50 }
 0x182   : > { %v6126_v52 = vpop.f32.mrf.mxu0 }
 0x184   : > { %v6128_v1 = vpop.f32.mrf.mxu0 }
 0x185   : > { %1524 = vmax.xlane.f32.xlu0 %v6128_v1 }
 0x186   : > { %v6131_v3 = vpop.f32.mrf.mxu0 }
 0x188   : > { %v6133_v9 = vpop.f32.mrf.mxu0 }
 0x189   : > { %1526 = vmax.xlane.f32.xlu1 %v6133_v9 }
 0x18a   : > { %v6136_v13 = vpop.f32.mrf.mxu0 }
 0x18c   : > { %v6138_v19 = vpop.f32.mrf.mxu0 }
 0x18d   : > { %1528 = vmax.xlane.f32.xlu0 %v6138_v19 }
 0x18e   : > { %v6141_v25 = vpop.f32.mrf.mxu0 }
 0x190   : > { %v6143_v32 = vpop.f32.mrf.mxu0 }
 0x191   : > { %1530 = vmax.xlane.f32.xlu1 %v6143_v32 }
 0x192   : > { %v6146_v49 = vpop.f32.mrf.mxu0 }
 0x194   : > { %v6152_v54 = vpop.f32.mrf.mxu0 }
 0x195   : > { %1532 = vmax.xlane.f32.xlu0 %v6152_v54 }
 0x196   : > { %v6155_v55 = vpop.f32.mrf.mxu0 }
 0x198   : > { %v6161_v7 = vpop.f32.mrf.mxu0 }
 0x199   : > { %1534 = vmax.xlane.f32.xlu1 %v6161_v7 }
 0x1e6   : > { %v1505_v34 = vpop.xlane.xlu0 %1504 }
 0x1e7   : > { %v1536_v15 = vsub.f32 %v6062_v56, %v1505_v34  ;;  %v1712_v34 = vld [vmem:[#allocation7 + $0x180] sm:$0xff] }
 0x1e8   : > { %1811 = vmatpush1.msra.mxu0 %v1712_v34  ;;  %v5500_v34 = vld [vmem:[%s5950_s19 + $0x68] sm:$0xff] }
 0x1e9   : > { %v1552_v47 = vmul.f32 1.442695, %v1536_v15  ;;  %1812 = vmatprep.subr.mxu0 %v1705_v17  ;;  %v1675_v17 = vld [vmem:[#allocation7 + $0x58] sm:$0xff] }
 0x1ea   : > { %v1507_v21 = vpop.xlane.xlu0 %1506  ;;  %1813 = vmatpush1.msra.mxu0 %v1704_v20  ;;  %v5501_v20 = vld [vmem:[%s5950_s19 + $0x70] sm:$0xff] }
 0x1eb   : > { %5423 = vpow2.f32 %v1552_v47  ;;  %v1537_v56 = vsub.f32 %v6069_v58, %v1507_v21  ;;  %v1707_v47 = vld [vmem:[#allocation7 + $0x158] sm:$0xff]  ;;  %1814 = vmatprep.subr.mxu0 %v1697_v23 }
 0x1ec   : > { %1973 = vmatprep.subr.mxu1 %v1707_v47  ;;  %1815 = vmatpush1.msra.mxu0 %v1696_v36  ;;  %v1667_v23 = vld [vmem:[#allocation7 + $0x18] sm:$0xff] }
 0x1ed   : > { %v1554_v26 = vmul.f32 1.442695, %v1537_v56  ;;  %1974 = vmatpush1.msra.mxu1 %v1706_v35  ;;  %1816 = vmatprep.subr.mxu0 %v1689_v31  ;;  %v6292_v35 = vpop.f32.mrf.mxu1  ;;  %v5502_v36 = vld [vmem:[%s5950_s19 + $0x78] sm:$0xff] }
 0x1ee   : > { %v1509_v27 = vpop.xlane.xlu1 %1508  ;;  %9482 = vst [vmem:[#allocation16_spill] sm:$0xff] %v6292_v35 }
 0x1ef   : > { %5425 = vpow2.f32 %v1554_v26  ;;  %v1538_v58 = vsub.f32 %v6076_v60, %v1509_v27  ;;  %v1699_v26 = vld [vmem:[#allocation7 + $0x118] sm:$0xff] }
 0x1f0   : > { %v5498_v27 = vld [vmem:[%s5950_s19 + $0x58] sm:$0xff]  ;;  %1975 = vmatprep.subr.mxu1 %v1699_v26  ;;  %s5674_s19 = scalar_lea.vmem %s5673_s11, 4096 }
 0x1f1   : > { %v1556_v51 = vmul.f32 1.442695, %v1538_v58  ;;  %1313 = vmatmul.mubr.f32.gmra.mxu0 %v5498_v27  ;;  %1474 = vmatmul.mubr.f32.gmra.mxu1 %v5498_v27  ;;  %p5676_p10 = scmp.lt.s32.totalorder %s5674_s19, %s5668_s18 }
 0x1f2   : > { %v1511_v43 = vpop.xlane.xlu1 %1510  ;;  %1976 = vmatpush1.msra.mxu1 %v1698_v29  ;;  %1318 = vmatprep.mubr.f32.mxu0 %v9182_v0  ;;  %v1666_v29 = vld [vmem:[#allocation7 + $0x10] sm:$0xff] }
 0x1f3   : > { %5427 = vpow2.f32 %v1556_v51  ;;  %v1539_v60 = vsub.f32 %v6083_v62, %v1511_v43  ;;  %1479 = vmatprep.mubr.f32.mxu1 %v9182_v0  ;;  %v1688_v43 = vld [vmem:[#allocation7 + $0xc0] sm:$0xff]  ;;  %1977 = vmatprep.subr.mxu1 %v1691_v37  ;;  %v1791_v37 = vld [vmem:[#allocation7 + $0x3f8] sm:$0xff]  ;;  %p5677_p1 = por %p5676_p10, %p5675_p5 }
 0x1f4   : > { %1817 = vmatpush1.msra.mxu0 %v1688_v43 }
 0x1f5   : > { %v1558_v5 = vmul.f32 1.442695, %v1539_v60  ;;  %1319 = vmatmul.mubr.f32.gmra.mxu0 %v5499_v2  ;;  %v1690_v60 = vld [vmem:[#allocation7 + $0xd0] sm:$0xff]  ;;  %1480 = vmatmul.mubr.f32.gmra.mxu1 %v5499_v2  ;;  %p5678_p6 = pnand %p5677_p1, %p5671_p13 }
 0x1f6   : > { %v1513_v38 = vpop.xlane.xlu0 %1512  ;;  %1978 = vmatpush1.msra.mxu1 %v1690_v60  ;;  %1324 = vmatprep.mubr.f32.mxu0 %v9182_v0 }
 0x1f7   : > { %5429 = vpow2.f32 %v1558_v5  ;;  %v1540_v62 = vsub.f32 %v6090_v4, %v1513_v38  ;;  %v1681_v5 = vld [vmem:[#allocation7 + $0x88] sm:$0xff]  ;;  %1485 = vmatprep.mubr.f32.mxu1 %v9182_v0  ;;  %1979 = vmatprep.subr.mxu1 %v1683_v8 }
 0x1f8   : > { %v6253_v46 = vpop.eup %5423  ;;  %1818 = vmatprep.subr.mxu0 %v1681_v5 }
 0x1f9   : > { %v1560_v15 = vmul.f32 1.442695, %v1540_v62  ;;  %1584 = vadd.xlane.f32.xlu0 %v6253_v46  ;;  %v1682_v62 = vld [vmem:[#allocation7 + $0x90] sm:$0xff]  ;;  %1325 = vmatmul.mubr.f32.gmra.mxu0 %v5500_v34 }
 0x1fa   : > { %v1515_v39 = vpop.xlane.xlu1 %1514  ;;  %1486 = vmatmul.mubr.f32.gmra.mxu1 %v5500_v34  ;;  %1819 = vmatpush1.msra.mxu0 %v1680_v45 }
 0x1fb   : > { %5431 = vpow2.f32 %v1560_v15  ;;  %v1541_v4 = vsub.f32 %v6097_v10, %v1515_v39  ;;  %1980 = vmatpush1.msra.mxu1 %v1682_v62  ;;  %v1673_v15 = vld [vmem:[#allocation7 + $0x48] sm:$0xff]  ;;  %1330 = vmatprep.mubr.f32.mxu0 %v9182_v0 }
 0x1fc   : > { %v6259_v21 = vpop.eup %5425  ;;  %1491 = vmatprep.mubr.f32.mxu1 %v9182_v0  ;;  %1820 = vmatprep.subr.mxu0 %v1673_v15 }
 0x1fd   : > { %v1562_v56 = vmul.f32 1.442695, %v1541_v4  ;;  %1586 = vadd.xlane.f32.xlu1 %v6259_v21  ;;  %v1672_v4 = vld [vmem:[#allocation7 + $0x40] sm:$0xff]  ;;  %1331 = vmatmul.mubr.f32.gmra.mxu0 %v5501_v20 }
 0x1fe   : > { %v1517_v48 = vpop.xlane.xlu0 %1516  ;;  %1492 = vmatmul.mubr.f32.gmra.mxu1 %v5501_v20  ;;  %1981 = vmatprep.subr.mxu1 %v1675_v17 }
 0x1ff   : > { %5433 = vpow2.f32 %v1562_v56  ;;  %v1542_v10 = vsub.f32 %v6104_v16, %v1517_v48  ;;  %1821 = vmatpush1.msra.mxu0 %v1672_v4  ;;  %1336 = vmatprep.mubr.f32.mxu0 %v9182_v0 }
 0x200   : > { %v6265_v41 = vpop.eup %5427  ;;  %1497 = vmatprep.mubr.f32.mxu1 %v9182_v0 }
 0x201   : > { %v1564_v58 = vmul.f32 1.442695, %v1542_v10  ;;  %1588 = vadd.xlane.f32.xlu0 %v6265_v41  ;;  %v1665_v10 = vld [vmem:[#allocation7 + $0x8] sm:$0xff]  ;;  %1337 = vmatmul.mubr.f32.gmra.mxu0 %v5502_v36 }
 0x202   : > { %v1519_v42 = vpop.xlane.xlu1 %1518  ;;  %1498 = vmatmul.mubr.f32.gmra.mxu1 %v5502_v36  ;;  %1822 = vmatprep.subr.mxu0 %v1665_v10 }
 0x203   : > { %5435 = vpow2.f32 %v1564_v58  ;;  %v1543_v16 = vsub.f32 %v6111_v22, %v1519_v42  ;;  %v6301_v58 = vpop.f32.mrf.mxu1  ;;  %1856 = vmatprep.mubr.f32.mxu0 %v9182_v0  ;;  %2017 = vmatprep.mubr.f32.mxu1 %v9182_v0  ;;  %v6396_v0 = vpop.f32.mrf.mxu0 }
 0x204   : > { %v6271_v51 = vpop.eup %5429  ;;  %9483 = vst [vmem:[#allocation17_spill] sm:$0xff] %v6301_v58 }
 0x205   : > { %v1566_v53 = vmul.f32 1.442695, %v1543_v16  ;;  %1590 = vadd.xlane.f32.xlu1 %v6271_v51  ;;  %v1789_v16 = vld [vmem:[#allocation7 + $0x3e8] sm:$0xff]  ;;  %v6306_v43 = vpop.f32.mrf.mxu1 }
 0x206   : > { %v1521_v33 = vpop.xlane.xlu0 %1520 }
 0x207   : > { %5437 = vpow2.f32 %v1566_v53  ;;  %v1544_v22 = vsub.f32 %v6118_v28, %v1521_v33  ;;  %v6311_v2 = vpop.f32.mrf.mxu1 }
 0x208   : > { %v6278_v44 = vpop.eup %5431  ;;  %9484 = vst [vmem:[#allocation18_spill] sm:$0xff] %v6311_v2 }
 0x209   : > { %v1568_v38 = vmul.f32 1.442695, %v1544_v22  ;;  %1592 = vadd.xlane.f32.xlu0 %v6278_v44  ;;  %v6316_v22 = vpop.f32.mrf.mxu1 }
 0x20a   : > { %v1523_v11 = vpop.xlane.xlu1 %1522 }
 0x20b   : > { %5439 = vpow2.f32 %v1568_v38  ;;  %v1545_v28 = vsub.f32 %v6123_v50, %v1523_v11  ;;  %v1674_v50 = vld [vmem:[#allocation7 + $0x50] sm:$0xff]  ;;  %v6319_v38 = vpop.f32.mrf.mxu1 }
 0x20c   : > { %v6285_v14 = vpop.eup %5433  ;;  %1982 = vmatpush1.msra.mxu1 %v1674_v50  ;;  %9485 = vst [vmem:[#allocation19_spill] sm:$0xff] %v6319_v38 }
 0x20d   : > { %v1570_v39 = vmul.f32 1.442695, %v1545_v28  ;;  %1594 = vadd.xlane.f32.xlu1 %v6285_v14  ;;  %1983 = vmatprep.subr.mxu1 %v1667_v23  ;;  %v6324_v62 = vpop.f32.mrf.mxu1 }
 0x20e   : > { %v1525_v47 = vpop.xlane.xlu0 %1524  ;;  %1984 = vmatpush1.msra.mxu1 %v1666_v29 }
 0x20f   : > { %5441 = vpow2.f32 %v1570_v39  ;;  %v1546_v40 = vsub.f32 %v6128_v1, %v1525_v47  ;;  %v1664_v1 = vld [vmem:[#allocation7] sm:$0xff]  ;;  %2275 = vmatprep.subr.mxu1 %v1791_v37  ;;  %v6327_v28 = vpop.f32.mrf.mxu1 }
 0x210   : > { %v6294_v56 = vpop.eup %5435  ;;  %1823 = vmatpush1.msra.mxu0 %v1664_v1  ;;  %9486 = vst [vmem:[#allocation20_spill] sm:$0xff] %v6327_v28 }
 0x211   : > { %v1572_v48 = vmul.f32 1.442695, %v1546_v40  ;;  %1596 = vadd.xlane.f32.xlu0 %v6294_v56  ;;  %2114 = vmatprep.subr.mxu0 %v1789_v16 }
 0x212   : > { %v1527_v26 = vpop.xlane.xlu1 %1526 }
 0x213   : > { %5443 = vpow2.f32 %v1572_v48  ;;  %v1547_v27 = vsub.f32 %v6133_v9, %v1527_v26 }
 0x214   : > { %v6303_v42 = vpop.eup %5437 }
 0x215   : > { %v1574_v31 = vmul.f32 1.442695, %v1547_v27  ;;  %1598 = vadd.xlane.f32.xlu1 %v6303_v42 }
 0x216   : > { %v1529_v53 = vpop.xlane.xlu0 %1528 }
 0x217   : > { %5445 = vpow2.f32 %v1574_v31  ;;  %v1548_v9 = vsub.f32 %v6138_v19, %v1529_v53 }
 0x218   : > { %v6313_v60 = vpop.eup %5439 }
 0x219   : > { %v1576_v33 = vmul.f32 1.442695, %v1548_v9  ;;  %1600 = vadd.xlane.f32.xlu0 %v6313_v60 }
 0x21a   : > { %v1531_v5 = vpop.xlane.xlu1 %1530 }
 0x21b   : > { %5447 = vpow2.f32 %v1576_v33  ;;  %v1549_v8 = vsub.f32 %v6143_v32, %v1531_v5  ;;  %v6332_v32 = vpop.f32.mrf.mxu1 }
 0x21c   : > { %v6321_v19 = vpop.eup %5441  ;;  %9487 = vst [vmem:[#allocation21_spill] sm:$0xff] %v6332_v32 }
 0x21d   : > { %v1578_v45 = vmul.f32 1.442695, %v1549_v8  ;;  %1602 = vadd.xlane.f32.xlu1 %v6321_v19  ;;  %v6335_v47 = vpop.f32.mrf.mxu1 }
 0x21e   : > { %v1533_v11 = vpop.xlane.xlu0 %1532  ;;  %9488 = vst [vmem:[#allocation22_spill] sm:$0xff] %v6335_v47 }
 0x21f   : > { %5449 = vpow2.f32 %v1578_v45  ;;  %v1550_v34 = vsub.f32 %v6152_v54, %v1533_v11  ;;  %v6340_v54 = vpop.f32.mrf.mxu1 }
 0x220   : > { %v6329_v15 = vpop.eup %5443  ;;  %9489 = vst [vmem:[#allocation23_spill] sm:$0xff] %v6340_v54 }
 0x221   : > { %v1580_v39 = vmul.f32 1.442695, %v1550_v34  ;;  %1604 = vadd.xlane.f32.xlu0 %v6329_v15  ;;  %v6342_v40 = vpop.f32.mrf.mxu1 }
 0x222   : > { %v1535_v17 = vpop.xlane.xlu1 %1534  ;;  %9490 = vst [vmem:[#allocation24_spill] sm:$0xff] %v6342_v40 }
 0x223   : > { %5451 = vpow2.f32 %v1580_v39  ;;  %v1551_v4 = vsub.f32 %v6161_v7, %v1535_v17  ;;  %v6347_v10 = vpop.f32.mrf.mxu1 }
 0x224   : > { %v6337_v20 = vpop.eup %5445  ;;  %9491 = vst [vmem:[#allocation25_spill] sm:$0xff] %v6347_v10 }
 0x225   : > { %v1582_v50 = vmul.f32 1.442695, %v1551_v4  ;;  %1606 = vadd.xlane.f32.xlu1 %v6337_v20  ;;  %v6349_v23 = vpop.f32.mrf.mxu1 }
 0x226   : > { %9492 = vst [vmem:[#allocation26_spill] sm:$0xff] %v6349_v23 }
 0x227   : > { %5453 = vpow2.f32 %v1582_v50  ;;  %v6354_v26 = vpop.f32.mrf.mxu1 }
 0x228   : > { %v6344_v48 = vpop.eup %5447  ;;  %9493 = vst [vmem:[#allocation27_spill] sm:$0xff] %v6354_v26 }
 0x229   : > { %1608 = vadd.xlane.f32.xlu0 %v6344_v48  ;;  %v6356_v1 = vpop.f32.mrf.mxu1 }
 0x22a   : > { %9494 = vst [vmem:[#allocation28_spill] sm:$0xff] %v6356_v1 }
 0x22b   : > { %v6361_v36 = vpop.f32.mrf.mxu1 }
 0x22c   : > { %v6351_v7 = vpop.eup %5449  ;;  %9495 = vst [vmem:[#allocation29_spill] sm:$0xff] %v6361_v36 }
 0x22d   : > { %1610 = vadd.xlane.f32.xlu1 %v6351_v7  ;;  %v6363_v29 = vpop.f32.mrf.mxu1 }
 0x22e   : > { %9496 = vst [vmem:[#allocation30_spill] sm:$0xff] %v6363_v29 }
 0x22f   : > { %v6368_v31 = vpop.f32.mrf.mxu1 }
 0x230   : > { %v6358_v27 = vpop.eup %5451  ;;  %9497 = vst [vmem:[#allocation31_spill] sm:$0xff] %v6368_v31 }
 0x231   : > { %1612 = vadd.xlane.f32.xlu0 %v6358_v27  ;;  %v6370_v37 = vpop.f32.mrf.mxu1 }
 0x232   : > { %9498 = vst [vmem:[#allocation32_spill] sm:$0xff] %v6370_v37 }
 0x233   : > { %v6372_v53 = vpop.f32.mrf.mxu1 }
 0x234   : > { %v6365_v16 = vpop.eup %5453  ;;  %9499 = vst [vmem:[#allocation33_spill] sm:$0xff] %v6372_v53 }
 0x235   : > { %1614 = vadd.xlane.f32.xlu1 %v6365_v16  ;;  %v6374_v9 = vpop.f32.mrf.mxu1 }
 0x236   : > { %9500 = vst [vmem:[#allocation34_spill] sm:$0xff] %v6374_v9 }
 0x237   : > { %v6376_v33 = vpop.f32.mrf.mxu1 }
 0x238   : > { %9501 = vst [vmem:[#allocation35_spill] sm:$0xff] %v6376_v33  ;;  %v6398_v33 = vpop.f32.mrf.mxu0 }
 0x239   : > { %v6378_v5 = vpop.f32.mrf.mxu1  ;;  %9511 = vst [vmem:[#allocation45_spill] sm:$0xff] %v6398_v33 }
 0x23a   : > { %9502 = vst [vmem:[#allocation36_spill] sm:$0xff] %v6378_v5 }
 0x23b   : > { %v6380_v8 = vpop.f32.mrf.mxu1 }
 0x23c   : > { %9503 = vst [vmem:[#allocation37_spill] sm:$0xff] %v6380_v8  ;;  %v6402_v8 = vpop.f32.mrf.mxu0 }
 0x23d   : > { %v6382_v45 = vpop.f32.mrf.mxu1  ;;  %9513 = vst [vmem:[#allocation47_spill] sm:$0xff] %v6402_v8 }
 0x23e   : > { %9504 = vst [vmem:[#allocation38_spill] sm:$0xff] %v6382_v45 }
 0x23f   : > { %v6384_v11 = vpop.f32.mrf.mxu1 }
 0x240   : > { %9505 = vst [vmem:[#allocation39_spill] sm:$0xff] %v6384_v11  ;;  %v6406_v11 = vpop.f32.mrf.mxu0 }
 0x241   : > { %v6386_v34 = vpop.f32.mrf.mxu1  ;;  %9515 = vst [vmem:[#allocation49_spill] sm:$0xff] %v6406_v11 }
 0x242   : > { %9506 = vst [vmem:[#allocation40_spill] sm:$0xff] %v6386_v34 }
 0x243   : > { %v6388_v39 = vpop.f32.mrf.mxu1 }
 0x244   : > { %9507 = vst [vmem:[#allocation41_spill] sm:$0xff] %v6388_v39  ;;  %v6410_v39 = vpop.f32.mrf.mxu0 }
 0x245   : > { %v6390_v17 = vpop.f32.mrf.mxu1  ;;  %9516 = vst [vmem:[#allocation50_spill] sm:$0xff] %v6410_v39 }
 0x246   : > { %9508 = vst [vmem:[#allocation42_spill] sm:$0xff] %v6390_v17 }
 0x247   : > { %v6392_v4 = vpop.f32.mrf.mxu1 }
 0x248   : > { %9509 = vst [vmem:[#allocation43_spill] sm:$0xff] %v6392_v4  ;;  %v6414_v4 = vpop.f32.mrf.mxu0 }
 0x249   : > { %v6394_v50 = vpop.f32.mrf.mxu1 }
 0x24a   : > { %9510 = vst [vmem:[#allocation44_spill] sm:$0xff] %v6394_v50  ;;  %v6418_v9 = vpop.f32.mrf.mxu0 }
 0x24b   : > { %v6400_v5 = vpop.f32.mrf.mxu1  ;;  %9518 = vst [vmem:[#allocation52_spill] sm:$0xff] %v6418_v9 }
 0x24c   : > { %9512 = vst [vmem:[#allocation46_spill] sm:$0xff] %v6400_v5  ;;  %v6422_v37 = vpop.f32.mrf.mxu0 }
 0x24d   : > { %v6404_v45 = vpop.f32.mrf.mxu1  ;;  %9520 = vst [vmem:[#allocation54_spill] sm:$0xff] %v6422_v37  ;;  %v1775_v37 = vld [vmem:[#allocation7 + $0x378] sm:$0xff] }
 0x24e   : > { %9514 = vst [vmem:[#allocation48_spill] sm:$0xff] %v6404_v45  ;;  %v6426_v45 = vpop.f32.mrf.mxu0 }
 0x24f   : > { %v6408_v34 = vpop.f32.mrf.mxu1  ;;  %9521 = vst [vmem:[#allocation55_spill] sm:$0xff] %v6426_v45  ;;  %v1773_v45 = vld [vmem:[#allocation7 + $0x368] sm:$0xff] }
 0x250   : > { %v6430_v36 = vpop.f32.mrf.mxu0 }
 0x251   : > { %v6412_v17 = vpop.f32.mrf.mxu1  ;;  %9523 = vst [vmem:[#allocation57_spill] sm:$0xff] %v6430_v36 }
 0x252   : > { %9517 = vst [vmem:[#allocation51_spill] sm:$0xff] %v6412_v17  ;;  %v6434_v17 = vpop.f32.mrf.mxu0 }
 0x253   : > { %v6416_v50 = vpop.f32.mrf.mxu1  ;;  %9525 = vst [vmem:[#allocation59_spill] sm:$0xff] %v6434_v17 }
 0x254   : > { %v6438_v23 = vpop.f32.mrf.mxu0 }
 0x255   : > { %v6420_v53 = vpop.f32.mrf.mxu1  ;;  %9527 = vst [vmem:[#allocation61_spill] sm:$0xff] %v6438_v23 }
 0x256   : > { %9519 = vst [vmem:[#allocation53_spill] sm:$0xff] %v6420_v53  ;;  %v6442_v53 = vpop.f32.mrf.mxu0 }
 0x257   : > { %v6424_v31 = vpop.f32.mrf.mxu1  ;;  %9529 = vst [vmem:[#allocation63_spill] sm:$0xff] %v6442_v53 }
 0x258   : > { %v6446_v47 = vpop.f32.mrf.mxu0 }
 0x259   : > { %v6428_v29 = vpop.f32.mrf.mxu1  ;;  %9531 = vst [vmem:[#allocation65_spill] sm:$0xff] %v6446_v47  ;;  %v1788_v47 = vld [vmem:[#allocation7 + $0x3e0] sm:$0xff] }
 0x25a   : > { %9522 = vst [vmem:[#allocation56_spill] sm:$0xff] %v6428_v29 }
 0x25b   : > { %v6432_v1 = vpop.f32.mrf.mxu1 }
 0x25c   : > { %9524 = vst [vmem:[#allocation58_spill] sm:$0xff] %v6432_v1  ;;  %v6450_v1 = vpop.f32.mrf.mxu0 }
 0x25d   : > { %v6436_v26 = vpop.f32.mrf.mxu1  ;;  %9533 = vst [vmem:[#allocation67_spill] sm:$0xff] %v6450_v1 }
 0x25e   : > { %9526 = vst [vmem:[#allocation60_spill] sm:$0xff] %v6436_v26  ;;  %v6454_v23 = vpop.f32.mrf.mxu0 }
 0x25f   : > { %v6440_v10 = vpop.f32.mrf.mxu1  ;;  %9535 = vst [vmem:[#allocation69_spill] sm:$0xff] %v6454_v23 }
 0x260   : > { %9528 = vst [vmem:[#allocation62_spill] sm:$0xff] %v6440_v10  ;;  %v6461_v32 = vpop.f32.mrf.mxu0 }
 0x261   : > { %v6444_v40 = vpop.f32.mrf.mxu1  ;;  %9537 = vst [vmem:[#allocation71_spill] sm:$0xff] %v6461_v32 }
 0x262   : > { %9530 = vst [vmem:[#allocation64_spill] sm:$0xff] %v6444_v40  ;;  %v6472_v32 = vpop.f32.mrf.mxu0 }
 0x263   : > { %v6448_v29 = vpop.f32.mrf.mxu1  ;;  %9540 = vst [vmem:[#allocation73_spill] sm:$0xff] %v6472_v32  ;;  %v1759_v32 = vld [vmem:[#allocation7 + $0x2f8] sm:$0xff] }
 0x264   : > { %9532 = vst [vmem:[#allocation66_spill] sm:$0xff] %v6448_v29  ;;  %v1790_v29 = vld [vmem:[#allocation7 + $0x3f0] sm:$0xff] }
 0x265   : > { %v6452_v17 = vpop.f32.mrf.mxu1 }
 0x266   : > { %9534 = vst [vmem:[#allocation68_spill] sm:$0xff] %v6452_v17  ;;  %v1783_v17 = vld [vmem:[#allocation7 + $0x3b8] sm:$0xff] }
 0x267   : > { %v6456_v10 = vpop.f32.mrf.mxu1 }
 0x268   : > { %9536 = vst [vmem:[#allocation70_spill] sm:$0xff] %v6456_v10 }
 0x282   : > { %v1585_v54 = vpop.xlane.xlu0 %1584 }
 0x283   : > { %5455 = vrcp.f32 %v1585_v54 }
 0x286   : > { %v1587_v36 = vpop.xlane.xlu1 %1586 }
 0x287   : > { %5457 = vrcp.f32 %v1587_v36  ;;  %v6463_v36 = vpop.f32.mrf.mxu1 }
 0x288   : > { %9538 = vst [vmem:[#allocation72_spill] sm:$0xff] %v6463_v36  ;;  %v1782_v36 = vld [vmem:[#allocation7 + $0x3b0] sm:$0xff] }
 0x28a   : > { %v1589_v26 = vpop.xlane.xlu0 %1588 }
 0x28b   : > { %5459 = vrcp.f32 %v1589_v26  ;;  %v1781_v26 = vld [vmem:[#allocation7 + $0x3a8] sm:$0xff] }
 0x28e   : > { %v1591_v53 = vpop.xlane.xlu1 %1590 }
 0x28f   : > { %5461 = vrcp.f32 %v1591_v53  ;;  %v9539_v53 = vmov 0.0  }
 0x290   : > { %v5456_v40 = vpop.eup %5455 }
 0x291   : > { %v6459_v54 = vmul.f32 %v5456_v40, %v6253_v46  ;;  %v1780_v40 = vld [vmem:[#allocation7 + $0x3a0] sm:$0xff] }
 0x292   : > { %v1593_v1 = vpop.xlane.xlu0 %1592 }
 0x293   : > { %5463 = vrcp.f32 %v1593_v1  ;;  %1857 = vmatmul.mubr.f32.vlgmr.msra.gmra.mxu0 %v6459_v54  ;;  %2018 = vmatmul.mubr.f32.vlgmr.msra.gmra.mxu1 %v6459_v54  ;;  %v6474_v1 = vpop.f32.mrf.mxu1 }
 0x294   : > { %v5458_v23 = vpop.eup %5457  ;;  %2115 = vmatpush1.msra.mxu0 %v1788_v47  ;;  %2276 = vmatpush1.msra.mxu1 %v1790_v29  ;;  %9541 = vst [vmem:[#allocation74_spill] sm:$0xff] %v6474_v1  ;;  %v1774_v29 = vld [vmem:[#allocation7 + $0x370] sm:$0xff] }
 0x295   : > { %1862 = vmatprep.mubr.f32.mxu0 %v9539_v53  ;;  %2023 = vmatprep.mubr.f32.mxu1 %v9539_v53  ;;  %v6470_v46 = vmul.f32 %v5458_v23, %v6259_v21  ;;  %v1772_v23 = vld [vmem:[#allocation7 + $0x360] sm:$0xff] }
 0x296   : > { %2116 = vmatprep.subr.mxu0 %v1781_v26  ;;  %2277 = vmatprep.subr.mxu1 %v1783_v17  ;;  %v1595_v10 = vpop.xlane.xlu1 %1594  ;;  %v6481_v26 = vpop.f32.mrf.mxu0 }
 0x297   : > { %5465 = vrcp.f32 %v1595_v10  ;;  %1863 = vmatmul.mubr.f32.gmra.mxu0 %v6470_v46  ;;  %2024 = vmatmul.mubr.f32.gmra.mxu1 %v6470_v46  ;;  %9542 = vst [vmem:[#allocation75_spill] sm:$0xff] %v6481_v26  ;;  %v6483_v17 = vpop.f32.mrf.mxu1  ;;  %v1765_v10 = vld [vmem:[#allocation7 + $0x328] sm:$0xff] }
 0x298   : > { %v5460_v47 = vpop.eup %5459  ;;  %2117 = vmatpush1.msra.mxu0 %v1780_v40  ;;  %2278 = vmatpush1.msra.mxu1 %v1782_v36  ;;  %9543 = vst [vmem:[#allocation76_spill] sm:$0xff] %v6483_v17  ;;  %v1764_v36 = vld [vmem:[#allocation7 + $0x320] sm:$0xff]  ;;  %v1766_v40 = vld [vmem:[#allocation7 + $0x330] sm:$0xff]  ;;  %v1757_v26 = vld [vmem:[#allocation7 + $0x2e8] sm:$0xff] }
 0x299   : > { %2118 = vmatprep.subr.mxu0 %v1773_v45  ;;  %2279 = vmatprep.subr.mxu1 %v1775_v37  ;;  %v6479_v21 = vmul.f32 %v5460_v47, %v6265_v41  ;;  %v1767_v37 = vld [vmem:[#allocation7 + $0x338] sm:$0xff]  ;;  %v6494_v47 = vpop.f32.mrf.mxu0 }
 0x29a   : > { %v1597_v1 = vpop.xlane.xlu0 %1596  ;;  %1868 = vmatprep.mubr.f32.mxu0 %v9539_v53  ;;  %2029 = vmatprep.mubr.f32.mxu1 %v9539_v53  ;;  %9544 = vst [vmem:[#allocation77_spill] sm:$0xff] %v6494_v47 }
 0x29b   : > { %5467 = vrcp.f32 %v1597_v1  ;;  %1869 = vmatmul.mubr.f32.gmra.mxu0 %v6479_v21  ;;  %2030 = vmatmul.mubr.f32.gmra.mxu1 %v6479_v21  ;;  %v6496_v1 = vpop.f32.mrf.mxu1 }
 0x29c   : > { %v5462_v41 = vpop.eup %5461  ;;  %2119 = vmatpush1.msra.mxu0 %v1772_v23  ;;  %2280 = vmatpush1.msra.mxu1 %v1774_v29  ;;  %9545 = vst [vmem:[#allocation78_spill] sm:$0xff] %v6496_v1  ;;  %v1756_v29 = vld [vmem:[#allocation7 + $0x2e0] sm:$0xff]  ;;  %v1743_v1 = vld [vmem:[#allocation7 + $0x278] sm:$0xff] }
 0x29d   : > { %1874 = vmatprep.mubr.f32.mxu0 %v9539_v53  ;;  %2035 = vmatprep.mubr.f32.mxu1 %v9539_v53  ;;  %v6492_v45 = vmul.f32 %v5462_v41, %v6271_v51  ;;  %v1758_v41 = vld [vmem:[#allocation7 + $0x2f0] sm:$0xff] }
 0x29e   : > { %2120 = vmatprep.subr.mxu0 %v1765_v10  ;;  %2281 = vmatprep.subr.mxu1 %v1767_v37  ;;  %v1599_v17 = vpop.xlane.xlu1 %1598  ;;  %v6503_v10 = vpop.f32.mrf.mxu0 }
 0x29f   : > { %5469 = vrcp.f32 %v1599_v17  ;;  %1875 = vmatmul.mubr.f32.gmra.mxu0 %v6492_v45  ;;  %2036 = vmatmul.mubr.f32.gmra.mxu1 %v6492_v45  ;;  %9546 = vst [vmem:[#allocation79_spill] sm:$0xff] %v6503_v10  ;;  %v6505_v37 = vpop.f32.mrf.mxu1  ;;  %v1741_v10 = vld [vmem:[#allocation7 + $0x268] sm:$0xff] }
 0x2a0   : > { %v5464_v23 = vpop.eup %5463  ;;  %2121 = vmatpush1.msra.mxu0 %v1764_v36  ;;  %2282 = vmatpush1.msra.mxu1 %v1766_v40  ;;  %9547 = vst [vmem:[#allocation80_spill] sm:$0xff] %v6505_v37  ;;  %v1748_v36 = vld [vmem:[#allocation7 + $0x2a0] sm:$0xff]  ;;  %v1750_v40 = vld [vmem:[#allocation7 + $0x2b0] sm:$0xff] }
 0x2a1   : > { %2122 = vmatprep.subr.mxu0 %v1757_v26  ;;  %2283 = vmatprep.subr.mxu1 %v1759_v32  ;;  %v6501_v51 = vmul.f32 %v5464_v23, %v6278_v44  ;;  %v1749_v32 = vld [vmem:[#allocation7 + $0x2a8] sm:$0xff]  ;;  %v1751_v26 = vld [vmem:[#allocation7 + $0x2b8] sm:$0xff]  ;;  %v6516_v23 = vpop.f32.mrf.mxu0 }
 0x2a2   : > { %v1601_v47 = vpop.xlane.xlu0 %1600  ;;  %1880 = vmatprep.mubr.f32.mxu0 %v9539_v53  ;;  %2041 = vmatprep.mubr.f32.mxu1 %v9539_v53  ;;  %9548 = vst [vmem:[#allocation81_spill] sm:$0xff] %v6516_v23  ;;  %v1727_v23 = vld [vmem:[#allocation7 + $0x1f8] sm:$0xff] }
 0x2a3   : > { %5471 = vrcp.f32 %v1601_v47  ;;  %1881 = vmatmul.mubr.f32.gmra.mxu0 %v6501_v51  ;;  %2042 = vmatmul.mubr.f32.gmra.mxu1 %v6501_v51  ;;  %v6518_v47 = vpop.f32.mrf.mxu1 }
 0x2a4   : > { %v5466_v44 = vpop.eup %5465  ;;  %2123 = vmatpush1.msra.mxu0 %v1756_v29  ;;  %2284 = vmatpush1.msra.mxu1 %v1758_v41  ;;  %9549 = vst [vmem:[#allocation82_spill] sm:$0xff] %v6518_v47  ;;  %v1740_v41 = vld [vmem:[#allocation7 + $0x260] sm:$0xff] }
 0x2a5   : > { %1886 = vmatprep.mubr.f32.mxu0 %v9539_v53  ;;  %2047 = vmatprep.mubr.f32.mxu1 %v9539_v53  ;;  %v6514_v17 = vmul.f32 %v5466_v44, %v6285_v14  ;;  %v1742_v44 = vld [vmem:[#allocation7 + $0x270] sm:$0xff] }
 0x2a6   : > { %2124 = vmatprep.subr.mxu0 %v1749_v32  ;;  %2285 = vmatprep.subr.mxu1 %v1751_v26  ;;  %v1603_v37 = vpop.xlane.xlu1 %1602  ;;  %v6525_v32 = vpop.f32.mrf.mxu0 }
 0x2a7   : > { %5473 = vrcp.f32 %v1603_v37  ;;  %1887 = vmatmul.mubr.f32.gmra.mxu0 %v6514_v17  ;;  %2048 = vmatmul.mubr.f32.gmra.mxu1 %v6514_v17  ;;  %9550 = vst [vmem:[#allocation83_spill] sm:$0xff] %v6525_v32  ;;  %v6527_v26 = vpop.f32.mrf.mxu1  ;;  %v1725_v32 = vld [vmem:[#allocation7 + $0x1e8] sm:$0xff] }
 0x2a8   : > { %v5468_v29 = vpop.eup %5467  ;;  %2125 = vmatpush1.msra.mxu0 %v1748_v36  ;;  %2286 = vmatpush1.msra.mxu1 %v1750_v40  ;;  %9551 = vst [vmem:[#allocation84_spill] sm:$0xff] %v6527_v26  ;;  %v1732_v36 = vld [vmem:[#allocation7 + $0x220] sm:$0xff]  ;;  %v1734_v40 = vld [vmem:[#allocation7 + $0x230] sm:$0xff] }
 0x2a9   : > { %2126 = vmatprep.subr.mxu0 %v1741_v10  ;;  %2287 = vmatprep.subr.mxu1 %v1743_v1  ;;  %v6523_v14 = vmul.f32 %v5468_v29, %v6294_v56  ;;  %v1733_v1 = vld [vmem:[#allocation7 + $0x228] sm:$0xff]  ;;  %v1735_v10 = vld [vmem:[#allocation7 + $0x238] sm:$0xff]  ;;  %v6538_v29 = vpop.f32.mrf.mxu0 }
 0x2aa   : > { %v1605_v47 = vpop.xlane.xlu0 %1604  ;;  %1892 = vmatprep.mubr.f32.mxu0 %v9539_v53  ;;  %2053 = vmatprep.mubr.f32.mxu1 %v9539_v53  ;;  %9552 = vst [vmem:[#allocation85_spill] sm:$0xff] %v6538_v29 }
 0x2ab   : > { %5475 = vrcp.f32 %v1605_v47  ;;  %1893 = vmatmul.mubr.f32.gmra.mxu0 %v6523_v14  ;;  %2054 = vmatmul.mubr.f32.gmra.mxu1 %v6523_v14  ;;  %v6540_v47 = vpop.f32.mrf.mxu1 }
 0x2ac   : > { %v5470_v56 = vpop.eup %5469  ;;  %2127 = vmatpush1.msra.mxu0 %v1740_v41  ;;  %2288 = vmatpush1.msra.mxu1 %v1742_v44  ;;  %9553 = vst [vmem:[#allocation86_spill] sm:$0xff] %v6540_v47  ;;  %v1724_v44 = vld [vmem:[#allocation7 + $0x1e0] sm:$0xff]  ;;  %v1711_v47 = vld [vmem:[#allocation7 + $0x178] sm:$0xff] }
 0x2ad   : > { %1898 = vmatprep.mubr.f32.mxu0 %v9539_v53  ;;  %2059 = vmatprep.mubr.f32.mxu1 %v9539_v53  ;;  %v6536_v37 = vmul.f32 %v5470_v56, %v6303_v42  ;;  %v1726_v56 = vld [vmem:[#allocation7 + $0x1f0] sm:$0xff] }
 0x2ae   : > { %2128 = vmatprep.subr.mxu0 %v1733_v1  ;;  %2289 = vmatprep.subr.mxu1 %v1735_v10  ;;  %v1607_v26 = vpop.xlane.xlu1 %1606  ;;  %v6547_v1 = vpop.f32.mrf.mxu0 }
 0x2af   : > { %5477 = vrcp.f32 %v1607_v26  ;;  %1899 = vmatmul.mubr.f32.gmra.mxu0 %v6536_v37  ;;  %2060 = vmatmul.mubr.f32.gmra.mxu1 %v6536_v37  ;;  %9554 = vst [vmem:[#allocation87_spill] sm:$0xff] %v6547_v1  ;;  %v6549_v10 = vpop.f32.mrf.mxu1  ;;  %v1709_v1 = vld [vmem:[#allocation7 + $0x168] sm:$0xff] }
 0x2b0   : > { %v5472_v41 = vpop.eup %5471  ;;  %2129 = vmatpush1.msra.mxu0 %v1732_v36  ;;  %2290 = vmatpush1.msra.mxu1 %v1734_v40  ;;  %9555 = vst [vmem:[#allocation88_spill] sm:$0xff] %v6549_v10  ;;  %v1716_v36 = vld [vmem:[#allocation7 + $0x1a0] sm:$0xff]  ;;  %v1718_v40 = vld [vmem:[#allocation7 + $0x1b0] sm:$0xff] }
 0x2b1   : > { %2130 = vmatprep.subr.mxu0 %v1725_v32  ;;  %2291 = vmatprep.subr.mxu1 %v1727_v23  ;;  %v6545_v42 = vmul.f32 %v5472_v41, %v6313_v60  ;;  %v1717_v23 = vld [vmem:[#allocation7 + $0x1a8] sm:$0xff]  ;;  %v1719_v32 = vld [vmem:[#allocation7 + $0x1b8] sm:$0xff]  ;;  %v6560_v41 = vpop.f32.mrf.mxu0 }
 0x2b2   : > { %v1609_v29 = vpop.xlane.xlu0 %1608  ;;  %1904 = vmatprep.mubr.f32.mxu0 %v9539_v53  ;;  %2065 = vmatprep.mubr.f32.mxu1 %v9539_v53  ;;  %9556 = vst [vmem:[#allocation89_spill] sm:$0xff] %v6560_v41 }
 0x2b3   : > { %5479 = vrcp.f32 %v1609_v29  ;;  %1905 = vmatmul.mubr.f32.gmra.mxu0 %v6545_v42  ;;  %2066 = vmatmul.mubr.f32.gmra.mxu1 %v6545_v42  ;;  %v6562_v29 = vpop.f32.mrf.mxu1 }
 0x2b4   : > { %v5474_v60 = vpop.eup %5473  ;;  %2131 = vmatpush1.msra.mxu0 %v1724_v44  ;;  %2292 = vmatpush1.msra.mxu1 %v1726_v56  ;;  %9557 = vst [vmem:[#allocation90_spill] sm:$0xff] %v6562_v29  ;;  %v1708_v56 = vld [vmem:[#allocation7 + $0x160] sm:$0xff] }
 0x2b5   : > { %1910 = vmatprep.mubr.f32.mxu0 %v9539_v53  ;;  %2071 = vmatprep.mubr.f32.mxu1 %v9539_v53  ;;  %v6558_v26 = vmul.f32 %v5474_v60, %v6321_v19  ;;  %v1710_v60 = vld [vmem:[#allocation7 + $0x170] sm:$0xff] }
 0x2b6   : > { %2132 = vmatprep.subr.mxu0 %v1717_v23  ;;  %2293 = vmatprep.subr.mxu1 %v1719_v32  ;;  %v1611_v10 = vpop.xlane.xlu1 %1610  ;;  %v6569_v23 = vpop.f32.mrf.mxu0 }
 0x2b7   : > { %5481 = vrcp.f32 %v1611_v10  ;;  %1911 = vmatmul.mubr.f32.gmra.mxu0 %v6558_v26  ;;  %2072 = vmatmul.mubr.f32.gmra.mxu1 %v6558_v26  ;;  %9558 = vst [vmem:[#allocation91_spill] sm:$0xff] %v6569_v23  ;;  %v6571_v32 = vpop.f32.mrf.mxu1 }
 0x2b8   : > { %v5476_v44 = vpop.eup %5475  ;;  %2133 = vmatpush1.msra.mxu0 %v1716_v36  ;;  %2294 = vmatpush1.msra.mxu1 %v1718_v40  ;;  %9559 = vst [vmem:[#allocation92_spill] sm:$0xff] %v6571_v32  ;;  %v1700_v36 = vld [vmem:[#allocation7 + $0x120] sm:$0xff]  ;;  %v1702_v40 = vld [vmem:[#allocation7 + $0x130] sm:$0xff] }
 0x2b9   : > { %2134 = vmatprep.subr.mxu0 %v1709_v1  ;;  %2295 = vmatprep.subr.mxu1 %v1711_v47  ;;  %v6567_v19 = vmul.f32 %v5476_v44, %v6329_v15  ;;  %v1701_v47 = vld [vmem:[#allocation7 + $0x128] sm:$0xff]  ;;  %v1703_v1 = vld [vmem:[#allocation7 + $0x138] sm:$0xff]  ;;  %v6582_v44 = vpop.f32.mrf.mxu0 }
 0x2ba   : > { %v1613_v29 = vpop.xlane.xlu0 %1612  ;;  %1916 = vmatprep.mubr.f32.mxu0 %v9539_v53  ;;  %2077 = vmatprep.mubr.f32.mxu1 %v9539_v53  ;;  %9560 = vst [vmem:[#allocation93_spill] sm:$0xff] %v6582_v44 }
 0x2bb   : > { %5483 = vrcp.f32 %v1613_v29  ;;  %1917 = vmatmul.mubr.f32.gmra.mxu0 %v6567_v19  ;;  %2078 = vmatmul.mubr.f32.gmra.mxu1 %v6567_v19  ;;  %v6584_v29 = vpop.f32.mrf.mxu1 }
 0x2bc   : > { %v5478_v15 = vpop.eup %5477  ;;  %2135 = vmatpush1.msra.mxu0 %v1708_v56  ;;  %2296 = vmatpush1.msra.mxu1 %v1710_v60  ;;  %9561 = vst [vmem:[#allocation94_spill] sm:$0xff] %v6584_v29  ;;  %v1693_v56 = vld [vmem:[#allocation7 + $0xe8] sm:$0xff]  ;;  %v1695_v60 = vld [vmem:[#allocation7 + $0xf8] sm:$0xff] }
 0x2bd   : > { %1922 = vmatprep.mubr.f32.mxu0 %v9539_v53  ;;  %2083 = vmatprep.mubr.f32.mxu1 %v9539_v53  ;;  %v6580_v10 = vmul.f32 %v5478_v15, %v6337_v20  ;;  %v6593_v15 = vpop.f32.mrf.mxu0 }
 0x2be   : > { %2136 = vmatprep.subr.mxu0 %v1701_v47  ;;  %2297 = vmatprep.subr.mxu1 %v1703_v1  ;;  %v1615_v32 = vpop.xlane.xlu1 %1614  ;;  %v1692_v47 = vld [vmem:[#allocation7 + $0xe0] sm:$0xff]  ;;  %v1694_v1 = vld [vmem:[#allocation7 + $0xf0] sm:$0xff]  ;;  %9562 = vst [vmem:[#allocation95_spill] sm:$0xff] %v6593_v15 }
 0x2bf   : > { %5485 = vrcp.f32 %v1615_v32  ;;  %1923 = vmatmul.mubr.f32.gmra.mxu0 %v6580_v10  ;;  %2084 = vmatmul.mubr.f32.gmra.mxu1 %v6580_v10  ;;  %v6595_v32 = vpop.f32.mrf.mxu1 }
 0x2c0   : > { %v5480_v23 = vpop.eup %5479  ;;  %2137 = vmatpush1.msra.mxu0 %v1700_v36  ;;  %2298 = vmatpush1.msra.mxu1 %v1702_v40  ;;  %9563 = vst [vmem:[#allocation96_spill] sm:$0xff] %v6595_v32  ;;  %v1685_v36 = vld [vmem:[#allocation7 + $0xa8] sm:$0xff]  ;;  %v1687_v40 = vld [vmem:[#allocation7 + $0xb8] sm:$0xff]  ;;  %v1686_v32 = vld [vmem:[#allocation7 + $0xb0] sm:$0xff] }
 0x2c1   : > { %1928 = vmatprep.mubr.f32.mxu0 %v9539_v53  ;;  %2089 = vmatprep.mubr.f32.mxu1 %v9539_v53  ;;  %v6591_v20 = vmul.f32 %v5480_v23, %v6344_v48  ;;  %v1684_v23 = vld [vmem:[#allocation7 + $0xa0] sm:$0xff] }
 0x2c2   : > { %2138 = vmatprep.subr.mxu0 %v1693_v56  ;;  %2299 = vmatprep.subr.mxu1 %v1695_v60  ;;  %v6604_v56 = vpop.f32.mrf.mxu0  ;;  %v6606_v60 = vpop.f32.mrf.mxu1 }
 0x2c3   : > { %1929 = vmatmul.mubr.f32.gmra.mxu0 %v6591_v20  ;;  %2090 = vmatmul.mubr.f32.gmra.mxu1 %v6591_v20  ;;  %9564 = vst [vmem:[#allocation97_spill] sm:$0xff] %v6604_v56  ;;  %9565 = vst [vmem:[#allocation98_spill] sm:$0xff] %v6606_v60  ;;  %v1678_v60 = vld [vmem:[#allocation7 + $0x70] sm:$0xff] }
 0x2c4   : > { %v5482_v44 = vpop.eup %5481  ;;  %2139 = vmatpush1.msra.mxu0 %v1692_v47  ;;  %2300 = vmatpush1.msra.mxu1 %v1694_v1  ;;  %v1677_v47 = vld [vmem:[#allocation7 + $0x68] sm:$0xff]  ;;  %v1679_v1 = vld [vmem:[#allocation7 + $0x78] sm:$0xff] }
 0x2c5   : > { %1934 = vmatprep.mubr.f32.mxu0 %v9539_v53  ;;  %2095 = vmatprep.mubr.f32.mxu1 %v9539_v53  ;;  %v6602_v48 = vmul.f32 %v5482_v44, %v6351_v7  ;;  %v1676_v44 = vld [vmem:[#allocation7 + $0x60] sm:$0xff] }
 0x2c6   : > { %2140 = vmatprep.subr.mxu0 %v1685_v36  ;;  %2301 = vmatprep.subr.mxu1 %v1687_v40  ;;  %v6615_v36 = vpop.f32.mrf.mxu0  ;;  %v6617_v40 = vpop.f32.mrf.mxu1 }
 0x2c7   : > { %1935 = vmatmul.mubr.f32.gmra.mxu0 %v6602_v48  ;;  %2096 = vmatmul.mubr.f32.gmra.mxu1 %v6602_v48  ;;  %9566 = vst [vmem:[#allocation99_spill] sm:$0xff] %v6615_v36  ;;  %9567 = vst [vmem:[#allocation100_spill] sm:$0xff] %v6617_v40  ;;  %v1670_v40 = vld [vmem:[#allocation7 + $0x30] sm:$0xff] }
 0x2c8   : > { %v5484_v15 = vpop.eup %5483  ;;  %2141 = vmatpush1.msra.mxu0 %v1684_v23  ;;  %2302 = vmatpush1.msra.mxu1 %v1686_v32  ;;  %v1669_v32 = vld [vmem:[#allocation7 + $0x28] sm:$0xff]  ;;  %v1671_v23 = vld [vmem:[#allocation7 + $0x38] sm:$0xff]  ;;  %v3019_v36 = vld [vmem:[#allocation8 + $0x170] sm:$0xff] }
 0x2c9   : > { %1940 = vmatprep.mubr.f32.mxu0 %v9539_v53  ;;  %2101 = vmatprep.mubr.f32.mxu1 %v9539_v53  ;;  %v6613_v7 = vmul.f32 %v5484_v15, %v6358_v27  ;;  %v1668_v15 = vld [vmem:[#allocation7 + $0x20] sm:$0xff] }
 0x2ca   : > { %2142 = vmatprep.subr.mxu0 %v1677_v47  ;;  %2303 = vmatprep.subr.mxu1 %v1679_v1  ;;  %v6626_v47 = vpop.f32.mrf.mxu0  ;;  %v6628_v1 = vpop.f32.mrf.mxu1 }
 0x2cb   : > { %1941 = vmatmul.mubr.f32.gmra.mxu0 %v6613_v7  ;;  %2102 = vmatmul.mubr.f32.gmra.mxu1 %v6613_v7  ;;  %9568 = vst [vmem:[#allocation101_spill] sm:$0xff] %v6626_v47  ;;  %9569 = vst [vmem:[#allocation102_spill] sm:$0xff] %v6628_v1  ;;  %v2746_v1 = vld [vmem:[#allocation8 + $0xf0] sm:$0xff] }
 0x2cc   : > { %v5486_v56 = vpop.eup %5485  ;;  %2143 = vmatpush1.msra.mxu0 %v1676_v44  ;;  %2304 = vmatpush1.msra.mxu1 %v1678_v60  ;;  %v2452_v60 = vld [vmem:[#allocation10 + $0x78] sm:$0xff] }
 0x2cd   : > { %1946 = vmatprep.mubr.f32.mxu0 %v9539_v53  ;;  %2107 = vmatprep.mubr.f32.mxu1 %v9539_v53  ;;  %v6624_v27 = vmul.f32 %v5486_v56, %v6365_v16  ;;  %v2747_v44 = vld [vmem:[#allocation8 + $0xf8] sm:$0xff]  ;;  %v6634_v16 = vpop.f32.mrf.mxu0  ;;  %v6636_v56 = vpop.f32.mrf.mxu1 }
 0x2ce   : > { %2144 = vmatprep.subr.mxu0 %v1669_v32  ;;  %2305 = vmatprep.subr.mxu1 %v1671_v23  ;;  %9570 = vst [vmem:[#allocation103_spill] sm:$0xff] %v6634_v16  ;;  %9571 = vst [vmem:[#allocation104_spill] sm:$0xff] %v6636_v56  ;;  %v2731_v32 = vld [vmem:[#allocation8 + $0x78] sm:$0xff]  ;;  %v2451_v23 = vld [vmem:[#allocation10 + $0x70] sm:$0xff] }
 0x2cf   : > { %1947 = vmatmul.mubr.f32.gmra.mxu0 %v6624_v27  ;;  %2108 = vmatmul.mubr.f32.gmra.mxu1 %v6624_v27  ;;  %v2745_v56 = vld [vmem:[#allocation8 + $0xe8] sm:$0xff] }
 0x2d0   : > { %2145 = vmatpush1.msra.mxu0 %v1668_v15  ;;  %2306 = vmatpush1.msra.mxu1 %v1670_v40  ;;  %v6642_v40 = vpop.f32.mrf.mxu0  ;;  %v6644_v15 = vpop.f32.mrf.mxu1 }
 0x2d1   : > { %2178 = vmatprep.mubr.f32.mxu0 %v9539_v53  ;;  %2339 = vmatprep.mubr.f32.mxu1 %v9539_v53  ;;  %9572 = vst [vmem:[#allocation105_spill] sm:$0xff] %v6644_v15 }
 0x2d2   : > { %5239 = vmatprep.subr.mxu0 %v2452_v60  ;;  %4839 = vmatprep.subr.mxu1 %v2747_v44  ;;  %v2730_v44 = vld [vmem:[#allocation8 + $0x70] sm:$0xff]  ;;  %v6652_v16 = vpop.f32.mrf.mxu1 }
 0x2d3   : > { %2179 = vmatmul.mubr.f32.vlgmr.msra.gmra.mxu0 %v6459_v54  ;;  %2340 = vmatmul.mubr.f32.vlgmr.msra.gmra.mxu1 %v6459_v54  ;;  %v2450_v54 = vld [vmem:[#allocation10 + $0x68] sm:$0xff]  ;;  %9574 = vst [vmem:[#allocation107_spill] sm:$0xff] %v6652_v16 }
 0x2d4   : > { %2184 = vmatprep.mubr.f32.mxu0 %v9539_v53  ;;  %2345 = vmatprep.mubr.f32.mxu1 %v9539_v53 }
 0x2d5   : > { %5240 = vmatpush3.msra.mxu0 %v2452_v60  ;;  %4840 = vmatpush3.msra.mxu1 %v2731_v32  ;;  %v6650_v60 = vpop.f32.mrf.mxu0  ;;  %v2744_v32 = vld [vmem:[#allocation8 + $0xe0] sm:$0xff] }
 0x2d6   : > { %5241 = vmatprep.subr.mxu0 %v2451_v23  ;;  %4841 = vmatprep.subr.mxu1 %v2746_v1  ;;  %9573 = vst [vmem:[#allocation106_spill] sm:$0xff] %v6650_v60  ;;  %v2729_v1 = vld [vmem:[#allocation8 + $0x68] sm:$0xff]  ;;  %v6660_v60 = vpop.f32.mrf.mxu1 }
 0x2d7   : > { %2185 = vmatmul.mubr.f32.gmra.mxu0 %v6470_v46  ;;  %2346 = vmatmul.mubr.f32.gmra.mxu1 %v6470_v46  ;;  %v2449_v46 = vld [vmem:[#allocation10 + $0x60] sm:$0xff] }
 0x2d8   : > { %2190 = vmatprep.mubr.f32.mxu0 %v9539_v53  ;;  %2351 = vmatprep.mubr.f32.mxu1 %v9539_v53  ;;  %v6668_v16 = vpop.f32.mrf.mxu1 }
 0x2d9   : > { %5242 = vmatpush3.msra.mxu0 %v2451_v23  ;;  %4842 = vmatpush3.msra.mxu1 %v2730_v44  ;;  %v6658_v23 = vpop.f32.mrf.mxu0  ;;  %v2743_v44 = vld [vmem:[#allocation8 + $0xd8] sm:$0xff]  ;;  %9576 = vst [vmem:[#allocation109_spill] sm:$0xff] %v6668_v16 }
 0x2da   : > { %5243 = vmatprep.subr.mxu0 %v2450_v54  ;;  %4843 = vmatprep.subr.mxu1 %v2745_v56  ;;  %v2728_v56 = vld [vmem:[#allocation8 + $0x60] sm:$0xff] }
 0x2db   : > { %2191 = vmatmul.mubr.f32.gmra.mxu0 %v6479_v21  ;;  %2352 = vmatmul.mubr.f32.gmra.mxu1 %v6479_v21  ;;  %v2448_v21 = vld [vmem:[#allocation10 + $0x58] sm:$0xff] }
 0x2dc   : > { %2196 = vmatprep.mubr.f32.mxu0 %v9539_v53  ;;  %2357 = vmatprep.mubr.f32.mxu1 %v9539_v53 }
 0x2dd   : > { %5244 = vmatpush3.msra.mxu0 %v2450_v54  ;;  %4844 = vmatpush3.msra.mxu1 %v2729_v1  ;;  %v6666_v54 = vpop.f32.mrf.mxu0  ;;  %v2727_v1 = vld [vmem:[#allocation8 + $0x58] sm:$0xff] }
 0x2de   : > { %5245 = vmatprep.subr.mxu0 %v2449_v46  ;;  %4845 = vmatprep.subr.mxu1 %v2744_v32  ;;  %9575 = vst [vmem:[#allocation108_spill] sm:$0xff] %v6666_v54  ;;  %v2742_v32 = vld [vmem:[#allocation8 + $0xd0] sm:$0xff]  ;;  %v6676_v54 = vpop.f32.mrf.mxu1 }
 0x2df   : > { %2197 = vmatmul.mubr.f32.gmra.mxu0 %v6492_v45  ;;  %2358 = vmatmul.mubr.f32.gmra.mxu1 %v6492_v45  ;;  %v2447_v45 = vld [vmem:[#allocation10 + $0x50] sm:$0xff] }
 0x2e0   : > { %2202 = vmatprep.mubr.f32.mxu0 %v9539_v53  ;;  %2363 = vmatprep.mubr.f32.mxu1 %v9539_v53  ;;  %v6684_v16 = vpop.f32.mrf.mxu1 }
 0x2e1   : > { %5246 = vmatpush3.msra.mxu0 %v2449_v46  ;;  %4846 = vmatpush3.msra.mxu1 %v2728_v56  ;;  %v6674_v46 = vpop.f32.mrf.mxu0  ;;  %v2726_v56 = vld [vmem:[#allocation8 + $0x50] sm:$0xff]  ;;  %9579 = vst [vmem:[#allocation112_spill] sm:$0xff] %v6684_v16 }
 0x2e2   : > { %5247 = vmatprep.subr.mxu0 %v2448_v21  ;;  %4847 = vmatprep.subr.mxu1 %v2743_v44  ;;  %9577 = vst [vmem:[#allocation110_spill] sm:$0xff] %v6674_v46  ;;  %v2741_v44 = vld [vmem:[#allocation8 + $0xc8] sm:$0xff] }
 0x2e3   : > { %2203 = vmatmul.mubr.f32.gmra.mxu0 %v6501_v51  ;;  %2364 = vmatmul.mubr.f32.gmra.mxu1 %v6501_v51  ;;  %v2446_v51 = vld [vmem:[#allocation10 + $0x48] sm:$0xff] }
 0x2e4   : > { %2208 = vmatprep.mubr.f32.mxu0 %v9539_v53  ;;  %2369 = vmatprep.mubr.f32.mxu1 %v9539_v53 }
 0x2e5   : > { %5248 = vmatpush3.msra.mxu0 %v2448_v21  ;;  %4848 = vmatpush3.msra.mxu1 %v2727_v1  ;;  %v6682_v21 = vpop.f32.mrf.mxu0  ;;  %v2725_v1 = vld [vmem:[#allocation8 + $0x48] sm:$0xff] }
 0x2e6   : > { %5249 = vmatprep.subr.mxu0 %v2447_v45  ;;  %4849 = vmatprep.subr.mxu1 %v2742_v32  ;;  %9578 = vst [vmem:[#allocation111_spill] sm:$0xff] %v6682_v21  ;;  %v2740_v32 = vld [vmem:[#allocation8 + $0xc0] sm:$0xff]  ;;  %v6692_v21 = vpop.f32.mrf.mxu1 }
 0x2e7   : > { %2209 = vmatmul.mubr.f32.gmra.mxu0 %v6514_v17  ;;  %2370 = vmatmul.mubr.f32.gmra.mxu1 %v6514_v17  ;;  %v2445_v17 = vld [vmem:[#allocation10 + $0x40] sm:$0xff] }
 0x2e8   : > { %2214 = vmatprep.mubr.f32.mxu0 %v9539_v53  ;;  %2375 = vmatprep.mubr.f32.mxu1 %v9539_v53  ;;  %v6700_v16 = vpop.f32.mrf.mxu1 }
 0x2e9   : > { %5250 = vmatpush3.msra.mxu0 %v2447_v45  ;;  %4850 = vmatpush3.msra.mxu1 %v2726_v56  ;;  %v6690_v45 = vpop.f32.mrf.mxu0  ;;  %v2724_v56 = vld [vmem:[#allocation8 + $0x40] sm:$0xff]  ;;  %9582 = vst [vmem:[#allocation115_spill] sm:$0xff] %v6700_v16 }
 0x2ea   : > { %5251 = vmatprep.subr.mxu0 %v2446_v51  ;;  %4851 = vmatprep.subr.mxu1 %v2741_v44  ;;  %9580 = vst [vmem:[#allocation113_spill] sm:$0xff] %v6690_v45  ;;  %v2739_v44 = vld [vmem:[#allocation8 + $0xb8] sm:$0xff] }
 0x2eb   : > { %2215 = vmatmul.mubr.f32.gmra.mxu0 %v6523_v14  ;;  %2376 = vmatmul.mubr.f32.gmra.mxu1 %v6523_v14  ;;  %v2444_v14 = vld [vmem:[#allocation10 + $0x38] sm:$0xff] }
 0x2ec   : > { %2220 = vmatprep.mubr.f32.mxu0 %v9539_v53  ;;  %2381 = vmatprep.mubr.f32.mxu1 %v9539_v53 }
 0x2ed   : > { %5252 = vmatpush3.msra.mxu0 %v2446_v51  ;;  %4852 = vmatpush3.msra.mxu1 %v2725_v1  ;;  %v6698_v51 = vpop.f32.mrf.mxu0  ;;  %v2723_v1 = vld [vmem:[#allocation8 + $0x38] sm:$0xff] }
 0x2ee   : > { %5253 = vmatprep.subr.mxu0 %v2445_v17  ;;  %4853 = vmatprep.subr.mxu1 %v2740_v32  ;;  %9581 = vst [vmem:[#allocation114_spill] sm:$0xff] %v6698_v51  ;;  %v2738_v32 = vld [vmem:[#allocation8 + $0xb0] sm:$0xff]  ;;  %v6708_v51 = vpop.f32.mrf.mxu1 }
 0x2ef   : > { %2221 = vmatmul.mubr.f32.gmra.mxu0 %v6536_v37  ;;  %2382 = vmatmul.mubr.f32.gmra.mxu1 %v6536_v37  ;;  %v2443_v37 = vld [vmem:[#allocation10 + $0x30] sm:$0xff] }
 0x2f0   : > { %2226 = vmatprep.mubr.f32.mxu0 %v9539_v53  ;;  %2387 = vmatprep.mubr.f32.mxu1 %v9539_v53  ;;  %v6716_v16 = vpop.f32.mrf.mxu1 }
 0x2f1   : > { %5254 = vmatpush3.msra.mxu0 %v2445_v17  ;;  %4854 = vmatpush3.msra.mxu1 %v2724_v56  ;;  %v6706_v17 = vpop.f32.mrf.mxu0  ;;  %v2722_v56 = vld [vmem:[#allocation8 + $0x30] sm:$0xff]  ;;  %9585 = vst [vmem:[#allocation118_spill] sm:$0xff] %v6716_v16 }
 0x2f2   : > { %5255 = vmatprep.subr.mxu0 %v2444_v14  ;;  %4855 = vmatprep.subr.mxu1 %v2739_v44  ;;  %9583 = vst [vmem:[#allocation116_spill] sm:$0xff] %v6706_v17  ;;  %v2737_v44 = vld [vmem:[#allocation8 + $0xa8] sm:$0xff] }
 0x2f3   : > { %2227 = vmatmul.mubr.f32.gmra.mxu0 %v6545_v42  ;;  %2388 = vmatmul.mubr.f32.gmra.mxu1 %v6545_v42  ;;  %v2442_v42 = vld [vmem:[#allocation10 + $0x28] sm:$0xff] }
 0x2f4   : > { %2232 = vmatprep.mubr.f32.mxu0 %v9539_v53  ;;  %2393 = vmatprep.mubr.f32.mxu1 %v9539_v53 }
 0x2f5   : > { %5256 = vmatpush3.msra.mxu0 %v2444_v14  ;;  %4856 = vmatpush3.msra.mxu1 %v2723_v1  ;;  %v6714_v14 = vpop.f32.mrf.mxu0  ;;  %v2721_v1 = vld [vmem:[#allocation8 + $0x28] sm:$0xff] }
 0x2f6   : > { %5257 = vmatprep.subr.mxu0 %v2443_v37  ;;  %4857 = vmatprep.subr.mxu1 %v2738_v32  ;;  %9584 = vst [vmem:[#allocation117_spill] sm:$0xff] %v6714_v14  ;;  %v2736_v32 = vld [vmem:[#allocation8 + $0xa0] sm:$0xff]  ;;  %v6724_v14 = vpop.f32.mrf.mxu1 }
 0x2f7   : > { %2233 = vmatmul.mubr.f32.gmra.mxu0 %v6558_v26  ;;  %2394 = vmatmul.mubr.f32.gmra.mxu1 %v6558_v26  ;;  %v2441_v26 = vld [vmem:[#allocation10 + $0x20] sm:$0xff] }
 0x2f8   : > { %2238 = vmatprep.mubr.f32.mxu0 %v9539_v53  ;;  %2399 = vmatprep.mubr.f32.mxu1 %v9539_v53  ;;  %v6732_v16 = vpop.f32.mrf.mxu1 }
 0x2f9   : > { %5258 = vmatpush3.msra.mxu0 %v2443_v37  ;;  %4858 = vmatpush3.msra.mxu1 %v2722_v56  ;;  %v6722_v37 = vpop.f32.mrf.mxu0  ;;  %v2720_v56 = vld [vmem:[#allocation8 + $0x20] sm:$0xff]  ;;  %9588 = vst [vmem:[#allocation121_spill] sm:$0xff] %v6732_v16 }
 0x2fa   : > { %5259 = vmatprep.subr.mxu0 %v2442_v42  ;;  %4859 = vmatprep.subr.mxu1 %v2737_v44  ;;  %9586 = vst [vmem:[#allocation119_spill] sm:$0xff] %v6722_v37  ;;  %v2735_v44 = vld [vmem:[#allocation8 + $0x98] sm:$0xff] }
 0x2fb   : > { %2239 = vmatmul.mubr.f32.gmra.mxu0 %v6567_v19  ;;  %2400 = vmatmul.mubr.f32.gmra.mxu1 %v6567_v19  ;;  %v2440_v19 = vld [vmem:[#allocation10 + $0x18] sm:$0xff] }
 0x2fc   : > { %2244 = vmatprep.mubr.f32.mxu0 %v9539_v53  ;;  %2405 = vmatprep.mubr.f32.mxu1 %v9539_v53 }
 0x2fd   : > { %5260 = vmatpush3.msra.mxu0 %v2442_v42  ;;  %4860 = vmatpush3.msra.mxu1 %v2721_v1  ;;  %v6730_v42 = vpop.f32.mrf.mxu0  ;;  %v2719_v1 = vld [vmem:[#allocation8 + $0x18] sm:$0xff] }
 0x2fe   : > { %5261 = vmatprep.subr.mxu0 %v2441_v26  ;;  %4861 = vmatprep.subr.mxu1 %v2736_v32  ;;  %9587 = vst [vmem:[#allocation120_spill] sm:$0xff] %v6730_v42  ;;  %v2734_v32 = vld [vmem:[#allocation8 + $0x90] sm:$0xff]  ;;  %v6740_v42 = vpop.f32.mrf.mxu1 }
 0x2ff   : > { %2245 = vmatmul.mubr.f32.gmra.mxu0 %v6580_v10  ;;  %2406 = vmatmul.mubr.f32.gmra.mxu1 %v6580_v10  ;;  %v2439_v10 = vld [vmem:[#allocation10 + $0x10] sm:$0xff] }
 0x300   : > { %2250 = vmatprep.mubr.f32.mxu0 %v9539_v53  ;;  %2411 = vmatprep.mubr.f32.mxu1 %v9539_v53  ;;  %v6748_v16 = vpop.f32.mrf.mxu1 }
 0x301   : > { %5262 = vmatpush3.msra.mxu0 %v2441_v26  ;;  %4862 = vmatpush3.msra.mxu1 %v2720_v56  ;;  %v6738_v26 = vpop.f32.mrf.mxu0  ;;  %v2718_v56 = vld [vmem:[#allocation8 + $0x10] sm:$0xff]  ;;  %9591 = vst [vmem:[#allocation124_spill] sm:$0xff] %v6748_v16  ;;  %v3036_v16 = vld [vmem:[#allocation8 + $0x1f8] sm:$0xff] }
 0x302   : > { %5263 = vmatprep.subr.mxu0 %v2440_v19  ;;  %4863 = vmatprep.subr.mxu1 %v2735_v44  ;;  %9589 = vst [vmem:[#allocation122_spill] sm:$0xff] %v6738_v26  ;;  %v2733_v44 = vld [vmem:[#allocation8 + $0x88] sm:$0xff] }
 0x303   : > { %2251 = vmatmul.mubr.f32.gmra.mxu0 %v6591_v20  ;;  %2412 = vmatmul.mubr.f32.gmra.mxu1 %v6591_v20  ;;  %v2438_v20 = vld [vmem:[#allocation10 + $0x8] sm:$0xff] }
 0x304   : > { %2256 = vmatprep.mubr.f32.mxu0 %v9539_v53  ;;  %2417 = vmatprep.mubr.f32.mxu1 %v9539_v53 }
 0x305   : > { %5264 = vmatpush3.msra.mxu0 %v2440_v19  ;;  %4864 = vmatpush3.msra.mxu1 %v2719_v1  ;;  %v6746_v19 = vpop.f32.mrf.mxu0  ;;  %v2717_v1 = vld [vmem:[#allocation8 + $0x8] sm:$0xff] }
 0x306   : > { %5265 = vmatprep.subr.mxu0 %v2439_v10  ;;  %4865 = vmatprep.subr.mxu1 %v2734_v32  ;;  %9590 = vst [vmem:[#allocation123_spill] sm:$0xff] %v6746_v19  ;;  %v2732_v32 = vld [vmem:[#allocation8 + $0x80] sm:$0xff]  ;;  %v6756_v19 = vpop.f32.mrf.mxu1 }
 0x307   : > { %2257 = vmatmul.mubr.f32.gmra.mxu0 %v6602_v48  ;;  %2418 = vmatmul.mubr.f32.gmra.mxu1 %v6602_v48  ;;  %v2437_v48 = vld [vmem:[#allocation10] sm:$0xff] }
 0x308   : > { %2262 = vmatprep.mubr.f32.mxu0 %v9539_v53  ;;  %2423 = vmatprep.mubr.f32.mxu1 %v9539_v53  ;;  %v6764_v47 = vpop.f32.mrf.mxu1 }
 0x309   : > { %5266 = vmatpush3.msra.mxu0 %v2439_v10  ;;  %4866 = vmatpush3.msra.mxu1 %v2718_v56  ;;  %v6754_v10 = vpop.f32.mrf.mxu0  ;;  %v1648_v56 = vmax.f32 %v6067_v57, 0.0  ;;  %9594 = vst [vmem:[#allocation127_spill] sm:$0xff] %v6764_v47  ;;  %v3020_v57 = vld [vmem:[#allocation8 + $0x178] sm:$0xff] }
 0x30a   : > { %5267 = vmatprep.subr.mxu0 %v2438_v20  ;;  %4867 = vmatprep.subr.mxu1 %v2733_v44  ;;  %9592 = vst [vmem:[#allocation125_spill] sm:$0xff] %v6754_v10  ;;  %v2716_v44 = vld [vmem:[#allocation8] sm:$0xff] }
 0x30b   : > { %2263 = vmatmul.mubr.f32.gmra.mxu0 %v6613_v7  ;;  %2424 = vmatmul.mubr.f32.gmra.mxu1 %v6613_v7  ;;  %v3517_v7 = vld [vmem:[#allocation8 + $0x2f8] sm:$0xff] }
 0x30c   : > { %2268 = vmatprep.mubr.f32.mxu0 %v9539_v53  ;;  %2429 = vmatprep.mubr.f32.mxu1 %v9539_v53  ;;  %v1649_v53 = vmax.f32 %v6074_v59, 0.0  ;;  %v6770_v59 = vpop.f32.mrf.mxu1 }
 0x30d   : > { %5268 = vmatpush3.msra.mxu0 %v2438_v20  ;;  %4868 = vmatpush3.msra.mxu1 %v2717_v1  ;;  %v6762_v20 = vpop.f32.mrf.mxu0  ;;  %v1650_v1 = vmax.f32 %v6081_v61, 0.0  ;;  %9596 = vst [vmem:[#allocation129_spill] sm:$0xff] %v6770_v59  ;;  %v3017_v61 = vld [vmem:[#allocation8 + $0x160] sm:$0xff] }
 0x30e   : > { %5269 = vmatprep.subr.mxu0 %v2437_v48  ;;  %4869 = vmatprep.subr.mxu1 %v2732_v32  ;;  %9593 = vst [vmem:[#allocation126_spill] sm:$0xff] %v6762_v20  ;;  %v3035_v32 = vld [vmem:[#allocation8 + $0x1f0] sm:$0xff]  ;;  %v3018_v20 = vld [vmem:[#allocation8 + $0x168] sm:$0xff] }
 0x30f   : > { %2269 = vmatmul.mubr.f32.gmra.mxu0 %v6624_v27  ;;  %2430 = vmatmul.mubr.f32.gmra.mxu1 %v6624_v27  ;;  %v3034_v27 = vld [vmem:[#allocation8 + $0x1e8] sm:$0xff] }
 0x310   : > { %5271 = vmatprep.mubr.f32.mxu0 %v1648_v56  ;;  %5270 = vmatpush3.msra.mxu0 %v2437_v48  ;;  %v1651_v48 = vmax.f32 %v6088_v63, 0.0  ;;  %v6768_v56 = vpop.f32.mrf.mxu0  ;;  %v6776_v63 = vpop.f32.mrf.mxu1 }
 0x311   : > { %4870 = vmatpush3.msra.mxu1 %v2716_v44  ;;  %4919 = vmatprep.subr.mxu0 %v3036_v16  ;;  %9595 = vst [vmem:[#allocation128_spill] sm:$0xff] %v6768_v56  ;;  %v1652_v16 = vmax.f32 %v6093_v6, 0.0  ;;  %v3033_v44 = vld [vmem:[#allocation8 + $0x1e0] sm:$0xff]  ;;  %9598 = vst [vmem:[#allocation131_spill] sm:$0xff] %v6776_v63  ;;  %v3031_v6 = vld [vmem:[#allocation8 + $0x1d0] sm:$0xff] }
 0x312   : > { %4999 = vmatprep.subr.mxu1 %v3517_v7  ;;  %v3032_v7 = vld [vmem:[#allocation8 + $0x1d8] sm:$0xff] }
 0x313   : > { %5272 = vmatmul.mubr.f32.vlgmr.msra.gmra.mxu0 %v1649_v53  ;;  %v1653_v53 = vmax.f32 %v6100_v12, 0.0  ;;  %v6782_v12 = vpop.f32.mrf.mxu1 }
 0x314   : > { %5274 = vmatprep.mubr.f32.mxu0 %v1650_v1  ;;  %4920 = vmatpush3.msra.mxu0 %v3020_v57  ;;  %v6774_v57 = vpop.f32.mrf.mxu0  ;;  %v3016_v1 = vld [vmem:[#allocation8 + $0x158] sm:$0xff]  ;;  %9600 = vst [vmem:[#allocation133_spill] sm:$0xff] %v6782_v12 }
 0x315   : > { %4921 = vmatprep.subr.mxu0 %v3035_v32  ;;  %9597 = vst [vmem:[#allocation130_spill] sm:$0xff] %v6774_v57  ;;  %v1654_v32 = vmax.f32 %v6107_v18, 0.0  ;;  %v3029_v18 = vld [vmem:[#allocation8 + $0x1c0] sm:$0xff] }
 0x316   : > { %4922 = vmatpush3.msra.mxu0 %v3019_v36  ;;  %v3015_v36 = vld [vmem:[#allocation8 + $0x150] sm:$0xff] }
 0x317   : > { %5275 = vmatmul.mubr.f32.gmra.mxu0 %v1651_v48  ;;  %4923 = vmatprep.subr.mxu0 %v3034_v27  ;;  %v3030_v27 = vld [vmem:[#allocation8 + $0x1c8] sm:$0xff]  ;;  %v6780_v48 = vpop.f32.mrf.mxu0 }
 0x318   : > { %5277 = vmatprep.mubr.f32.mxu0 %v1652_v16  ;;  %4924 = vmatpush3.msra.mxu0 %v3018_v20  ;;  %v1655_v20 = vmax.f32 %v6114_v24, 0.0  ;;  %9599 = vst [vmem:[#allocation132_spill] sm:$0xff] %v6780_v48  ;;  %v3014_v16 = vld [vmem:[#allocation8 + $0x148] sm:$0xff]  ;;  %v6788_v24 = vpop.f32.mrf.mxu1 }
 0x319   : > { %4925 = vmatprep.subr.mxu0 %v3033_v44  ;;  %v1656_v44 = vmax.f32 %v6121_v30, 0.0  ;;  %9602 = vst [vmem:[#allocation135_spill] sm:$0xff] %v6788_v24  ;;  %v3027_v30 = vld [vmem:[#allocation8 + $0x1b0] sm:$0xff] }
 0x31a   : > { %4926 = vmatpush3.msra.mxu0 %v3017_v61  ;;  %v3013_v61 = vld [vmem:[#allocation8 + $0x140] sm:$0xff] }
 0x31b   : > { %5278 = vmatmul.mubr.f32.gmra.mxu0 %v1653_v53  ;;  %4927 = vmatprep.subr.mxu0 %v3032_v7  ;;  %v3028_v7 = vld [vmem:[#allocation8 + $0x1b8] sm:$0xff]  ;;  %v1657_v53 = vmax.f32 %v6126_v52, 0.0  ;;  %v6794_v52 = vpop.f32.mrf.mxu1 }
 0x31c   : > { %5280 = vmatprep.mubr.f32.mxu0 %v1654_v32  ;;  %4928 = vmatpush3.msra.mxu0 %v3016_v1  ;;  %v6786_v1 = vpop.f32.mrf.mxu0  ;;  %v3012_v32 = vld [vmem:[#allocation8 + $0x138] sm:$0xff]  ;;  %9604 = vst [vmem:[#allocation137_spill] sm:$0xff] %v6794_v52 }
 0x31d   : > { %4929 = vmatprep.subr.mxu0 %v3031_v6  ;;  %9601 = vst [vmem:[#allocation134_spill] sm:$0xff] %v6786_v1  ;;  %v1658_v6 = vmax.f32 %v6131_v3, 0.0  ;;  %v3025_v3 = vld [vmem:[#allocation8 + $0x1a0] sm:$0xff] }
 0x31e   : > { %4930 = vmatpush3.msra.mxu0 %v3015_v36  ;;  %v3011_v36 = vld [vmem:[#allocation8 + $0x130] sm:$0xff] }
 0x31f   : > { %5281 = vmatmul.mubr.f32.gmra.mxu0 %v1655_v20  ;;  %4931 = vmatprep.subr.mxu0 %v3030_v27  ;;  %v3026_v27 = vld [vmem:[#allocation8 + $0x1a8] sm:$0xff]  ;;  %v1659_v20 = vmax.f32 %v6136_v13, 0.0  ;;  %v6800_v13 = vpop.f32.mrf.mxu1 }
 0x320   : > { %5283 = vmatprep.mubr.f32.mxu0 %v1656_v44  ;;  %4932 = vmatpush3.msra.mxu0 %v3014_v16  ;;  %v6792_v16 = vpop.f32.mrf.mxu0  ;;  %v3010_v44 = vld [vmem:[#allocation8 + $0x128] sm:$0xff]  ;;  %9606 = vst [vmem:[#allocation139_spill] sm:$0xff] %v6800_v13 }
 0x321   : > { %4933 = vmatprep.subr.mxu0 %v3029_v18  ;;  %9603 = vst [vmem:[#allocation136_spill] sm:$0xff] %v6792_v16  ;;  %v1660_v18 = vmax.f32 %v6141_v25, 0.0  ;;  %v3023_v25 = vld [vmem:[#allocation8 + $0x190] sm:$0xff] }
 0x322   : > { %4934 = vmatpush3.msra.mxu0 %v3013_v61  ;;  %v3009_v61 = vld [vmem:[#allocation8 + $0x120] sm:$0xff] }
 0x323   : > { %5284 = vmatmul.mubr.f32.gmra.mxu0 %v1657_v53  ;;  %4935 = vmatprep.subr.mxu0 %v3028_v7  ;;  %v3024_v7 = vld [vmem:[#allocation8 + $0x198] sm:$0xff]  ;;  %v1661_v53 = vmax.f32 %v6146_v49, 0.0  ;;  %v6806_v49 = vpop.f32.mrf.mxu1 }
 0x324   : > { %5286 = vmatprep.mubr.f32.mxu0 %v1658_v6  ;;  %4936 = vmatpush3.msra.mxu0 %v3012_v32  ;;  %v6798_v32 = vpop.f32.mrf.mxu0  ;;  %v3008_v6 = vld [vmem:[#allocation8 + $0x118] sm:$0xff]  ;;  %9608 = vst [vmem:[#allocation141_spill] sm:$0xff] %v6806_v49 }
 0x325   : > { %4937 = vmatprep.subr.mxu0 %v3027_v30  ;;  %9605 = vst [vmem:[#allocation138_spill] sm:$0xff] %v6798_v32  ;;  %v1662_v30 = vmax.f32 %v6155_v55, 0.0  ;;  %v3005_v55 = vld [vmem:[#allocation8 + $0x100] sm:$0xff] }
 0x326   : > { %4938 = vmatpush3.msra.mxu0 %v3011_v36  ;;  %v3007_v36 = vld [vmem:[#allocation8 + $0x110] sm:$0xff] }
 0x327   : > { %5287 = vmatmul.mubr.f32.gmra.mxu0 %v1659_v20  ;;  %4939 = vmatprep.subr.mxu0 %v3026_v27  ;;  %v3022_v27 = vld [vmem:[#allocation8 + $0x188] sm:$0xff]  ;;  %v1663_v20 = vmax.f32 %v6396_v0, 0.0 }
 0x328   : > { %5289 = vmatprep.mubr.f32.mxu0 %v1660_v18  ;;  %4940 = vmatpush3.msra.mxu0 %v3010_v44  ;;  %v6804_v44 = vpop.f32.mrf.mxu0  ;;  %v3006_v18 = vld [vmem:[#allocation8 + $0x108] sm:$0xff] }
 0x329   : > { %4941 = vmatprep.subr.mxu0 %v3025_v3  ;;  %9607 = vst [vmem:[#allocation140_spill] sm:$0xff] %v6804_v44  ;;  %v3021_v3 = vld [vmem:[#allocation8 + $0x180] sm:$0xff] }
 0x32a   : > { %4942 = vmatpush3.msra.mxu0 %v3009_v61  ;;  %v3998_v61 = vld [vmem:[#allocation8 + $0x3f8] sm:$0xff] }
 0x32b   : > { %5290 = vmatmul.mubr.f32.gmra.mxu0 %v1661_v53  ;;  %4943 = vmatprep.subr.mxu0 %v3024_v7  ;;  %v6808_v7 = vpop.f32.mrf.mxu0  ;;  %v6810_v53 = vpop.f32.mrf.mxu1 }
 0x32c   : > { %5292 = vmatprep.mubr.f32.mxu0 %v1662_v30  ;;  %4944 = vmatpush3.msra.mxu0 %v3008_v6  ;;  %9609 = vst [vmem:[#allocation142_spill] sm:$0xff] %v6808_v7  ;;  %9610 = vst [vmem:[#allocation143_spill] sm:$0xff] %v6810_v53 }
 0x32d   : > { %4945 = vmatprep.subr.mxu0 %v3023_v25  ;;  %v6812_v0 = vpop.f32.mrf.mxu0  ;;  %v6814_v6 = vpop.f32.mrf.mxu1 }
 0x32e   : > { %4946 = vmatpush3.msra.mxu0 %v3007_v36  ;;  %9611 = vst [vmem:[#allocation144_spill] sm:$0xff] %v6812_v0  ;;  %9612 = vst [vmem:[#allocation145_spill] sm:$0xff] %v6814_v6 }
 0x32f   : > { %5293 = vmatmul.mubr.f32.gmra.mxu0 %v1663_v20  ;;  %4947 = vmatprep.subr.mxu0 %v3022_v27  ;;  %v6816_v30 = vpop.f32.mrf.mxu0  ;;  %v6818_v25 = vpop.f32.mrf.mxu1 }
 0x330   : > { %4948 = vmatpush3.msra.mxu0 %v3006_v18  ;;  %9613 = vst [vmem:[#allocation146_spill] sm:$0xff] %v6816_v30  ;;  %9614 = vst [vmem:[#allocation147_spill] sm:$0xff] %v6818_v25 }
 0x331   : > { %4949 = vmatprep.subr.mxu0 %v3021_v3  ;;  %v6820_v36 = vpop.f32.mrf.mxu0  ;;  %v6822_v27 = vpop.f32.mrf.mxu1 }
 0x332   : > { %4950 = vmatpush3.msra.mxu0 %v3005_v55  ;;  %9615 = vst [vmem:[#allocation148_spill] sm:$0xff] %v6820_v36  ;;  %9616 = vst [vmem:[#allocation149_spill] sm:$0xff] %v6822_v27 }
 0x333   : > { %5079 = vmatprep.subr.mxu0 %v3998_v61  ;;  %v6824_v20 = vpop.f32.mrf.mxu0  ;;  %v6826_v18 = vpop.f32.mrf.mxu1 }
 0x334   : > { %9617 = vst [vmem:[#allocation150_spill] sm:$0xff] %v6824_v20  ;;  %9618 = vst [vmem:[#allocation151_spill] sm:$0xff] %v6826_v18 }
 0x335   : > { %v6828_v7 = vpop.f32.mrf.mxu0  ;;  %v6830_v3 = vpop.f32.mrf.mxu1 }
 0x336   : > { %9619 = vst [vmem:[#allocation152_spill] sm:$0xff] %v6828_v7  ;;  %9620 = vst [vmem:[#allocation153_spill] sm:$0xff] %v6830_v3 }
 0x337   : > { %v6832_v55 = vpop.f32.mrf.mxu0  ;;  %v6834_v61 = vpop.f32.mrf.mxu1 }
 0x338   : > { %9621 = vst [vmem:[#allocation154_spill] sm:$0xff] %v6832_v55  ;;  %9622 = vst [vmem:[#allocation155_spill] sm:$0xff] %v6834_v61 }
 0x339   : > { %v6836_v53 = vpop.f32.mrf.mxu0  ;;  %v6838_v30 = vpop.f32.mrf.mxu1 }
 0x33a   : > { %9623 = vst [vmem:[#allocation156_spill] sm:$0xff] %v6836_v53  ;;  %9624 = vst [vmem:[#allocation157_spill] sm:$0xff] %v6838_v30 }
 0x33b   : > { %v6840_v25 = vpop.f32.mrf.mxu0  ;;  %v6842_v32 = vpop.f32.mrf.mxu1 }
 0x33c   : > { %9625 = vst [vmem:[#allocation158_spill] sm:$0xff] %v6840_v25  ;;  %9626 = vst [vmem:[#allocation159_spill] sm:$0xff] %v6842_v32 }
 0x353   : > { %v6844_v13 = vpop.f32.mrf.mxu0  ;;  %v6846_v20 = vpop.f32.mrf.mxu1 }
 0x354   : > { %9627 = vst [vmem:[#allocation160_spill] sm:$0xff] %v6844_v13  ;;  %9628 = vst [vmem:[#allocation161_spill] sm:$0xff] %v6846_v20  ;;  %v3198_v18 = vmul.f32 %v6844_v13, %v6844_v13  ;;  %v3262_v1 = vmul.f32 2.0, %v6844_v13  ;;  %v2620_v24 = vmul.f32 %v6844_v13, %v6292_v35  ;;  %v2652_v25 = vmul.f32 %v6846_v20, %v6398_v33 }
 0x355   : > { %v6851_v55 = vpop.f32.mrf.mxu0  ;;  %v6853_v61 = vpop.f32.mrf.mxu1  ;;  %v3390_v63 = vmul.f32 %v6846_v20, %v6846_v20 }
 0x356   : > { %9629 = vst [vmem:[#allocation162_spill] sm:$0xff] %v6851_v55  ;;  %9630 = vst [vmem:[#allocation163_spill] sm:$0xff] %v6853_v61  ;;  %v3294_v32 = vmul.f32 %v3262_v1, %v6846_v20  ;;  %v3230_v57 = vmul.f32 %v3198_v18, %v6400_v5  ;;  %v2621_v53 = vmul.f32 %v6851_v55, %v6301_v58  ;;  %v3263_v33 = vmul.f32 2.0, %v6851_v55 }
 0x357   : > { %v6863_v47 = vpop.f32.mrf.mxu0  ;;  %v6865_v30 = vpop.f32.mrf.mxu1  ;;  %v2653_v13 = vmul.f32 %v6853_v61, %v6402_v8  ;;  %v2684_v7 = vadd.f32 %v2652_v25, %v2620_v24  ;;  %v3516_v24 = vld [vmem:[#allocation8 + $0x2f0] sm:$0xff] }
 0x358   : > { %9631 = vst [vmem:[#allocation164_spill] sm:$0xff] %v6863_v47  ;;  %9632 = vst [vmem:[#allocation165_spill] sm:$0xff] %v6865_v30  ;;  %v3326_v35 = vmul.f32 %v3294_v32, %v6644_v15  ;;  %v3200_v1 = vmul.f32 %v6863_v47, %v6863_v47  ;;  %v3264_v18 = vmul.f32 2.0, %v6863_v47  ;;  %v3392_v20 = vmul.f32 %v6865_v30, %v6865_v30  ;;  %v3501_v15 = vld [vmem:[#allocation8 + $0x278] sm:$0xff] }
 0x359   : > { %v6878_v5 = vpop.f32.mrf.mxu0  ;;  %v6880_v3 = vpop.f32.mrf.mxu1  ;;  %v2685_v58 = vadd.f32 %v2653_v13, %v2621_v53  ;;  %v6884_v32 = vmul.f32 %v6851_v55, %v6851_v55  ;;  %v2622_v8 = vmul.f32 %v6863_v47, %v6306_v43  ;;  %v2654_v27 = vmul.f32 %v6865_v30, %v6406_v11 }
 0x35a   : > { %9633 = vst [vmem:[#allocation166_spill] sm:$0xff] %v6878_v5  ;;  %9634 = vst [vmem:[#allocation167_spill] sm:$0xff] %v6880_v3  ;;  %v3358_v36 = vadd.f32 %v3326_v35, %v3230_v57  ;;  %v3296_v29 = vmul.f32 %v3264_v18, %v6865_v30  ;;  %v2623_v35 = vmul.f32 %v6878_v5, %v6311_v2  ;;  %v3500_v18 = vld [vmem:[#allocation8 + $0x270] sm:$0xff]  ;;  %v3265_v55 = vmul.f32 2.0, %v6878_v5 }
 0x35b   : > { %2812 = vmatprep.mubr.f32.mxu1 %v2685_v58  ;;  %v6891_v6 = vpop.f32.mrf.mxu0  ;;  %v6893_v0 = vpop.f32.mrf.mxu1  ;;  %v2655_v57 = vmul.f32 %v6880_v3, %v6410_v39  ;;  %v3422_v13 = vmul.f32 %v3390_v63, %v6642_v40  ;;  %v6901_v53 = vmul.f32 %v3263_v33, %v6853_v61  ;;  %v6904_v25 = vmul.f32 %v3200_v1, %v6408_v34 }
 0x35c   : > { %9635 = vst [vmem:[#allocation168_spill] sm:$0xff] %v6891_v6  ;;  %9636 = vst [vmem:[#allocation169_spill] sm:$0xff] %v6893_v0  ;;  %v6908_v58 = vmul.f32 %v6878_v5, %v6878_v5  ;;  %2813 = vmatmul.mubr.f32.vlgmr.msra.gmra.mxu1 %v2684_v7  ;;  %v6911_v30 = vmul.f32 %v3392_v20, %v6658_v23  ;;  %v3202_v63 = vmul.f32 %v6891_v6, %v6891_v6 }
 0x35d   : > { %9637 = vst [vmem:[#allocation170_spill] sm:$0xff] %v6904_v25  ;;  %v3266_v33 = vmul.f32 2.0, %v6891_v6  ;;  %v6917_v47 = vpop.f32.mrf.mxu0  ;;  %v6919_v1 = vpop.f32.mrf.mxu1  ;;  %5000 = vmatpush3.msra.mxu1 %v3501_v15  ;;  %v3515_v25 = vld [vmem:[#allocation8 + $0x2e8] sm:$0xff]  ;;  %v6921_v39 = vadd.f32 %v3422_v13, %v3358_v36  ;;  %v3394_v7 = vmul.f32 %v6893_v0, %v6893_v0  ;;  %v6927_v5 = vmul.f32 %v3296_v29, %v6660_v60 }
 0x35e   : > { %9638 = vst [vmem:[#allocation171_spill] sm:$0xff] %v6908_v58  ;;  %9639 = vst [vmem:[#allocation172_spill] sm:$0xff] %v6911_v30  ;;  %v3267_v20 = vmul.f32 2.0, %v6917_v47  ;;  %v2687_v30 = vadd.f32 %v2655_v57, %v2623_v35  ;;  %5001 = vmatprep.subr.mxu1 %v3516_v24  ;;  %v2686_v15 = vadd.f32 %v2654_v27, %v2622_v8  ;;  %v3499_v13 = vld [vmem:[#allocation8 + $0x268] sm:$0xff]  ;;  %v3514_v24 = vld [vmem:[#allocation8 + $0x2e0] sm:$0xff] }
 0x35f   : > { %9640 = vst [vmem:[#allocation173_spill] sm:$0xff] %v6917_v47  ;;  %9641 = vst [vmem:[#allocation174_spill] sm:$0xff] %v6919_v1  ;;  %v3298_v2 = vmul.f32 %v3266_v33, %v6893_v0  ;;  %v6930_v58 = vpop.f32.mrf.mxu0  ;;  %v6932_v11 = vpop.f32.mrf.mxu1  ;;  %v2625_v36 = vmul.f32 %v6917_v47, %v6319_v38  ;;  %5002 = vmatpush3.msra.mxu1 %v3500_v18  ;;  %v2656_v35 = vmul.f32 %v6893_v0, %v6414_v4 }
 0x360   : > { %9642 = vst [vmem:[#allocation175_spill] sm:$0xff] %v6921_v39  ;;  %9643 = vst [vmem:[#allocation176_spill] sm:$0xff] %v6927_v5  ;;  %v2624_v39 = vmul.f32 %v6891_v6, %v6316_v22  ;;  %2817 = vmatprep.mubr.f32.mxu1 %v2687_v30  ;;  %v3204_v29 = vmul.f32 %v6930_v58, %v6930_v58  ;;  %v3268_v57 = vmul.f32 2.0, %v6930_v58  ;;  %5003 = vmatprep.subr.mxu1 %v3515_v25  ;;  %v3498_v25 = vld [vmem:[#allocation8 + $0x260] sm:$0xff] }
 0x361   : > { %9644 = vst [vmem:[#allocation177_spill] sm:$0xff] %v6930_v58  ;;  %9645 = vst [vmem:[#allocation178_spill] sm:$0xff] %v6932_v11  ;;  %v6944_v8 = vmul.f32 %v3265_v55, %v6880_v3  ;;  %v6947_v27 = vmul.f32 %v3202_v63, %v6416_v50  ;;  %v6951_v18 = vmul.f32 %v6917_v47, %v6917_v47  ;;  %2818 = vmatmul.mubr.f32.gmra.mxu1 %v2686_v15  ;;  %v6953_v33 = vpop.f32.mrf.mxu0  ;;  %v6955_v30 = vpop.f32.mrf.mxu1  ;;  %v3513_v15 = vld [vmem:[#allocation8 + $0x2d8] sm:$0xff] }
 0x362   : > { %9648 = vst [vmem:[#allocation181_spill] sm:$0xff] %v6953_v33  ;;  %9649 = vst [vmem:[#allocation182_spill] sm:$0xff] %v6955_v30  ;;  %v2657_v0 = vmul.f32 %v6919_v1, %v6418_v9  ;;  %v6960_v6 = vmul.f32 %v3394_v7, %v6674_v46  ;;  %v6963_v55 = vmul.f32 %v3267_v20, %v6919_v1  ;;  %5004 = vmatpush3.msra.mxu1 %v3499_v13  ;;  %v9656_v13 = vld [vmem:[#allocation54_spill] sm:$0xff] }
 0x363   : > { %9646 = vst [vmem:[#allocation179_spill] sm:$0xff] %v6947_v27  ;;  %9647 = vst [vmem:[#allocation180_spill] sm:$0xff] %v6951_v18  ;;  %v3300_v63 = vmul.f32 %v3268_v57, %v6932_v11  ;;  %v3396_v47 = vmul.f32 %v6932_v11, %v6932_v11  ;;  %v6969_v27 = vmul.f32 %v3298_v2, %v6676_v54  ;;  %v6973_v18 = vpop.f32.mrf.mxu0  ;;  %v6975_v7 = vpop.f32.mrf.mxu1  ;;  %5005 = vmatprep.subr.mxu1 %v3514_v24 }
 0x364   : > { %9650 = vst [vmem:[#allocation183_spill] sm:$0xff] %v6960_v6  ;;  %9651 = vst [vmem:[#allocation184_spill] sm:$0xff] %v6963_v55  ;;  %v2626_v9 = vmul.f32 %v6930_v58, %v6324_v62  ;;  %v2689_v38 = vadd.f32 %v2657_v0, %v2625_v36  ;;  %v2627_v20 = vmul.f32 %v6953_v33, %v6327_v28  ;;  %5006 = vmatpush3.msra.mxu1 %v3498_v25  ;;  %v3497_v0 = vld [vmem:[#allocation8 + $0x258] sm:$0xff] }
 0x365   : > { %9652 = vst [vmem:[#allocation185_spill] sm:$0xff] %v6969_v27  ;;  %9653 = vst [vmem:[#allocation186_spill] sm:$0xff] %v6973_v18  ;;  %v6980_v57 = vmul.f32 %v3204_v29, %v6424_v31  ;;  %v2658_v6 = vmul.f32 %v6932_v11, %v9656_v13  ;;  %v6986_v2 = vmul.f32 %v6953_v33, %v6953_v33  ;;  %v3269_v36 = vmul.f32 2.0, %v6953_v33  ;;  %v6992_v29 = vpop.f32.mrf.mxu0  ;;  %v9660_v11 = vld [vmem:[#allocation55_spill] sm:$0xff]  ;;  %v9663_v33 = vld [vmem:[#allocation21_spill] sm:$0xff] }
 0x366   : > { %9654 = vst [vmem:[#allocation187_spill] sm:$0xff] %v6975_v7  ;;  %v2688_v58 = vadd.f32 %v2656_v35, %v2624_v39  ;;  %2822 = vmatprep.mubr.f32.mxu1 %v2689_v38  ;;  %v3206_v28 = vmul.f32 %v6973_v18, %v6973_v18  ;;  %v3270_v24 = vmul.f32 2.0, %v6973_v18  ;;  %9658 = vst [vmem:[#allocation190_spill] sm:$0xff] %v6992_v29  ;;  %5007 = vmatprep.subr.mxu1 %v3513_v15 }
 0x367   : > { %9655 = vst [vmem:[#allocation188_spill] sm:$0xff] %v6980_v57  ;;  %9657 = vst [vmem:[#allocation189_spill] sm:$0xff] %v6986_v2  ;;  %v6994_v57 = vpop.f32.mrf.mxu1  ;;  %v2659_v27 = vmul.f32 %v6955_v30, %v9660_v11  ;;  %v3512_v2 = vld [vmem:[#allocation8 + $0x2d0] sm:$0xff]  ;;  %v6999_v39 = vmul.f32 %v3300_v63, %v6692_v21  ;;  %v7002_v35 = vmul.f32 %v3396_v47, %v6690_v45  ;;  %v3271_v25 = vmul.f32 2.0, %v6992_v29  ;;  %v7010_v15 = vpop.f32.mrf.mxu0 }
 0x368   : > { %9659 = vst [vmem:[#allocation191_spill] sm:$0xff] %v6994_v57  ;;  %v3398_v38 = vmul.f32 %v6975_v7, %v6975_v7  ;;  %2823 = vmatmul.mubr.f32.gmra.mxu1 %v2688_v58  ;;  %v2628_v13 = vmul.f32 %v6973_v18, %v9663_v33  ;;  %v3302_v1 = vmul.f32 %v3270_v24, %v6975_v7  ;;  %9664 = vst [vmem:[#allocation194_spill] sm:$0xff] %v7010_v15  ;;  %v9666_v63 = vld [vmem:[#allocation22_spill] sm:$0xff] }
 0x369   : > { %9661 = vst [vmem:[#allocation192_spill] sm:$0xff] %v6999_v39  ;;  %9662 = vst [vmem:[#allocation193_spill] sm:$0xff] %v7002_v35  ;;  %v2691_v11 = vadd.f32 %v2659_v27, %v2627_v20  ;;  %v7012_v55 = vpop.f32.mrf.mxu1  ;;  %v2629_v47 = vmul.f32 %v6992_v29, %v9666_v63  ;;  %5008 = vmatpush3.msra.mxu1 %v3497_v0  ;;  %v9667_v35 = vld [vmem:[#allocation57_spill] sm:$0xff]  ;;  %v3208_v58 = vmul.f32 %v7010_v15, %v7010_v15  ;;  %v3496_v24 = vld [vmem:[#allocation8 + $0x250] sm:$0xff]  ;;  %v7031_v63 = vpop.f32.mrf.mxu0 }
 0x36a   : > { %9665 = vst [vmem:[#allocation195_spill] sm:$0xff] %v7012_v55  ;;  %v2660_v39 = vmul.f32 %v6975_v7, %v9667_v35  ;;  %v3272_v5 = vmul.f32 2.0, %v7010_v15  ;;  %v2690_v18 = vadd.f32 %v2658_v6, %v2626_v9  ;;  %5009 = vmatprep.subr.mxu1 %v3512_v2  ;;  %v7022_v27 = vmul.f32 %v3269_v36, %v6955_v30  ;;  %v9669_v20 = vld [vmem:[#allocation58_spill] sm:$0xff]  ;;  %v9674_v35 = vld [vmem:[#allocation59_spill] sm:$0xff]  ;;  %v3511_v6 = vld [vmem:[#allocation8 + $0x2c8] sm:$0xff] }
 0x36b   : > { %v7025_v33 = vmul.f32 %v3206_v28, %v9669_v20  ;;  %v7029_v0 = vmul.f32 %v6992_v29, %v6992_v29  ;;  %2827 = vmatprep.mubr.f32.mxu1 %v2691_v11  ;;  %9672 = vst [vmem:[#allocation198_spill] sm:$0xff] %v7031_v63  ;;  %v7033_v7 = vpop.f32.mrf.mxu1  ;;  %v2661_v9 = vmul.f32 %v6994_v57, %v9674_v35  ;;  %v3495_v11 = vld [vmem:[#allocation8 + $0x248] sm:$0xff] }
 0x36c   : > { %9668 = vst [vmem:[#allocation196_spill] sm:$0xff] %v7022_v27  ;;  %9673 = vst [vmem:[#allocation199_spill] sm:$0xff] %v7033_v7  ;;  %v7038_v2 = vmul.f32 %v3398_v38, %v6706_v17  ;;  %v7041_v36 = vmul.f32 %v3271_v25, %v6994_v57  ;;  %v3304_v28 = vmul.f32 %v3272_v5, %v7012_v55  ;;  %2828 = vmatmul.mubr.f32.gmra.mxu1 %v2690_v18  ;;  %v7051_v27 = vpop.f32.mrf.mxu0  ;;  %v9681_v25 = vld [vmem:[#allocation24_spill] sm:$0xff]  ;;  %v9682_v57 = vld [vmem:[#allocation62_spill] sm:$0xff] }
 0x36d   : > { %9670 = vst [vmem:[#allocation58_spill] sm:$0xff] %v7025_v33  ;;  %9671 = vst [vmem:[#allocation197_spill] sm:$0xff] %v7029_v0  ;;  %v3400_v29 = vmul.f32 %v7012_v55, %v7012_v55  ;;  %v7047_v33 = vmul.f32 %v3302_v1, %v6708_v51  ;;  %v9678_v0 = vld [vmem:[#allocation23_spill] sm:$0xff]  ;;  %v2693_v30 = vadd.f32 %v2661_v9, %v2629_v47  ;;  %v7053_v38 = vpop.f32.mrf.mxu1  ;;  %5010 = vmatpush3.msra.mxu1 %v3496_v24  ;;  %v3510_v5 = vld [vmem:[#allocation8 + $0x2c0] sm:$0xff] }
 0x36e   : > { %9675 = vst [vmem:[#allocation200_spill] sm:$0xff] %v7038_v2  ;;  %9676 = vst [vmem:[#allocation201_spill] sm:$0xff] %v7041_v36  ;;  %v2630_v35 = vmul.f32 %v7010_v15, %v9678_v0  ;;  %v2631_v2 = vmul.f32 %v7031_v63, %v9681_v25  ;;  %v7058_v36 = vmul.f32 %v3208_v58, %v9682_v57  ;;  %v9684_v18 = vld [vmem:[#allocation61_spill] sm:$0xff]  ;;  %5011 = vmatprep.subr.mxu1 %v3511_v6  ;;  %v3494_v9 = vld [vmem:[#allocation8 + $0x240] sm:$0xff]  ;;  %v7070_v58 = vpop.f32.mrf.mxu0 }
 0x36f   : > { %9677 = vst [vmem:[#allocation202_spill] sm:$0xff] %v7047_v33  ;;  %9679 = vst [vmem:[#allocation203_spill] sm:$0xff] %v7051_v27  ;;  %v2662_v1 = vmul.f32 %v7012_v55, %v9684_v18  ;;  %v7064_v33 = vmul.f32 %v7031_v63, %v7031_v63  ;;  %v2692_v47 = vadd.f32 %v2660_v39, %v2628_v13  ;;  %v3273_v15 = vmul.f32 2.0, %v7031_v63  ;;  %v9688_v55 = vld [vmem:[#allocation63_spill] sm:$0xff]  ;;  %v9691_v63 = vld [vmem:[#allocation25_spill] sm:$0xff] }
 0x370   : > { %9680 = vst [vmem:[#allocation204_spill] sm:$0xff] %v7053_v38  ;;  %9683 = vst [vmem:[#allocation205_spill] sm:$0xff] %v7058_v36  ;;  %2832 = vmatprep.mubr.f32.mxu1 %v2693_v30  ;;  %v3210_v24 = vmul.f32 %v7051_v27, %v7051_v27  ;;  %v3274_v25 = vmul.f32 2.0, %v7051_v27  ;;  %v7072_v36 = vpop.f32.mrf.mxu1  ;;  %v2663_v18 = vmul.f32 %v7033_v7, %v9688_v55  ;;  %5012 = vmatpush3.msra.mxu1 %v3495_v11  ;;  %v7088_v57 = vpop.f32.mrf.mxu0 }
 0x371   : > { %9685 = vst [vmem:[#allocation206_spill] sm:$0xff] %v7064_v33  ;;  %9686 = vst [vmem:[#allocation207_spill] sm:$0xff] %v7070_v58  ;;  %v3509_v33 = vld [vmem:[#allocation8 + $0x2b8] sm:$0xff]  ;;  %v7077_v13 = vmul.f32 %v3304_v28, %v6724_v14  ;;  %v7080_v39 = vmul.f32 %v3400_v29, %v6722_v37  ;;  %v3402_v30 = vmul.f32 %v7053_v38, %v7053_v38  ;;  %2833 = vmatmul.mubr.f32.gmra.mxu1 %v2692_v47 }
 0x372   : > { %9687 = vst [vmem:[#allocation208_spill] sm:$0xff] %v7072_v36  ;;  %v3275_v6 = vmul.f32 2.0, %v7070_v58  ;;  %5013 = vmatprep.subr.mxu1 %v3510_v5  ;;  %v2632_v0 = vmul.f32 %v7051_v27, %v9691_v63  ;;  %v3306_v55 = vmul.f32 %v3274_v25, %v7053_v38  ;;  %v2695_v11 = vadd.f32 %v2663_v18, %v2631_v2  ;;  %v7090_v28 = vpop.f32.mrf.mxu1  ;;  %v3493_v25 = vld [vmem:[#allocation8 + $0x238] sm:$0xff]  ;;  %v9697_v18 = vld [vmem:[#allocation66_spill] sm:$0xff] }
 0x373   : > { %9689 = vst [vmem:[#allocation209_spill] sm:$0xff] %v7077_v13  ;;  %9690 = vst [vmem:[#allocation210_spill] sm:$0xff] %v7080_v39  ;;  %v9694_v13 = vld [vmem:[#allocation26_spill] sm:$0xff]  ;;  %5014 = vmatpush3.msra.mxu1 %v3494_v9  ;;  %v9695_v39 = vld [vmem:[#allocation65_spill] sm:$0xff]  ;;  %v3212_v5 = vmul.f32 %v7088_v57, %v7088_v57  ;;  %v3276_v37 = vmul.f32 2.0, %v7088_v57  ;;  %v2694_v27 = vadd.f32 %v2662_v1, %v2630_v35 }
 0x374   : > { %9692 = vst [vmem:[#allocation211_spill] sm:$0xff] %v7088_v57  ;;  %9693 = vst [vmem:[#allocation212_spill] sm:$0xff] %v7090_v28  ;;  %v2633_v29 = vmul.f32 %v7070_v58, %v9694_v13  ;;  %v2664_v47 = vmul.f32 %v7053_v38, %v9695_v39  ;;  %5015 = vmatprep.subr.mxu1 %v3509_v33  ;;  %v7100_v2 = vmul.f32 %v3273_v15, %v7033_v7  ;;  %v7109_v38 = vpop.f32.mrf.mxu0  ;;  %v7111_v13 = vpop.f32.mrf.mxu1  ;;  %v9702_v39 = vld [vmem:[#allocation67_spill] sm:$0xff]  ;;  %v3508_v33 = vld [vmem:[#allocation8 + $0x2b0] sm:$0xff] }
 0x375   : > { %v7103_v63 = vmul.f32 %v3210_v24, %v9697_v18  ;;  %v7107_v9 = vmul.f32 %v7070_v58, %v7070_v58  ;;  %2837 = vmatprep.mubr.f32.mxu1 %v2695_v11  ;;  %9700 = vst [vmem:[#allocation215_spill] sm:$0xff] %v7109_v38  ;;  %9701 = vst [vmem:[#allocation216_spill] sm:$0xff] %v7111_v13  ;;  %v2665_v35 = vmul.f32 %v7072_v36, %v9702_v39  ;;  %v3492_v11 = vld [vmem:[#allocation8 + $0x230] sm:$0xff] }
 0x376   : > { %9696 = vst [vmem:[#allocation213_spill] sm:$0xff] %v7100_v2  ;;  %v7116_v1 = vmul.f32 %v3402_v30, %v6738_v26  ;;  %v7119_v15 = vmul.f32 %v3275_v6, %v7072_v36  ;;  %v3308_v24 = vmul.f32 %v3276_v37, %v7090_v28  ;;  %v3404_v58 = vmul.f32 %v7090_v28, %v7090_v28  ;;  %v7129_v2 = vpop.f32.mrf.mxu0  ;;  %v7131_v30 = vpop.f32.mrf.mxu1  ;;  %v9709_v6 = vld [vmem:[#allocation28_spill] sm:$0xff]  ;;  %v3507_v37 = vld [vmem:[#allocation8 + $0x2a8] sm:$0xff]  ;;  %v9710_v36 = vld [vmem:[#allocation70_spill] sm:$0xff] }
 0x377   : > { %9698 = vst [vmem:[#allocation66_spill] sm:$0xff] %v7103_v63  ;;  %9699 = vst [vmem:[#allocation214_spill] sm:$0xff] %v7107_v9  ;;  %2838 = vmatmul.mubr.f32.gmra.mxu1 %v2694_v27  ;;  %v7125_v63 = vmul.f32 %v3306_v55, %v6740_v42  ;;  %v9706_v9 = vld [vmem:[#allocation27_spill] sm:$0xff]  ;;  %v2697_v7 = vadd.f32 %v2665_v35, %v2633_v29  ;;  %v9712_v27 = vld [vmem:[#allocation69_spill] sm:$0xff]  ;;  %v2696_v29 = vadd.f32 %v2664_v47, %v2632_v0 }
 0x378   : > { %9703 = vst [vmem:[#allocation217_spill] sm:$0xff] %v7116_v1  ;;  %9704 = vst [vmem:[#allocation218_spill] sm:$0xff] %v7119_v15  ;;  %v2634_v39 = vmul.f32 %v7088_v57, %v9706_v9  ;;  %v2635_v1 = vmul.f32 %v7109_v38, %v9709_v6  ;;  %5016 = vmatpush3.msra.mxu1 %v3493_v25  ;;  %v7136_v15 = vmul.f32 %v3212_v5, %v9710_v36  ;;  %v3491_v35 = vld [vmem:[#allocation8 + $0x228] sm:$0xff]  ;;  %v7148_v5 = vpop.f32.mrf.mxu0 }
 0x379   : > { %9705 = vst [vmem:[#allocation219_spill] sm:$0xff] %v7125_v63  ;;  %9707 = vst [vmem:[#allocation220_spill] sm:$0xff] %v7129_v2  ;;  %v2666_v55 = vmul.f32 %v7090_v28, %v9712_v27  ;;  %v7142_v63 = vmul.f32 %v7109_v38, %v7109_v38  ;;  %5017 = vmatprep.subr.mxu1 %v3508_v33  ;;  %v3277_v57 = vmul.f32 2.0, %v7109_v38  ;;  %2842 = vmatprep.mubr.f32.mxu1 %v2697_v7  ;;  %v9716_v28 = vld [vmem:[#allocation71_spill] sm:$0xff]  ;;  %v9719_v38 = vld [vmem:[#allocation29_spill] sm:$0xff] }
 0x37a   : > { %9708 = vst [vmem:[#allocation221_spill] sm:$0xff] %v7131_v30  ;;  %9711 = vst [vmem:[#allocation222_spill] sm:$0xff] %v7136_v15  ;;  %v3214_v25 = vmul.f32 %v7129_v2, %v7129_v2  ;;  %v3278_v6 = vmul.f32 2.0, %v7129_v2  ;;  %v7150_v15 = vpop.f32.mrf.mxu1  ;;  %v2667_v27 = vmul.f32 %v7111_v13, %v9716_v28  ;;  %5018 = vmatpush3.msra.mxu1 %v3492_v11  ;;  %v3279_v33 = vmul.f32 2.0, %v7148_v5  ;;  %v7166_v36 = vpop.f32.mrf.mxu0 }
 0x37b   : > { %9713 = vst [vmem:[#allocation223_spill] sm:$0xff] %v7142_v63  ;;  %9714 = vst [vmem:[#allocation224_spill] sm:$0xff] %v7148_v5  ;;  %v3506_v63 = vld [vmem:[#allocation8 + $0x2a0] sm:$0xff]  ;;  %v7155_v0 = vmul.f32 %v3308_v24, %v6756_v19  ;;  %v7158_v47 = vmul.f32 %v3404_v58, %v6754_v10  ;;  %v3406_v7 = vmul.f32 %v7131_v30, %v7131_v30  ;;  %2843 = vmatmul.mubr.f32.gmra.mxu1 %v2696_v29 }
 0x37c   : > { %9715 = vst [vmem:[#allocation225_spill] sm:$0xff] %v7150_v15  ;;  %5019 = vmatprep.subr.mxu1 %v3507_v37  ;;  %v2636_v9 = vmul.f32 %v7129_v2, %v9719_v38  ;;  %v3310_v28 = vmul.f32 %v3278_v6, %v7131_v30  ;;  %v2699_v11 = vadd.f32 %v2667_v27, %v2635_v1  ;;  %9720 = vst [vmem:[#allocation228_spill] sm:$0xff] %v7166_v36  ;;  %v7168_v24 = vpop.f32.mrf.mxu1  ;;  %v3490_v6 = vld [vmem:[#allocation8 + $0x220] sm:$0xff]  ;;  %v9725_v27 = vld [vmem:[#allocation74_spill] sm:$0xff] }
 0x37d   : > { %9717 = vst [vmem:[#allocation226_spill] sm:$0xff] %v7155_v0  ;;  %9718 = vst [vmem:[#allocation227_spill] sm:$0xff] %v7158_v47  ;;  %v9722_v0 = vld [vmem:[#allocation30_spill] sm:$0xff]  ;;  %5020 = vmatpush3.msra.mxu1 %v3491_v35  ;;  %v9723_v47 = vld [vmem:[#allocation73_spill] sm:$0xff]  ;;  %v3216_v37 = vmul.f32 %v7166_v36, %v7166_v36  ;;  %v3280_v10 = vmul.f32 2.0, %v7166_v36  ;;  %v2698_v2 = vadd.f32 %v2666_v55, %v2634_v39 }
 0x37e   : > { %9721 = vst [vmem:[#allocation229_spill] sm:$0xff] %v7168_v24  ;;  %v2637_v58 = vmul.f32 %v7148_v5, %v9722_v0  ;;  %v2668_v29 = vmul.f32 %v7131_v30, %v9723_v47  ;;  %5021 = vmatprep.subr.mxu1 %v3506_v63  ;;  %v7178_v1 = vmul.f32 %v3277_v57, %v7111_v13  ;;  %v7187_v30 = vpop.f32.mrf.mxu0  ;;  %v7189_v0 = vpop.f32.mrf.mxu1  ;;  %v9730_v47 = vld [vmem:[#allocation75_spill] sm:$0xff] }
 0x37f   : > { %v7181_v38 = vmul.f32 %v3214_v25, %v9725_v27  ;;  %v7185_v35 = vmul.f32 %v7148_v5, %v7148_v5  ;;  %2847 = vmatprep.mubr.f32.mxu1 %v2699_v11  ;;  %9728 = vst [vmem:[#allocation233_spill] sm:$0xff] %v7187_v30  ;;  %9729 = vst [vmem:[#allocation234_spill] sm:$0xff] %v7189_v0  ;;  %v2669_v39 = vmul.f32 %v7150_v15, %v9730_v47  ;;  %v3505_v63 = vld [vmem:[#allocation8 + $0x298] sm:$0xff] }
 0x380   : > { %9724 = vst [vmem:[#allocation230_spill] sm:$0xff] %v7178_v1  ;;  %v7194_v55 = vmul.f32 %v3406_v7, %v6768_v56  ;;  %v7197_v57 = vmul.f32 %v3279_v33, %v7150_v15  ;;  %v3312_v25 = vmul.f32 %v3280_v10, %v7168_v24  ;;  %v3408_v5 = vmul.f32 %v7168_v24, %v7168_v24  ;;  %v3489_v11 = vld [vmem:[#allocation8 + $0x218] sm:$0xff]  ;;  %v7207_v1 = vpop.f32.mrf.mxu0  ;;  %v7209_v7 = vpop.f32.mrf.mxu1  ;;  %v9737_v33 = vld [vmem:[#allocation32_spill] sm:$0xff]  ;;  %v3504_v10 = vld [vmem:[#allocation8 + $0x290] sm:$0xff] }
 0x381   : > { %9726 = vst [vmem:[#allocation231_spill] sm:$0xff] %v7181_v38  ;;  %9727 = vst [vmem:[#allocation232_spill] sm:$0xff] %v7185_v35  ;;  %2848 = vmatmul.mubr.f32.gmra.mxu1 %v2698_v2  ;;  %v7203_v38 = vmul.f32 %v3310_v28, %v6770_v59  ;;  %v9734_v35 = vld [vmem:[#allocation31_spill] sm:$0xff]  ;;  %v2701_v13 = vadd.f32 %v2669_v39, %v2637_v58  ;;  %v9738_v15 = vld [vmem:[#allocation78_spill] sm:$0xff]  ;;  %v2700_v58 = vadd.f32 %v2668_v29, %v2636_v9 }
 0x382   : > { %9731 = vst [vmem:[#allocation235_spill] sm:$0xff] %v7194_v55  ;;  %9732 = vst [vmem:[#allocation236_spill] sm:$0xff] %v7197_v57  ;;  %v2638_v47 = vmul.f32 %v7166_v36, %v9734_v35  ;;  %v2639_v55 = vmul.f32 %v7187_v30, %v9737_v33  ;;  %5022 = vmatpush3.msra.mxu1 %v3490_v6  ;;  %v7214_v57 = vmul.f32 %v3216_v37, %v9738_v15  ;;  %v9740_v2 = vld [vmem:[#allocation77_spill] sm:$0xff]  ;;  %v3488_v39 = vld [vmem:[#allocation8 + $0x210] sm:$0xff]  ;;  %v7226_v37 = vpop.f32.mrf.mxu0 }
 0x383   : > { %9733 = vst [vmem:[#allocation237_spill] sm:$0xff] %v7203_v38  ;;  %9735 = vst [vmem:[#allocation238_spill] sm:$0xff] %v7207_v1  ;;  %v2670_v28 = vmul.f32 %v7168_v24, %v9740_v2  ;;  %v7220_v38 = vmul.f32 %v7187_v30, %v7187_v30  ;;  %5023 = vmatprep.subr.mxu1 %v3505_v63  ;;  %v3281_v36 = vmul.f32 2.0, %v7187_v30  ;;  %2852 = vmatprep.mubr.f32.mxu1 %v2701_v13  ;;  %v9744_v24 = vld [vmem:[#allocation79_spill] sm:$0xff]  ;;  %v9747_v30 = vld [vmem:[#allocation33_spill] sm:$0xff] }
 0x384   : > { %9736 = vst [vmem:[#allocation239_spill] sm:$0xff] %v7209_v7  ;;  %9739 = vst [vmem:[#allocation240_spill] sm:$0xff] %v7214_v57  ;;  %v3218_v6 = vmul.f32 %v7207_v1, %v7207_v1  ;;  %v3282_v33 = vmul.f32 2.0, %v7207_v1  ;;  %v7228_v57 = vpop.f32.mrf.mxu1  ;;  %v2671_v2 = vmul.f32 %v7189_v0, %v9744_v24  ;;  %5024 = vmatpush3.msra.mxu1 %v3489_v11  ;;  %v3283_v63 = vmul.f32 2.0, %v7226_v37  ;;  %v7244_v15 = vpop.f32.mrf.mxu0  ;;  %v9838_v59 = vld [vmem:[#allocation161_spill] sm:$0xff] }
 0x385   : > { %9741 = vst [vmem:[#allocation241_spill] sm:$0xff] %v7220_v38  ;;  %9742 = vst [vmem:[#allocation242_spill] sm:$0xff] %v7226_v37  ;;  %v3503_v38 = vld [vmem:[#allocation8 + $0x288] sm:$0xff]  ;;  %v7233_v9 = vmul.f32 %v3312_v25, %v6782_v12  ;;  %v7236_v29 = vmul.f32 %v3408_v5, %v6780_v48  ;;  %v3410_v13 = vmul.f32 %v7209_v7, %v7209_v7  ;;  %2853 = vmatmul.mubr.f32.gmra.mxu1 %v2700_v58 }
 0x386   : > { %9743 = vst [vmem:[#allocation243_spill] sm:$0xff] %v7228_v57  ;;  %5025 = vmatprep.subr.mxu1 %v3504_v10  ;;  %v2640_v35 = vmul.f32 %v7207_v1, %v9747_v30  ;;  %v3314_v24 = vmul.f32 %v3282_v33, %v7209_v7  ;;  %v2703_v11 = vadd.f32 %v2671_v2, %v2639_v55  ;;  %9748 = vst [vmem:[#allocation246_spill] sm:$0xff] %v7244_v15  ;;  %v7246_v25 = vpop.f32.mrf.mxu1  ;;  %v3487_v33 = vld [vmem:[#allocation8 + $0x208] sm:$0xff]  ;;  %v9753_v2 = vld [vmem:[#allocation82_spill] sm:$0xff] }
 0x387   : > { %9745 = vst [vmem:[#allocation244_spill] sm:$0xff] %v7233_v9  ;;  %9746 = vst [vmem:[#allocation245_spill] sm:$0xff] %v7236_v29  ;;  %v9750_v9 = vld [vmem:[#allocation34_spill] sm:$0xff]  ;;  %5026 = vmatpush3.msra.mxu1 %v3488_v39  ;;  %v9751_v29 = vld [vmem:[#allocation81_spill] sm:$0xff]  ;;  %v3220_v10 = vmul.f32 %v7244_v15, %v7244_v15  ;;  %v3284_v48 = vmul.f32 2.0, %v7244_v15  ;;  %v2702_v1 = vadd.f32 %v2670_v28, %v2638_v47 }
 0x388   : > { %9749 = vst [vmem:[#allocation247_spill] sm:$0xff] %v7246_v25  ;;  %v2641_v5 = vmul.f32 %v7226_v37, %v9750_v9  ;;  %v2672_v58 = vmul.f32 %v7209_v7, %v9751_v29  ;;  %5027 = vmatprep.subr.mxu1 %v3503_v38  ;;  %v7256_v55 = vmul.f32 %v3281_v36, %v7189_v0  ;;  %v7265_v7 = vpop.f32.mrf.mxu0  ;;  %v7267_v9 = vpop.f32.mrf.mxu1  ;;  %v9758_v29 = vld [vmem:[#allocation83_spill] sm:$0xff]  ;;  %v3502_v38 = vld [vmem:[#allocation8 + $0x280] sm:$0xff] }
 0x389   : > { %v7259_v30 = vmul.f32 %v3218_v6, %v9753_v2  ;;  %v7263_v39 = vmul.f32 %v7226_v37, %v7226_v37  ;;  %2857 = vmatprep.mubr.f32.mxu1 %v2703_v11  ;;  %9756 = vst [vmem:[#allocation251_spill] sm:$0xff] %v7265_v7  ;;  %9757 = vst [vmem:[#allocation252_spill] sm:$0xff] %v7267_v9  ;;  %v2673_v47 = vmul.f32 %v7228_v57, %v9758_v29  ;;  %v3486_v11 = vld [vmem:[#allocation8 + $0x200] sm:$0xff] }
 0x38a   : > { %9752 = vst [vmem:[#allocation248_spill] sm:$0xff] %v7256_v55  ;;  %v7272_v28 = vmul.f32 %v3410_v13, %v6792_v16  ;;  %v7275_v36 = vmul.f32 %v3283_v63, %v7228_v57  ;;  %v3316_v6 = vmul.f32 %v3284_v48, %v7246_v25  ;;  %v3412_v37 = vmul.f32 %v7246_v25, %v7246_v25  ;;  %v7285_v55 = vpop.f32.mrf.mxu0  ;;  %v7287_v13 = vpop.f32.mrf.mxu1  ;;  %v9765_v63 = vld [vmem:[#allocation36_spill] sm:$0xff]  ;;  %v4479_v48 = vld [vmem:[#allocation8 + $0x4f8] sm:$0xff]  ;;  %v9766_v57 = vld [vmem:[#allocation86_spill] sm:$0xff] }
 0x38b   : > { %9754 = vst [vmem:[#allocation249_spill] sm:$0xff] %v7259_v30  ;;  %9755 = vst [vmem:[#allocation250_spill] sm:$0xff] %v7263_v39  ;;  %2858 = vmatmul.mubr.f32.gmra.mxu1 %v2702_v1  ;;  %v7281_v30 = vmul.f32 %v3314_v24, %v6794_v52  ;;  %v9762_v39 = vld [vmem:[#allocation35_spill] sm:$0xff]  ;;  %v2705_v0 = vadd.f32 %v2673_v47, %v2641_v5  ;;  %v9768_v1 = vld [vmem:[#allocation85_spill] sm:$0xff]  ;;  %v2704_v5 = vadd.f32 %v2672_v58, %v2640_v35 }
 0x38c   : > { %9759 = vst [vmem:[#allocation253_spill] sm:$0xff] %v7272_v28  ;;  %9760 = vst [vmem:[#allocation254_spill] sm:$0xff] %v7275_v36  ;;  %v2642_v29 = vmul.f32 %v7244_v15, %v9762_v39  ;;  %v2643_v28 = vmul.f32 %v7265_v7, %v9765_v63  ;;  %5028 = vmatpush3.msra.mxu1 %v3487_v33  ;;  %v7292_v36 = vmul.f32 %v3220_v10, %v9766_v57  ;;  %v7304_v63 = vpop.f32.mrf.mxu0  ;;  %v7306_v10 = vpop.f32.mrf.mxu1  ;;  %v9835_v52 = vld [vmem:[#allocation16_spill] sm:$0xff] }
 0x38d   : > { %9761 = vst [vmem:[#allocation255_spill] sm:$0xff] %v7281_v30  ;;  %9763 = vst [vmem:[#allocation256_spill] sm:$0xff] %v7285_v55  ;;  %v2674_v24 = vmul.f32 %v7246_v25, %v9768_v1  ;;  %v7298_v30 = vmul.f32 %v7265_v7, %v7265_v7  ;;  %5029 = vmatprep.subr.mxu1 %v3502_v38  ;;  %v3285_v47 = vmul.f32 2.0, %v7265_v7  ;;  %2862 = vmatprep.mubr.f32.mxu1 %v2705_v0  ;;  %v9775_v38 = vld [vmem:[#allocation37_spill] sm:$0xff] }
 0x38e   : > { %9764 = vst [vmem:[#allocation257_spill] sm:$0xff] %v7287_v13  ;;  %9767 = vst [vmem:[#allocation258_spill] sm:$0xff] %v7292_v36  ;;  %v3222_v15 = vmul.f32 %v7285_v55, %v7285_v55  ;;  %v3286_v33 = vmul.f32 2.0, %v7285_v55  ;;  %v9772_v36 = vld [vmem:[#allocation87_spill] sm:$0xff]  ;;  %5030 = vmatpush3.msra.mxu1 %v3486_v11  ;;  %v7314_v35 = vmul.f32 %v3412_v37, %v6804_v44  ;;  %v3287_v58 = vmul.f32 2.0, %v7304_v63  ;;  %v7322_v11 = vpop.f32.mrf.mxu0  ;;  %v9786_v44 = vld [vmem:[#allocation144_spill] sm:$0xff] }
 0x38f   : > { %9769 = vst [vmem:[#allocation259_spill] sm:$0xff] %v7298_v30  ;;  %9770 = vst [vmem:[#allocation260_spill] sm:$0xff] %v7304_v63  ;;  %v2675_v25 = vmul.f32 %v7267_v9, %v9772_v36  ;;  %v7311_v30 = vmul.f32 %v3316_v6, %v6806_v49  ;;  %v3414_v0 = vmul.f32 %v7287_v13, %v7287_v13  ;;  %2863 = vmatmul.mubr.f32.gmra.mxu1 %v2704_v5  ;;  %v7324_v6 = vpop.f32.mrf.mxu1 }
 0x390   : > { %9771 = vst [vmem:[#allocation261_spill] sm:$0xff] %v7306_v10  ;;  %9774 = vst [vmem:[#allocation263_spill] sm:$0xff] %v7314_v35  ;;  %5295 = vmatprep.subr.mxu1 %v4479_v48  ;;  %v2644_v7 = vmul.f32 %v7285_v55, %v9775_v38  ;;  %v3318_v1 = vmul.f32 %v3286_v33, %v7287_v13  ;;  %v2676_v35 = vmul.f32 %v7287_v13, %v6560_v41  ;;  %v9785_v41 = vld [vmem:[#allocation91_spill] sm:$0xff] }
 0x391   : > { %9773 = vst [vmem:[#allocation262_spill] sm:$0xff] %v7311_v30  ;;  %v2707_v36 = vadd.f32 %v2675_v25, %v2643_v28  ;;  %9776 = vst [vmem:[#allocation264_spill] sm:$0xff] %v7322_v11  ;;  %v9778_v30 = vld [vmem:[#allocation38_spill] sm:$0xff]  ;;  %v3224_v5 = vmul.f32 %v7322_v11, %v7322_v11  ;;  %v3288_v48 = vmul.f32 2.0, %v7322_v11  ;;  %v2706_v39 = vadd.f32 %v2674_v24, %v2642_v29  ;;  %v7345_v13 = vpop.f32.mrf.mxu1 }
 0x392   : > { %9777 = vst [vmem:[#allocation265_spill] sm:$0xff] %v7324_v6  ;;  %v2645_v37 = vmul.f32 %v7304_v63, %v9778_v30  ;;  %v7334_v55 = vmul.f32 %v3285_v47, %v7267_v9  ;;  %v9780_v25 = vld [vmem:[#allocation90_spill] sm:$0xff]  ;;  %v7341_v33 = vmul.f32 %v7304_v63, %v7304_v63  ;;  %v7343_v30 = vpop.f32.mrf.mxu0  ;;  %9784 = vst [vmem:[#allocation270_spill] sm:$0xff] %v7345_v13 }
 0x393   : > { %v7337_v28 = vmul.f32 %v3222_v15, %v9780_v25  ;;  %2867 = vmatprep.mubr.f32.mxu1 %v2707_v36  ;;  %9783 = vst [vmem:[#allocation269_spill] sm:$0xff] %v7343_v30  ;;  %v2677_v38 = vmul.f32 %v7306_v10, %v9785_v41  ;;  %v7350_v29 = vmul.f32 %v3414_v0, %v9786_v44  ;;  %v9789_v36 = vld [vmem:[#allocation145_spill] sm:$0xff]  ;;  %v7365_v0 = vpop.f32.mrf.mxu1  ;;  %v9817_v25 = vld [vmem:[#allocation152_spill] sm:$0xff] }
 0x394   : > { %9779 = vst [vmem:[#allocation266_spill] sm:$0xff] %v7334_v55  ;;  %9782 = vst [vmem:[#allocation268_spill] sm:$0xff] %v7341_v33  ;;  %v7353_v24 = vmul.f32 %v3287_v58, %v7306_v10  ;;  %v3320_v15 = vmul.f32 %v3288_v48, %v7324_v6  ;;  %v3416_v47 = vmul.f32 %v7324_v6, %v7324_v6  ;;  %2868 = vmatmul.mubr.f32.gmra.mxu1 %v2706_v39  ;;  %v7363_v41 = vpop.f32.mrf.mxu0  ;;  %v9795_v10 = vld [vmem:[#allocation94_spill] sm:$0xff] }
 0x395   : > { %9781 = vst [vmem:[#allocation267_spill] sm:$0xff] %v7337_v28  ;;  %9787 = vst [vmem:[#allocation271_spill] sm:$0xff] %v7350_v29  ;;  %v7359_v63 = vmul.f32 %v3318_v1, %v9789_v36  ;;  %v9791_v28 = vld [vmem:[#allocation39_spill] sm:$0xff]  ;;  %v2709_v9 = vadd.f32 %v2677_v38, %v2645_v37  ;;  %v9794_v29 = vld [vmem:[#allocation40_spill] sm:$0xff]  ;;  %v7370_v48 = vmul.f32 %v3224_v5, %v9795_v10  ;;  %v3289_v38 = vmul.f32 2.0, %v7343_v30  ;;  %v7384_v5 = vpop.f32.mrf.mxu1 }
 0x396   : > { %9788 = vst [vmem:[#allocation272_spill] sm:$0xff] %v7353_v24  ;;  %v2646_v33 = vmul.f32 %v7322_v11, %v9791_v28  ;;  %9792 = vst [vmem:[#allocation274_spill] sm:$0xff] %v7363_v41  ;;  %v2647_v58 = vmul.f32 %v7343_v30, %v9794_v29  ;;  %v9797_v24 = vld [vmem:[#allocation93_spill] sm:$0xff]  ;;  %v7376_v1 = vmul.f32 %v7343_v30, %v7343_v30  ;;  %v3290_v11 = vmul.f32 2.0, %v7363_v41  ;;  %v7382_v29 = vpop.f32.mrf.mxu0 }
 0x397   : > { %9790 = vst [vmem:[#allocation273_spill] sm:$0xff] %v7359_v63  ;;  %9793 = vst [vmem:[#allocation275_spill] sm:$0xff] %v7365_v0  ;;  %v2678_v39 = vmul.f32 %v7324_v6, %v9797_v24  ;;  %v2708_v63 = vadd.f32 %v2676_v35, %v2644_v7  ;;  %2872 = vmatprep.mubr.f32.mxu1 %v2709_v9  ;;  %v3226_v37 = vmul.f32 %v7363_v41, %v7363_v41  ;;  %v9802_v24 = vld [vmem:[#allocation149_spill] sm:$0xff] }
 0x398   : > { %9796 = vst [vmem:[#allocation276_spill] sm:$0xff] %v7370_v48  ;;  %9798 = vst [vmem:[#allocation277_spill] sm:$0xff] %v7376_v1  ;;  %v9801_v48 = vld [vmem:[#allocation95_spill] sm:$0xff]  ;;  %v7389_v28 = vmul.f32 %v3320_v15, %v9802_v24  ;;  %v9804_v1 = vld [vmem:[#allocation148_spill] sm:$0xff]  ;;  %v3418_v9 = vmul.f32 %v7365_v0, %v7365_v0  ;;  %v3291_v35 = vmul.f32 2.0, %v7382_v29  ;;  %v3322_v55 = vmul.f32 %v3290_v11, %v7365_v0  ;;  %v7400_v36 = vpop.f32.mrf.mxu0 }
 0x399   : > { %9799 = vst [vmem:[#allocation278_spill] sm:$0xff] %v7382_v29  ;;  %9800 = vst [vmem:[#allocation279_spill] sm:$0xff] %v7384_v5  ;;  %v2679_v6 = vmul.f32 %v7345_v13, %v9801_v48  ;;  %v7392_v7 = vmul.f32 %v3416_v47, %v9804_v1  ;;  %2873 = vmatmul.mubr.f32.gmra.mxu1 %v2708_v63  ;;  %v9806_v30 = vld [vmem:[#allocation41_spill] sm:$0xff]  ;;  %v7402_v48 = vpop.f32.mrf.mxu1  ;;  %v9809_v15 = vld [vmem:[#allocation42_spill] sm:$0xff]  ;;  %v3228_v63 = vmul.f32 %v7400_v36, %v7400_v36 }
 0x39a   : > { %9803 = vst [vmem:[#allocation280_spill] sm:$0xff] %v7389_v28  ;;  %v2648_v10 = vmul.f32 %v7363_v41, %v9806_v30  ;;  %9807 = vst [vmem:[#allocation282_spill] sm:$0xff] %v7400_v36  ;;  %v2649_v47 = vmul.f32 %v7382_v29, %v9809_v15  ;;  %v3292_v1 = vmul.f32 2.0, %v7400_v36  ;;  %v2710_v24 = vadd.f32 %v2678_v39, %v2646_v33  ;;  %v9812_v11 = vld [vmem:[#allocation98_spill] sm:$0xff]  ;;  %v7421_v15 = vpop.f32.mrf.mxu0 }
 0x39b   : > { %9805 = vst [vmem:[#allocation281_spill] sm:$0xff] %v7392_v7  ;;  %v2711_v44 = vadd.f32 %v2679_v6, %v2647_v58  ;;  %9808 = vst [vmem:[#allocation283_spill] sm:$0xff] %v7402_v48  ;;  %v9810_v7 = vld [vmem:[#allocation97_spill] sm:$0xff]  ;;  %v7412_v41 = vmul.f32 %v3289_v38, %v7345_v13  ;;  %v7415_v6 = vmul.f32 %v3226_v37, %v9812_v11  ;;  %v9820_v38 = vld [vmem:[#allocation43_spill] sm:$0xff] }
 0x39c   : > { %v2680_v28 = vmul.f32 %v7365_v0, %v9810_v7  ;;  %v7419_v58 = vmul.f32 %v7382_v29, %v7382_v29  ;;  %9815 = vst [vmem:[#allocation287_spill] sm:$0xff] %v7421_v15  ;;  %v7423_v0 = vpop.f32.mrf.mxu1  ;;  %v9816_v7 = vld [vmem:[#allocation99_spill] sm:$0xff]  ;;  %v7428_v33 = vmul.f32 %v3418_v9, %v9817_v25  ;;  %v7431_v39 = vmul.f32 %v3291_v35, %v7384_v5  ;;  %v9824_v35 = vld [vmem:[#allocation102_spill] sm:$0xff] }
 0x39d   : > { %9811 = vst [vmem:[#allocation284_spill] sm:$0xff] %v7412_v41  ;;  %9813 = vst [vmem:[#allocation285_spill] sm:$0xff] %v7415_v6  ;;  %2877 = vmatprep.mubr.f32.mxu1 %v2711_v44  ;;  %v2681_v30 = vmul.f32 %v7384_v5, %v9816_v7  ;;  %v2650_v37 = vmul.f32 %v7400_v36, %v9820_v38  ;;  %v3420_v29 = vmul.f32 %v7402_v48, %v7402_v48  ;;  %v9821_v44 = vld [vmem:[#allocation153_spill] sm:$0xff]  ;;  %v9834_v11 = vld [vmem:[#allocation103_spill] sm:$0xff] }
 0x39e   : > { %9814 = vst [vmem:[#allocation286_spill] sm:$0xff] %v7419_v58  ;;  %9818 = vst [vmem:[#allocation288_spill] sm:$0xff] %v7428_v33  ;;  %2878 = vmatmul.mubr.f32.gmra.mxu1 %v2710_v24  ;;  %v7438_v6 = vmul.f32 %v3322_v55, %v9821_v44  ;;  %v9823_v58 = vld [vmem:[#allocation101_spill] sm:$0xff]  ;;  %v3324_v7 = vmul.f32 %v3292_v1, %v7402_v48  ;;  %v2180_v33 = vpop.f32.mrf.mxu0  ;;  %v2341_v41 = vpop.f32.mrf.mxu1  ;;  %v7444_v5 = vmul.f32 %v3228_v63, %v9824_v35  ;;  %v9827_v24 = vld [vmem:[#allocation44_spill] sm:$0xff] }
 0x39f   : > { %9819 = vst [vmem:[#allocation289_spill] sm:$0xff] %v7431_v39  ;;  %v2682_v13 = vmul.f32 %v7402_v48, %v9823_v58  ;;  %v2713_v9 = vadd.f32 %v2681_v30, %v2649_v47  ;;  %v7448_v36 = vmul.f32 %v7421_v15, %v7421_v15  ;;  %v2712_v38 = vadd.f32 %v2680_v28, %v2648_v10  ;;  %v9828_v58 = vld [vmem:[#allocation46_spill] sm:$0xff]  ;;  %v9829_v1 = vld [vmem:[#allocation105_spill] sm:$0xff]  ;;  %v9830_v63 = vld [vmem:[#allocation156_spill] sm:$0xff] }
 0x3a0   : > { %9822 = vst [vmem:[#allocation290_spill] sm:$0xff] %v7438_v6  ;;  %9825 = vst [vmem:[#allocation291_spill] sm:$0xff] %v7444_v5  ;;  %v2651_v55 = vmul.f32 %v7421_v15, %v9827_v24  ;;  %v3679_v6 = vmul.f32 %v2180_v33, %v2180_v33  ;;  %v3743_v39 = vmul.f32 2.0, %v2180_v33  ;;  %v4160_v25 = vmul.f32 %v2180_v33, %v9828_v58  ;;  %v7454_v47 = vpop.f32.mrf.mxu0  ;;  %v7456_v48 = vpop.f32.mrf.mxu1 }
 0x3a1   : > { %9826 = vst [vmem:[#allocation292_spill] sm:$0xff] %v7448_v36  ;;  %2882 = vmatprep.mubr.f32.mxu1 %v2713_v9  ;;  %v4288_v30 = vmul.f32 %v2180_v33, %v9829_v1  ;;  %v7459_v5 = vmul.f32 %v3420_v29, %v9830_v63  ;;  %v3293_v36 = vmul.f32 2.0, %v7421_v15  ;;  %v4192_v10 = vmul.f32 %v2341_v41, %v9829_v1  ;;  %v9832_v9 = vld [vmem:[#allocation157_spill] sm:$0xff] }
 0x3a2   : > { %v4320_v28 = vmul.f32 %v2341_v41, %v6642_v40  ;;  %2883 = vmatmul.mubr.f32.gmra.mxu1 %v2712_v38  ;;  %v7465_v24 = vmul.f32 %v3324_v7, %v9832_v9  ;;  %v3775_v35 = vmul.f32 %v3743_v39, %v2341_v41  ;;  %v3871_v44 = vmul.f32 %v2341_v41, %v2341_v41  ;;  %v2186_v57 = vpop.f32.mrf.mxu0  ;;  %v2347_v16 = vpop.f32.mrf.mxu1  ;;  %v9837_v9 = vld [vmem:[#allocation160_spill] sm:$0xff] }
 0x3a3   : > { %9831 = vst [vmem:[#allocation46_spill] sm:$0xff] %v7459_v5  ;;  %v2683_v49 = vmul.f32 %v7423_v0, %v9834_v11  ;;  %v2909_v29 = vmul.f32 %v2180_v33, %v9835_v52  ;;  %v9836_v5 = vld [vmem:[#allocation45_spill] sm:$0xff]  ;;  %v4224_v15 = vadd.f32 %v4192_v10, %v4160_v25  ;;  %v3711_v12 = vmul.f32 %v3679_v6, %v9828_v58 }
 0x3a4   : > { %9833 = vst [vmem:[#allocation105_spill] sm:$0xff] %v7465_v24  ;;  %v2941_v63 = vmul.f32 %v2341_v41, %v9836_v5  ;;  %v4352_v2 = vadd.f32 %v4320_v28, %v4288_v30  ;;  %v3807_v38 = vmul.f32 %v3775_v35, %v9829_v1  ;;  %v3745_v7 = vmul.f32 2.0, %v2186_v57  ;;  %v7473_v24 = vpop.f32.mrf.mxu0  ;;  %v7475_v39 = vpop.f32.mrf.mxu1  ;;  %v9841_v30 = vld [vmem:[#allocation48_spill] sm:$0xff] }
 0x3a5   : > { %v2715_v56 = vadd.f32 %v2683_v49, %v2651_v55  ;;  %v4256_v11 = vmul.f32 %v4224_v15, %v9837_v9  ;;  %v4162_v52 = vmul.f32 %v2186_v57, %v6408_v34  ;;  %v4290_v41 = vmul.f32 %v2186_v57, %v6660_v60 }
 0x3a6   : > { %v4384_v27 = vmul.f32 %v4352_v2, %v9838_v59  ;;  %v3839_v25 = vadd.f32 %v3807_v38, %v3711_v12  ;;  %v3903_v5 = vmul.f32 %v3871_v44, %v6642_v40  ;;  %v3681_v6 = vmul.f32 %v2186_v57, %v2186_v57  ;;  %v2192_v49 = vpop.f32.mrf.mxu0  ;;  %v2353_v2 = vpop.f32.mrf.mxu1 }
 0x3a7   : > { %2887 = vmatprep.mubr.f32.mxu1 %v2715_v56  ;;  %v3777_v58 = vmul.f32 %v3745_v7, %v2347_v16  ;;  %v7483_v33 = vmul.f32 %v3293_v36, %v7423_v0  ;;  %v4194_v15 = vmul.f32 %v2347_v16, %v6660_v60  ;;  %v4322_v59 = vmul.f32 %v2347_v16, %v6658_v23  ;;  %v9844_v36 = vld [vmem:[#allocation107_spill] sm:$0xff]  ;;  %v9848_v7 = vld [vmem:[#allocation106_spill] sm:$0xff] }
 0x3a8   : > { %v7485_v35 = vadd.f32 %v4384_v27, %v4256_v11  ;;  %v2973_v55 = vadd.f32 %v2941_v63, %v2909_v29  ;;  %v7489_v1 = vadd.f32 %v3903_v5, %v3839_v25  ;;  %v2714_v12 = vadd.f32 %v2682_v13, %v2650_v37  ;;  %v7501_v10 = vpop.f32.mrf.mxu0  ;;  %v9845_v13 = vld [vmem:[#allocation17_spill] sm:$0xff]  ;;  %v9846_v37 = vld [vmem:[#allocation47_spill] sm:$0xff]  ;;  %v7513_v25 = vpop.f32.mrf.mxu1 }
 0x3a9   : > { %v3231_v40 = vmul.f32 %v6884_v32, %v9841_v30  ;;  %v7493_v56 = vadd.f32 %v4194_v15, %v4162_v52  ;;  %v7495_v44 = vadd.f32 %v4322_v59, %v4290_v41  ;;  %v3327_v27 = vmul.f32 %v6901_v53, %v9844_v36  ;;  %v9847_v29 = vld [vmem:[#allocation49_spill] sm:$0xff]  ;;  %9849 = vst [vmem:[#allocation48_spill] sm:$0xff] %v7513_v25 }
 0x3aa   : > { %9839 = vst [vmem:[#allocation16_spill] sm:$0xff] %v7485_v35  ;;  %9840 = vst [vmem:[#allocation45_spill] sm:$0xff] %v7489_v1  ;;  %v3391_v11 = vmul.f32 %v6853_v61, %v6853_v61  ;;  %v2911_v63 = vmul.f32 %v2186_v57, %v6306_v43  ;;  %v7505_v28 = vmul.f32 %v3681_v6, %v6408_v34  ;;  %2888 = vmatmul.mubr.f32.gmra.mxu1 %v2714_v12  ;;  %v3997_v35 = vld [vmem:[#allocation8 + $0x3f0] sm:$0xff]  ;;  %v3986_v1 = vld [vmem:[#allocation8 + $0x398] sm:$0xff] }
 0x3ab   : > { %9842 = vst [vmem:[#allocation160_spill] sm:$0xff] %v7493_v56  ;;  %9843 = vst [vmem:[#allocation161_spill] sm:$0xff] %v7495_v44  ;;  %v2910_v32 = vmul.f32 %v7454_v47, %v9845_v13  ;;  %v2942_v9 = vmul.f32 %v7456_v48, %v9846_v37  ;;  %v2943_v38 = vmul.f32 %v2347_v16, %v9847_v29  ;;  %v3747_v41 = vmul.f32 2.0, %v2192_v49  ;;  %v3982_v13 = vld [vmem:[#allocation8 + $0x378] sm:$0xff]  ;;  %v9859_v56 = vld [vmem:[#allocation50_spill] sm:$0xff] }
 0x3ac   : > { %v3359_v53 = vadd.f32 %v3327_v27, %v3231_v40  ;;  %v3423_v52 = vmul.f32 %v3391_v11, %v9848_v7  ;;  %v7515_v5 = vmul.f32 %v2347_v16, %v2347_v16  ;;  %v4164_v34 = vmul.f32 %v2192_v49, %v6416_v50  ;;  %v2198_v40 = vpop.f32.mrf.mxu0  ;;  %v9850_v16 = vld [vmem:[#allocation51_spill] sm:$0xff] }
 0x3ad   : > { %v2974_v43 = vadd.f32 %v2942_v9, %v2910_v32  ;;  %v4292_v57 = vmul.f32 %v2192_v49, %v6676_v54  ;;  %v7520_v6 = vmul.f32 %v3777_v58, %v6660_v60  ;;  %v3683_v59 = vmul.f32 %v2192_v49, %v2192_v49  ;;  %v9851_v37 = vld [vmem:[#allocation171_spill] sm:$0xff]  ;;  %v9852_v9 = vld [vmem:[#allocation109_spill] sm:$0xff] }
 0x3ae   : > { %v3455_v15 = vadd.f32 %v3423_v52, %v3359_v53  ;;  %v3779_v12 = vmul.f32 %v3747_v41, %v2353_v2  ;;  %v4196_v27 = vmul.f32 %v2353_v2, %v6676_v54  ;;  %v4324_v11 = vmul.f32 %v2353_v2, %v6674_v46  ;;  %v9853_v53 = vld [vmem:[#allocation18_spill] sm:$0xff]  ;;  %v2359_v41 = vpop.f32.mrf.mxu1  ;;  %v9856_v44 = vld [vmem:[#allocation175_spill] sm:$0xff] }
 0x3af   : > { %3101 = vmatprep.mubr.f32.mxu0 %v2974_v43  ;;  %v3233_v32 = vmul.f32 %v9851_v37, %v9850_v16  ;;  %v3329_v29 = vmul.f32 %v6944_v8, %v9852_v9  ;;  %v7529_v60 = vmul.f32 %v2192_v49, %v6316_v22  ;;  %v3393_v58 = vmul.f32 %v6880_v3, %v6880_v3  ;;  %v3981_v43 = vld [vmem:[#allocation8 + $0x370] sm:$0xff]  ;;  %v3996_v22 = vld [vmem:[#allocation8 + $0x3e8] sm:$0xff]  ;;  %v9858_v3 = vld [vmem:[#allocation108_spill] sm:$0xff] }
 0x3b0   : > { %3582 = vmatprep.mubr.f32.mxu1 %v3455_v15  ;;  %3102 = vmatmul.mubr.f32.vlgmr.msra.gmra.mxu0 %v2973_v55  ;;  %v2912_v52 = vmul.f32 %v7473_v24, %v9853_v53  ;;  %v7535_v61 = vadd.f32 %v4196_v27, %v4164_v34  ;;  %v7537_v37 = vadd.f32 %v4324_v11, %v4292_v57  ;;  %v3749_v15 = vmul.f32 2.0, %v2198_v40  ;;  %v7549_v57 = vpop.f32.mrf.mxu0  ;;  %v3980_v27 = vld [vmem:[#allocation8 + $0x368] sm:$0xff] }
 0x3b1   : > { %3583 = vmatmul.mubr.f32.vlgmr.msra.gmra.mxu1 %v9856_v44  ;;  %5080 = vmatpush3.msra.mxu0 %v3982_v13  ;;  %v3361_v8 = vadd.f32 %v3329_v29, %v3233_v32  ;;  %v7541_v49 = vmul.f32 %v3683_v59, %v6416_v50  ;;  %v7544_v55 = vmul.f32 %v2353_v2, %v6414_v4 }
 0x3b2   : > { %9854 = vst [vmem:[#allocation107_spill] sm:$0xff] %v7535_v61  ;;  %9855 = vst [vmem:[#allocation17_spill] sm:$0xff] %v7537_v37  ;;  %v3425_v53 = vmul.f32 %v3393_v58, %v9858_v3  ;;  %v2944_v34 = vmul.f32 %v7475_v39, %v9859_v56  ;;  %5081 = vmatprep.subr.mxu0 %v3997_v35  ;;  %v7551_v44 = vmul.f32 %v2353_v2, %v2353_v2  ;;  %v7561_v35 = vpop.f32.mrf.mxu1 }
 0x3b3   : > { %9857 = vst [vmem:[#allocation47_spill] sm:$0xff] %v7541_v49  ;;  %9860 = vst [vmem:[#allocation49_spill] sm:$0xff] %v7549_v57  ;;  %v4166_v13 = vmul.f32 %v2198_v40, %v6424_v31  ;;  %v4294_v11 = vmul.f32 %v2198_v40, %v6692_v21  ;;  %v3781_v50 = vmul.f32 %v3749_v15, %v2359_v41  ;;  %5082 = vmatpush3.msra.mxu0 %v3981_v43  ;;  %v3995_v15 = vld [vmem:[#allocation8 + $0x3e0] sm:$0xff] }
 0x3b4   : > { %9861 = vst [vmem:[#allocation106_spill] sm:$0xff] %v7551_v44  ;;  %v7556_v4 = vmul.f32 %v3779_v12, %v6676_v54  ;;  %v3457_v59 = vadd.f32 %v3425_v53, %v3361_v8  ;;  %v2976_v32 = vadd.f32 %v2944_v34, %v2912_v52  ;;  %v7559_v29 = vmul.f32 %v2198_v40, %v6324_v62  ;;  %v9864_v54 = vld [vmem:[#allocation170_spill] sm:$0xff]  ;;  %v9865_v12 = vld [vmem:[#allocation176_spill] sm:$0xff]  ;;  %v9866_v52 = vld [vmem:[#allocation53_spill] sm:$0xff] }
 0x3b5   : > { %9863 = vst [vmem:[#allocation171_spill] sm:$0xff] %v7561_v35  ;;  %5083 = vmatprep.subr.mxu0 %v3996_v22  ;;  %v3685_v56 = vmul.f32 %v2198_v40, %v2198_v40  ;;  %v4198_v2 = vmul.f32 %v2359_v41, %v6692_v21  ;;  %v4326_v58 = vmul.f32 %v2359_v41, %v6690_v45  ;;  %v9867_v8 = vld [vmem:[#allocation180_spill] sm:$0xff]  ;;  %v2204_v22 = vpop.f32.mrf.mxu0  ;;  %v4463_v44 = vld [vmem:[#allocation8 + $0x478] sm:$0xff] }
 0x3b6   : > { %9862 = vst [vmem:[#allocation51_spill] sm:$0xff] %v7556_v4  ;;  %v2975_v37 = vadd.f32 %v2943_v38, %v2911_v63  ;;  %5084 = vmatpush3.msra.mxu0 %v3980_v27  ;;  %3587 = vmatprep.mubr.f32.mxu1 %v3457_v59  ;;  %v3360_v43 = vadd.f32 %v9865_v12, %v9864_v54  ;;  %v9868_v53 = vld [vmem:[#allocation112_spill] sm:$0xff]  ;;  %v9872_v63 = vld [vmem:[#allocation174_spill] sm:$0xff]  ;;  %v9873_v27 = vld [vmem:[#allocation19_spill] sm:$0xff] }
 0x3b7   : > { %3106 = vmatprep.mubr.f32.mxu0 %v2976_v32  ;;  %v3235_v62 = vmul.f32 %v9867_v8, %v9866_v52  ;;  %v9869_v34 = vld [vmem:[#allocation184_spill] sm:$0xff]  ;;  %v7571_v46 = vadd.f32 %v4198_v2, %v4166_v13  ;;  %v7573_v45 = vadd.f32 %v4326_v58, %v4294_v11  ;;  %v3395_v38 = vmul.f32 %v9872_v63, %v9872_v63  ;;  %v9874_v32 = vld [vmem:[#allocation54_spill] sm:$0xff]  ;;  %v2365_v13 = vpop.f32.mrf.mxu1  ;;  %v3994_v11 = vld [vmem:[#allocation8 + $0x3d8] sm:$0xff] }
 0x3b8   : > { %v3331_v61 = vmul.f32 %v9869_v34, %v9868_v53  ;;  %v3979_v40 = vld [vmem:[#allocation8 + $0x360] sm:$0xff]  ;;  %3107 = vmatmul.mubr.f32.gmra.mxu0 %v2975_v37  ;;  %v2914_v59 = vmul.f32 %v7501_v10, %v9873_v27  ;;  %v7580_v54 = vmul.f32 %v2359_v41, %v9874_v32  ;;  %5085 = vmatprep.subr.mxu0 %v3995_v15  ;;  %v9878_v2 = vld [vmem:[#allocation111_spill] sm:$0xff] }
 0x3b9   : > { %9870 = vst [vmem:[#allocation109_spill] sm:$0xff] %v7571_v46  ;;  %9871 = vst [vmem:[#allocation18_spill] sm:$0xff] %v7573_v45  ;;  %v9875_v12 = vld [vmem:[#allocation172_spill] sm:$0xff]  ;;  %v7586_v37 = vmul.f32 %v3685_v56, %v6424_v31  ;;  %v3427_v58 = vmul.f32 %v3395_v38, %v9878_v2  ;;  %v3751_v45 = vmul.f32 2.0, %v2204_v22  ;;  %v4168_v27 = vmul.f32 %v2204_v22, %v9669_v20  ;;  %v9886_v46 = vld [vmem:[#allocation115_spill] sm:$0xff] }
 0x3ba   : > { %v3456_v8 = vadd.f32 %v9875_v12, %v3360_v43  ;;  %v3363_v34 = vadd.f32 %v3331_v61, %v3235_v62  ;;  %v9876_v4 = vld [vmem:[#allocation52_spill] sm:$0xff]  ;;  %5086 = vmatpush3.msra.mxu0 %v3979_v40  ;;  %5311 = vmatpush3.msra.mxu1 %v4463_v44  ;;  %v7591_v32 = vmul.f32 %v3781_v50, %v6692_v21  ;;  %v9881_v62 = vld [vmem:[#allocation21_spill] sm:$0xff]  ;;  %v7600_v12 = vpop.f32.mrf.mxu0  ;;  %v4478_v44 = vld [vmem:[#allocation8 + $0x4f0] sm:$0xff] }
 0x3bb   : > { %v2946_v49 = vmul.f32 %v7513_v25, %v9876_v4  ;;  %9877 = vst [vmem:[#allocation175_spill] sm:$0xff] %v7586_v37  ;;  %v7593_v61 = vmul.f32 %v2359_v41, %v2359_v41  ;;  %v4296_v15 = vmul.f32 %v2204_v22, %v6708_v51  ;;  %v7597_v31 = vmul.f32 %v2204_v22, %v9881_v62  ;;  %v9882_v50 = vld [vmem:[#allocation179_spill] sm:$0xff]  ;;  %v9883_v40 = vld [vmem:[#allocation185_spill] sm:$0xff]  ;;  %v9887_v63 = vld [vmem:[#allocation196_spill] sm:$0xff] }
 0x3bc   : > { %9879 = vst [vmem:[#allocation108_spill] sm:$0xff] %v7591_v32  ;;  %3588 = vmatmul.mubr.f32.gmra.mxu1 %v3456_v8  ;;  %v3459_v43 = vadd.f32 %v3427_v58, %v3363_v34  ;;  %v3783_v56 = vmul.f32 %v3751_v45, %v2365_v13  ;;  %v4200_v38 = vmul.f32 %v2365_v13, %v6708_v51  ;;  %v3978_v8 = vld [vmem:[#allocation8 + $0x358] sm:$0xff]  ;;  %v9884_v45 = vld [vmem:[#allocation56_spill] sm:$0xff]  ;;  %v9885_v58 = vld [vmem:[#allocation189_spill] sm:$0xff] }
 0x3bd   : > { %9880 = vst [vmem:[#allocation50_spill] sm:$0xff] %v7593_v61  ;;  %v2978_v4 = vadd.f32 %v2946_v49, %v2914_v59  ;;  %5087 = vmatprep.subr.mxu0 %v3994_v11  ;;  %v3687_v21 = vmul.f32 %v2204_v22, %v2204_v22  ;;  %v4328_v41 = vmul.f32 %v2365_v13, %v6706_v17  ;;  %v9888_v61 = vld [vmem:[#allocation182_spill] sm:$0xff]  ;;  %v9890_v17 = vld [vmem:[#allocation57_spill] sm:$0xff] }
 0x3be   : > { %v2977_v49 = vadd.f32 %v7544_v55, %v7529_v60  ;;  %v3362_v59 = vadd.f32 %v9883_v40, %v9882_v50  ;;  %3592 = vmatprep.mubr.f32.mxu1 %v3459_v43  ;;  %v4232_v34 = vadd.f32 %v4200_v38, %v4168_v27  ;;  %v3237_v62 = vmul.f32 %v9885_v58, %v9884_v45  ;;  %v9891_v55 = vld [vmem:[#allocation183_spill] sm:$0xff]  ;;  %v3993_v43 = vld [vmem:[#allocation8 + $0x3d0] sm:$0xff]  ;;  %v4461_v25 = vld [vmem:[#allocation8 + $0x468] sm:$0xff] }
 0x3bf   : > { %3111 = vmatprep.mubr.f32.mxu0 %v2978_v4  ;;  %v3333_v11 = vmul.f32 %v9887_v63, %v9886_v46  ;;  %v3397_v22 = vmul.f32 %v9888_v61, %v9888_v61  ;;  %v7613_v4 = vpop.f32.mrf.mxu1  ;;  %v7616_v32 = vmul.f32 %v2365_v13, %v9890_v17  ;;  %v4360_v60 = vadd.f32 %v4328_v41, %v4296_v15  ;;  %v9893_v40 = vld [vmem:[#allocation186_spill] sm:$0xff]  ;;  %v2210_v46 = vpop.f32.mrf.mxu0 }
 0x3c0   : > { %9889 = vst [vmem:[#allocation170_spill] sm:$0xff] %v7613_v4  ;;  %3112 = vmatmul.mubr.f32.gmra.mxu0 %v2977_v49  ;;  %v3458_v50 = vadd.f32 %v9891_v55, %v3362_v59  ;;  %v3752_v27 = vmul.f32 2.0, %v7600_v12  ;;  %5296 = vmatprep.subr.mxu1 %v4478_v44  ;;  %v7620_v38 = vmul.f32 %v2365_v13, %v2365_v13  ;;  %v9894_v37 = vld [vmem:[#allocation114_spill] sm:$0xff]  ;;  %v9897_v49 = vld [vmem:[#allocation187_spill] sm:$0xff] }
 0x3c1   : > { %v4264_v63 = vmul.f32 %v4232_v34, %v9893_v40  ;;  %v3365_v58 = vadd.f32 %v3333_v11, %v3237_v62  ;;  %v3429_v61 = vmul.f32 %v3397_v22, %v9894_v37  ;;  %5088 = vmatpush3.msra.mxu0 %v3978_v8  ;;  %v3977_v45 = vld [vmem:[#allocation8 + $0x350] sm:$0xff]  ;;  %v7625_v15 = vmul.f32 %v3687_v21, %v9669_v20  ;;  %v9899_v34 = vld [vmem:[#allocation60_spill] sm:$0xff]  ;;  %v9901_v20 = vld [vmem:[#allocation55_spill] sm:$0xff] }
 0x3c2   : > { %9892 = vst [vmem:[#allocation176_spill] sm:$0xff] %v7620_v38  ;;  %v4462_v17 = vld [vmem:[#allocation8 + $0x470] sm:$0xff]  ;;  %v7628_v41 = vmul.f32 %v3783_v56, %v6708_v51  ;;  %v4392_v59 = vmul.f32 %v4360_v60, %v9897_v49  ;;  %3593 = vmatmul.mubr.f32.gmra.mxu1 %v3458_v50  ;;  %v7633_v13 = vmul.f32 %v7600_v12, %v7600_v12  ;;  %v9900_v8 = vld [vmem:[#allocation20_spill] sm:$0xff]  ;;  %v2371_v51 = vpop.f32.mrf.mxu1  ;;  %v3992_v56 = vld [vmem:[#allocation8 + $0x3c8] sm:$0xff]  ;;  %v3753_v50 = vmul.f32 2.0, %v2210_v46 }
 0x3c3   : > { %9895 = vst [vmem:[#allocation180_spill] sm:$0xff] %v7625_v15  ;;  %v3461_v44 = vadd.f32 %v3429_v61, %v3365_v58  ;;  %v7637_v62 = vmul.f32 %v7600_v12, %v9899_v34  ;;  %v2916_v11 = vmul.f32 %v7549_v57, %v9900_v8  ;;  %v2948_v21 = vmul.f32 %v7561_v35, %v9901_v20  ;;  %v9903_v60 = vld [vmem:[#allocation118_spill] sm:$0xff]  ;;  %v9906_v8 = vld [vmem:[#allocation117_spill] sm:$0xff]  ;;  %v9910_v37 = vld [vmem:[#allocation192_spill] sm:$0xff] }
 0x3c4   : > { %9896 = vst [vmem:[#allocation184_spill] sm:$0xff] %v7628_v41  ;;  %9898 = vst [vmem:[#allocation19_spill] sm:$0xff] %v7633_v13  ;;  %5089 = vmatprep.subr.mxu0 %v3993_v43  ;;  %v7643_v22 = vadd.f32 %v4392_v59, %v4264_v63  ;;  %v7647_v55 = vmul.f32 %v7600_v12, %v9903_v60  ;;  %v7650_v61 = vmul.f32 %v3752_v27, %v7613_v4  ;;  %v9905_v43 = vld [vmem:[#allocation62_spill] sm:$0xff]  ;;  %v3976_v59 = vld [vmem:[#allocation8 + $0x348] sm:$0xff]  ;;  %v7673_v2 = vpop.f32.mrf.mxu1 }
 0x3c5   : > { %5090 = vmatpush3.msra.mxu0 %v3977_v45  ;;  %5312 = vmatpush3.msra.mxu1 %v4462_v17  ;;  %v7654_v40 = vmul.f32 %v7613_v4, %v9903_v60  ;;  %v2980_v58 = vadd.f32 %v2948_v21, %v2916_v11  ;;  %v4170_v49 = vmul.f32 %v2210_v46, %v9905_v43  ;;  %v7663_v17 = vpop.f32.mrf.mxu0  ;;  %v9907_v41 = vld [vmem:[#allocation23_spill] sm:$0xff]  ;;  %v9909_v13 = vld [vmem:[#allocation188_spill] sm:$0xff]  ;;  %v9916_v57 = vld [vmem:[#allocation61_spill] sm:$0xff] }
 0x3c6   : > { %9902 = vst [vmem:[#allocation54_spill] sm:$0xff] %v7643_v22  ;;  %9904 = vst [vmem:[#allocation172_spill] sm:$0xff] %v7650_v61  ;;  %3597 = vmatprep.mubr.f32.mxu1 %v3461_v44  ;;  %v4298_v63 = vmul.f32 %v2210_v46, %v6724_v14  ;;  %v7660_v20 = vmul.f32 %v7613_v4, %v9906_v8  ;;  %v3689_v27 = vmul.f32 %v2210_v46, %v2210_v46  ;;  %v3991_v44 = vld [vmem:[#allocation8 + $0x3c0] sm:$0xff]  ;;  %v9908_v21 = vld [vmem:[#allocation119_spill] sm:$0xff] }
 0x3c7   : > { %v3785_v38 = vmul.f32 %v3753_v50, %v2371_v51  ;;  %v4202_v45 = vmul.f32 %v2371_v51, %v6724_v14  ;;  %5091 = vmatprep.subr.mxu0 %v3992_v56  ;;  %3116 = vmatprep.mubr.f32.mxu0 %v2980_v58  ;;  %v7666_v11 = vmul.f32 %v2210_v46, %v9907_v41  ;;  %v3975_v50 = vld [vmem:[#allocation8 + $0x340] sm:$0xff]  ;;  %v9913_v56 = vld [vmem:[#allocation197_spill] sm:$0xff]  ;;  %v9915_v41 = vld [vmem:[#allocation191_spill] sm:$0xff] }
 0x3c8   : > { %v4330_v15 = vmul.f32 %v2371_v51, %v9908_v21  ;;  %v2979_v61 = vadd.f32 %v7580_v54, %v7559_v29  ;;  %v3364_v35 = vadd.f32 %v9910_v37, %v9909_v13  ;;  %9911 = vst [vmem:[#allocation52_spill] sm:$0xff] %v7673_v2  ;;  %v3239_v52 = vmul.f32 %v9913_v56, %v9899_v34  ;;  %v9914_v58 = vld [vmem:[#allocation201_spill] sm:$0xff]  ;;  %v2216_v34 = vpop.f32.mrf.mxu0 }
 0x3c9   : > { %v7675_v53 = vadd.f32 %v4202_v45, %v4170_v49  ;;  %v3335_v46 = vmul.f32 %v9914_v58, %v9903_v60  ;;  %v3399_v21 = vmul.f32 %v9915_v41, %v9915_v41  ;;  %5092 = vmatpush3.msra.mxu0 %v3976_v59  ;;  %v7684_v29 = vmul.f32 %v2371_v51, %v9916_v57  ;;  %v9918_v37 = vld [vmem:[#allocation193_spill] sm:$0xff]  ;;  %v3990_v45 = vld [vmem:[#allocation8 + $0x3b8] sm:$0xff] }
 0x3ca   : > { %v7686_v54 = vadd.f32 %v4330_v15, %v4298_v63  ;;  %3117 = vmatmul.mubr.f32.gmra.mxu0 %v2979_v61  ;;  %v3460_v13 = vadd.f32 %v9918_v37, %v3364_v35  ;;  %v3754_v49 = vmul.f32 2.0, %v7663_v17  ;;  %5093 = vmatprep.subr.mxu0 %v3991_v44  ;;  %v7691_v56 = vmul.f32 %v3689_v27, %v9905_v43  ;;  %v3974_v57 = vld [vmem:[#allocation8 + $0x338] sm:$0xff]  ;;  %v4477_v15 = vld [vmem:[#allocation8 + $0x4e8] sm:$0xff]  ;;  %v9923_v63 = vld [vmem:[#allocation64_spill] sm:$0xff]  ;;  %v2377_v27 = vpop.f32.mrf.mxu1 }
 0x3cb   : > { %9912 = vst [vmem:[#allocation21_spill] sm:$0xff] %v7675_v53  ;;  %v7693_v58 = vmul.f32 %v2371_v51, %v2371_v51  ;;  %v3367_v60 = vadd.f32 %v3335_v46, %v3239_v52  ;;  %v3431_v59 = vmul.f32 %v3399_v21, %v9906_v8  ;;  %5094 = vmatpush3.msra.mxu0 %v3975_v50  ;;  %v9924_v51 = vld [vmem:[#allocation22_spill] sm:$0xff]  ;;  %v9925_v21 = vld [vmem:[#allocation121_spill] sm:$0xff]  ;;  %v9935_v53 = vld [vmem:[#allocation199_spill] sm:$0xff] }
 0x3cc   : > { %9917 = vst [vmem:[#allocation179_spill] sm:$0xff] %v7686_v54  ;;  %9919 = vst [vmem:[#allocation185_spill] sm:$0xff] %v7691_v56  ;;  %v7697_v61 = vmul.f32 %v3785_v38, %v6724_v14  ;;  %3598 = vmatmul.mubr.f32.gmra.mxu1 %v3460_v13  ;;  %v7701_v35 = vmul.f32 %v7663_v17, %v7663_v17  ;;  %v7705_v43 = vmul.f32 %v7663_v17, %v9923_v63  ;;  %v9927_v38 = vld [vmem:[#allocation59_spill] sm:$0xff]  ;;  %v3989_v37 = vld [vmem:[#allocation8 + $0x3b0] sm:$0xff] }
 0x3cd   : > { %9920 = vst [vmem:[#allocation189_spill] sm:$0xff] %v7693_v58  ;;  %v2918_v52 = vmul.f32 %v7600_v12, %v9924_v51  ;;  %v3463_v44 = vadd.f32 %v3431_v59, %v3367_v60  ;;  %v7711_v50 = vmul.f32 %v7663_v17, %v9925_v21  ;;  %v7714_v14 = vmul.f32 %v3754_v49, %v7673_v2  ;;  %v9928_v59 = vld [vmem:[#allocation120_spill] sm:$0xff]  ;;  %v9929_v8 = vld [vmem:[#allocation58_spill] sm:$0xff] }
 0x3ce   : > { %9921 = vst [vmem:[#allocation196_spill] sm:$0xff] %v7697_v61  ;;  %9922 = vst [vmem:[#allocation57_spill] sm:$0xff] %v7701_v35  ;;  %v2950_v46 = vmul.f32 %v7613_v4, %v9927_v38  ;;  %5095 = vmatprep.subr.mxu0 %v3990_v45  ;;  %v7720_v13 = vmul.f32 %v7673_v2, %v9925_v21  ;;  %v3755_v58 = vmul.f32 2.0, %v2216_v34  ;;  %5297 = vmatprep.subr.mxu1 %v4477_v15  ;;  %v7729_v61 = vpop.f32.mrf.mxu0  ;;  %v3973_v4 = vld [vmem:[#allocation8 + $0x330] sm:$0xff] }
 0x3cf   : > { %9926 = vst [vmem:[#allocation183_spill] sm:$0xff] %v7714_v14  ;;  %v4172_v12 = vmul.f32 %v2216_v34, %v9697_v18  ;;  %v4300_v60 = vmul.f32 %v2216_v34, %v6740_v42  ;;  %5096 = vmatpush3.msra.mxu0 %v3974_v57  ;;  %3602 = vmatprep.mubr.f32.mxu1 %v3463_v44  ;;  %v9930_v57 = vld [vmem:[#allocation202_spill] sm:$0xff]  ;;  %v7736_v44 = vpop.f32.mrf.mxu1 }
 0x3d0   : > { %v7726_v49 = vmul.f32 %v7673_v2, %v9928_v59  ;;  %v2982_v51 = vadd.f32 %v2950_v46, %v2918_v52  ;;  %v3691_v38 = vmul.f32 %v2216_v34, %v2216_v34  ;;  %v4204_v45 = vmul.f32 %v2377_v27, %v6740_v42  ;;  %9931 = vst [vmem:[#allocation186_spill] sm:$0xff] %v7736_v44  ;;  %v9933_v46 = vld [vmem:[#allocation206_spill] sm:$0xff] }
 0x3d1   : > { %v3787_v56 = vmul.f32 %v3755_v58, %v2377_v27  ;;  %v4332_v14 = vmul.f32 %v2377_v27, %v6738_v26  ;;  %v2981_v35 = vadd.f32 %v7616_v32, %v7597_v31  ;;  %v3366_v15 = vadd.f32 %v9930_v57, %v9929_v8  ;;  %5097 = vmatprep.subr.mxu0 %v3989_v37  ;;  %v9934_v58 = vld [vmem:[#allocation213_spill] sm:$0xff] }
 0x3d2   : > { %3121 = vmatprep.mubr.f32.mxu0 %v2982_v51  ;;  %v7738_v52 = vadd.f32 %v4204_v45, %v4172_v12  ;;  %v3241_v54 = vmul.f32 %v9933_v46, %v9923_v63  ;;  %v3337_v26 = vmul.f32 %v9934_v58, %v9925_v21  ;;  %v3401_v32 = vmul.f32 %v9935_v53, %v9935_v53  ;;  %v9936_v31 = vld [vmem:[#allocation25_spill] sm:$0xff]  ;;  %v9939_v12 = vld [vmem:[#allocation200_spill] sm:$0xff] }
 0x3d3   : > { %v7747_v22 = vmul.f32 %v2216_v34, %v9936_v31  ;;  %v9937_v8 = vld [vmem:[#allocation65_spill] sm:$0xff]  ;;  %v7752_v37 = vadd.f32 %v4332_v14, %v4300_v60  ;;  %3122 = vmatmul.mubr.f32.gmra.mxu0 %v2981_v35  ;;  %v3462_v51 = vadd.f32 %v9939_v12, %v3366_v15  ;;  %v4476_v45 = vld [vmem:[#allocation8 + $0x4e0] sm:$0xff]  ;;  %v7756_v46 = vmul.f32 %v3691_v38, %v9697_v18  ;;  %v2383_v60 = vpop.f32.mrf.mxu1  ;;  %v9951_v12 = vld [vmem:[#allocation70_spill] sm:$0xff] }
 0x3d4   : > { %9932 = vst [vmem:[#allocation187_spill] sm:$0xff] %v7738_v52  ;;  %v7750_v57 = vmul.f32 %v2377_v27, %v9937_v8  ;;  %v3369_v63 = vadd.f32 %v3337_v26, %v3241_v54  ;;  %v3433_v58 = vmul.f32 %v3401_v32, %v9928_v59  ;;  %v3756_v21 = vmul.f32 2.0, %v7729_v61  ;;  %v2222_v52 = vpop.f32.mrf.mxu0  ;;  %5098 = vmatpush3.msra.mxu0 %v3973_v4  ;;  %v3988_v34 = vld [vmem:[#allocation8 + $0x3a8] sm:$0xff]  ;;  %v4460_v31 = vld [vmem:[#allocation8 + $0x460] sm:$0xff] }
 0x3d5   : > { %9938 = vst [vmem:[#allocation20_spill] sm:$0xff] %v7752_v37  ;;  %9940 = vst [vmem:[#allocation55_spill] sm:$0xff] %v7756_v46  ;;  %5313 = vmatpush3.msra.mxu1 %v4461_v25  ;;  %v7761_v14 = vmul.f32 %v3787_v56, %v6740_v42  ;;  %v7763_v35 = vmul.f32 %v2377_v27, %v2377_v27  ;;  %v7767_v18 = vmul.f32 %v7729_v61, %v7729_v61  ;;  %v9944_v26 = vld [vmem:[#allocation24_spill] sm:$0xff]  ;;  %v9949_v56 = vld [vmem:[#allocation63_spill] sm:$0xff] }
 0x3d6   : > { %3603 = vmatmul.mubr.f32.gmra.mxu1 %v3462_v51  ;;  %v2920_v54 = vmul.f32 %v7663_v17, %v9944_v26  ;;  %v3465_v38 = vadd.f32 %v3433_v58, %v3369_v63  ;;  %v9945_v15 = vld [vmem:[#allocation68_spill] sm:$0xff]  ;;  %v2952_v27 = vmul.f32 %v7673_v2, %v9949_v56  ;;  %5298 = vmatprep.subr.mxu1 %v4476_v45  ;;  %v3972_v32 = vld [vmem:[#allocation8 + $0x328] sm:$0xff]  ;;  %v3757_v17 = vmul.f32 2.0, %v2222_v52  ;;  %v9953_v26 = vld [vmem:[#allocation123_spill] sm:$0xff] }
 0x3d7   : > { %9941 = vst [vmem:[#allocation62_spill] sm:$0xff] %v7761_v14  ;;  %9942 = vst [vmem:[#allocation23_spill] sm:$0xff] %v7763_v35  ;;  %v7773_v25 = vmul.f32 %v7729_v61, %v9945_v15  ;;  %v9947_v4 = vld [vmem:[#allocation124_spill] sm:$0xff]  ;;  %v4174_v63 = vmul.f32 %v2222_v52, %v9951_v12  ;;  %v4302_v51 = vmul.f32 %v2222_v52, %v6756_v19  ;;  %5099 = vmatprep.subr.mxu0 %v3988_v34  ;;  %v7795_v14 = vpop.f32.mrf.mxu0  ;;  %v9955_v59 = vld [vmem:[#allocation125_spill] sm:$0xff] }
 0x3d8   : > { %9943 = vst [vmem:[#allocation188_spill] sm:$0xff] %v7767_v18  ;;  %v7777_v42 = vmul.f32 %v7729_v61, %v9947_v4  ;;  %v7783_v8 = vmul.f32 %v7736_v44, %v9947_v4  ;;  %5314 = vmatpush3.msra.mxu1 %v4460_v31  ;;  %3607 = vmatprep.mubr.f32.mxu1 %v3465_v38  ;;  %v4475_v31 = vld [vmem:[#allocation8 + $0x4d8] sm:$0xff]  ;;  %v9958_v37 = vld [vmem:[#allocation209_spill] sm:$0xff] }
 0x3d9   : > { %9946 = vst [vmem:[#allocation192_spill] sm:$0xff] %v7773_v25  ;;  %v7788_v58 = vmul.f32 %v3756_v21, %v7736_v44  ;;  %v7792_v56 = vmul.f32 %v7736_v44, %v9953_v26  ;;  %v2984_v45 = vadd.f32 %v2952_v27, %v2920_v54  ;;  %v4206_v35 = vmul.f32 %v2383_v60, %v6756_v19  ;;  %v3987_v21 = vld [vmem:[#allocation8 + $0x3a0] sm:$0xff]  ;;  %v9959_v27 = vld [vmem:[#allocation214_spill] sm:$0xff]  ;;  %v9962_v25 = vld [vmem:[#allocation27_spill] sm:$0xff] }
 0x3da   : > { %9948 = vst [vmem:[#allocation197_spill] sm:$0xff] %v7777_v42  ;;  %9950 = vst [vmem:[#allocation201_spill] sm:$0xff] %v7783_v8  ;;  %v3693_v46 = vmul.f32 %v2222_v52, %v2222_v52  ;;  %v3789_v18 = vmul.f32 %v3757_v17, %v2383_v60  ;;  %v4334_v2 = vmul.f32 %v2383_v60, %v9955_v59  ;;  %5100 = vmatpush3.msra.mxu0 %v3972_v32  ;;  %v9960_v42 = vld [vmem:[#allocation218_spill] sm:$0xff]  ;;  %v7808_v8 = vpop.f32.mrf.mxu1  ;;  %v4459_v59 = vld [vmem:[#allocation8 + $0x458] sm:$0xff] }
 0x3db   : > { %9952 = vst [vmem:[#allocation191_spill] sm:$0xff] %v7788_v58  ;;  %9954 = vst [vmem:[#allocation61_spill] sm:$0xff] %v7792_v56  ;;  %v2983_v34 = vadd.f32 %v7684_v29, %v7666_v11  ;;  %3126 = vmatprep.mubr.f32.mxu0 %v2984_v45  ;;  %v7800_v38 = vadd.f32 %v4206_v35, %v4174_v63  ;;  %v9957_v58 = vld [vmem:[#allocation205_spill] sm:$0xff]  ;;  %v3243_v56 = vmul.f32 %v9959_v27, %v9945_v15  ;;  %v9965_v63 = vld [vmem:[#allocation208_spill] sm:$0xff]  ;;  %v2228_v15 = vpop.f32.mrf.mxu0 }
 0x3dc   : > { %v3368_v54 = vadd.f32 %v9958_v37, %v9957_v58  ;;  %v3339_v17 = vmul.f32 %v9960_v42, %v9947_v4  ;;  %9961 = vst [vmem:[#allocation22_spill] sm:$0xff] %v7808_v8  ;;  %v7811_v11 = vmul.f32 %v2222_v52, %v9962_v25  ;;  %v9963_v29 = vld [vmem:[#allocation69_spill] sm:$0xff]  ;;  %v7816_v35 = vadd.f32 %v4334_v2, %v4302_v51  ;;  %v9967_v45 = vld [vmem:[#allocation210_spill] sm:$0xff]  ;;  %v3971_v25 = vld [vmem:[#allocation8 + $0x320] sm:$0xff] }
 0x3dd   : > { %9956 = vst [vmem:[#allocation193_spill] sm:$0xff] %v7800_v38  ;;  %v7814_v32 = vmul.f32 %v2383_v60, %v9963_v29  ;;  %3127 = vmatmul.mubr.f32.gmra.mxu0 %v2983_v34  ;;  %v3403_v37 = vmul.f32 %v9965_v63, %v9965_v63  ;;  %v7820_v58 = vmul.f32 %v2383_v60, %v2383_v60  ;;  %v3758_v4 = vmul.f32 2.0, %v7795_v14  ;;  %v4474_v52 = vld [vmem:[#allocation8 + $0x4d0] sm:$0xff]  ;;  %v9971_v34 = vld [vmem:[#allocation72_spill] sm:$0xff] }
 0x3de   : > { %9964 = vst [vmem:[#allocation59_spill] sm:$0xff] %v7816_v35  ;;  %v3464_v27 = vadd.f32 %v9967_v45, %v3368_v54  ;;  %v3371_v42 = vadd.f32 %v3339_v17, %v3243_v56  ;;  %5299 = vmatprep.subr.mxu1 %v4475_v31  ;;  %5101 = vmatprep.subr.mxu0 %v3987_v21  ;;  %v4458_v56 = vld [vmem:[#allocation8 + $0x450] sm:$0xff]  ;;  %v9973_v21 = vld [vmem:[#allocation127_spill] sm:$0xff]  ;;  %v2389_v17 = vpop.f32.mrf.mxu1  ;;  %v3759_v45 = vmul.f32 2.0, %v2228_v15 }
 0x3df   : > { %9966 = vst [vmem:[#allocation58_spill] sm:$0xff] %v7820_v58  ;;  %v7825_v29 = vmul.f32 %v3693_v46, %v9951_v12  ;;  %v7828_v2 = vmul.f32 %v3789_v18, %v6756_v19  ;;  %v3435_v51 = vmul.f32 %v3403_v37, %v9953_v26  ;;  %v7833_v60 = vmul.f32 %v7795_v14, %v7795_v14  ;;  %v9975_v12 = vld [vmem:[#allocation26_spill] sm:$0xff]  ;;  %v9976_v18 = vld [vmem:[#allocation67_spill] sm:$0xff] }
 0x3e0   : > { %5315 = vmatpush3.msra.mxu1 %v4459_v59  ;;  %v7837_v31 = vmul.f32 %v7795_v14, %v9971_v34  ;;  %v7841_v46 = vmul.f32 %v7795_v14, %v9973_v21  ;;  %v2922_v19 = vmul.f32 %v7729_v61, %v9975_v12  ;;  %v2954_v54 = vmul.f32 %v7736_v44, %v9976_v18  ;;  %v9982_v18 = vld [vmem:[#allocation129_spill] sm:$0xff]  ;;  %v9984_v38 = vld [vmem:[#allocation66_spill] sm:$0xff] }
 0x3e1   : > { %9968 = vst [vmem:[#allocation202_spill] sm:$0xff] %v7825_v29  ;;  %9969 = vst [vmem:[#allocation206_spill] sm:$0xff] %v7828_v2  ;;  %3608 = vmatmul.mubr.f32.gmra.mxu1 %v3464_v27  ;;  %v3467_v37 = vadd.f32 %v3435_v51, %v3371_v42  ;;  %v7849_v59 = vmul.f32 %v7808_v8, %v9973_v21  ;;  %v9978_v27 = vld [vmem:[#allocation74_spill] sm:$0xff]  ;;  %5300 = vmatprep.subr.mxu1 %v4474_v52  ;;  %v7860_v42 = vpop.f32.mrf.mxu0  ;;  %v4473_v51 = vld [vmem:[#allocation8 + $0x4c8] sm:$0xff] }
 0x3e2   : > { %9970 = vst [vmem:[#allocation213_spill] sm:$0xff] %v7833_v60  ;;  %9972 = vst [vmem:[#allocation199_spill] sm:$0xff] %v7837_v31  ;;  %v4176_v58 = vmul.f32 %v2228_v15, %v9978_v27  ;;  %5102 = vmatpush3.msra.mxu0 %v3971_v25  ;;  %v7853_v2 = vmul.f32 %v3758_v4, %v7808_v8  ;;  %v9980_v29 = vld [vmem:[#allocation126_spill] sm:$0xff]  ;;  %v2986_v12 = vadd.f32 %v2954_v54, %v2922_v19  ;;  %v9983_v25 = vld [vmem:[#allocation128_spill] sm:$0xff] }
 0x3e3   : > { %9974 = vst [vmem:[#allocation25_spill] sm:$0xff] %v7841_v46  ;;  %9977 = vst [vmem:[#allocation65_spill] sm:$0xff] %v7849_v59  ;;  %v7857_v61 = vmul.f32 %v7808_v8, %v9980_v29  ;;  %v4304_v60 = vmul.f32 %v2228_v15, %v9982_v18  ;;  %5316 = vmatpush3.msra.mxu1 %v4458_v56  ;;  %3612 = vmatprep.mubr.f32.mxu1 %v3467_v37  ;;  %v4457_v4 = vld [vmem:[#allocation8 + $0x448] sm:$0xff]  ;;  %v9985_v19 = vld [vmem:[#allocation219_spill] sm:$0xff]  ;;  %v7872_v59 = vpop.f32.mrf.mxu1 }
 0x3e4   : > { %9979 = vst [vmem:[#allocation200_spill] sm:$0xff] %v7853_v2  ;;  %v3695_v26 = vmul.f32 %v2228_v15, %v2228_v15  ;;  %v3791_v44 = vmul.f32 %v3759_v45, %v2389_v17  ;;  %v4208_v52 = vmul.f32 %v2389_v17, %v9982_v18  ;;  %v4336_v35 = vmul.f32 %v2389_v17, %v9983_v25  ;;  %v9987_v56 = vld [vmem:[#allocation230_spill] sm:$0xff]  ;;  %v4472_v45 = vld [vmem:[#allocation8 + $0x4c0] sm:$0xff]  ;;  %v9989_v31 = vld [vmem:[#allocation29_spill] sm:$0xff] }
 0x3e5   : > { %9981 = vst [vmem:[#allocation24_spill] sm:$0xff] %v7857_v61  ;;  %3131 = vmatprep.mubr.f32.mxu0 %v2986_v12  ;;  %v2985_v2 = vadd.f32 %v7750_v57, %v7747_v22  ;;  %v3370_v54 = vadd.f32 %v9985_v19, %v9984_v38  ;;  %v9986_v61 = vld [vmem:[#allocation223_spill] sm:$0xff]  ;;  %v3341_v37 = vmul.f32 %v9987_v56, %v9973_v21  ;;  %9988 = vst [vmem:[#allocation63_spill] sm:$0xff] %v7872_v59  ;;  %v9992_v22 = vld [vmem:[#allocation216_spill] sm:$0xff] }
 0x3e6   : > { %v3245_v46 = vmul.f32 %v9986_v61, %v9971_v34  ;;  %v7875_v63 = vmul.f32 %v2228_v15, %v9989_v31  ;;  %v7877_v25 = vadd.f32 %v4208_v52, %v4176_v58  ;;  %v7879_v12 = vadd.f32 %v4336_v35, %v4304_v60  ;;  %5301 = vmatprep.subr.mxu1 %v4473_v51  ;;  %v9993_v38 = vld [vmem:[#allocation73_spill] sm:$0xff]  ;;  %v2234_v34 = vpop.f32.mrf.mxu0  ;;  %v4456_v15 = vld [vmem:[#allocation8 + $0x440] sm:$0xff]  ;;  %v3970_v51 = vld [vmem:[#allocation8 + $0x318] sm:$0xff] }
 0x3e7   : > { %v3405_v57 = vmul.f32 %v9992_v22, %v9992_v22  ;;  %v7884_v19 = vmul.f32 %v2389_v17, %v9993_v38  ;;  %3132 = vmatmul.mubr.f32.gmra.mxu0 %v2985_v2  ;;  %v9994_v61 = vld [vmem:[#allocation217_spill] sm:$0xff]  ;;  %5317 = vmatpush3.msra.mxu1 %v4457_v4  ;;  %v7888_v58 = vmul.f32 %v3695_v26, %v9978_v27  ;;  %v3760_v31 = vmul.f32 2.0, %v7860_v42  ;;  %v9999_v52 = vld [vmem:[#allocation28_spill] sm:$0xff]  ;;  %v10000_v27 = vld [vmem:[#allocation71_spill] sm:$0xff]  ;;  %v2395_v4 = vpop.f32.mrf.mxu1 }
 0x3e8   : > { %9990 = vst [vmem:[#allocation70_spill] sm:$0xff] %v7877_v25  ;;  %9991 = vst [vmem:[#allocation205_spill] sm:$0xff] %v7879_v12  ;;  %v3466_v56 = vadd.f32 %v9994_v61, %v3370_v54  ;;  %v3373_v21 = vadd.f32 %v3341_v37, %v3245_v46  ;;  %v7890_v35 = vmul.f32 %v2389_v17, %v2389_v17  ;;  %5302 = vmatprep.subr.mxu1 %v4472_v45  ;;  %v10001_v37 = vld [vmem:[#allocation76_spill] sm:$0xff]  ;;  %v10006_v61 = vld [vmem:[#allocation78_spill] sm:$0xff] }
 0x3e9   : > { %9995 = vst [vmem:[#allocation209_spill] sm:$0xff] %v7888_v58  ;;  %v3437_v60 = vmul.f32 %v3405_v57, %v9980_v29  ;;  %v7895_v2 = vmul.f32 %v3791_v44, %v9982_v18  ;;  %v7899_v46 = vmul.f32 %v7860_v42, %v7860_v42  ;;  %v2924_v26 = vmul.f32 %v7795_v14, %v9999_v52  ;;  %v10003_v57 = vld [vmem:[#allocation131_spill] sm:$0xff]  ;;  %v10007_v52 = vld [vmem:[#allocation133_spill] sm:$0xff]  ;;  %v10016_v25 = vld [vmem:[#allocation232_spill] sm:$0xff] }
 0x3ea   : > { %9996 = vst [vmem:[#allocation214_spill] sm:$0xff] %v7890_v35  ;;  %3613 = vmatmul.mubr.f32.gmra.mxu1 %v3466_v56  ;;  %v2956_v17 = vmul.f32 %v7808_v8, %v10000_v27  ;;  %v7907_v45 = vmul.f32 %v7860_v42, %v10001_v37  ;;  %v7911_v44 = vmul.f32 %v7860_v42, %v10003_v57  ;;  %v3761_v18 = vmul.f32 2.0, %v2234_v34  ;;  %v4455_v58 = vld [vmem:[#allocation8 + $0x438] sm:$0xff]  ;;  %v7934_v8 = vpop.f32.mrf.mxu1 }
 0x3eb   : > { %9997 = vst [vmem:[#allocation218_spill] sm:$0xff] %v7895_v2  ;;  %9998 = vst [vmem:[#allocation27_spill] sm:$0xff] %v7899_v46  ;;  %v3469_v54 = vadd.f32 %v3437_v60, %v3373_v21  ;;  %5103 = vmatprep.subr.mxu0 %v3986_v1  ;;  %5318 = vmatpush3.msra.mxu1 %v4456_v15  ;;  %v7915_v38 = vmul.f32 %v7872_v59, %v10003_v57  ;;  %v4471_v60 = vld [vmem:[#allocation8 + $0x4b8] sm:$0xff]  ;;  %v7923_v15 = vpop.f32.mrf.mxu0  ;;  %v10009_v46 = vld [vmem:[#allocation130_spill] sm:$0xff] }
 0x3ec   : > { %10002 = vst [vmem:[#allocation69_spill] sm:$0xff] %v7907_v45  ;;  %10004 = vst [vmem:[#allocation210_spill] sm:$0xff] %v7911_v44  ;;  %v2988_v14 = vadd.f32 %v2956_v17, %v2924_v26  ;;  %v4178_v56 = vmul.f32 %v2234_v34, %v10006_v61  ;;  %v4306_v21 = vmul.f32 %v2234_v34, %v10007_v52  ;;  %5104 = vmatpush3.msra.mxu0 %v3970_v51  ;;  %v10011_v17 = vld [vmem:[#allocation132_spill] sm:$0xff]  ;;  %v10019_v45 = vld [vmem:[#allocation31_spill] sm:$0xff] }
 0x3ed   : > { %10005 = vst [vmem:[#allocation26_spill] sm:$0xff] %v7915_v38  ;;  %3617 = vmatprep.mubr.f32.mxu1 %v3469_v54  ;;  %v7920_v27 = vmul.f32 %v3760_v31, %v7872_v59  ;;  %v3697_v35 = vmul.f32 %v2234_v34, %v2234_v34  ;;  %v3793_v2 = vmul.f32 %v3761_v18, %v2395_v4  ;;  %v10012_v54 = vld [vmem:[#allocation222_spill] sm:$0xff]  ;;  %10014 = vst [vmem:[#allocation129_spill] sm:$0xff] %v7934_v8  ;;  %v10017_v38 = vld [vmem:[#allocation236_spill] sm:$0xff] }
 0x3ee   : > { %v4210_v1 = vmul.f32 %v2395_v4, %v10007_v52  ;;  %v7927_v26 = vmul.f32 %v7872_v59, %v10009_v46  ;;  %3136 = vmatprep.mubr.f32.mxu0 %v2988_v14  ;;  %v4338_v29 = vmul.f32 %v2395_v4, %v10011_v17  ;;  %v2987_v51 = vadd.f32 %v7814_v32, %v7811_v11  ;;  %v10013_v31 = vld [vmem:[#allocation226_spill] sm:$0xff]  ;;  %v10018_v14 = vld [vmem:[#allocation225_spill] sm:$0xff] }
 0x3ef   : > { %10008 = vst [vmem:[#allocation67_spill] sm:$0xff] %v7920_v27  ;;  %v3372_v27 = vadd.f32 %v10013_v31, %v10012_v54  ;;  %v4470_v18 = vld [vmem:[#allocation8 + $0x4b0] sm:$0xff]  ;;  %v3247_v44 = vmul.f32 %v10016_v25, %v10001_v37  ;;  %v3407_v17 = vmul.f32 %v10018_v14, %v10018_v14  ;;  %5303 = vmatprep.subr.mxu1 %v4471_v60  ;;  %v10021_v54 = vld [vmem:[#allocation227_spill] sm:$0xff] }
 0x3f0   : > { %10010 = vst [vmem:[#allocation74_spill] sm:$0xff] %v7927_v26  ;;  %v7936_v12 = vadd.f32 %v4210_v1, %v4178_v56  ;;  %v3343_v26 = vmul.f32 %v10017_v38, %v10003_v57  ;;  %v7945_v11 = vmul.f32 %v2234_v34, %v10019_v45  ;;  %v7947_v32 = vadd.f32 %v4338_v29, %v4306_v21  ;;  %v3985_v1 = vld [vmem:[#allocation8 + $0x390] sm:$0xff]  ;;  %v10023_v38 = vld [vmem:[#allocation77_spill] sm:$0xff]  ;;  %v2240_v34 = vpop.f32.mrf.mxu0 }
 0x3f1   : > { %3137 = vmatmul.mubr.f32.gmra.mxu0 %v2987_v51  ;;  %v3468_v31 = vadd.f32 %v10021_v54, %v3372_v27  ;;  %v3762_v56 = vmul.f32 2.0, %v7923_v15  ;;  %5319 = vmatpush3.msra.mxu1 %v4455_v58  ;;  %v7952_v25 = vmul.f32 %v3697_v35, %v10006_v61  ;;  %v7955_v57 = vmul.f32 %v2395_v4, %v10023_v38  ;;  %v4454_v29 = vld [vmem:[#allocation8 + $0x430] sm:$0xff]  ;;  %v4469_v54 = vld [vmem:[#allocation8 + $0x4a8] sm:$0xff] }
 0x3f2   : > { %10015 = vst [vmem:[#allocation66_spill] sm:$0xff] %v7936_v12  ;;  %10020 = vst [vmem:[#allocation219_spill] sm:$0xff] %v7947_v32  ;;  %v3375_v37 = vadd.f32 %v3343_v26, %v3247_v44  ;;  %v3439_v60 = vmul.f32 %v3407_v17, %v10009_v46  ;;  %5304 = vmatprep.subr.mxu1 %v4470_v18  ;;  %v3969_v45 = vld [vmem:[#allocation8 + $0x310] sm:$0xff]  ;;  %v7959_v21 = vmul.f32 %v3793_v2, %v10007_v52  ;;  %v2401_v44 = vpop.f32.mrf.mxu1  ;;  %v10028_v17 = vld [vmem:[#allocation80_spill] sm:$0xff] }
 0x3f3   : > { %10022 = vst [vmem:[#allocation223_spill] sm:$0xff] %v7952_v25  ;;  %v7961_v27 = vmul.f32 %v2395_v4, %v2395_v4  ;;  %3618 = vmatmul.mubr.f32.gmra.mxu1 %v3468_v31  ;;  %v7965_v58 = vmul.f32 %v7923_v15, %v7923_v15  ;;  %v10027_v35 = vld [vmem:[#allocation30_spill] sm:$0xff]  ;;  %v7971_v51 = vmul.f32 %v7923_v15, %v10028_v17  ;;  %v10030_v18 = vld [vmem:[#allocation135_spill] sm:$0xff]  ;;  %v3763_v38 = vmul.f32 2.0, %v2240_v34  ;;  %v4453_v32 = vld [vmem:[#allocation8 + $0x428] sm:$0xff] }
 0x3f4   : > { %10024 = vst [vmem:[#allocation230_spill] sm:$0xff] %v7959_v21  ;;  %v2926_v61 = vmul.f32 %v7860_v42, %v10027_v35  ;;  %v3471_v26 = vadd.f32 %v3439_v60, %v3375_v37  ;;  %v7975_v2 = vmul.f32 %v7923_v15, %v10030_v18  ;;  %v10032_v4 = vld [vmem:[#allocation75_spill] sm:$0xff]  ;;  %5105 = vmatprep.subr.mxu0 %v3985_v1  ;;  %v10034_v42 = vld [vmem:[#allocation82_spill] sm:$0xff]  ;;  %v10035_v37 = vld [vmem:[#allocation137_spill] sm:$0xff] }
 0x3f5   : > { %10025 = vst [vmem:[#allocation29_spill] sm:$0xff] %v7961_v27  ;;  %10026 = vst [vmem:[#allocation73_spill] sm:$0xff] %v7965_v58  ;;  %v2958_v52 = vmul.f32 %v7872_v59, %v10032_v4  ;;  %v7980_v31 = vmul.f32 %v3762_v56, %v7934_v8  ;;  %v4180_v35 = vmul.f32 %v2240_v34, %v10034_v42  ;;  %5320 = vmatpush3.msra.mxu1 %v4454_v29  ;;  %v7989_v4 = vpop.f32.mrf.mxu0  ;;  %v10038_v59 = vld [vmem:[#allocation231_spill] sm:$0xff]  ;;  %v10039_v29 = vld [vmem:[#allocation237_spill] sm:$0xff] }
 0x3f6   : > { %10029 = vst [vmem:[#allocation217_spill] sm:$0xff] %v7971_v51  ;;  %10031 = vst [vmem:[#allocation28_spill] sm:$0xff] %v7975_v2  ;;  %v4308_v60 = vmul.f32 %v2240_v34, %v10035_v37  ;;  %5106 = vmatpush3.msra.mxu0 %v3969_v45  ;;  %3622 = vmatprep.mubr.f32.mxu1 %v3471_v26  ;;  %v7986_v27 = vmul.f32 %v7934_v8, %v10030_v18  ;;  %v7996_v26 = vpop.f32.mrf.mxu1  ;;  %v3984_v12 = vld [vmem:[#allocation8 + $0x388] sm:$0xff] }
 0x3f7   : > { %10033 = vst [vmem:[#allocation71_spill] sm:$0xff] %v7980_v31  ;;  %v2990_v21 = vadd.f32 %v2958_v52, %v2926_v61  ;;  %v3699_v25 = vmul.f32 %v2240_v34, %v2240_v34  ;;  %v4212_v1 = vmul.f32 %v2401_v44, %v10035_v37  ;;  %v3795_v56 = vmul.f32 %v3763_v38, %v2401_v44  ;;  %v10037_v31 = vld [vmem:[#allocation136_spill] sm:$0xff]  ;;  %v10042_v52 = vld [vmem:[#allocation241_spill] sm:$0xff] }
 0x3f8   : > { %10036 = vst [vmem:[#allocation78_spill] sm:$0xff] %v7986_v27  ;;  %v4340_v58 = vmul.f32 %v2401_v44, %v10037_v31  ;;  %v2989_v46 = vadd.f32 %v7884_v19, %v7875_v63  ;;  %v3374_v45 = vadd.f32 %v10039_v29, %v10038_v59  ;;  %10040 = vst [vmem:[#allocation133_spill] sm:$0xff] %v7996_v26  ;;  %5305 = vmatprep.subr.mxu1 %v4469_v54  ;;  %v10043_v38 = vld [vmem:[#allocation248_spill] sm:$0xff]  ;;  %v10044_v27 = vld [vmem:[#allocation234_spill] sm:$0xff] }
 0x3f9   : > { %3141 = vmatprep.mubr.f32.mxu0 %v2990_v21  ;;  %v7998_v61 = vadd.f32 %v4212_v1, %v4180_v35  ;;  %v3249_v2 = vmul.f32 %v10042_v52, %v10028_v17  ;;  %v3345_v31 = vmul.f32 %v10043_v38, %v10030_v18  ;;  %v3409_v63 = vmul.f32 %v10044_v27, %v10044_v27  ;;  %v10045_v19 = vld [vmem:[#allocation134_spill] sm:$0xff]  ;;  %v10047_v29 = vld [vmem:[#allocation33_spill] sm:$0xff]  ;;  %v10049_v21 = vld [vmem:[#allocation235_spill] sm:$0xff] }
 0x3fa   : > { %v8008_v59 = vmul.f32 %v7934_v8, %v10045_v19  ;;  %v8011_v54 = vmul.f32 %v2240_v34, %v10047_v29  ;;  %v8013_v51 = vadd.f32 %v4340_v58, %v4308_v60  ;;  %3142 = vmatmul.mubr.f32.gmra.mxu0 %v2989_v46  ;;  %v3470_v35 = vadd.f32 %v10049_v21, %v3374_v45  ;;  %v4468_v1 = vld [vmem:[#allocation8 + $0x4a0] sm:$0xff]  ;;  %v10050_v52 = vld [vmem:[#allocation81_spill] sm:$0xff]  ;;  %v10059_v29 = vld [vmem:[#allocation86_spill] sm:$0xff] }
 0x3fb   : > { %10041 = vst [vmem:[#allocation222_spill] sm:$0xff] %v7998_v61  ;;  %v8017_v17 = vmul.f32 %v2401_v44, %v10050_v52  ;;  %v3377_v38 = vadd.f32 %v3345_v31, %v3249_v2  ;;  %v3441_v18 = vmul.f32 %v3409_v63, %v10045_v19  ;;  %v2246_v61 = vpop.f32.mrf.mxu0  ;;  %5321 = vmatpush3.msra.mxu1 %v4453_v32  ;;  %v4452_v27 = vld [vmem:[#allocation8 + $0x420] sm:$0xff]  ;;  %v2407_v2 = vpop.f32.mrf.mxu1  ;;  %v10056_v63 = vld [vmem:[#allocation79_spill] sm:$0xff]  ;;  %v10060_v21 = vld [vmem:[#allocation141_spill] sm:$0xff] }
 0x3fc   : > { %10046 = vst [vmem:[#allocation226_spill] sm:$0xff] %v8008_v59  ;;  %10048 = vst [vmem:[#allocation232_spill] sm:$0xff] %v8013_v51  ;;  %5107 = vmatprep.subr.mxu0 %v3984_v12  ;;  %v3968_v59 = vld [vmem:[#allocation8 + $0x308] sm:$0xff]  ;;  %v8021_v34 = vmul.f32 %v3699_v25, %v10034_v42  ;;  %v8024_v58 = vmul.f32 %v3795_v56, %v10035_v37  ;;  %v8026_v46 = vmul.f32 %v2401_v44, %v2401_v44  ;;  %v10054_v60 = vld [vmem:[#allocation32_spill] sm:$0xff] }
 0x3fd   : > { %3623 = vmatmul.mubr.f32.gmra.mxu1 %v3470_v35  ;;  %v2928_v45 = vmul.f32 %v7923_v15, %v10054_v60  ;;  %v3473_v31 = vadd.f32 %v3441_v18, %v3377_v38  ;;  %v8032_v32 = vmul.f32 %v7989_v4, %v7989_v4  ;;  %v3764_v12 = vmul.f32 2.0, %v7989_v4  ;;  %5306 = vmatprep.subr.mxu1 %v4468_v1  ;;  %v4467_v42 = vld [vmem:[#allocation8 + $0x498] sm:$0xff]  ;;  %v10057_v37 = vld [vmem:[#allocation84_spill] sm:$0xff] }
 0x3fe   : > { %10051 = vst [vmem:[#allocation236_spill] sm:$0xff] %v8021_v34  ;;  %10052 = vst [vmem:[#allocation31_spill] sm:$0xff] %v8024_v58  ;;  %v2960_v25 = vmul.f32 %v7934_v8, %v10056_v63  ;;  %v8039_v44 = vmul.f32 %v7989_v4, %v10057_v37  ;;  %v3765_v56 = vmul.f32 2.0, %v2246_v61  ;;  %v4182_v15 = vmul.f32 %v2246_v61, %v10059_v29  ;;  %v10061_v35 = vld [vmem:[#allocation139_spill] sm:$0xff]  ;;  %v8052_v63 = vpop.f32.mrf.mxu0  ;;  %v10064_v34 = vld [vmem:[#allocation140_spill] sm:$0xff] }
 0x3ff   : > { %10053 = vst [vmem:[#allocation227_spill] sm:$0xff] %v8026_v46  ;;  %10055 = vst [vmem:[#allocation77_spill] sm:$0xff] %v8032_v32  ;;  %v4310_v18 = vmul.f32 %v2246_v61, %v10060_v21  ;;  %5322 = vmatpush3.msra.mxu1 %v4452_v27  ;;  %5108 = vmatpush3.msra.mxu0 %v3968_v59  ;;  %v8045_v52 = vmul.f32 %v7989_v4, %v10061_v35  ;;  %v4451_v59 = vld [vmem:[#allocation8 + $0x418] sm:$0xff]  ;;  %v10066_v8 = vld [vmem:[#allocation240_spill] sm:$0xff] }
 0x400   : > { %10058 = vst [vmem:[#allocation30_spill] sm:$0xff] %v8039_v44  ;;  %3627 = vmatprep.mubr.f32.mxu1 %v3473_v31  ;;  %v8049_v1 = vmul.f32 %v7996_v26, %v10061_v35  ;;  %v2992_v38 = vadd.f32 %v2960_v25, %v2928_v45  ;;  %v4214_v60 = vmul.f32 %v2407_v2, %v10060_v21  ;;  %v3983_v31 = vld [vmem:[#allocation8 + $0x380] sm:$0xff]  ;;  %v10068_v25 = vld [vmem:[#allocation250_spill] sm:$0xff]  ;;  %v8065_v44 = vpop.f32.mrf.mxu1 }
 0x401   : > { %10062 = vst [vmem:[#allocation75_spill] sm:$0xff] %v8045_v52  ;;  %v3701_v46 = vmul.f32 %v2246_v61, %v2246_v61  ;;  %v3797_v58 = vmul.f32 %v3765_v56, %v2407_v2  ;;  %v4342_v32 = vmul.f32 %v2407_v2, %v10064_v34  ;;  %v2991_v27 = vadd.f32 %v7955_v57, %v7945_v11  ;;  %v10067_v51 = vld [vmem:[#allocation244_spill] sm:$0xff]  ;;  %v4466_v34 = vld [vmem:[#allocation8 + $0x490] sm:$0xff] }
 0x402   : > { %10063 = vst [vmem:[#allocation82_spill] sm:$0xff] %v8049_v1  ;;  %5307 = vmatprep.subr.mxu1 %v4467_v42  ;;  %3146 = vmatprep.mubr.f32.mxu0 %v2992_v38  ;;  %v8057_v19 = vadd.f32 %v4214_v60, %v4182_v15  ;;  %v3376_v45 = vadd.f32 %v10067_v51, %v10066_v8  ;;  %v10069_v1 = vld [vmem:[#allocation254_spill] sm:$0xff]  ;;  %10070 = vst [vmem:[#allocation231_spill] sm:$0xff] %v8065_v44  ;;  %v10075_v8 = vld [vmem:[#allocation243_spill] sm:$0xff]  ;;  %v8079_v38 = vmul.f32 2.0, %v7454_v47 }
 0x403   : > { %v3251_v52 = vmul.f32 %v10068_v25, %v10057_v37  ;;  %v3347_v56 = vmul.f32 %v10069_v1, %v10061_v35  ;;  %v8068_v57 = vmul.f32 %v3764_v12, %v7996_v26  ;;  %v10072_v11 = vld [vmem:[#allocation138_spill] sm:$0xff]  ;;  %v8074_v15 = vadd.f32 %v4342_v32, %v4310_v18  ;;  %3147 = vmatmul.mubr.f32.gmra.mxu0 %v2991_v27  ;;  %v10076_v1 = vld [vmem:[#allocation35_spill] sm:$0xff]  ;;  %v10077_v25 = vld [vmem:[#allocation245_spill] sm:$0xff] }
 0x404   : > { %10065 = vst [vmem:[#allocation137_spill] sm:$0xff] %v8057_v19  ;;  %v8072_v42 = vmul.f32 %v7996_v26, %v10072_v11  ;;  %v3411_v51 = vmul.f32 %v10075_v8, %v10075_v8  ;;  %v8082_v60 = vmul.f32 %v2246_v61, %v10076_v1  ;;  %v3472_v35 = vadd.f32 %v10077_v25, %v3376_v45  ;;  %v4450_v37 = vld [vmem:[#allocation8 + $0x410] sm:$0xff]  ;;  %v3967_v19 = vld [vmem:[#allocation8 + $0x300] sm:$0xff]  ;;  %v10079_v18 = vld [vmem:[#allocation85_spill] sm:$0xff] }
 0x405   : > { %10071 = vst [vmem:[#allocation237_spill] sm:$0xff] %v8068_v57  ;;  %10074 = vst [vmem:[#allocation248_spill] sm:$0xff] %v8074_v15  ;;  %v3379_v12 = vadd.f32 %v3347_v56, %v3251_v52  ;;  %v2252_v57 = vpop.f32.mrf.mxu0  ;;  %5323 = vmatpush3.msra.mxu1 %v4451_v59  ;;  %5109 = vmatprep.subr.mxu0 %v3983_v31  ;;  %v8086_v32 = vmul.f32 %v3701_v46, %v10059_v29  ;;  %v4465_v61 = vld [vmem:[#allocation8 + $0x488] sm:$0xff]  ;;  %v10083_v59 = vld [vmem:[#allocation34_spill] sm:$0xff] }
 0x406   : > { %10073 = vst [vmem:[#allocation241_spill] sm:$0xff] %v8072_v42  ;;  %v8089_v27 = vmul.f32 %v2407_v2, %v10079_v18  ;;  %v8091_v15 = vmul.f32 %v2407_v2, %v2407_v2  ;;  %v3443_v8 = vmul.f32 %v3411_v51, %v10072_v11  ;;  %5308 = vmatprep.subr.mxu1 %v4466_v34  ;;  %v10084_v29 = vld [vmem:[#allocation83_spill] sm:$0xff]  ;;  %v2413_v2 = vpop.f32.mrf.mxu1  ;;  %v3766_v51 = vmul.f32 2.0, %v8052_v63  ;;  %v10085_v1 = vld [vmem:[#allocation90_spill] sm:$0xff] }
 0x407   : > { %10078 = vst [vmem:[#allocation33_spill] sm:$0xff] %v8086_v32  ;;  %v8095_v45 = vmul.f32 %v3797_v58, %v10060_v21  ;;  %3628 = vmatmul.mubr.f32.gmra.mxu1 %v3472_v35  ;;  %v8099_v52 = vmul.f32 %v8052_v63, %v8052_v63  ;;  %v2930_v46 = vmul.f32 %v7989_v4, %v10083_v59  ;;  %v3767_v34 = vmul.f32 2.0, %v2252_v57  ;;  %v10086_v58 = vld [vmem:[#allocation88_spill] sm:$0xff]  ;;  %v10088_v35 = vld [vmem:[#allocation143_spill] sm:$0xff]  ;;  %v10090_v59 = vld [vmem:[#allocation145_spill] sm:$0xff] }
 0x408   : > { %10080 = vst [vmem:[#allocation235_spill] sm:$0xff] %v8091_v15  ;;  %v2962_v31 = vmul.f32 %v7996_v26, %v10084_v29  ;;  %v3475_v56 = vadd.f32 %v3443_v8, %v3379_v12  ;;  %v4184_v25 = vmul.f32 %v2252_v57, %v10085_v1  ;;  %5324 = vmatpush3.msra.mxu1 %v4450_v37  ;;  %v8116_v15 = vpop.f32.mrf.mxu0  ;;  %v4449_v8 = vld [vmem:[#allocation8 + $0x408] sm:$0xff]  ;;  %v10091_v37 = vld [vmem:[#allocation144_spill] sm:$0xff] }
 0x409   : > { %10081 = vst [vmem:[#allocation81_spill] sm:$0xff] %v8095_v45  ;;  %10082 = vst [vmem:[#allocation32_spill] sm:$0xff] %v8099_v52  ;;  %5110 = vmatpush3.msra.mxu0 %v3967_v19  ;;  %v8109_v21 = vmul.f32 %v8052_v63, %v10086_v58  ;;  %v8113_v18 = vmul.f32 %v8052_v63, %v10088_v35  ;;  %v4312_v29 = vmul.f32 %v2252_v57, %v10090_v59  ;;  %v4464_v52 = vld [vmem:[#allocation8 + $0x480] sm:$0xff]  ;;  %v10092_v26 = vld [vmem:[#allocation249_spill] sm:$0xff] }
 0x40a   : > { %v2994_v4 = vadd.f32 %v2962_v31, %v2930_v46  ;;  %5309 = vmatprep.subr.mxu1 %v4465_v61  ;;  %3632 = vmatprep.mubr.f32.mxu1 %v3475_v56  ;;  %v3703_v12 = vmul.f32 %v2252_v57, %v2252_v57  ;;  %v3799_v45 = vmul.f32 %v3767_v34, %v2413_v2  ;;  %v10093_v46 = vld [vmem:[#allocation255_spill] sm:$0xff]  ;;  %v10095_v61 = vld [vmem:[#allocation266_spill] sm:$0xff] }
 0x40b   : > { %10087 = vst [vmem:[#allocation79_spill] sm:$0xff] %v8109_v21  ;;  %10089 = vst [vmem:[#allocation86_spill] sm:$0xff] %v8113_v18  ;;  %v4216_v19 = vmul.f32 %v2413_v2, %v10090_v59  ;;  %v4344_v32 = vmul.f32 %v2413_v2, %v10091_v37  ;;  %v2993_v11 = vadd.f32 %v8017_v17, %v8011_v54  ;;  %v10094_v18 = vld [vmem:[#allocation259_spill] sm:$0xff]  ;;  %v8138_v54 = vpop.f32.mrf.mxu1  ;;  %5325 = vmatpush3.msra.mxu1 %v4449_v8  ;;  %v10106_v8 = vld [vmem:[#allocation89_spill] sm:$0xff] }
 0x40c   : > { %3151 = vmatprep.mubr.f32.mxu0 %v2994_v4  ;;  %v3378_v31 = vadd.f32 %v10093_v46, %v10092_v26  ;;  %v3253_v21 = vmul.f32 %v10094_v18, %v10086_v58  ;;  %v3349_v56 = vmul.f32 %v10095_v61, %v10088_v35  ;;  %v8130_v34 = vmul.f32 %v8065_v44, %v10088_v35  ;;  %v10099_v4 = vld [vmem:[#allocation252_spill] sm:$0xff]  ;;  %v10101_v18 = vld [vmem:[#allocation142_spill] sm:$0xff]  ;;  %v10103_v61 = vld [vmem:[#allocation253_spill] sm:$0xff] }
 0x40d   : > { %v8132_v42 = vadd.f32 %v4216_v19, %v4184_v25  ;;  %v8134_v37 = vadd.f32 %v4344_v32, %v4312_v29  ;;  %v3413_v17 = vmul.f32 %v10099_v4, %v10099_v4  ;;  %10100 = vst [vmem:[#allocation250_spill] sm:$0xff] %v8138_v54  ;;  %v8141_v26 = vmul.f32 2.0, %v7473_v24  ;;  %3152 = vmatmul.mubr.f32.gmra.mxu0 %v2993_v11  ;;  %v2258_v19 = vpop.f32.mrf.mxu0  ;;  %v4448_v32 = vld [vmem:[#allocation8 + $0x400] sm:$0xff]  ;;  %v10105_v58 = vld [vmem:[#allocation37_spill] sm:$0xff] }
 0x40e   : > { %10096 = vst [vmem:[#allocation141_spill] sm:$0xff] %v8130_v34  ;;  %v8145_v46 = vmul.f32 %v8065_v44, %v10101_v18  ;;  %v3474_v35 = vadd.f32 %v10103_v61, %v3378_v31  ;;  %v3381_v25 = vadd.f32 %v3349_v56, %v3253_v21  ;;  %5310 = vmatprep.subr.mxu1 %v4464_v52  ;;  %v5503_v34 = vld [vmem:[#allocation8 + $0x4f8] sm:$0xff]  ;;  %v10109_v52 = vld [vmem:[#allocation36_spill] sm:$0xff] }
 0x40f   : > { %10097 = vst [vmem:[#allocation240_spill] sm:$0xff] %v8132_v42  ;;  %10098 = vst [vmem:[#allocation244_spill] sm:$0xff] %v8134_v37  ;;  %v8149_v29 = vmul.f32 %v3766_v51, %v8065_v44  ;;  %v8152_v37 = vmul.f32 %v2252_v57, %v10105_v58  ;;  %v8155_v42 = vmul.f32 %v2413_v2, %v10106_v8  ;;  %5159 = vmatprep.subr.mxu0 %v5503_v34  ;;  %v10110_v31 = vld [vmem:[#allocation87_spill] sm:$0xff] }
 0x410   : > { %10102 = vst [vmem:[#allocation254_spill] sm:$0xff] %v8145_v46  ;;  %v3445_v4 = vmul.f32 %v3413_v17, %v10101_v18  ;;  %v8159_v11 = vmul.f32 %v3703_v12, %v10085_v1  ;;  %v8161_v21 = vmul.f32 %v2413_v2, %v2413_v2  ;;  %3633 = vmatmul.mubr.f32.gmra.mxu1 %v3474_v35  ;;  %v3769_v34 = vmul.f32 2.0, %v2258_v19  ;;  %v2419_v1 = vpop.f32.mrf.mxu1  ;;  %v10113_v35 = vld [vmem:[#allocation92_spill] sm:$0xff] }
 0x411   : > { %10104 = vst [vmem:[#allocation35_spill] sm:$0xff] %v8149_v29  ;;  %v2932_v51 = vmul.f32 %v8052_v63, %v10109_v52  ;;  %v2964_v57 = vmul.f32 %v8065_v44, %v10110_v31  ;;  %v8168_v58 = vmul.f32 %v3799_v45, %v10090_v59  ;;  %v8172_v17 = vmul.f32 %v8116_v15, %v8116_v15  ;;  %v10115_v63 = vld [vmem:[#allocation147_spill] sm:$0xff]  ;;  %v8188_v52 = vpop.f32.mrf.mxu0  ;;  %v10119_v31 = vld [vmem:[#allocation149_spill] sm:$0xff]  ;;  %v10123_v44 = vld [vmem:[#allocation268_spill] sm:$0xff] }
 0x412   : > { %10107 = vst [vmem:[#allocation245_spill] sm:$0xff] %v8159_v11  ;;  %10108 = vst [vmem:[#allocation85_spill] sm:$0xff] %v8161_v21  ;;  %v3477_v56 = vadd.f32 %v3445_v4, %v3381_v25  ;;  %5326 = vmatpush3.msra.mxu1 %v4448_v32  ;;  %v3768_v2 = vmul.f32 2.0, %v8116_v15  ;;  %v8177_v12 = vmul.f32 %v8116_v15, %v10113_v35  ;;  %v10118_v25 = vld [vmem:[#allocation94_spill] sm:$0xff] }
 0x413   : > { %10111 = vst [vmem:[#allocation34_spill] sm:$0xff] %v8168_v58  ;;  %10112 = vst [vmem:[#allocation83_spill] sm:$0xff] %v8172_v17  ;;  %v8181_v61 = vmul.f32 %v8116_v15, %v10115_v63  ;;  %v2996_v45 = vadd.f32 %v2964_v57, %v2932_v51  ;;  %v8185_v59 = vmul.f32 %v8138_v54, %v10115_v63  ;;  %v10120_v51 = vld [vmem:[#allocation258_spill] sm:$0xff]  ;;  %v10122_v17 = vld [vmem:[#allocation148_spill] sm:$0xff] }
 0x414   : > { %10114 = vst [vmem:[#allocation90_spill] sm:$0xff] %v8177_v12  ;;  %3637 = vmatprep.mubr.f32.mxu1 %v3477_v56  ;;  %v3705_v4 = vmul.f32 %v2258_v19, %v2258_v19  ;;  %v4186_v8 = vmul.f32 %v2258_v19, %v10118_v25  ;;  %v3801_v32 = vmul.f32 %v3769_v34, %v2419_v1  ;;  %v10121_v57 = vld [vmem:[#allocation262_spill] sm:$0xff]  ;;  %v10124_v34 = vld [vmem:[#allocation272_spill] sm:$0xff]  ;;  %v8203_v12 = vpop.f32.mrf.mxu1 }
 0x415   : > { %10116 = vst [vmem:[#allocation145_spill] sm:$0xff] %v8181_v61  ;;  %10117 = vst [vmem:[#allocation249_spill] sm:$0xff] %v8185_v59  ;;  %3156 = vmatprep.mubr.f32.mxu0 %v2996_v45  ;;  %v4314_v21 = vmul.f32 %v2258_v19, %v10119_v31  ;;  %v4218_v58 = vmul.f32 %v2419_v1, %v10119_v31  ;;  %v2995_v11 = vadd.f32 %v8089_v27, %v8082_v60  ;;  %v10125_v59 = vld [vmem:[#allocation261_spill] sm:$0xff]  ;;  %v10128_v60 = vld [vmem:[#allocation146_spill] sm:$0xff] }
 0x416   : > { %v3380_v56 = vadd.f32 %v10121_v57, %v10120_v51  ;;  %v4346_v18 = vmul.f32 %v2419_v1, %v10122_v17  ;;  %v3255_v29 = vmul.f32 %v10123_v44, %v10113_v35  ;;  %v3351_v61 = vmul.f32 %v10124_v34, %v10115_v63  ;;  %10126 = vst [vmem:[#allocation255_spill] sm:$0xff] %v8203_v12  ;;  %v10130_v51 = vld [vmem:[#allocation39_spill] sm:$0xff]  ;;  %v10133_v63 = vld [vmem:[#allocation93_spill] sm:$0xff] }
 0x417   : > { %v3415_v45 = vmul.f32 %v10125_v59, %v10125_v59  ;;  %v8206_v46 = vmul.f32 %v3768_v2, %v8138_v54  ;;  %v8210_v27 = vmul.f32 %v8138_v54, %v10128_v60  ;;  %v8213_v57 = vmul.f32 %v2258_v19, %v10130_v51  ;;  %3157 = vmatmul.mubr.f32.gmra.mxu0 %v2995_v11  ;;  %v10131_v44 = vld [vmem:[#allocation263_spill] sm:$0xff]  ;;  %v10137_v11 = vld [vmem:[#allocation38_spill] sm:$0xff]  ;;  %v10146_v51 = vld [vmem:[#allocation153_spill] sm:$0xff] }
 0x418   : > { %v3476_v17 = vadd.f32 %v10131_v44, %v3380_v56  ;;  %v8217_v34 = vmul.f32 %v3705_v4, %v10118_v25  ;;  %v8220_v35 = vmul.f32 %v2419_v1, %v10133_v63  ;;  %v3383_v59 = vadd.f32 %v3351_v61, %v3255_v29  ;;  %v10140_v63 = vld [vmem:[#allocation91_spill] sm:$0xff] }
 0x419   : > { %10127 = vst [vmem:[#allocation259_spill] sm:$0xff] %v8206_v46  ;;  %10129 = vst [vmem:[#allocation266_spill] sm:$0xff] %v8210_v27  ;;  %v3447_v2 = vmul.f32 %v3415_v45, %v10128_v60  ;;  %v2264_v46 = vpop.f32.mrf.mxu0  ;;  %v8224_v14 = vmul.f32 %v3801_v32, %v10119_v31  ;;  %v8226_v27 = vmul.f32 %v2419_v1, %v2419_v1  ;;  %v2425_v32 = vpop.f32.mrf.mxu1  ;;  %v3770_v1 = vmul.f32 2.0, %v8188_v52  ;;  %v10141_v31 = vld [vmem:[#allocation96_spill] sm:$0xff] }
 0x41a   : > { %10132 = vst [vmem:[#allocation253_spill] sm:$0xff] %v8217_v34  ;;  %v8228_v19 = vadd.f32 %v4218_v58, %v4186_v8  ;;  %3638 = vmatmul.mubr.f32.gmra.mxu1 %v3476_v17  ;;  %v2934_v56 = vmul.f32 %v8116_v15, %v10137_v11  ;;  %v8232_v4 = vadd.f32 %v4346_v18, %v4314_v21  ;;  %v10143_v17 = vld [vmem:[#allocation151_spill] sm:$0xff]  ;;  %v3771_v18 = vmul.f32 2.0, %v2264_v46  ;;  %v10145_v8 = vld [vmem:[#allocation98_spill] sm:$0xff]  ;;  %v10148_v34 = vld [vmem:[#allocation273_spill] sm:$0xff] }
 0x41b   : > { %10134 = vst [vmem:[#allocation37_spill] sm:$0xff] %v8224_v14  ;;  %10135 = vst [vmem:[#allocation89_spill] sm:$0xff] %v8226_v27  ;;  %v3479_v25 = vadd.f32 %v3447_v2, %v3383_v59  ;;  %v8236_v29 = vmul.f32 %v8188_v52, %v8188_v52  ;;  %v2966_v61 = vmul.f32 %v8138_v54, %v10140_v63  ;;  %v8251_v2 = vpop.f32.mrf.mxu0  ;;  %v10147_v14 = vld [vmem:[#allocation267_spill] sm:$0xff]  ;;  %v10151_v54 = vld [vmem:[#allocation284_spill] sm:$0xff] }
 0x41c   : > { %10136 = vst [vmem:[#allocation36_spill] sm:$0xff] %v8228_v19  ;;  %10138 = vst [vmem:[#allocation87_spill] sm:$0xff] %v8232_v4  ;;  %v8243_v58 = vmul.f32 %v8188_v52, %v10141_v31  ;;  %v8247_v15 = vmul.f32 %v8188_v52, %v10143_v17  ;;  %v3707_v59 = vmul.f32 %v2264_v46, %v2264_v46  ;;  %v10152_v19 = vld [vmem:[#allocation270_spill] sm:$0xff] }
 0x41d   : > { %10139 = vst [vmem:[#allocation94_spill] sm:$0xff] %v8236_v29  ;;  %3642 = vmatprep.mubr.f32.mxu1 %v3479_v25  ;;  %v2998_v21 = vadd.f32 %v2966_v61, %v2934_v56  ;;  %v4188_v45 = vmul.f32 %v2264_v46, %v10145_v8  ;;  %v4316_v44 = vmul.f32 %v2264_v46, %v10146_v51  ;;  %v10149_v29 = vld [vmem:[#allocation152_spill] sm:$0xff]  ;;  %v10150_v56 = vld [vmem:[#allocation277_spill] sm:$0xff] }
 0x41e   : > { %10142 = vst [vmem:[#allocation149_spill] sm:$0xff] %v8243_v58  ;;  %10144 = vst [vmem:[#allocation258_spill] sm:$0xff] %v8247_v15  ;;  %v3803_v11 = vmul.f32 %v3771_v18, %v2425_v32  ;;  %v4220_v63 = vmul.f32 %v2425_v32, %v10146_v51  ;;  %v2997_v27 = vadd.f32 %v8155_v42, %v8152_v37  ;;  %v8265_v15 = vpop.f32.mrf.mxu1  ;;  %v10155_v42 = vld [vmem:[#allocation150_spill] sm:$0xff] }
 0x41f   : > { %v3382_v60 = vadd.f32 %v10148_v34, %v10147_v14  ;;  %3161 = vmatprep.mubr.f32.mxu0 %v2998_v21  ;;  %v4348_v25 = vmul.f32 %v2425_v32, %v10149_v29  ;;  %v3257_v61 = vmul.f32 %v10150_v56, %v10141_v31  ;;  %v3353_v4 = vmul.f32 %v10151_v54, %v10143_v17  ;;  %v10156_v34 = vld [vmem:[#allocation271_spill] sm:$0xff]  ;;  %v10157_v54 = vld [vmem:[#allocation41_spill] sm:$0xff] }
 0x420   : > { %v3417_v18 = vmul.f32 %v10152_v19, %v10152_v19  ;;  %v8268_v58 = vmul.f32 %v3770_v1, %v8203_v12  ;;  %v8272_v14 = vmul.f32 %v8203_v12, %v10143_v17  ;;  %v8276_v37 = vmul.f32 %v8203_v12, %v10155_v42  ;;  %3162 = vmatmul.mubr.f32.gmra.mxu0 %v2997_v27  ;;  %v10158_v29 = vld [vmem:[#allocation97_spill] sm:$0xff]  ;;  %v10162_v27 = vld [vmem:[#allocation40_spill] sm:$0xff] }
 0x421   : > { %v3478_v21 = vadd.f32 %v10156_v34, %v3382_v60  ;;  %v8280_v56 = vmul.f32 %v2264_v46, %v10157_v54  ;;  %v2969_v31 = vmul.f32 %v2425_v32, %v10158_v29  ;;  %v3385_v19 = vadd.f32 %v3353_v4, %v3257_v61  ;;  %v10165_v29 = vld [vmem:[#allocation95_spill] sm:$0xff] }
 0x422   : > { %10153 = vst [vmem:[#allocation262_spill] sm:$0xff] %v8268_v58  ;;  %10154 = vst [vmem:[#allocation268_spill] sm:$0xff] %v8272_v14  ;;  %v3449_v1 = vmul.f32 %v3417_v18, %v10155_v42  ;;  %v2270_v58 = vpop.f32.mrf.mxu0  ;;  %v8285_v22 = vmul.f32 %v3707_v59, %v10145_v8  ;;  %v8287_v17 = vmul.f32 %v2425_v32, %v2425_v32  ;;  %v2431_v18 = vpop.f32.mrf.mxu1  ;;  %v3772_v59 = vmul.f32 2.0, %v8251_v2  ;;  %v10167_v8 = vld [vmem:[#allocation100_spill] sm:$0xff]  ;;  %v10175_v42 = vld [vmem:[#allocation286_spill] sm:$0xff] }
 0x423   : > { %v8289_v14 = vadd.f32 %v4220_v63, %v4188_v45  ;;  %3643 = vmatmul.mubr.f32.gmra.mxu1 %v3478_v21  ;;  %v2936_v60 = vmul.f32 %v8188_v52, %v10162_v27  ;;  %v8294_v46 = vmul.f32 %v3803_v11, %v10146_v51  ;;  %v8296_v34 = vadd.f32 %v4348_v25, %v4316_v44  ;;  %v10168_v51 = vld [vmem:[#allocation155_spill] sm:$0xff]  ;;  %v10170_v63 = vld [vmem:[#allocation102_spill] sm:$0xff]  ;;  %v10171_v21 = vld [vmem:[#allocation157_spill] sm:$0xff] }
 0x424   : > { %10159 = vst [vmem:[#allocation272_spill] sm:$0xff] %v8285_v22  ;;  %10160 = vst [vmem:[#allocation39_spill] sm:$0xff] %v8287_v17  ;;  %v3481_v4 = vadd.f32 %v3449_v1, %v3385_v19  ;;  %v2968_v61 = vmul.f32 %v8203_v12, %v10165_v29  ;;  %v8302_v32 = vmul.f32 %v8251_v2, %v8251_v2  ;;  %v3773_v52 = vmul.f32 2.0, %v2270_v58  ;;  %v10172_v17 = vld [vmem:[#allocation156_spill] sm:$0xff] }
 0x425   : > { %10161 = vst [vmem:[#allocation263_spill] sm:$0xff] %v8289_v14  ;;  %10163 = vst [vmem:[#allocation93_spill] sm:$0xff] %v8294_v46  ;;  %v8307_v45 = vmul.f32 %v8251_v2, %v10167_v8  ;;  %v8311_v44 = vmul.f32 %v8251_v2, %v10168_v51  ;;  %v3709_v11 = vmul.f32 %v2270_v58, %v2270_v58  ;;  %v10174_v22 = vld [vmem:[#allocation280_spill] sm:$0xff] }
 0x426   : > { %10164 = vst [vmem:[#allocation38_spill] sm:$0xff] %v8296_v34  ;;  %10166 = vst [vmem:[#allocation91_spill] sm:$0xff] %v8302_v32  ;;  %3647 = vmatprep.mubr.f32.mxu1 %v3481_v4  ;;  %v3000_v19 = vadd.f32 %v2968_v61, %v2936_v60  ;;  %v4190_v25 = vmul.f32 %v2270_v58, %v10170_v63  ;;  %v4318_v54 = vmul.f32 %v2270_v58, %v10171_v21  ;;  %v10173_v4 = vld [vmem:[#allocation276_spill] sm:$0xff]  ;;  %v10176_v61 = vld [vmem:[#allocation289_spill] sm:$0xff] }
 0x427   : > { %10169 = vst [vmem:[#allocation98_spill] sm:$0xff] %v8311_v44  ;;  %v3805_v1 = vmul.f32 %v3773_v52, %v2431_v18  ;;  %v4222_v27 = vmul.f32 %v2431_v18, %v10171_v21  ;;  %v2999_v29 = vadd.f32 %v8220_v35, %v8213_v57  ;;  %v4350_v46 = vmul.f32 %v2431_v18, %v10172_v17  ;;  %v10179_v35 = vld [vmem:[#allocation154_spill] sm:$0xff]  ;;  %v10183_v17 = vld [vmem:[#allocation101_spill] sm:$0xff] }
 0x428   : > { %3166 = vmatprep.mubr.f32.mxu0 %v3000_v19  ;;  %v3384_v32 = vadd.f32 %v10174_v22, %v10173_v4  ;;  %v3259_v60 = vmul.f32 %v10175_v42, %v10167_v8  ;;  %v3355_v12 = vmul.f32 %v10176_v61, %v10168_v51  ;;  %v8326_v34 = vmul.f32 %v3772_v59, %v8265_v15  ;;  %v10181_v19 = vld [vmem:[#allocation279_spill] sm:$0xff]  ;;  %v10184_v61 = vld [vmem:[#allocation281_spill] sm:$0xff] }
 0x429   : > { %v8330_v52 = vmul.f32 %v8265_v15, %v10168_v51  ;;  %v8334_v57 = vmul.f32 %v8265_v15, %v10179_v35  ;;  %3167 = vmatmul.mubr.f32.gmra.mxu0 %v2999_v29  ;;  %v3419_v22 = vmul.f32 %v10181_v19, %v10181_v19  ;;  %v10182_v4 = vld [vmem:[#allocation43_spill] sm:$0xff]  ;;  %v2971_v8 = vmul.f32 %v2431_v18, %v10183_v17  ;;  %v10188_v17 = vld [vmem:[#allocation42_spill] sm:$0xff] }
 0x42a   : > { %10177 = vst [vmem:[#allocation153_spill] sm:$0xff] %v8326_v34  ;;  %v2939_v42 = vmul.f32 %v2270_v58, %v10182_v4  ;;  %v3480_v14 = vadd.f32 %v10184_v61, %v3384_v32  ;;  %v3387_v59 = vadd.f32 %v3355_v12, %v3259_v60  ;;  %v2272_v34 = vpop.f32.mrf.mxu0  ;;  %v8342_v44 = vmul.f32 %v3709_v11, %v10170_v63  ;;  %v8354_v58 = vpop.f32.mrf.mxu1  ;;  %v10189_v32 = vld [vmem:[#allocation99_spill] sm:$0xff]  ;;  %v10191_v60 = vld [vmem:[#allocation285_spill] sm:$0xff] }
 0x42b   : > { %10178 = vst [vmem:[#allocation267_spill] sm:$0xff] %v8330_v52  ;;  %10180 = vst [vmem:[#allocation273_spill] sm:$0xff] %v8334_v57  ;;  %v8344_v51 = vmul.f32 %v2431_v18, %v2431_v18  ;;  %v8346_v52 = vadd.f32 %v4222_v27, %v4190_v25  ;;  %v3451_v29 = vmul.f32 %v3419_v22, %v10179_v35  ;;  %v10190_v25 = vld [vmem:[#allocation104_spill] sm:$0xff]  ;;  %v10194_v22 = vld [vmem:[#allocation159_spill] sm:$0xff]  ;;  %v3774_v35 = vmul.f32 2.0, %v2272_v34 }
 0x42c   : > { %10185 = vst [vmem:[#allocation277_spill] sm:$0xff] %v8342_v44  ;;  %v8350_v57 = vmul.f32 %v3805_v1, %v10171_v21  ;;  %v8352_v19 = vadd.f32 %v4350_v46, %v4318_v54  ;;  %3648 = vmatmul.mubr.f32.gmra.mxu1 %v3480_v14  ;;  %v2938_v12 = vmul.f32 %v8251_v2, %v10188_v17  ;;  %v10192_v21 = vld [vmem:[#allocation290_spill] sm:$0xff]  ;;  %v10193_v14 = vld [vmem:[#allocation292_spill] sm:$0xff]  ;;  %v8373_v61 = vpop.f32.mrf.mxu0 }
 0x42d   : > { %10186 = vst [vmem:[#allocation284_spill] sm:$0xff] %v8344_v51  ;;  %v2970_v11 = vmul.f32 %v8265_v15, %v10189_v32  ;;  %v3483_v18 = vadd.f32 %v3451_v29, %v3387_v59  ;;  %v8360_v63 = vmul.f32 %v2272_v34, %v2272_v34  ;;  %v8363_v27 = vmul.f32 %v2272_v34, %v10190_v25  ;;  %v10195_v29 = vld [vmem:[#allocation288_spill] sm:$0xff] }
 0x42e   : > { %10187 = vst [vmem:[#allocation271_spill] sm:$0xff] %v8350_v57  ;;  %v3386_v1 = vadd.f32 %v10192_v21, %v10191_v60  ;;  %v3261_v54 = vmul.f32 %v10193_v14, %v10190_v25  ;;  %v3357_v4 = vmul.f32 %v7483_v33, %v10194_v22  ;;  %v3421_v2 = vmul.f32 %v7423_v0, %v7423_v0  ;;  %v10196_v32 = vld [vmem:[#allocation44_spill] sm:$0xff]  ;;  %v10197_v60 = vld [vmem:[#allocation103_spill] sm:$0xff]  ;;  %v10198_v21 = vld [vmem:[#allocation158_spill] sm:$0xff] }
 0x42f   : > { %v3002_v46 = vadd.f32 %v2970_v11, %v2938_v12  ;;  %3652 = vmatprep.mubr.f32.mxu1 %v3483_v18  ;;  %v3001_v59 = vadd.f32 %v2969_v31, %v8280_v56  ;;  %v2940_v51 = vmul.f32 %v2272_v34, %v10196_v32  ;;  %v2972_v12 = vmul.f32 %v8354_v58, %v10197_v60  ;;  %v10199_v57 = vld [vmem:[#allocation291_spill] sm:$0xff]  ;;  %v10200_v18 = vld [vmem:[#allocation105_spill] sm:$0xff] }
 0x430   : > { %v3482_v17 = vadd.f32 %v10195_v29, %v3386_v1  ;;  %v8381_v11 = vmul.f32 %v2272_v34, %v10194_v22  ;;  %v3389_v33 = vadd.f32 %v3357_v4, %v3261_v54  ;;  %v3453_v14 = vmul.f32 %v3421_v2, %v10198_v21  ;;  %v8394_v4 = vpop.f32.mrf.mxu0  ;;  %v10201_v34 = vld [vmem:[#allocation46_spill] sm:$0xff] }
 0x431   : > { %3171 = vmatprep.mubr.f32.mxu0 %v3002_v46  ;;  %v3388_v44 = vadd.f32 %v10200_v18, %v10199_v57  ;;  %v3004_v31 = vadd.f32 %v2972_v12, %v2940_v51  ;;  %v3680_v56 = vmul.f32 %v7454_v47, %v7454_v47  ;;  %v3776_v1 = vmul.f32 %v8079_v38, %v7456_v48 }
 0x432   : > { %3172 = vmatmul.mubr.f32.gmra.mxu0 %v3001_v59  ;;  %3653 = vmatmul.mubr.f32.gmra.mxu1 %v3482_v17  ;;  %v3485_v29 = vadd.f32 %v3453_v14, %v3389_v33  ;;  %v3003_v32 = vadd.f32 %v2971_v8, %v2939_v42  ;;  %v3872_v46 = vmul.f32 %v7456_v48, %v7456_v48  ;;  %v8423_v18 = vpop.f32.mrf.mxu0 }
 0x433   : > { %v4233_v54 = vadd.f32 %v7654_v40, %v7637_v62  ;;  %3176 = vmatprep.mubr.f32.mxu0 %v3004_v31  ;;  %v3484_v57 = vadd.f32 %v10201_v34, %v3388_v44  ;;  %v3712_v51 = vmul.f32 %v3680_v56, %v9841_v30  ;;  %v3808_v2 = vmul.f32 %v3776_v1, %v9844_v36  ;;  %v10202_v62 = vld [vmem:[#allocation190_spill] sm:$0xff]  ;;  %v10204_v34 = vld [vmem:[#allocation45_spill] sm:$0xff] }
 0x434   : > { %v4361_v38 = vadd.f32 %v7660_v20, %v7647_v55  ;;  %v8403_v8 = vmul.f32 %v8354_v58, %v10194_v22  ;;  %3657 = vmatprep.mubr.f32.mxu1 %v3485_v29  ;;  %v3904_v42 = vmul.f32 %v3872_v46, %v9848_v7  ;;  %v3682_v59 = vmul.f32 %v7473_v24, %v7473_v24 }
 0x435   : > { %v4265_v40 = vmul.f32 %v4233_v54, %v10202_v62  ;;  %v3748_v44 = vmul.f32 2.0, %v7501_v10  ;;  %v3840_v17 = vadd.f32 %v3808_v2, %v3712_v51  ;;  %v3778_v55 = vmul.f32 %v8141_v26, %v7475_v39  ;;  %v10206_v51 = vld [vmem:[#allocation194_spill] sm:$0xff]  ;;  %v10207_v2 = vld [vmem:[#allocation21_spill] sm:$0xff] }
 0x436   : > { %3177 = vmatmul.mubr.f32.gmra.mxu0 %v3003_v32  ;;  %3658 = vmatmul.mubr.f32.gmra.mxu1 %v3484_v57  ;;  %v4393_v60 = vmul.f32 %v4361_v38, %v9915_v41  ;;  %v8415_v20 = vmul.f32 %v8354_v58, %v10198_v21  ;;  %v3874_v12 = vmul.f32 %v7475_v39, %v7475_v39  ;;  %v10203_v32 = vld [vmem:[#allocation198_spill] sm:$0xff] }
 0x437   : > { %v4235_v33 = vadd.f32 %v7720_v13, %v7705_v43  ;;  %v4363_v14 = vadd.f32 %v7726_v49, %v7711_v50  ;;  %v3936_v31 = vadd.f32 %v3904_v42, %v3840_v17  ;;  %v3714_v56 = vmul.f32 %v3682_v59, %v9850_v16  ;;  %v8433_v13 = vpop.f32.mrf.mxu1  ;;  %v10209_v42 = vld [vmem:[#allocation179_spill] sm:$0xff] }
 0x438   : > { %v4425_v41 = vadd.f32 %v4393_v60, %v4265_v40  ;;  %v3810_v26 = vmul.f32 %v3778_v55, %v9852_v9  ;;  %v8428_v1 = vmul.f32 %v3774_v35, %v8354_v58  ;;  %v3906_v29 = vmul.f32 %v3874_v12, %v9858_v3  ;;  %v10205_v35 = vld [vmem:[#allocation54_spill] sm:$0xff]  ;;  %v10210_v60 = vld [vmem:[#allocation48_spill] sm:$0xff] }
 0x439   : > { %v4267_v46 = vmul.f32 %v4235_v33, %v10203_v32  ;;  %v4395_v43 = vmul.f32 %v4363_v14, %v9935_v53  ;;  %4063 = vmatprep.mubr.f32.mxu0 %v3936_v31  ;;  %v3841_v49 = vadd.f32 %v7520_v6, %v7505_v28  ;;  %v3905_v54 = vmul.f32 %v7515_v5, %v6658_v23  ;;  %v10208_v53 = vld [vmem:[#allocation195_spill] sm:$0xff]  ;;  %v8445_v40 = vpop.f32.mrf.mxu1  ;;  %v8450_v28 = vld [vmem:[%s9174_s5] ss:$0 sm:$0xff]  ;;  %v2529_v6 = vpop.f32.mrf.mxu0  ;;  %v5505_v12 = vld [vmem:[#allocation8 + $0x4f0] sm:$0xff] }
 0x43a   : > { %4564 = vmatprep.mubr.f32.mxu1 %v4425_v41  ;;  %v3842_v50 = vadd.f32 %v3810_v26, %v3714_v56  ;;  %4064 = vmatmul.mubr.f32.vlgmr.msra.gmra.mxu0 %v10204_v34  ;;  %v4266_v38 = vmul.f32 %v10207_v2, %v10206_v51  ;;  %v4394_v62 = vmul.f32 %v10209_v42, %v10208_v53  ;;  %v5504_v23 = vld [vmem:[#allocation8 + $0x478] sm:$0xff]  ;;  %v10211_v31 = vld [vmem:[#allocation192_spill] sm:$0xff]  ;;  %v10212_v41 = vld [vmem:[#allocation201_spill] sm:$0xff] }
 0x43b   : > { %4565 = vmatmul.mubr.f32.vlgmr.msra.gmra.mxu1 %v10205_v35  ;;  %v4427_v57 = vadd.f32 %v4395_v43, %v4267_v46  ;;  %5160 = vmatpush3.msra.mxu0 %v5504_v23  ;;  %v3937_v59 = vadd.f32 %v3905_v54, %v3841_v49  ;;  %v3684_v17 = vmul.f32 %v7501_v10, %v7501_v10  ;;  %v10213_v26 = vld [vmem:[#allocation49_spill] sm:$0xff]  ;;  %v8464_v35 = vpop.f32.mrf.mxu1  ;;  %v10220_v2 = vld [vmem:[#allocation207_spill] sm:$0xff]  ;;  %v8475_v53 = vpop.f32.mrf.mxu0 }
 0x43c   : > { %v3938_v5 = vadd.f32 %v3906_v29, %v3842_v50  ;;  %v3780_v55 = vmul.f32 %v3748_v44, %v10210_v60  ;;  %5161 = vmatprep.subr.mxu0 %v5505_v12  ;;  %v4426_v33 = vadd.f32 %v4394_v62, %v4266_v38  ;;  %v3876_v14 = vmul.f32 %v10210_v60, %v10210_v60  ;;  %v5506_v29 = vld [vmem:[#allocation8 + $0x470] sm:$0xff]  ;;  %v10214_v46 = vld [vmem:[#allocation53_spill] sm:$0xff]  ;;  %v10215_v50 = vld [vmem:[#allocation112_spill] sm:$0xff] }
 0x43d   : > { %4569 = vmatprep.mubr.f32.mxu1 %v4427_v57  ;;  %v4237_v56 = vadd.f32 %v10212_v41, %v10211_v31  ;;  %v3750_v32 = vmul.f32 2.0, %v10213_v26  ;;  %5162 = vmatpush3.msra.mxu0 %v5506_v29  ;;  %v3716_v43 = vmul.f32 %v3684_v17, %v10214_v46  ;;  %v10216_v44 = vld [vmem:[#allocation197_spill] sm:$0xff]  ;;  %10218 = vst [vmem:[#allocation41_spill] sm:$0xff] %v8464_v35  ;;  %v10221_v62 = vld [vmem:[#allocation111_spill] sm:$0xff]  ;;  %v8481_v41 = vpop.f32.mrf.mxu1  ;;  %v10227_v29 = vld [vmem:[#allocation106_spill] sm:$0xff] }
 0x43e   : > { %4068 = vmatprep.mubr.f32.mxu0 %v3938_v5  ;;  %v3812_v49 = vmul.f32 %v3780_v55, %v10215_v50  ;;  %v10217_v54 = vld [vmem:[#allocation61_spill] sm:$0xff]  ;;  %v8468_v57 = vadd.f32 %v8373_v61, %v8450_v28  ;;  %v8472_v51 = vadd.f32 %v8450_v28, %v8394_v4  ;;  %v3908_v23 = vmul.f32 %v3876_v14, %v10221_v62  ;;  %v10222_v5 = vld [vmem:[#allocation208_spill] sm:$0xff]  ;;  %v10223_v12 = vld [vmem:[#allocation47_spill] sm:$0xff] }
 0x43f   : > { %v4365_v34 = vadd.f32 %v10217_v54, %v10216_v44  ;;  %4069 = vmatmul.mubr.f32.gmra.mxu0 %v3937_v59  ;;  %4570 = vmatmul.mubr.f32.gmra.mxu1 %v4426_v33  ;;  %v4269_v38 = vmul.f32 %v4237_v56, %v10220_v2  ;;  %v5507_v55 = vld [vmem:[#allocation8 + $0x4e8] sm:$0xff]  ;;  %v10224_v61 = vld [vmem:[#allocation51_spill] sm:$0xff]  ;;  %10225 = vst [vmem:[#allocation40_spill] sm:$0xff] %v8481_v41  ;;  %v10226_v4 = vld [vmem:[#allocation110_spill] sm:$0xff] }
 0x440   : > { %10219 = vst [vmem:[#allocation97_spill] sm:$0xff] %v8468_v57  ;;  %v3844_v42 = vadd.f32 %v3812_v49, %v3716_v43  ;;  %5163 = vmatprep.subr.mxu0 %v5507_v55  ;;  %v3843_v31 = vadd.f32 %v10224_v61, %v10223_v12  ;;  %v3907_v59 = vmul.f32 %v10227_v29, %v10226_v4  ;;  %v5508_v33 = vld [vmem:[#allocation8 + $0x468] sm:$0xff]  ;;  %v10228_v56 = vld [vmem:[#allocation203_spill] sm:$0xff]  ;;  %v10230_v43 = vld [vmem:[#allocation204_spill] sm:$0xff] }
 0x441   : > { %v4397_v17 = vmul.f32 %v4365_v34, %v10222_v5  ;;  %5164 = vmatpush3.msra.mxu0 %v5508_v33  ;;  %v10229_v44 = vld [vmem:[#allocation187_spill] sm:$0xff]  ;;  %v10231_v49 = vld [vmem:[#allocation20_spill] sm:$0xff]  ;;  %v3686_v34 = vmul.f32 %v10213_v26, %v10213_v26  ;;  %v8496_v4 = vadd.f32 %v8423_v18, %v8450_v28  ;;  %v10260_v41 = vld [vmem:[#allocation69_spill] sm:$0xff] }
 0x442   : > { %v4268_v54 = vmul.f32 %v10229_v44, %v10228_v56  ;;  %v4396_v14 = vmul.f32 %v10231_v49, %v10230_v43  ;;  %v3940_v2 = vadd.f32 %v3908_v23, %v3844_v42  ;;  %v10232_v55 = vld [vmem:[#allocation171_spill] sm:$0xff]  ;;  %v5509_v57 = vld [vmem:[#allocation8 + $0x4e0] sm:$0xff]  ;;  %v3939_v29 = vadd.f32 %v3907_v59, %v3843_v31  ;;  %v10235_v44 = vld [vmem:[#allocation65_spill] sm:$0xff]  ;;  %v8500_v42 = vpop.f32.mrf.mxu1 }
 0x443   : > { %v4429_v5 = vadd.f32 %v4397_v17, %v4269_v38  ;;  %v3782_v12 = vmul.f32 %v3750_v32, %v10232_v55  ;;  %v3878_v61 = vmul.f32 %v10232_v55, %v10232_v55  ;;  %5165 = vmatprep.subr.mxu0 %v5509_v57  ;;  %10233 = vst [vmem:[#allocation95_spill] sm:$0xff] %v8496_v4  ;;  %v10234_v56 = vld [vmem:[#allocation199_spill] sm:$0xff]  ;;  %v5510_v49 = vld [vmem:[#allocation8 + $0x460] sm:$0xff]  ;;  %10236 = vst [vmem:[#allocation102_spill] sm:$0xff] %v8500_v42  ;;  %v2539_v38 = vpop.f32.mrf.mxu0 }
 0x444   : > { %v4428_v33 = vadd.f32 %v4396_v14, %v4268_v54  ;;  %v4239_v43 = vadd.f32 %v10235_v44, %v10234_v56  ;;  %5166 = vmatpush3.msra.mxu0 %v5510_v49  ;;  %4073 = vmatprep.mubr.f32.mxu0 %v3940_v2  ;;  %v10237_v32 = vld [vmem:[#allocation56_spill] sm:$0xff]  ;;  %v10238_v17 = vld [vmem:[#allocation115_spill] sm:$0xff]  ;;  %v10239_v55 = vld [vmem:[#allocation25_spill] sm:$0xff]  ;;  %v8507_v31 = vadd.f32 %v8450_v28, %v2529_v6  ;;  %v8511_v44 = vpop.f32.mrf.mxu1 }
 0x445   : > { %4574 = vmatprep.mubr.f32.mxu1 %v4429_v5  ;;  %v3718_v23 = vmul.f32 %v3686_v34, %v10237_v32  ;;  %v3814_v57 = vmul.f32 %v3782_v12, %v10238_v17  ;;  %v10240_v26 = vld [vmem:[#allocation24_spill] sm:$0xff]  ;;  %4074 = vmatmul.mubr.f32.gmra.mxu0 %v3939_v29  ;;  %v10242_v59 = vld [vmem:[#allocation114_spill] sm:$0xff]  ;;  %v10243_v14 = vld [vmem:[#allocation215_spill] sm:$0xff]  ;;  %10244 = vst [vmem:[#allocation276_spill] sm:$0xff] %v8511_v44 }
 0x446   : > { %v4367_v18 = vadd.f32 %v10240_v26, %v10239_v55  ;;  %10241 = vst [vmem:[#allocation157_spill] sm:$0xff] %v8507_v31  ;;  %4575 = vmatmul.mubr.f32.gmra.mxu1 %v4428_v33  ;;  %v3910_v54 = vmul.f32 %v3878_v61, %v10242_v59  ;;  %v4271_v56 = vmul.f32 %v4239_v43, %v10243_v14  ;;  %v10245_v5 = vld [vmem:[#allocation216_spill] sm:$0xff]  ;;  %v10246_v34 = vld [vmem:[#allocation175_spill] sm:$0xff]  ;;  %v10248_v42 = vld [vmem:[#allocation113_spill] sm:$0xff] }
 0x447   : > { %v3846_v2 = vadd.f32 %v3814_v57, %v3718_v23  ;;  %v10247_v4 = vld [vmem:[#allocation108_spill] sm:$0xff]  ;;  %v10249_v17 = vld [vmem:[#allocation50_spill] sm:$0xff]  ;;  %v5511_v55 = vld [vmem:[#allocation8 + $0x4d8] sm:$0xff] }
 0x448   : > { %v4399_v49 = vmul.f32 %v4367_v18, %v10245_v5  ;;  %v3845_v12 = vadd.f32 %v10247_v4, %v10246_v34  ;;  %v3909_v26 = vmul.f32 %v10249_v17, %v10248_v42  ;;  %5167 = vmatprep.subr.mxu0 %v5511_v55  ;;  %v10250_v6 = vld [vmem:[#allocation211_spill] sm:$0xff]  ;;  %v10251_v29 = vld [vmem:[#allocation193_spill] sm:$0xff]  ;;  %v10252_v31 = vld [vmem:[#allocation212_spill] sm:$0xff]  ;;  %v8526_v4 = vpop.f32.mrf.mxu1  ;;  %v5282_v34 = vpop.f32.mrf.mxu0 }
 0x449   : > { %v4270_v33 = vmul.f32 %v10251_v29, %v10250_v6  ;;  %v10253_v61 = vld [vmem:[#allocation59_spill] sm:$0xff]  ;;  %v10254_v43 = vld [vmem:[#allocation60_spill] sm:$0xff]  ;;  %v10256_v23 = vld [vmem:[#allocation118_spill] sm:$0xff]  ;;  %10258 = vst [vmem:[#allocation280_spill] sm:$0xff] %v8526_v4  ;;  %v3942_v42 = vadd.f32 %v3910_v54, %v3846_v2  ;;  %v8538_v54 = vadd.f32 %v8475_v53, %v8450_v28 }
 0x44a   : > { %v4398_v59 = vmul.f32 %v10253_v61, %v10252_v31  ;;  %v10255_v14 = vld [vmem:[#allocation19_spill] sm:$0xff]  ;;  %v10257_v57 = vld [vmem:[#allocation172_spill] sm:$0xff]  ;;  %v4431_v17 = vadd.f32 %v4399_v49, %v4271_v56  ;;  %v3941_v55 = vadd.f32 %v3909_v26, %v3845_v12  ;;  %v10259_v32 = vld [vmem:[#allocation170_spill] sm:$0xff]  ;;  %v8534_v4 = vpop.f32.mrf.mxu1  ;;  %v2549_v53 = vpop.f32.mrf.mxu0 }
 0x44b   : > { %v3720_v44 = vmul.f32 %v10255_v14, %v10254_v43  ;;  %v3816_v18 = vmul.f32 %v10257_v57, %v10256_v23  ;;  %v5512_v5 = vld [vmem:[#allocation8 + $0x458] sm:$0xff]  ;;  %v3880_v6 = vmul.f32 %v10259_v32, %v10259_v32  ;;  %v5513_v29 = vld [vmem:[#allocation8 + $0x4d0] sm:$0xff]  ;;  %10264 = vst [vmem:[#allocation286_spill] sm:$0xff] %v8538_v54  ;;  %v8541_v32 = vadd.f32 %v8450_v28, %v2539_v38  ;;  %v10269_v49 = vld [vmem:[#allocation180_spill] sm:$0xff] }
 0x44c   : > { %5168 = vmatpush3.msra.mxu0 %v5512_v5  ;;  %v4430_v31 = vadd.f32 %v4398_v59, %v4270_v33  ;;  %v10261_v43 = vld [vmem:[#allocation26_spill] sm:$0xff]  ;;  %4078 = vmatprep.mubr.f32.mxu0 %v3942_v42  ;;  %v10266_v59 = vld [vmem:[#allocation117_spill] sm:$0xff]  ;;  %v10270_v12 = vld [vmem:[#allocation184_spill] sm:$0xff]  ;;  %v8548_v33 = vpop.f32.mrf.mxu1 }
 0x44d   : > { %5169 = vmatprep.subr.mxu0 %v5513_v29  ;;  %v3848_v61 = vadd.f32 %v3816_v18, %v3720_v44  ;;  %v4241_v14 = vadd.f32 %v10261_v43, %v10260_v41  ;;  %v10262_v35 = vld [vmem:[#allocation210_spill] sm:$0xff]  ;;  %10265 = vst [vmem:[#allocation289_spill] sm:$0xff] %v8541_v32  ;;  %4579 = vmatprep.mubr.f32.mxu1 %v4431_v17  ;;  %v10267_v41 = vld [vmem:[#allocation224_spill] sm:$0xff]  ;;  %v10308_v32 = vld [vmem:[#allocation75_spill] sm:$0xff] }
 0x44e   : > { %v10263_v23 = vld [vmem:[#allocation74_spill] sm:$0xff]  ;;  %v3912_v56 = vmul.f32 %v3880_v6, %v10266_v59  ;;  %4079 = vmatmul.mubr.f32.gmra.mxu0 %v3941_v55  ;;  %4580 = vmatmul.mubr.f32.gmra.mxu1 %v4430_v31  ;;  %v3847_v26 = vadd.f32 %v10270_v12, %v10269_v49  ;;  %v10271_v29 = vld [vmem:[#allocation116_spill] sm:$0xff]  ;;  %v10275_v6 = vld [vmem:[#allocation221_spill] sm:$0xff] }
 0x44f   : > { %v4369_v57 = vadd.f32 %v10263_v23, %v10262_v35  ;;  %v5514_v5 = vld [vmem:[#allocation8 + $0x450] sm:$0xff]  ;;  %v4273_v44 = vmul.f32 %v4241_v14, %v10267_v41  ;;  %v10268_v35 = vld [vmem:[#allocation225_spill] sm:$0xff]  ;;  %v10272_v38 = vld [vmem:[#allocation176_spill] sm:$0xff] }
 0x450   : > { %5170 = vmatpush3.msra.mxu0 %v5514_v5  ;;  %v3944_v18 = vadd.f32 %v3912_v56, %v3848_v61  ;;  %v3911_v43 = vmul.f32 %v10272_v38, %v10271_v29  ;;  %v10273_v42 = vld [vmem:[#allocation220_spill] sm:$0xff]  ;;  %v10274_v17 = vld [vmem:[#allocation70_spill] sm:$0xff]  ;;  %v10276_v55 = vld [vmem:[#allocation205_spill] sm:$0xff]  ;;  %v8562_v29 = vpop.f32.mrf.mxu1 }
 0x451   : > { %v4401_v2 = vmul.f32 %v4369_v57, %v10268_v35  ;;  %v4272_v23 = vmul.f32 %v10274_v17, %v10273_v42  ;;  %v4400_v31 = vmul.f32 %v10276_v55, %v10275_v6  ;;  %v5515_v5 = vld [vmem:[#allocation8 + $0x4c8] sm:$0xff]  ;;  %v10277_v57 = vld [vmem:[#allocation64_spill] sm:$0xff]  ;;  %v10280_v49 = vld [vmem:[#allocation183_spill] sm:$0xff] }
 0x452   : > { %5171 = vmatprep.subr.mxu0 %v5515_v5  ;;  %v10278_v59 = vld [vmem:[#allocation57_spill] sm:$0xff]  ;;  %v10281_v54 = vld [vmem:[#allocation52_spill] sm:$0xff]  ;;  %4083 = vmatprep.mubr.f32.mxu0 %v3944_v18  ;;  %v3943_v38 = vadd.f32 %v3911_v43, %v3847_v26  ;;  %v10283_v6 = vld [vmem:[#allocation78_spill] sm:$0xff] }
 0x453   : > { %v4433_v14 = vadd.f32 %v4401_v2, %v4273_v44  ;;  %v3722_v41 = vmul.f32 %v10278_v59, %v10277_v57  ;;  %v10279_v35 = vld [vmem:[#allocation121_spill] sm:$0xff]  ;;  %v3882_v61 = vmul.f32 %v10281_v54, %v10281_v54  ;;  %v4432_v42 = vadd.f32 %v4400_v31, %v4272_v23  ;;  %v10284_v44 = vld [vmem:[#allocation28_spill] sm:$0xff]  ;;  %v10285_v2 = vld [vmem:[#allocation226_spill] sm:$0xff] }
 0x454   : > { %v3818_v12 = vmul.f32 %v10280_v49, %v10279_v35  ;;  %v5516_v56 = vld [vmem:[#allocation8 + $0x448] sm:$0xff]  ;;  %v4371_v5 = vadd.f32 %v10285_v2, %v10284_v44  ;;  %v8569_v57 = vadd.f32 %v5282_v34, %v8450_v28  ;;  %v8572_v59 = vadd.f32 %v8450_v28, %v2549_v53  ;;  %v10288_v35 = vld [vmem:[#allocation120_spill] sm:$0xff]  ;;  %4084 = vmatmul.mubr.f32.gmra.mxu0 %v3943_v38  ;;  %v10291_v43 = vld [vmem:[#allocation234_spill] sm:$0xff]  ;;  %v5285_v34 = vpop.f32.mrf.mxu0 }
 0x455   : > { %5172 = vmatpush3.msra.mxu0 %v5516_v56  ;;  %v10282_v17 = vld [vmem:[#allocation217_spill] sm:$0xff]  ;;  %4584 = vmatprep.mubr.f32.mxu1 %v4433_v14  ;;  %v3914_v49 = vmul.f32 %v3882_v61, %v10288_v35  ;;  %v8575_v56 = vpop.f32.mrf.mxu1  ;;  %v10294_v2 = vld [vmem:[#allocation119_spill] sm:$0xff]  ;;  %v10296_v14 = vld [vmem:[#allocation228_spill] sm:$0xff] }
 0x456   : > { %v4243_v55 = vadd.f32 %v10283_v6, %v10282_v17  ;;  %10286 = vst [vmem:[#allocation43_spill] sm:$0xff] %v8569_v57  ;;  %10287 = vst [vmem:[#allocation101_spill] sm:$0xff] %v8572_v59  ;;  %v3850_v54 = vadd.f32 %v3818_v12, %v3722_v41  ;;  %4585 = vmatmul.mubr.f32.gmra.mxu1 %v4432_v42  ;;  %v10290_v26 = vld [vmem:[#allocation233_spill] sm:$0xff]  ;;  %v4403_v23 = vmul.f32 %v4371_v5, %v10291_v43  ;;  %v10293_v17 = vld [vmem:[#allocation196_spill] sm:$0xff] }
 0x457   : > { %10289 = vst [vmem:[#allocation281_spill] sm:$0xff] %v8575_v56  ;;  %v10292_v31 = vld [vmem:[#allocation185_spill] sm:$0xff]  ;;  %v10297_v41 = vld [vmem:[#allocation66_spill] sm:$0xff]  ;;  %v10299_v35 = vld [vmem:[#allocation219_spill] sm:$0xff]  ;;  %v8587_v42 = vpop.f32.mrf.mxu1 }
 0x458   : > { %v4275_v18 = vmul.f32 %v4243_v55, %v10290_v26  ;;  %v3849_v6 = vadd.f32 %v10293_v17, %v10292_v31  ;;  %v3946_v44 = vadd.f32 %v3914_v49, %v3850_v54  ;;  %v10295_v53 = vld [vmem:[#allocation189_spill] sm:$0xff]  ;;  %v4274_v12 = vmul.f32 %v10297_v41, %v10296_v14  ;;  %v5517_v38 = vld [vmem:[#allocation8 + $0x4c0] sm:$0xff]  ;;  %10300 = vst [vmem:[#allocation42_spill] sm:$0xff] %v8587_v42  ;;  %v10304_v17 = vld [vmem:[#allocation191_spill] sm:$0xff] }
 0x459   : > { %v3913_v57 = vmul.f32 %v10295_v53, %v10294_v2  ;;  %v10298_v61 = vld [vmem:[#allocation229_spill] sm:$0xff]  ;;  %5173 = vmatprep.subr.mxu0 %v5517_v38  ;;  %v10301_v5 = vld [vmem:[#allocation68_spill] sm:$0xff]  ;;  %v10305_v49 = vld [vmem:[#allocation186_spill] sm:$0xff] }
 0x45a   : > { %v4402_v59 = vmul.f32 %v10299_v35, %v10298_v61  ;;  %v4435_v55 = vadd.f32 %v4403_v23, %v4275_v18  ;;  %v10302_v26 = vld [vmem:[#allocation188_spill] sm:$0xff]  ;;  %v3884_v2 = vmul.f32 %v10305_v49, %v10305_v49  ;;  %4088 = vmatprep.mubr.f32.mxu0 %v3946_v44  ;;  %v10306_v61 = vld [vmem:[#allocation30_spill] sm:$0xff]  ;;  %v10309_v42 = vld [vmem:[#allocation241_spill] sm:$0xff]  ;;  %v8599_v23 = vpop.f32.mrf.mxu1 }
 0x45b   : > { %v3724_v43 = vmul.f32 %v10302_v26, %v10301_v5  ;;  %v10303_v31 = vld [vmem:[#allocation124_spill] sm:$0xff]  ;;  %v3945_v14 = vadd.f32 %v3913_v57, %v3849_v6  ;;  %v10307_v35 = vld [vmem:[#allocation82_spill] sm:$0xff]  ;;  %v4373_v18 = vadd.f32 %v10309_v42, %v10308_v32  ;;  %10310 = vst [vmem:[#allocation99_spill] sm:$0xff] %v8599_v23  ;;  %v8602_v5 = vadd.f32 %v5285_v34, %v8450_v28  ;;  %v10313_v49 = vld [vmem:[#allocation55_spill] sm:$0xff] }
 0x45c   : > { %v3820_v54 = vmul.f32 %v10304_v17, %v10303_v31  ;;  %v5518_v53 = vld [vmem:[#allocation8 + $0x440] sm:$0xff]  ;;  %v4434_v41 = vadd.f32 %v4402_v59, %v4274_v12  ;;  %v4245_v38 = vadd.f32 %v10307_v35, %v10306_v61  ;;  %4589 = vmatprep.mubr.f32.mxu1 %v4435_v55  ;;  %v10312_v31 = vld [vmem:[#allocation123_spill] sm:$0xff]  ;;  %v10315_v57 = vld [vmem:[#allocation242_spill] sm:$0xff]  ;;  %v8611_v35 = vpop.f32.mrf.mxu1 }
 0x45d   : > { %5174 = vmatpush3.msra.mxu0 %v5518_v53  ;;  %10311 = vst [vmem:[#allocation104_spill] sm:$0xff] %v8602_v5  ;;  %v3916_v17 = vmul.f32 %v3884_v2, %v10312_v31  ;;  %v10314_v53 = vld [vmem:[#allocation62_spill] sm:$0xff]  ;;  %v10316_v6 = vld [vmem:[#allocation243_spill] sm:$0xff]  ;;  %10319 = vst [vmem:[#allocation285_spill] sm:$0xff] %v8611_v35 }
 0x45e   : > { %v3852_v26 = vadd.f32 %v3820_v54, %v3724_v43  ;;  %v3851_v44 = vadd.f32 %v10314_v53, %v10313_v49  ;;  %4089 = vmatmul.mubr.f32.gmra.mxu0 %v3945_v14  ;;  %4590 = vmatmul.mubr.f32.gmra.mxu1 %v4434_v41  ;;  %v4277_v59 = vmul.f32 %v4245_v38, %v10315_v57  ;;  %v10317_v61 = vld [vmem:[#allocation122_spill] sm:$0xff]  ;;  %v10318_v32 = vld [vmem:[#allocation23_spill] sm:$0xff]  ;;  %v10323_v2 = vld [vmem:[#allocation232_spill] sm:$0xff] }
 0x45f   : > { %v4405_v12 = vmul.f32 %v4373_v18, %v10316_v6  ;;  %v3915_v42 = vmul.f32 %v10318_v32, %v10317_v61  ;;  %v10320_v5 = vld [vmem:[#allocation238_spill] sm:$0xff]  ;;  %v10322_v54 = vld [vmem:[#allocation239_spill] sm:$0xff]  ;;  %v10324_v23 = vld [vmem:[#allocation72_spill] sm:$0xff] }
 0x460   : > { %v3948_v34 = vadd.f32 %v3916_v17, %v3852_v26  ;;  %v10321_v55 = vld [vmem:[#allocation222_spill] sm:$0xff]  ;;  %v4404_v31 = vmul.f32 %v10323_v2, %v10322_v54  ;;  %v10325_v49 = vld [vmem:[#allocation213_spill] sm:$0xff]  ;;  %v5519_v41 = vld [vmem:[#allocation8 + $0x4b8] sm:$0xff]  ;;  %v8623_v17 = vpop.f32.mrf.mxu1 }
 0x461   : > { %v4276_v43 = vmul.f32 %v10321_v55, %v10320_v5  ;;  %v3726_v14 = vmul.f32 %v10325_v49, %v10324_v23  ;;  %5175 = vmatprep.subr.mxu0 %v5519_v41  ;;  %v4437_v38 = vadd.f32 %v4405_v12, %v4277_v59  ;;  %v3947_v53 = vadd.f32 %v3915_v42, %v3851_v44  ;;  %v10326_v18 = vld [vmem:[#allocation127_spill] sm:$0xff]  ;;  %v10327_v57 = vld [vmem:[#allocation200_spill] sm:$0xff]  ;;  %v10328_v61 = vld [vmem:[#allocation22_spill] sm:$0xff] }
 0x462   : > { %v3822_v6 = vmul.f32 %v10327_v57, %v10326_v18  ;;  %v3886_v32 = vmul.f32 %v10328_v61, %v10328_v61  ;;  %v5520_v26 = vld [vmem:[#allocation8 + $0x438] sm:$0xff]  ;;  %10329 = vst [vmem:[#allocation290_spill] sm:$0xff] %v8623_v17  ;;  %4093 = vmatprep.mubr.f32.mxu0 %v3948_v34  ;;  %v10331_v54 = vld [vmem:[#allocation141_spill] sm:$0xff]  ;;  %v10332_v23 = vld [vmem:[#allocation86_spill] sm:$0xff]  ;;  %v8634_v17 = vpop.f32.mrf.mxu1 }
 0x463   : > { %5176 = vmatpush3.msra.mxu0 %v5520_v26  ;;  %v4436_v5 = vadd.f32 %v4404_v31, %v4276_v43  ;;  %v10330_v55 = vld [vmem:[#allocation79_spill] sm:$0xff]  ;;  %v10333_v49 = vld [vmem:[#allocation254_spill] sm:$0xff]  ;;  %4594 = vmatprep.mubr.f32.mxu1 %v4437_v38  ;;  %v10337_v61 = vld [vmem:[#allocation125_spill] sm:$0xff]  ;;  %10339 = vst [vmem:[#allocation292_spill] sm:$0xff] %v8634_v17 }
 0x464   : > { %v4247_v2 = vadd.f32 %v10331_v54, %v10330_v55  ;;  %v4375_v41 = vadd.f32 %v10333_v49, %v10332_v23  ;;  %v10334_v59 = vld [vmem:[#allocation202_spill] sm:$0xff]  ;;  %4094 = vmatmul.mubr.f32.gmra.mxu0 %v3947_v53  ;;  %v3854_v42 = vadd.f32 %v3822_v6, %v3726_v14  ;;  %v10340_v34 = vld [vmem:[#allocation251_spill] sm:$0xff]  ;;  %v10341_v31 = vld [vmem:[#allocation252_spill] sm:$0xff] }
 0x465   : > { %v10335_v44 = vld [vmem:[#allocation206_spill] sm:$0xff]  ;;  %4595 = vmatmul.mubr.f32.gmra.mxu1 %v4436_v5  ;;  %v10343_v23 = vld [vmem:[#allocation137_spill] sm:$0xff]  ;;  %v10344_v56 = vld [vmem:[#allocation247_spill] sm:$0xff]  ;;  %v8646_v5 = vpop.f32.mrf.mxu1 }
 0x466   : > { %v3853_v12 = vadd.f32 %v10335_v44, %v10334_v59  ;;  %v10336_v18 = vld [vmem:[#allocation126_spill] sm:$0xff]  ;;  %v4279_v43 = vmul.f32 %v4247_v2, %v10340_v34  ;;  %v4407_v55 = vmul.f32 %v4375_v41, %v10341_v31  ;;  %v10345_v59 = vld [vmem:[#allocation248_spill] sm:$0xff]  ;;  %10350 = vst [vmem:[#allocation159_spill] sm:$0xff] %v8646_v5  ;;  %v10351_v34 = vld [vmem:[#allocation63_spill] sm:$0xff] }
 0x467   : > { %v3918_v57 = vmul.f32 %v3886_v32, %v10336_v18  ;;  %v10338_v26 = vld [vmem:[#allocation58_spill] sm:$0xff]  ;;  %v4406_v38 = vmul.f32 %v10345_v59, %v10344_v56  ;;  %v10346_v6 = vld [vmem:[#allocation76_spill] sm:$0xff]  ;;  %v10347_v32 = vld [vmem:[#allocation27_spill] sm:$0xff]  ;;  %v3888_v31 = vmul.f32 %v10351_v34, %v10351_v34 }
 0x468   : > { %v3917_v35 = vmul.f32 %v10338_v26, %v10337_v61  ;;  %v10342_v54 = vld [vmem:[#allocation246_spill] sm:$0xff]  ;;  %v3728_v44 = vmul.f32 %v10347_v32, %v10346_v6  ;;  %v10348_v18 = vld [vmem:[#allocation131_spill] sm:$0xff]  ;;  %v4439_v2 = vadd.f32 %v4407_v55, %v4279_v43  ;;  %v10356_v6 = vld [vmem:[#allocation209_spill] sm:$0xff]  ;;  %v8658_v55 = vpop.f32.mrf.mxu1 }
 0x469   : > { %v4278_v49 = vmul.f32 %v10343_v23, %v10342_v54  ;;  %v3950_v53 = vadd.f32 %v3918_v57, %v3854_v42  ;;  %v10349_v61 = vld [vmem:[#allocation67_spill] sm:$0xff]  ;;  %v5521_v17 = vld [vmem:[#allocation8 + $0x4b0] sm:$0xff]  ;;  %v10353_v23 = vld [vmem:[#allocation249_spill] sm:$0xff]  ;;  %10360 = vst [vmem:[#allocation288_spill] sm:$0xff] %v8658_v55 }
 0x46a   : > { %v3949_v14 = vadd.f32 %v3917_v35, %v3853_v12  ;;  %v3824_v26 = vmul.f32 %v10349_v61, %v10348_v18  ;;  %5177 = vmatprep.subr.mxu0 %v5521_v17  ;;  %v10352_v54 = vld [vmem:[#allocation90_spill] sm:$0xff]  ;;  %v10354_v12 = vld [vmem:[#allocation145_spill] sm:$0xff]  ;;  %v10358_v18 = vld [vmem:[#allocation128_spill] sm:$0xff]  ;;  %4599 = vmatprep.mubr.f32.mxu1 %v4439_v2  ;;  %v8669_v55 = vpop.f32.mrf.mxu1 }
 0x46b   : > { %v4438_v41 = vadd.f32 %v4406_v38, %v4278_v49  ;;  %v4249_v56 = vadd.f32 %v10353_v23, %v10352_v54  ;;  %v5522_v42 = vld [vmem:[#allocation8 + $0x430] sm:$0xff]  ;;  %4098 = vmatprep.mubr.f32.mxu0 %v3950_v53  ;;  %v10362_v34 = vld [vmem:[#allocation260_spill] sm:$0xff]  ;;  %10370 = vst [vmem:[#allocation44_spill] sm:$0xff] %v8669_v55  ;;  %v10371_v2 = vld [vmem:[#allocation135_spill] sm:$0xff] }
 0x46c   : > { %5178 = vmatpush3.msra.mxu0 %v5522_v42  ;;  %v3856_v35 = vadd.f32 %v3824_v26, %v3728_v44  ;;  %v10355_v57 = vld [vmem:[#allocation266_spill] sm:$0xff]  ;;  %v10363_v23 = vld [vmem:[#allocation256_spill] sm:$0xff]  ;;  %v10365_v26 = vld [vmem:[#allocation261_spill] sm:$0xff] }
 0x46d   : > { %v4377_v59 = vadd.f32 %v10355_v57, %v10354_v12  ;;  %v10357_v32 = vld [vmem:[#allocation218_spill] sm:$0xff]  ;;  %4099 = vmatmul.mubr.f32.gmra.mxu0 %v3949_v14  ;;  %v4281_v54 = vmul.f32 %v4249_v56, %v10362_v34  ;;  %v10364_v53 = vld [vmem:[#allocation240_spill] sm:$0xff]  ;;  %4600 = vmatmul.mubr.f32.gmra.mxu1 %v4438_v41  ;;  %v10366_v57 = vld [vmem:[#allocation257_spill] sm:$0xff] }
 0x46e   : > { %v3855_v17 = vadd.f32 %v10357_v32, %v10356_v6  ;;  %v10359_v61 = vld [vmem:[#allocation214_spill] sm:$0xff]  ;;  %v4280_v44 = vmul.f32 %v10364_v53, %v10363_v23  ;;  %v10367_v6 = vld [vmem:[#allocation244_spill] sm:$0xff]  ;;  %v10373_v56 = vld [vmem:[#allocation129_spill] sm:$0xff] }
 0x46f   : > { %v3919_v43 = vmul.f32 %v10359_v61, %v10358_v18  ;;  %v10361_v49 = vld [vmem:[#allocation130_spill] sm:$0xff]  ;;  %v4409_v42 = vmul.f32 %v4377_v59, %v10365_v26  ;;  %v4408_v32 = vmul.f32 %v10367_v6, %v10366_v57  ;;  %v10368_v5 = vld [vmem:[#allocation80_spill] sm:$0xff]  ;;  %v10369_v18 = vld [vmem:[#allocation73_spill] sm:$0xff]  ;;  %v3890_v34 = vmul.f32 %v10373_v56, %v10373_v56 }
 0x470   : > { %v3920_v38 = vmul.f32 %v3888_v31, %v10361_v49  ;;  %v3730_v61 = vmul.f32 %v10369_v18, %v10368_v5  ;;  %v10372_v31 = vld [vmem:[#allocation71_spill] sm:$0xff]  ;;  %v10374_v23 = vld [vmem:[#allocation149_spill] sm:$0xff]  ;;  %v10375_v41 = vld [vmem:[#allocation268_spill] sm:$0xff] }
 0x471   : > { %v3951_v12 = vadd.f32 %v3919_v43, %v3855_v17  ;;  %v3826_v49 = vmul.f32 %v10372_v31, %v10371_v2  ;;  %v4251_v53 = vadd.f32 %v10375_v41, %v10374_v23  ;;  %v5523_v59 = vld [vmem:[#allocation8 + $0x4a8] sm:$0xff]  ;;  %v4441_v17 = vadd.f32 %v4409_v42, %v4281_v54  ;;  %v10376_v26 = vld [vmem:[#allocation258_spill] sm:$0xff]  ;;  %v10377_v5 = vld [vmem:[#allocation223_spill] sm:$0xff] }
 0x472   : > { %v3952_v14 = vadd.f32 %v3920_v38, %v3856_v35  ;;  %5179 = vmatprep.subr.mxu0 %v5523_v59  ;;  %v4440_v43 = vadd.f32 %v4408_v32, %v4280_v44  ;;  %v4379_v57 = vadd.f32 %v8276_v37, %v10376_v26  ;;  %v10378_v6 = vld [vmem:[#allocation230_spill] sm:$0xff]  ;;  %v5524_v35 = vld [vmem:[#allocation8 + $0x428] sm:$0xff]  ;;  %v8681_v38 = vpop.f32.mrf.mxu1  ;;  %v10382_v41 = vld [vmem:[#allocation132_spill] sm:$0xff] }
 0x473   : > { %v3857_v18 = vadd.f32 %v10378_v6, %v10377_v5  ;;  %5180 = vmatpush3.msra.mxu0 %v5524_v35  ;;  %10379 = vst [vmem:[#allocation103_spill] sm:$0xff] %v8681_v38  ;;  %v3858_v2 = vadd.f32 %v3826_v49, %v3730_v61  ;;  %v10380_v31 = vld [vmem:[#allocation134_spill] sm:$0xff]  ;;  %v10381_v55 = vld [vmem:[#allocation269_spill] sm:$0xff]  ;;  %4604 = vmatprep.mubr.f32.mxu1 %v4441_v17  ;;  %v10385_v42 = vld [vmem:[#allocation264_spill] sm:$0xff] }
 0x474   : > { %4103 = vmatprep.mubr.f32.mxu0 %v3952_v14  ;;  %v3922_v56 = vmul.f32 %v3890_v34, %v10380_v31  ;;  %v4283_v23 = vmul.f32 %v4251_v53, %v10381_v55  ;;  %v10383_v59 = vld [vmem:[#allocation29_spill] sm:$0xff]  ;;  %v10384_v44 = vld [vmem:[#allocation270_spill] sm:$0xff]  ;;  %v10386_v32 = vld [vmem:[#allocation36_spill] sm:$0xff]  ;;  %v8692_v38 = vpop.f32.mrf.mxu1  ;;  %4605 = vmatmul.mubr.f32.gmra.mxu1 %v4440_v43 }
 0x475   : > { %v3921_v54 = vmul.f32 %v10383_v59, %v10382_v41  ;;  %4104 = vmatmul.mubr.f32.gmra.mxu0 %v3951_v12  ;;  %v4411_v37 = vmul.f32 %v4379_v57, %v10384_v44  ;;  %v4282_v26 = vmul.f32 %v10386_v32, %v10385_v42  ;;  %v10387_v5 = vld [vmem:[#allocation265_spill] sm:$0xff]  ;;  %v10388_v6 = vld [vmem:[#allocation87_spill] sm:$0xff]  ;;  %v10389_v49 = vld [vmem:[#allocation84_spill] sm:$0xff] }
 0x476   : > { %v4410_v35 = vmul.f32 %v10388_v6, %v10387_v5  ;;  %v3954_v61 = vadd.f32 %v3922_v56, %v3858_v2  ;;  %v10390_v55 = vld [vmem:[#allocation77_spill] sm:$0xff]  ;;  %v10391_v53 = vld [vmem:[#allocation139_spill] sm:$0xff]  ;;  %v5525_v32 = vld [vmem:[#allocation8 + $0x4a0] sm:$0xff]  ;;  %v8702_v5 = vpop.f32.mrf.mxu1 }
 0x477   : > { %v3953_v14 = vadd.f32 %v3921_v54, %v3857_v18  ;;  %v3732_v34 = vmul.f32 %v10390_v55, %v10389_v49  ;;  %v10392_v31 = vld [vmem:[#allocation237_spill] sm:$0xff]  ;;  %v4443_v12 = vadd.f32 %v4411_v37, %v4283_v23  ;;  %v10394_v44 = vld [vmem:[#allocation267_spill] sm:$0xff]  ;;  %5181 = vmatprep.subr.mxu0 %v5525_v32  ;;  %v10395_v18 = vld [vmem:[#allocation98_spill] sm:$0xff] }
 0x478   : > { %v3828_v17 = vmul.f32 %v10392_v31, %v10391_v53  ;;  %v4442_v41 = vadd.f32 %v4410_v35, %v4282_v26  ;;  %v10393_v57 = vld [vmem:[#allocation133_spill] sm:$0xff]  ;;  %v4253_v42 = vadd.f32 %v10394_v44, %v8307_v45  ;;  %4108 = vmatprep.mubr.f32.mxu0 %v3954_v61  ;;  %v10397_v54 = vld [vmem:[#allocation236_spill] sm:$0xff]  ;;  %v10398_v6 = vld [vmem:[#allocation31_spill] sm:$0xff]  ;;  %v8710_v35 = vpop.f32.mrf.mxu0 }
 0x479   : > { %v3892_v59 = vmul.f32 %v10393_v57, %v10393_v57  ;;  %v10396_v2 = vld [vmem:[#allocation273_spill] sm:$0xff]  ;;  %v3859_v49 = vadd.f32 %v10398_v6, %v10397_v54  ;;  %v10399_v23 = vld [vmem:[#allocation136_spill] sm:$0xff]  ;;  %v10400_v37 = vld [vmem:[#allocation227_spill] sm:$0xff]  ;;  %10401 = vst [vmem:[#allocation158_spill] sm:$0xff] %v8710_v35  ;;  %4609 = vmatprep.mubr.f32.mxu1 %v4443_v12  ;;  %4109 = vmatmul.mubr.f32.gmra.mxu0 %v3953_v14 }
 0x47a   : > { %v3860_v43 = vadd.f32 %v3828_v17, %v3732_v34  ;;  %v4381_v56 = vadd.f32 %v10396_v2, %v10395_v18  ;;  %v3923_v26 = vmul.f32 %v10400_v37, %v10399_v23  ;;  %v10402_v45 = vld [vmem:[#allocation138_spill] sm:$0xff]  ;;  %v10405_v61 = vld [vmem:[#allocation263_spill] sm:$0xff]  ;;  %v8716_v17 = vpop.f32.mrf.mxu1  ;;  %4610 = vmatmul.mubr.f32.gmra.mxu1 %v4442_v41  ;;  %v10409_v23 = vld [vmem:[#allocation88_spill] sm:$0xff] }
 0x47b   : > { %v3924_v55 = vmul.f32 %v3892_v59, %v10402_v45  ;;  %v10403_v53 = vld [vmem:[#allocation278_spill] sm:$0xff]  ;;  %v10406_v44 = vld [vmem:[#allocation279_spill] sm:$0xff]  ;;  %v10410_v37 = vld [vmem:[#allocation32_spill] sm:$0xff] }
 0x47c   : > { %v4285_v31 = vmul.f32 %v4253_v42, %v10403_v53  ;;  %v10404_v57 = vld [vmem:[#allocation274_spill] sm:$0xff]  ;;  %v4413_v32 = vmul.f32 %v4381_v56, %v10406_v44  ;;  %v3955_v18 = vadd.f32 %v3923_v26, %v3859_v49  ;;  %v10407_v2 = vld [vmem:[#allocation275_spill] sm:$0xff]  ;;  %v3734_v12 = vmul.f32 %v10410_v37, %v10409_v23  ;;  %v5526_v41 = vld [vmem:[#allocation8 + $0x420] sm:$0xff]  ;;  %v8729_v56 = vpop.f32.mrf.mxu1 }
 0x47d   : > { %v4284_v34 = vmul.f32 %v10405_v61, %v10404_v57  ;;  %v10408_v54 = vld [vmem:[#allocation38_spill] sm:$0xff]  ;;  %v3956_v14 = vadd.f32 %v3924_v55, %v3860_v43  ;;  %v10411_v35 = vld [vmem:[#allocation143_spill] sm:$0xff]  ;;  %v4255_v57 = vadd.f32 %v8403_v8, %v8363_v27  ;;  %5182 = vmatpush3.msra.mxu0 %v5526_v41  ;;  %v4383_v61 = vadd.f32 %v8415_v20, %v8381_v11  ;;  %v10414_v44 = vld [vmem:[#allocation33_spill] sm:$0xff] }
 0x47e   : > { %v4412_v6 = vmul.f32 %v10408_v54, %v10407_v2  ;;  %v10412_v59 = vld [vmem:[#allocation35_spill] sm:$0xff]  ;;  %v4445_v49 = vadd.f32 %v4413_v32, %v4285_v31  ;;  %v10415_v43 = vld [vmem:[#allocation81_spill] sm:$0xff]  ;;  %v10416_v23 = vld [vmem:[#allocation142_spill] sm:$0xff] }
 0x47f   : > { %v3830_v45 = vmul.f32 %v10412_v59, %v10411_v35  ;;  %v10413_v42 = vld [vmem:[#allocation231_spill] sm:$0xff]  ;;  %v3861_v55 = vadd.f32 %v10415_v43, %v10414_v44  ;;  %v8735_v35 = vpop.f32.mrf.mxu0  ;;  %4113 = vmatprep.mubr.f32.mxu0 %v3956_v14  ;;  %v10418_v59 = vld [vmem:[#allocation140_spill] sm:$0xff]  ;;  %v4415_v11 = vmul.f32 %v4383_v61, %v7423_v0  ;;  %v10420_v20 = vld [vmem:[#allocation282_spill] sm:$0xff] }
 0x480   : > { %v3894_v53 = vmul.f32 %v10413_v42, %v10413_v42  ;;  %v4444_v26 = vadd.f32 %v4412_v6, %v4284_v34  ;;  %v5527_v2 = vld [vmem:[#allocation8 + $0x498] sm:$0xff]  ;;  %v8741_v34 = vpop.f32.mrf.mxu1  ;;  %4614 = vmatprep.mubr.f32.mxu1 %v4445_v49  ;;  %4114 = vmatmul.mubr.f32.gmra.mxu0 %v3955_v18  ;;  %v4286_v32 = vmul.f32 %v8346_v52, %v10420_v20  ;;  %v10426_v0 = vld [vmem:[#allocation250_spill] sm:$0xff]  ;;  %v10427_v52 = vld [vmem:[#allocation245_spill] sm:$0xff] }
 0x481   : > { %5183 = vmatprep.subr.mxu0 %v5527_v2  ;;  %v3862_v54 = vadd.f32 %v3830_v45, %v3734_v12  ;;  %v10417_v8 = vld [vmem:[#allocation287_spill] sm:$0xff]  ;;  %v3896_v61 = vmul.f32 %v10426_v0, %v10426_v0  ;;  %v10432_v20 = vld [vmem:[#allocation94_spill] sm:$0xff] }
 0x482   : > { %v3926_v27 = vmul.f32 %v3894_v53, %v10416_v23  ;;  %v4287_v37 = vmul.f32 %v4255_v57, %v10417_v8  ;;  %v10419_v42 = vld [vmem:[#allocation235_spill] sm:$0xff]  ;;  %4615 = vmatmul.mubr.f32.gmra.mxu1 %v4444_v26  ;;  %v10422_v53 = vld [vmem:[#allocation92_spill] sm:$0xff]  ;;  %v8752_v23 = vpop.f32.mrf.mxu1  ;;  %v10428_v8 = vld [vmem:[#allocation34_spill] sm:$0xff]  ;;  %v8758_v26 = vpop.f32.mrf.mxu0 }
 0x483   : > { %v3925_v31 = vmul.f32 %v10419_v42, %v10418_v59  ;;  %v10421_v6 = vld [vmem:[#allocation283_spill] sm:$0xff]  ;;  %v3863_v59 = vadd.f32 %v10428_v8, %v10427_v52  ;;  %v5529_v8 = vld [vmem:[#allocation8 + $0x490] sm:$0xff] }
 0x484   : > { %v4414_v14 = vmul.f32 %v8352_v19, %v10421_v6  ;;  %v3958_v12 = vadd.f32 %v3926_v27, %v3862_v54  ;;  %v10423_v57 = vld [vmem:[#allocation83_spill] sm:$0xff]  ;;  %v4447_v18 = vadd.f32 %v4415_v11, %v4287_v37  ;;  %v10429_v54 = vld [vmem:[#allocation144_spill] sm:$0xff]  ;;  %v10430_v27 = vld [vmem:[#allocation85_spill] sm:$0xff] }
 0x485   : > { %v3957_v45 = vadd.f32 %v3925_v31, %v3861_v55  ;;  %v3736_v41 = vmul.f32 %v10423_v57, %v10422_v53  ;;  %v10424_v44 = vld [vmem:[#allocation147_spill] sm:$0xff]  ;;  %v3927_v42 = vmul.f32 %v10430_v27, %v10429_v54  ;;  %v10431_v31 = vld [vmem:[#allocation96_spill] sm:$0xff]  ;;  %v10434_v11 = vld [vmem:[#allocation262_spill] sm:$0xff] }
 0x486   : > { %v10425_v43 = vld [vmem:[#allocation259_spill] sm:$0xff]  ;;  %v4446_v49 = vadd.f32 %v4414_v14, %v4286_v32  ;;  %4118 = vmatprep.mubr.f32.mxu0 %v3958_v12  ;;  %v3738_v6 = vmul.f32 %v10432_v20, %v10431_v31  ;;  %v8766_v14 = vpop.f32.mrf.mxu1  ;;  %4619 = vmatprep.mubr.f32.mxu1 %v4447_v18  ;;  %v10435_v53 = vld [vmem:[#allocation146_spill] sm:$0xff]  ;;  %v10437_v12 = vld [vmem:[#allocation253_spill] sm:$0xff] }
 0x487   : > { %v3832_v2 = vmul.f32 %v10425_v43, %v10424_v44  ;;  %v5528_v19 = vld [vmem:[#allocation8 + $0x418] sm:$0xff]  ;;  %4119 = vmatmul.mubr.f32.gmra.mxu0 %v3957_v45  ;;  %v3928_v57 = vmul.f32 %v3896_v61, %v10435_v53  ;;  %v3959_v0 = vadd.f32 %v3927_v42, %v3863_v59  ;;  %v10440_v54 = vld [vmem:[#allocation89_spill] sm:$0xff]  ;;  %v10441_v45 = vld [vmem:[#allocation150_spill] sm:$0xff]  ;;  %v8782_v59 = vpop.f32.mrf.mxu0 }
 0x488   : > { %5184 = vmatpush3.msra.mxu0 %v5528_v19  ;;  %v10433_v37 = vld [vmem:[#allocation151_spill] sm:$0xff]  ;;  %4620 = vmatmul.mubr.f32.gmra.mxu1 %v4446_v49  ;;  %v10439_v19 = vld [vmem:[#allocation148_spill] sm:$0xff]  ;;  %v8775_v31 = vpop.f32.mrf.mxu1  ;;  %v5530_v61 = vld [vmem:[#allocation8 + $0x410] sm:$0xff] }
 0x489   : > { %v3864_v55 = vadd.f32 %v3832_v2, %v3736_v41  ;;  %v3834_v32 = vmul.f32 %v10434_v11, %v10433_v37  ;;  %v10436_v44 = vld [vmem:[#allocation255_spill] sm:$0xff]  ;;  %v10438_v41 = vld [vmem:[#allocation37_spill] sm:$0xff]  ;;  %5185 = vmatprep.subr.mxu0 %v5529_v8  ;;  %v3929_v27 = vmul.f32 %v10440_v54, %v10439_v19  ;;  %v10442_v37 = vld [vmem:[#allocation100_spill] sm:$0xff] }
 0x48a   : > { %v3898_v43 = vmul.f32 %v10436_v44, %v10436_v44  ;;  %v3865_v2 = vadd.f32 %v10438_v41, %v10437_v12  ;;  %5186 = vmatpush3.msra.mxu0 %v5530_v61  ;;  %v10443_v11 = vld [vmem:[#allocation91_spill] sm:$0xff]  ;;  %v10445_v12 = vld [vmem:[#allocation153_spill] sm:$0xff]  ;;  %v10446_v41 = vld [vmem:[#allocation272_spill] sm:$0xff] }
 0x48b   : > { %v3866_v52 = vadd.f32 %v3834_v32, %v3738_v6  ;;  %v3960_v18 = vadd.f32 %v3928_v57, %v3864_v55  ;;  %v3740_v53 = vmul.f32 %v10443_v11, %v10442_v37  ;;  %v10444_v44 = vld [vmem:[#allocation155_spill] sm:$0xff]  ;;  %v3900_v6 = vmul.f32 %v8265_v15, %v8265_v15  ;;  %v5531_v32 = vld [vmem:[#allocation8 + $0x488] sm:$0xff]  ;;  %v10450_v15 = vld [vmem:[#allocation154_spill] sm:$0xff] }
 0x48c   : > { %v3930_v20 = vmul.f32 %v3898_v43, %v10441_v45  ;;  %v3836_v49 = vmul.f32 %v10445_v12, %v10444_v44  ;;  %v3961_v42 = vadd.f32 %v3929_v27, %v3865_v2  ;;  %5187 = vmatprep.subr.mxu0 %v5531_v32  ;;  %v10447_v55 = vld [vmem:[#allocation93_spill] sm:$0xff]  ;;  %v10448_v43 = vld [vmem:[#allocation152_spill] sm:$0xff]  ;;  %v10449_v8 = vld [vmem:[#allocation39_spill] sm:$0xff]  ;;  %v3742_v37 = vmul.f32 %v8360_v63, %v10190_v25  ;;  %v8792_v2 = vpop.f32.mrf.mxu1 }
 0x48d   : > { %v3867_v57 = vadd.f32 %v10447_v55, %v10446_v41  ;;  %v3931_v19 = vmul.f32 %v10449_v8, %v10448_v43  ;;  %4123 = vmatprep.mubr.f32.mxu0 %v3960_v18  ;;  %v5532_v61 = vld [vmem:[#allocation8 + $0x408] sm:$0xff]  ;;  %v3932_v27 = vmul.f32 %v3900_v6, %v10450_v15  ;;  %v3838_v44 = vmul.f32 %v8428_v1, %v10194_v22  ;;  %v10454_v63 = vld [vmem:[#allocation284_spill] sm:$0xff]  ;;  %v8805_v6 = vpop.f32.mrf.mxu0 }
 0x48e   : > { %v3962_v54 = vadd.f32 %v3930_v20, %v3866_v52  ;;  %v3868_v45 = vadd.f32 %v3836_v49, %v3740_v53  ;;  %5188 = vmatpush3.msra.mxu0 %v5532_v61  ;;  %v3902_v12 = vmul.f32 %v8354_v58, %v8354_v58  ;;  %v5533_v52 = vld [vmem:[#allocation8 + $0x480] sm:$0xff]  ;;  %v10451_v18 = vld [vmem:[#allocation277_spill] sm:$0xff]  ;;  %v10452_v20 = vld [vmem:[#allocation271_spill] sm:$0xff]  ;;  %v4193_v58 = vmul.f32 %v7456_v48, %v9844_v36  ;;  %v8816_v8 = vpop.f32.mrf.mxu1 }
 0x48f   : > { %4124 = vmatmul.mubr.f32.gmra.mxu0 %v3959_v0  ;;  %v3963_v11 = vadd.f32 %v3931_v19, %v3867_v57  ;;  %5189 = vmatprep.subr.mxu0 %v5533_v52  ;;  %v3869_v53 = vadd.f32 %v10452_v20, %v10451_v18  ;;  %v10453_v49 = vld [vmem:[#allocation156_spill] sm:$0xff]  ;;  %v4161_v0 = vmul.f32 %v7454_v47, %v9841_v30 }
 0x490   : > { %4128 = vmatprep.mubr.f32.mxu0 %v3962_v54  ;;  %v3933_v25 = vmul.f32 %v10454_v63, %v10453_v49  ;;  %v3964_v32 = vadd.f32 %v3932_v27, %v3868_v45  ;;  %v3870_v41 = vadd.f32 %v3838_v44, %v3742_v37  ;;  %v3934_v22 = vmul.f32 %v3902_v12, %v10198_v21  ;;  %v5534_v1 = vld [vmem:[#allocation8 + $0x400] sm:$0xff]  ;;  %v10457_v37 = vld [vmem:[#allocation162_spill] sm:$0xff]  ;;  %v10458_v44 = vld [vmem:[#allocation165_spill] sm:$0xff] }
 0x491   : > { %5190 = vmatpush3.msra.mxu0 %v5534_v1  ;;  %v4289_v57 = vmul.f32 %v7454_v47, %v9844_v36  ;;  %v4321_v43 = vmul.f32 %v7456_v48, %v9848_v7  ;;  %v4163_v30 = vmul.f32 %v7473_v24, %v9850_v16  ;;  %v4225_v21 = vadd.f32 %v4193_v58, %v4161_v0  ;;  %v10455_v36 = vld [vmem:[#allocation164_spill] sm:$0xff]  ;;  %v10459_v12 = vld [vmem:[#allocation161_spill] sm:$0xff] }
 0x492   : > { %v3965_v55 = vadd.f32 %v3933_v25, %v3869_v53  ;;  %v3966_v19 = vadd.f32 %v3934_v22, %v3870_v41  ;;  %v4195_v54 = vmul.f32 %v7475_v39, %v9852_v9  ;;  %v4291_v45 = vmul.f32 %v7473_v24, %v9852_v9  ;;  %v10456_v7 = vld [vmem:[#allocation160_spill] sm:$0xff]  ;;  %v10460_v9 = vld [vmem:[#allocation163_spill] sm:$0xff]  ;;  %v10463_v41 = vld [vmem:[#allocation41_spill] sm:$0xff] }
 0x493   : > { %4129 = vmatmul.mubr.f32.gmra.mxu0 %v3961_v42  ;;  %v4353_v61 = vadd.f32 %v4321_v43, %v4289_v57  ;;  %v4323_v47 = vmul.f32 %v7475_v39, %v9858_v3  ;;  %v4873_v48 = vadd.f32 %v8445_v40, %v8433_v13  ;;  %v4258_v16 = vmul.f32 %v10456_v7, %v10455_v36  ;;  %v8828_v42 = vpop.f32.mrf.mxu0  ;;  %v8841_v40 = vpop.f32.mrf.mxu1  ;;  %v10462_v25 = vld [vmem:[#allocation167_spill] sm:$0xff]  ;;  %v10464_v22 = vld [vmem:[#allocation40_spill] sm:$0xff] }
 0x494   : > { %4133 = vmatprep.mubr.f32.mxu0 %v3964_v32  ;;  %v4257_v15 = vmul.f32 %v4225_v21, %v10457_v37  ;;  %v4227_v27 = vadd.f32 %v4195_v54, %v4163_v30  ;;  %v4386_v52 = vmul.f32 %v10459_v12, %v10458_v44  ;;  %v4165_v24 = vmul.f32 %v7501_v10, %v10214_v46  ;;  %v10465_v57 = vld [vmem:[#allocation168_spill] sm:$0xff]  ;;  %v10467_v30 = vld [vmem:[#allocation169_spill] sm:$0xff]  ;;  %v10473_v36 = vld [vmem:[#allocation115_spill] sm:$0xff] }
 0x495   : > { %v4385_v18 = vmul.f32 %v4353_v61, %v10460_v9  ;;  %v4355_v3 = vadd.f32 %v4323_v47, %v4291_v45  ;;  %v8837_v39 = vadd.f32 %v4873_v48, %v8472_v51  ;;  %v4197_v13 = vmul.f32 %v10210_v60, %v10215_v50  ;;  %v10461_v51 = vld [vmem:[#allocation166_spill] sm:$0xff]  ;;  %v2589_v58 = vpop.f32.mrf.mxu0  ;;  %v10468_v21 = vld [vmem:[#allocation17_spill] sm:$0xff]  ;;  %v10474_v7 = vld [vmem:[#allocation171_spill] sm:$0xff] }
 0x496   : > { %v8845_v20 = vadd.f32 %v8735_v35, %v8450_v28  ;;  %v4418_v53 = vadd.f32 %v4386_v52, %v4258_v16  ;;  %v4293_v46 = vmul.f32 %v7501_v10, %v10215_v50  ;;  %v4325_v49 = vmul.f32 %v10210_v60, %v10221_v62  ;;  %v10469_v50 = vld [vmem:[#allocation56_spill] sm:$0xff]  ;;  %v10470_v54 = vld [vmem:[#allocation49_spill] sm:$0xff]  ;;  %v4917_v62 = vpop.f32.mrf.mxu1  ;;  %v10475_v37 = vld [vmem:[#allocation174_spill] sm:$0xff] }
 0x497   : > { %4134 = vmatmul.mubr.f32.gmra.mxu0 %v3963_v11  ;;  %v4259_v63 = vmul.f32 %v4227_v27, %v10461_v51  ;;  %v4387_v0 = vmul.f32 %v4355_v3, %v10462_v25  ;;  %v4229_v32 = vadd.f32 %v4197_v13, %v4165_v24  ;;  %v4876_v1 = vadd.f32 %v10464_v22, %v10463_v41  ;;  %v10466_v11 = vld [vmem:[#allocation107_spill] sm:$0xff]  ;;  %v10471_v45 = vld [vmem:[#allocation173_spill] sm:$0xff]  ;;  %v10476_v52 = vld [vmem:[#allocation114_spill] sm:$0xff]  ;;  %v4951_v9 = vpop.f32.mrf.mxu0 }
 0x498   : > { %4138 = vmatprep.mubr.f32.mxu0 %v3966_v19  ;;  %v4357_v35 = vadd.f32 %v4325_v49, %v4293_v46  ;;  %v4260_v43 = vmul.f32 %v10466_v11, %v10465_v57  ;;  %v4388_v10 = vmul.f32 %v10468_v21, %v10467_v30  ;;  %v4167_v60 = vmul.f32 %v10470_v54, %v10469_v50  ;;  %v10472_v47 = vld [vmem:[#allocation97_spill] sm:$0xff]  ;;  %v10478_v3 = vld [vmem:[#allocation276_spill] sm:$0xff]  ;;  %v10481_v51 = vld [vmem:[#allocation178_spill] sm:$0xff]  ;;  %v5031_v11 = vpop.f32.mrf.mxu1 }
 0x499   : > { %v4417_v19 = vadd.f32 %v4385_v18, %v4257_v15  ;;  %v4261_v61 = vmul.f32 %v4229_v32, %v10471_v45  ;;  %v2894_v48 = vadd.f32 %v4876_v1, %v10472_v47  ;;  %v4199_v16 = vmul.f32 %v10474_v7, %v10473_v36  ;;  %v10477_v18 = vld [vmem:[#allocation102_spill] sm:$0xff]  ;;  %v10479_v46 = vld [vmem:[#allocation177_spill] sm:$0xff]  ;;  %v10483_v1 = vld [vmem:[#allocation280_spill] sm:$0xff] }
 0x49a   : > { %v4389_v27 = vmul.f32 %v4357_v35, %v10475_v37  ;;  %v4420_v44 = vadd.f32 %v4388_v10, %v4260_v43  ;;  %v4295_v12 = vmul.f32 %v10470_v54, %v10473_v36  ;;  %v4327_v24 = vmul.f32 %v10474_v7, %v10476_v52  ;;  %v10480_v49 = vld [vmem:[#allocation109_spill] sm:$0xff]  ;;  %v10482_v25 = vld [vmem:[#allocation18_spill] sm:$0xff]  ;;  %v10487_v45 = vld [vmem:[#allocation16_spill] sm:$0xff] }
 0x49b   : > { %4139 = vmatmul.mubr.f32.gmra.mxu0 %v3965_v55  ;;  %v2617_v15 = vadd.f32 %v8782_v59, %v8450_v28  ;;  %v4879_v13 = vadd.f32 %v10478_v3, %v10477_v18  ;;  %v4262_v55 = vmul.f32 %v10480_v49, %v10479_v46  ;;  %v4390_v32 = vmul.f32 %v10482_v25, %v10481_v51  ;;  %v10484_v43 = vld [vmem:[#allocation157_spill] sm:$0xff]  ;;  %v10486_v50 = vld [vmem:[#allocation42_spill] sm:$0xff]  ;;  %v10496_v18 = vld [vmem:[#allocation288_spill] sm:$0xff] }
 0x49c   : > { %4544 = vmatprep.mubr.f32.mxu0 %v4417_v19  ;;  %v4419_v41 = vadd.f32 %v4387_v0, %v4259_v63  ;;  %v4231_v22 = vadd.f32 %v4199_v16, %v4167_v60  ;;  %v4882_v35 = vadd.f32 %v8534_v4, %v10483_v1  ;;  %v4885_v57 = vadd.f32 %v8562_v29, %v8548_v33  ;;  %v10485_v10 = vld [vmem:[#allocation281_spill] sm:$0xff]  ;;  %v4952_v19 = vpop.f32.mrf.mxu0  ;;  %v10488_v63 = vld [vmem:[#allocation95_spill] sm:$0xff]  ;;  %v10492_v29 = vld [vmem:[#allocation286_spill] sm:$0xff] }
 0x49d   : > { %v4359_v59 = vadd.f32 %v4327_v24, %v4295_v12  ;;  %v2895_v30 = vadd.f32 %v4879_v13, %v10484_v43  ;;  %v4422_v21 = vadd.f32 %v4390_v32, %v4262_v55  ;;  %v4888_v54 = vadd.f32 %v10486_v50, %v10485_v10  ;;  %v10489_v60 = vld [vmem:[#allocation289_spill] sm:$0xff]  ;;  %v10490_v4 = vld [vmem:[#allocation99_spill] sm:$0xff]  ;;  %v10493_v37 = vld [vmem:[#allocation290_spill] sm:$0xff] }
 0x49e   : > { %v4421_v47 = vadd.f32 %v4389_v27, %v4261_v61  ;;  %v2896_v0 = vadd.f32 %v4882_v35, %v10488_v63  ;;  %v8888_v36 = vadd.f32 %v4885_v57, %v10489_v60  ;;  %v10491_v7 = vld [vmem:[#allocation285_spill] sm:$0xff]  ;;  %v10494_v12 = vld [vmem:[#allocation292_spill] sm:$0xff]  ;;  %v10495_v24 = vld [vmem:[#allocation159_spill] sm:$0xff]  ;;  %v8909_v25 = vadd.f32 %v8702_v5, %v8692_v38 }
 0x49f   : > { %4545 = vmatmul.mubr.f32.vlgmr.msra.gmra.mxu0 %v10487_v45  ;;  %v4891_v33 = vadd.f32 %v10491_v7, %v10490_v4  ;;  %v8893_v16 = vadd.f32 %v4888_v54, %v10492_v29  ;;  %v4894_v52 = vadd.f32 %v10494_v12, %v10493_v37  ;;  %v8899_v3 = vadd.f32 %v10496_v18, %v10495_v24  ;;  %v10497_v61 = vld [vmem:[#allocation44_spill] sm:$0xff]  ;;  %v10498_v27 = vld [vmem:[#allocation103_spill] sm:$0xff]  ;;  %v10499_v46 = vld [vmem:[#allocation181_spill] sm:$0xff]  ;;  %v4954_v54 = vpop.f32.mrf.mxu0 }
 0x4a0   : > { %4549 = vmatprep.mubr.f32.mxu0 %v4419_v41  ;;  %v4900_v13 = vadd.f32 %v10498_v27, %v10497_v61  ;;  %v4263_v49 = vmul.f32 %v4231_v22, %v10499_v46  ;;  %v10500_v55 = vld [vmem:[#allocation101_spill] sm:$0xff]  ;;  %v4906_v32 = vadd.f32 %v8729_v56, %v8716_v17  ;;  %v5032_v41 = vpop.f32.mrf.mxu1  ;;  %v10501_v1 = vld [vmem:[#allocation182_spill] sm:$0xff]  ;;  %v10502_v57 = vld [vmem:[#allocation43_spill] sm:$0xff]  ;;  %v8920_v22 = vadd.f32 %v8752_v23, %v8741_v34 }
 0x4a1   : > { %v8905_v51 = vadd.f32 %v4891_v33, %v10500_v55  ;;  %v4391_v35 = vmul.f32 %v4359_v59, %v10501_v1  ;;  %v2900_v43 = vadd.f32 %v4894_v52, %v10502_v57  ;;  %v10503_v10 = vld [vmem:[#allocation104_spill] sm:$0xff]  ;;  %v2618_v45 = vadd.f32 %v8450_v28, %v2589_v58  ;;  %v4955_v23 = vpop.f32.mrf.mxu0 }
 0x4a2   : > { %v8916_v50 = vadd.f32 %v4900_v13, %v10503_v10  ;;  %v8924_v38 = vadd.f32 %v4906_v32, %v8845_v20  ;;  %v4912_v5 = vadd.f32 %v8775_v31, %v8766_v14  ;;  %v4915_v17 = vadd.f32 %v8816_v8, %v8792_v2 }
 0x4a3   : > { %4550 = vmatmul.mubr.f32.gmra.mxu0 %v4418_v53  ;;  %v8931_v56 = vadd.f32 %v4917_v62, %v8841_v40  ;;  %v4953_v59 = vadd.f32 %v4952_v19, %v4951_v9  ;;  %v5033_v34 = vadd.f32 %v5032_v41, %v5031_v11  ;;  %v5034_v53 = vpop.f32.mrf.mxu1  ;;  %v4956_v20 = vadd.f32 %v4955_v23, %v4954_v54  ;;  %v4957_v40 = vpop.f32.mrf.mxu0 }
 0x4a4   : > { %4554 = vmatprep.mubr.f32.mxu0 %v4421_v47  ;;  %v8933_v63 = vadd.f32 %v4912_v5, %v2617_v15  ;;  %v8935_v58 = vadd.f32 %v4915_v17, %v2618_v45  ;;  %v4423_v60 = vadd.f32 %v4391_v35, %v4263_v49  ;;  %v10504_v17 = vld [vmem:[#allocation158_spill] sm:$0xff] }
 0x4a5   : > { %v3182_v4 = vadd.f32 %v4953_v59, %v8837_v39  ;;  %v3183_v14 = vadd.f32 %v4956_v20, %v2894_v48  ;;  %v5035_v31 = vpop.f32.mrf.mxu1  ;;  %v4958_v15 = vpop.f32.mrf.mxu0  ;;  %v2612_v59 = vadd.f32 %v8450_v28, %v10504_v17 }
 0x4a6   : > { %v5036_v8 = vadd.f32 %v5035_v31, %v5034_v53  ;;  %v4959_v11 = vadd.f32 %v4958_v15, %v4957_v40 }
 0x4a7   : > { %4555 = vmatmul.mubr.f32.gmra.mxu0 %v4420_v44  ;;  %v8938_v2 = vadd.f32 %v5033_v34, %v3182_v4  ;;  %v5037_v9 = vpop.f32.mrf.mxu1  ;;  %v4960_v39 = vpop.f32.mrf.mxu0  ;;  %v2901_v23 = vadd.f32 %v8899_v3, %v2612_v59  ;;  %v2614_v3 = vadd.f32 %v8450_v28, %v8758_v26  ;;  %v5535_v26 = vld [vmem:[%s9174_s5] ss:$0 sm:$0xff] }
 0x4a8   : > { %4559 = vmatprep.mubr.f32.mxu0 %v4423_v60  ;;  %v8940_v62 = vadd.f32 %v5036_v8, %v3183_v14  ;;  %v3184_v47 = vadd.f32 %v4959_v11, %v2895_v30 }
 0x4a9   : > { %v5038_v19 = vpop.f32.mrf.mxu1  ;;  %v4961_v48 = vpop.f32.mrf.mxu0 }
 0x4aa   : > { %v5039_v7 = vadd.f32 %v5038_v19, %v5037_v9  ;;  %v4962_v29 = vadd.f32 %v4961_v48, %v4960_v39  ;;  %v2903_v19 = vadd.f32 %v8909_v25, %v2614_v3  ;;  %v2616_v25 = vadd.f32 %v5535_v26, %v8805_v6 }
 0x4ab   : > { %4560 = vmatmul.mubr.f32.gmra.mxu0 %v4422_v21  ;;  %v5040_v44 = vpop.f32.mrf.mxu1  ;;  %v8946_v18 = vpop.f32.mrf.mxu0 }
 0x4ac   : > { %v8942_v33 = vadd.f32 %v5039_v7, %v3184_v47  ;;  %v3185_v12 = vadd.f32 %v4962_v29, %v2896_v0 }
 0x4ad   : > { %v5041_v37 = vpop.f32.mrf.mxu1  ;;  %v8950_v61 = vpop.f32.mrf.mxu0 }
 0x4ae   : > { %v5042_v52 = vadd.f32 %v5041_v37, %v5040_v44 }
 0x4af   : > { %v8948_v21 = vpop.f32.mrf.mxu1  ;;  %v8954_v30 = vpop.f32.mrf.mxu0 }
 0x4b0   : > { %v8944_v24 = vadd.f32 %v5042_v52, %v3185_v12 }
 0x4b1   : > { %v8952_v27 = vpop.f32.mrf.mxu1  ;;  %v8958_v46 = vpop.f32.mrf.mxu0 }
 0x4b3   : > { %v8956_v13 = vpop.f32.mrf.mxu1  ;;  %v8962_v0 = vpop.f32.mrf.mxu0 }
 0x4b5   : > { %v8960_v49 = vpop.f32.mrf.mxu1  ;;  %v8966_v32 = vpop.f32.mrf.mxu0 }
 0x4b7   : > { %v8964_v55 = vpop.f32.mrf.mxu1  ;;  %v4972_v1 = vpop.f32.mrf.mxu0 }
 0x4b9   : > { %v8968_v41 = vpop.f32.mrf.mxu1  ;;  %v4973_v35 = vpop.f32.mrf.mxu0 }
 0x4ba   : > { %v4974_v57 = vadd.f32 %v4973_v35, %v4972_v1  ;;  %v2905_v35 = vadd.f32 %v8920_v22, %v2616_v25 }
 0x4bb   : > { %v8970_v10 = vpop.f32.mrf.mxu1  ;;  %v4975_v5 = vpop.f32.mrf.mxu0 }
 0x4bc   : > { %v8972_v54 = vadd.f32 %v4974_v57, %v2900_v43 }
 0x4bd   : > { %v8974_v45 = vpop.f32.mrf.mxu1  ;;  %v4976_v34 = vpop.f32.mrf.mxu0 }
 0x4be   : > { %v4977_v53 = vadd.f32 %v4976_v34, %v4975_v5 }
 0x4bf   : > { %v8979_v20 = vpop.f32.mrf.mxu1 }
 0x4c0   : > { %v8981_v60 = vadd.f32 %v4977_v53, %v2901_v23 }
 0x4c1   : > { %v8983_v4 = vpop.f32.mrf.mxu1 }
 0x4c3   : > { %v4978_v14 = vpop.f32.mrf.mxu0 }
 0x4c5   : > { %v4979_v31 = vpop.f32.mrf.mxu0 }
 0x4c6   : > { %v4980_v43 = vadd.f32 %v4979_v31, %v4978_v14 }
 0x4c7   : > { %v8985_v8 = vpop.f32.mrf.mxu1 }
 0x4c8   : > { %v8988_v40 = vadd.f32 %v4980_v43, %v8916_v50 }
 0x4c9   : > { %v8990_v9 = vpop.f32.mrf.mxu1 }
 0x4cd   : > { %v4981_v15 = vpop.f32.mrf.mxu0 }
 0x4cf   : > { %v4982_v11 = vpop.f32.mrf.mxu0 }
 0x4d0   : > { %v8995_v47 = vpop.f32.mrf.mxu1  ;;  %v4983_v7 = vadd.f32 %v4982_v11, %v4981_v15 }
 0x4d2   : > { %v8997_v39 = vadd.f32 %v4983_v7, %v2903_v19  ;;  %v8999_v44 = vpop.f32.mrf.mxu1  ;;  %v2619_v7 = vadd.f32 %v5535_v26, %v8828_v42 }
 0x4d7   : > { %v4984_v48 = vpop.f32.mrf.mxu0 }
 0x4d9   : > { %v4985_v29 = vpop.f32.mrf.mxu0 }
 0x4da   : > { %v9001_v50 = vpop.f32.mrf.mxu1  ;;  %v4986_v37 = vadd.f32 %v4985_v29, %v4984_v48 }
 0x4dc   : > { %v9004_v12 = vadd.f32 %v4986_v37, %v8924_v38  ;;  %v9006_v52 = vpop.f32.mrf.mxu1  ;;  %v2908_v37 = vadd.f32 %v8931_v56, %v2619_v7 }
 0x4e0   : > { %v4987_v28 = vpop.f32.mrf.mxu0 }
 0x4e2   : > { %v4988_v1 = vpop.f32.mrf.mxu0 }
 0x4e3   : > { %v9013_v57 = vpop.f32.mrf.mxu1  ;;  %v4989_v5 = vadd.f32 %v4988_v1, %v4987_v28 }
 0x4e5   : > { %v9015_v17 = vadd.f32 %v4989_v5, %v2905_v35  ;;  %v9017_v59 = vpop.f32.mrf.mxu1 }
 0x4e9   : > { %v4990_v38 = vpop.f32.mrf.mxu0 }
 0x4eb   : > { %v4991_v34 = vpop.f32.mrf.mxu0 }
 0x4ec   : > { %v9019_v23 = vpop.f32.mrf.mxu1  ;;  %v4992_v53 = vadd.f32 %v4991_v34, %v4990_v38 }
 0x4ee   : > { %v9022_v14 = vadd.f32 %v4992_v53, %v8933_v63  ;;  %v9024_v31 = vpop.f32.mrf.mxu1 }
 0x4f2   : > { %v4993_v6 = vpop.f32.mrf.mxu0  ;;  %v9026_v43 = vpop.f32.mrf.mxu1 }
 0x4f4   : > { %v4994_v22 = vpop.f32.mrf.mxu0  ;;  %v9028_v15 = vpop.f32.mrf.mxu1 }
 0x4f5   : > { %v4995_v3 = vadd.f32 %v4994_v22, %v4993_v6 }
 0x4f6   : > { %v4996_v11 = vpop.f32.mrf.mxu0  ;;  %v9030_v19 = vpop.f32.mrf.mxu1 }
 0x4f7   : > { %v9034_v48 = vadd.f32 %v4995_v3, %v8935_v58 }
 0x4f8   : > { %v4997_v29 = vpop.f32.mrf.mxu0  ;;  %v9036_v63 = vpop.f32.mrf.mxu1 }
 0x4f9   : > { %v4998_v28 = vadd.f32 %v4997_v29, %v4996_v11 }
 0x4fa   : > { %v5111_v1 = vpop.f32.mrf.mxu0 }
 0x4fb   : > { %v9039_v25 = vadd.f32 %v4998_v28, %v2908_v37  ;;  %v5203_v35 = vpop.f32.mrf.mxu1 }
 0x4fc   : > { %v5112_v5 = vpop.f32.mrf.mxu0 }
 0x4fd   : > { %10505 = vst [vmem:[#allocation291_spill] sm:$0xff] %v9039_v25  ;;  %v5204_v38 = vpop.f32.mrf.mxu1  ;;  %v5113_v34 = vadd.f32 %v5112_v5, %v5111_v1  ;;  %v4965_v1 = vadd.f32 %v8950_v61, %v8946_v18 }
 0x4ff   : > { %v5114_v53 = vpop.f32.mrf.mxu0  ;;  %v5206_v6 = vpop.f32.mrf.mxu1  ;;  %v9042_v42 = vadd.f32 %v5113_v34, %v8938_v2 }
 0x501   : > { %10506 = vst [vmem:[#allocation105_spill] sm:$0xff] %v9042_v42  ;;  %v5115_v58 = vpop.f32.mrf.mxu0  ;;  %v5207_v26 = vpop.f32.mrf.mxu1 }
 0x502   : > { %v5116_v22 = vadd.f32 %v5115_v58, %v5114_v53  ;;  %v3186_v53 = vadd.f32 %v4965_v1, %v8888_v36  ;;  %v4971_v36 = vadd.f32 %v8966_v32, %v8962_v0  ;;  %v5205_v1 = vadd.f32 %v5204_v38, %v5203_v35 }
 0x503   : > { %v5051_v0 = vadd.f32 %v8968_v41, %v8964_v55  ;;  %v5208_v32 = vadd.f32 %v5207_v26, %v5206_v6 }
 0x504   : > { %v9045_v3 = vadd.f32 %v5116_v22, %v8940_v62  ;;  %v4968_v62 = vadd.f32 %v8958_v46, %v8954_v30 }
 0x505   : > { %v5117_v56 = vpop.f32.mrf.mxu0 }
 0x506   : > { %v5209_v11 = vpop.f32.mrf.mxu1 }
 0x507   : > { %v5118_v7 = vpop.f32.mrf.mxu0 }
 0x508   : > { %v5210_v29 = vpop.f32.mrf.mxu1  ;;  %v5119_v37 = vadd.f32 %v5118_v7, %v5117_v56 }
 0x50a   : > { %v9048_v28 = vadd.f32 %v5119_v37, %v8942_v33  ;;  %v5045_v33 = vadd.f32 %v8952_v27, %v8948_v21 }
 0x50c   : > { %10507 = vst [vmem:[#allocation46_spill] sm:$0xff] %v9048_v28  ;;  %v3667_v61 = vadd.f32 %v5045_v33, %v3186_v53  ;;  %v3188_v28 = vadd.f32 %v4971_v36, %v8905_v51 }
 0x50e   : > { %v5120_v5 = vpop.f32.mrf.mxu0  ;;  %v5212_v2 = vpop.f32.mrf.mxu1  ;;  %v3669_v38 = vadd.f32 %v5051_v0, %v3188_v28 }
 0x510   : > { %v5121_v34 = vpop.f32.mrf.mxu0  ;;  %v5213_v42 = vpop.f32.mrf.mxu1 }
 0x511   : > { %v5122_v25 = vadd.f32 %v5121_v34, %v5120_v5  ;;  %v3187_v5 = vadd.f32 %v4968_v62, %v8893_v16  ;;  %v5214_v26 = vadd.f32 %v5213_v42, %v5212_v2 }
 0x513   : > { %v9056_v58 = vadd.f32 %v5122_v25, %v8944_v24  ;;  %v5048_v25 = vadd.f32 %v8960_v49, %v8956_v13 }
 0x514   : > { %v5123_v22 = vpop.f32.mrf.mxu0 }
 0x515   : > { %10508 = vst [vmem:[#allocation190_spill] sm:$0xff] %v9056_v58  ;;  %v3668_v27 = vadd.f32 %v5048_v25, %v3187_v5 }
 0x516   : > { %v5215_v56 = vpop.f32.mrf.mxu1  ;;  %v5124_v7 = vpop.f32.mrf.mxu0 }
 0x517   : > { %v5125_v37 = vadd.f32 %v5124_v7, %v5123_v22 }
 0x518   : > { %v5216_v18 = vpop.f32.mrf.mxu1 }
 0x519   : > { %v4148_v30 = vadd.f32 %v5125_v37, %v3667_v61  ;;  %v5054_v61 = vadd.f32 %v8974_v45, %v8970_v10 }
 0x51b   : > { %v4629_v34 = vadd.f32 %v5205_v1, %v4148_v30  ;;  %v3670_v41 = vadd.f32 %v5054_v61, %v8972_v54  ;;  %v5060_v54 = vadd.f32 %v8990_v9, %v8985_v8 }
 0x51d   : > { %4645 = vst [vmem:[%s9068_s8 + $0x20] sm:$0xff] %v4629_v34  ;;  %v5217_v34 = vadd.f32 %v5216_v18, %v5215_v56 }
 0x51e   : > { %v5126_v46 = vpop.f32.mrf.mxu0  ;;  %v5218_v24 = vpop.f32.mrf.mxu1 }
 0x520   : > { %v5127_v58 = vpop.f32.mrf.mxu0  ;;  %v5219_v21 = vpop.f32.mrf.mxu1 }
 0x521   : > { %v5128_v53 = vadd.f32 %v5127_v58, %v5126_v46  ;;  %v5211_v58 = vadd.f32 %v5210_v29, %v5209_v11  ;;  %v5057_v11 = vadd.f32 %v8983_v4, %v8979_v20 }
 0x523   : > { %v4149_v35 = vadd.f32 %v5128_v53, %v3668_v27  ;;  %v3671_v10 = vadd.f32 %v5057_v11, %v8981_v60  ;;  %v3672_v27 = vadd.f32 %v5060_v54, %v8988_v40  ;;  %v5066_v40 = vadd.f32 %v9006_v52, %v9001_v50 }
 0x524   : > { %v5129_v16 = vpop.f32.mrf.mxu0 }
 0x525   : > { %v5221_v13 = vpop.f32.mrf.mxu1  ;;  %v4630_v62 = vadd.f32 %v5208_v32, %v4149_v35  ;;  %v5063_v32 = vadd.f32 %v8999_v44, %v8995_v47 }
 0x526   : > { %v5130_v49 = vpop.f32.mrf.mxu0 }
 0x527   : > { %v5131_v22 = vadd.f32 %v5130_v49, %v5129_v16  ;;  %v5222_v51 = vpop.f32.mrf.mxu1  ;;  %4646 = vst [vmem:[%s9068_s8 + $0x28] sm:$0xff] %v4630_v62  ;;  %v5220_v16 = vadd.f32 %v5219_v21, %v5218_v24  ;;  %v3673_v8 = vadd.f32 %v5063_v32, %v8997_v39  ;;  %v3674_v62 = vadd.f32 %v5066_v40, %v9004_v12 }
 0x528   : > { %v5072_v12 = vadd.f32 %v9024_v31, %v9019_v23 }
 0x529   : > { %v4150_v33 = vadd.f32 %v5131_v22, %v3669_v38  ;;  %v5223_v38 = vadd.f32 %v5222_v51, %v5221_v13 }
 0x52b   : > { %v4631_v5 = vadd.f32 %v5211_v58, %v4150_v33 }
 0x52d   : > { %v5132_v7 = vpop.f32.mrf.mxu0  ;;  %v5224_v37 = vpop.f32.mrf.mxu1  ;;  %4647 = vst [vmem:[%s9068_s8 + $0x30] sm:$0xff] %v4631_v5 }
 0x52f   : > { %v5133_v55 = vpop.f32.mrf.mxu0  ;;  %v5225_v36 = vpop.f32.mrf.mxu1 }
 0x530   : > { %v5134_v6 = vadd.f32 %v5133_v55, %v5132_v7  ;;  %v5226_v58 = vadd.f32 %v5225_v36, %v5224_v37  ;;  %v5069_v7 = vadd.f32 %v9017_v59, %v9013_v57  ;;  %v5075_v36 = vadd.f32 %v9028_v15, %v9026_v43  ;;  %v10509_v15 = vld [vmem:[#allocation291_spill] sm:$0xff] }
 0x532   : > { %v4151_v28 = vadd.f32 %v5134_v6, %v3670_v41  ;;  %v3675_v50 = vadd.f32 %v5069_v7, %v9015_v17  ;;  %v3677_v23 = vadd.f32 %v5075_v36, %v9034_v48 }
 0x534   : > { %v4632_v29 = vadd.f32 %v5214_v26, %v4151_v28  ;;  %v5227_v46 = vpop.f32.mrf.mxu1  ;;  %v3676_v26 = vadd.f32 %v5072_v12, %v9022_v14  ;;  %v5078_v14 = vadd.f32 %v9036_v63, %v9030_v19 }
 0x535   : > { %v5135_v1 = vpop.f32.mrf.mxu0 }
 0x536   : > { %4648 = vst [vmem:[%s9068_s8 + $0x38] sm:$0xff] %v4632_v29  ;;  %v5228_v4 = vpop.f32.mrf.mxu1  ;;  %v3678_v54 = vadd.f32 %v5078_v14, %v10509_v15 }
 0x537   : > { %v5136_v30 = vpop.f32.mrf.mxu0  ;;  %v5229_v51 = vadd.f32 %v5228_v4, %v5227_v46  ;;  %v10510_v4 = vld [vmem:[#allocation105_spill] sm:$0xff] }
 0x538   : > { %v5137_v45 = vadd.f32 %v5136_v30, %v5135_v1 }
 0x539   : > { %v5138_v25 = vpop.f32.mrf.mxu0 }
 0x53a   : > { %v4152_v42 = vadd.f32 %v5137_v45, %v3671_v10  ;;  %v5230_v9 = vpop.f32.mrf.mxu1 }
 0x53b   : > { %v5139_v2 = vpop.f32.mrf.mxu0 }
 0x53c   : > { %v4633_v53 = vadd.f32 %v5217_v34, %v4152_v42  ;;  %v5140_v20 = vadd.f32 %v5139_v2, %v5138_v25  ;;  %v5231_v22 = vpop.f32.mrf.mxu1 }
 0x53d   : > { %v5232_v17 = vadd.f32 %v5231_v22, %v5230_v9 }
 0x53e   : > { %4649 = vst [vmem:[%s9068_s8 + $0x40] sm:$0xff] %v4633_v53  ;;  %v4153_v0 = vadd.f32 %v5140_v20, %v3672_v27 }
 0x540   : > { %v5141_v60 = vpop.f32.mrf.mxu0  ;;  %v4634_v35 = vadd.f32 %v5220_v16, %v4153_v0 }
 0x542   : > { %v5142_v49 = vpop.f32.mrf.mxu0  ;;  %4650 = vst [vmem:[%s9068_s8 + $0x48] sm:$0xff] %v4634_v35  ;;  %v5233_v61 = vpop.f32.mrf.mxu1 }
 0x543   : > { %v5143_v56 = vadd.f32 %v5142_v49, %v5141_v60 }
 0x544   : > { %v5234_v41 = vpop.f32.mrf.mxu1 }
 0x545   : > { %v4154_v24 = vadd.f32 %v5143_v56, %v3673_v8  ;;  %v5235_v45 = vadd.f32 %v5234_v41, %v5233_v61  ;;  %v10511_v56 = vld [vmem:[#allocation46_spill] sm:$0xff] }
 0x547   : > { %v5144_v18 = vpop.f32.mrf.mxu0  ;;  %v4635_v47 = vadd.f32 %v5223_v38, %v4154_v24 }
 0x548   : > { %v5236_v11 = vpop.f32.mrf.mxu1 }
 0x549   : > { %v5145_v21 = vpop.f32.mrf.mxu0  ;;  %4651 = vst [vmem:[%s9068_s8 + $0x50] sm:$0xff] %v4635_v47 }
 0x54a   : > { %v5146_v44 = vadd.f32 %v5145_v21, %v5144_v18  ;;  %v5237_v25 = vpop.f32.mrf.mxu1 }
 0x54b   : > { %v5238_v48 = vadd.f32 %v5237_v25, %v5236_v11 }
 0x54c   : > { %v4155_v33 = vadd.f32 %v5146_v44, %v3674_v62 }
 0x54e   : > { %v4636_v5 = vadd.f32 %v5226_v58, %v4155_v33 }
 0x54f   : > { %v5147_v39 = vpop.f32.mrf.mxu0 }
 0x550   : > { %4652 = vst [vmem:[%s9068_s8 + $0x58] sm:$0xff] %v4636_v5 }
 0x551   : > { %v5148_v55 = vpop.f32.mrf.mxu0 }
 0x552   : > { %v5149_v52 = vadd.f32 %v5148_v55, %v5147_v39 }
 0x553   : > { %v5150_v13 = vpop.f32.mrf.mxu0 }
 0x554   : > { %v4156_v37 = vadd.f32 %v5149_v52, %v3675_v50 }
 0x555   : > { %v5151_v6 = vpop.f32.mrf.mxu0 }
 0x556   : > { %v4637_v57 = vadd.f32 %v5229_v51, %v4156_v37  ;;  %v5152_v59 = vadd.f32 %v5151_v6, %v5150_v13 }
 0x557   : > { %v5153_v28 = vpop.f32.mrf.mxu0 }
 0x558   : > { %4653 = vst [vmem:[%s9068_s8 + $0x60] sm:$0xff] %v4637_v57  ;;  %v4157_v1 = vadd.f32 %v5152_v59, %v3676_v26 }
 0x559   : > { %v5154_v29 = vpop.f32.mrf.mxu0 }
 0x55a   : > { %v4638_v31 = vadd.f32 %v5232_v17, %v4157_v1  ;;  %v5155_v30 = vadd.f32 %v5154_v29, %v5153_v28 }
 0x55b   : > { %v5156_v10 = vpop.f32.mrf.mxu0 }
 0x55c   : > { %4654 = vst [vmem:[%s9068_s8 + $0x68] sm:$0xff] %v4638_v31  ;;  %v4158_v46 = vadd.f32 %v5155_v30, %v3677_v23 }
 0x55d   : > { %v5157_v43 = vpop.f32.mrf.mxu0 }
 0x55e   : > { %v4639_v34 = vadd.f32 %v5235_v45, %v4158_v46  ;;  %v5158_v42 = vadd.f32 %v5157_v43, %v5156_v10 }
 0x55f   : > { %v5191_v2 = vpop.f32.mrf.mxu0 }
 0x560   : > { %4655 = vst [vmem:[%s9068_s8 + $0x70] sm:$0xff] %v4639_v34  ;;  %v4159_v27 = vadd.f32 %v5158_v42, %v3678_v54 }
 0x561   : > { %v5192_v53 = vpop.f32.mrf.mxu0 }
 0x562   : > { %v4640_v20 = vadd.f32 %v5238_v48, %v4159_v27  ;;  %v5193_v19 = vadd.f32 %v5192_v53, %v5191_v2 }
 0x563   : > { %v5194_v63 = vpop.f32.mrf.mxu0 }
 0x564   : > { %4656 = vst [vmem:[%s9068_s8 + $0x78] sm:$0xff] %v4640_v20  ;;  %v4625_v16 = vadd.f32 %v5193_v19, %v10510_v4 }
 0x565   : > { %v5195_v0 = vpop.f32.mrf.mxu0 }
 0x566   : > { %4641 = vst [vmem:[%s9068_s8] sm:$0xff] %v4625_v16  ;;  %v5196_v60 = vadd.f32 %v5195_v0, %v5194_v63 }
 0x567   : > { %v5197_v32 = vpop.f32.mrf.mxu0 }
 0x568   : > { %v4626_v35 = vadd.f32 %v5196_v60, %v9045_v3  ;;  %v10512_v3 = vld [vmem:[#allocation190_spill] sm:$0xff] }
 0x569   : > { %v5198_v49 = vpop.f32.mrf.mxu0 }
 0x56a   : > { %4642 = vst [vmem:[%s9068_s8 + $0x8] sm:$0xff] %v4626_v35  ;;  %v5199_v8 = vadd.f32 %v5198_v49, %v5197_v32 }
 0x56b   : > { %v5200_v9 = vpop.f32.mrf.mxu0 }
 0x56c   : > { %v4627_v18 = vadd.f32 %v5199_v8, %v10511_v56 }
 0x56d   : > { %v5201_v40 = vpop.f32.mrf.mxu0 }
 0x56e   : > { %4643 = vst [vmem:[%s9068_s8 + $0x10] sm:$0xff] %v4627_v18  ;;  %v5202_v38 = vadd.f32 %v5201_v40, %v5200_v9 }
 0x570   : > { %v4628_v24 = vadd.f32 %v5202_v38, %v10512_v3 }
 0x572   : > { %4644 = vst [vmem:[%s9068_s8 + $0x18] sm:$0xff] %v4628_v24 }
 0x573   : > { %5681 = shalt.err (!%p5678_p6)
}
 0x574   : > { %s5682_s27 = scalar_lea.hbm %s9122_s26, 2048  ;;  %s5686_s16 = scalar_lea.hbm %s9175_s6, 4096 }
 0x575   : > { %p5683_p2 = scmp.ne.s32.totalorder %s9122_s26, %s5682_s27  ;;  %p5687_p0 = scmp.lt.s32.totalorder %s9122_s26, %s9175_s6 }
 0x576   : > { %p5688_p11 = scmp.lt.s32.totalorder %s5686_s16, %s5682_s27 }
 0x577   : > { %p5684_p4 = pnand %p5683_p2, %p10513_p7 }
 0x578   : > { %p5689_p3 = por %p5688_p11, %p5687_p0 }
 0x579   : > { %p5685_p8 = pneg %p5684_p4 }
 0x57b   : > { %p5690_p12 = pnand %p5689_p3, %p5685_p8 }
 0x57d   : > { %5693 = shalt.err (!%p5690_p12)
}
 0x57e   : > { %s5755_s9 = smov 128   ;;  %s5756_s10 = smov 8  }
 0x57f   : > { %5345 = dma.vmem_to_hbm [thread:$0]  (%p10513_p7), %s9124_s15, 2048, %s9122_s26, %s4658_s12, %s5755_s9, %s5755_s9, %s5756_s10  }
 0x580 PF: > { %s4686_s18 = sand.u32 1, %s5728_s21   ;;  %p10514_p9 = scmp.ne.s32.totalorder %s9468_s28, 0 }
 0x581   : > { %p10515_p13 = scmp.ge.s32.totalorder %s5740_s24, 2  ;;  %s4687_s25 = scalar_lea.sflag [#allocation4], %s4686_s18 }
 0x583   : > { %p5365_p5 = pnand %p10515_p13, %p10514_p9 }
 0x585   : > { %p5366_p10 = pneg %p5365_p5 }
 0x587   : > { %5723 = dma.done.wait (%p5366_p10), %s4687_s25, 2048  }
 0x588   : > { %5725 = vsyncadd (%p5366_p10), %s4687_s25, 4294965248  ;;  %p21_p1 = scmp.ge.s32.totalorder %s5886_s20, 4   ;;  %s10516_s21 = smov %s5732_s22 }
 0x589   : > { %s10517_s22 = smov %s5736_s23  ;;  %s10518_s23 = smov %s5902_s7 }
 0x58a   : > { %s10519_s24 = smov %s5886_s20  ;;  %23 = sbr.rel (!%p21_p1) target bundleno = 7 (0x7), region = 105 }
 0x58f   :  { %4692 = vsyncpa [#allocation3], 1 }
 0x590   :  { %4694 = vsyncpa [#allocation3 + $0x1], 1 }
 0x591   :  { %4695 = vsyncpa [#allocation6], 1 }
 0x592   :  { %4696 = vsyncpa [#allocation9], 1 }
 0x593   :  { %4697 = vsyncpa [#allocation4], 1 }
 0x594   :  { %4699 = vsyncpa [#allocation4 + $0x1], 1 }

</bundles_post_ra>
